<compile_context>
chip_gen: v6e
topology: v6e:2x2x1
jax: 0.10.0
libtpu: 0.0.40
codegen_flags: <defaults>
</compile_context>

<pallas_src>
import functools
import math

import jax
import jax.numpy as jnp
from jax.experimental import pallas as pl
from jax.experimental.pallas import tpu as pltpu


def _vmem():
    return pl.BlockSpec(memory_space=pltpu.MemorySpace.VMEM)


def _smem():
    return pl.BlockSpec(memory_space=pltpu.MemorySpace.SMEM)


def _conv_w(w):
    """PyTorch conv weight (OC, IC, KH, KW) -> (KH*KW*IC, OC) bf16, feature order (kh, kw, ic)."""
    oc, ic, kh, kw = w.shape
    return jnp.transpose(w, (2, 3, 1, 0)).reshape(kh * kw * ic, oc).astype(jnp.bfloat16)


def _bias(b):
    return b.reshape(1, -1).astype(jnp.float32)


# -----------------------------------------------------------------------------
# Kernel 1: PatchDownConv  ->  out = skip + alpha * (patches @ W + b)
# -----------------------------------------------------------------------------
def _patchdown_kernel(alpha_ref, p_ref, w_ref, b_ref, skip_ref, o_ref):
    a = alpha_ref[0, 0]
    y = jnp.dot(p_ref[...].astype(jnp.bfloat16), w_ref[...],
                preferred_element_type=jnp.float32)
    o_ref[...] = skip_ref[...] + a * (y + b_ref[...])


# -----------------------------------------------------------------------------
# Kernel 2: fused ResidualBlock on the padded-flat activation
#   out = skip + conv3x3(relu(conv3x3(relu(x)))),  zero padding enforced by mask
# -----------------------------------------------------------------------------
def _resblock_kernel(*refs, offs, R, n_pad, identity_skip):
    if identity_skip:
        x_ref, m_ref, w1_ref, b1_ref, w2_ref, b2_ref, o_ref, xs_sc, h_sc = refs
        skip_ref = None
    else:
        x_ref, m_ref, w1_ref, b1_ref, w2_ref, b2_ref, skip_ref, o_ref, xs_sc, h_sc = refs

    cin = x_ref.shape[1]
    cmid = w1_ref.shape[1]
    x = x_ref[...]                               # (R, Cin), padding rows are zero
    mask = m_ref[...]                            # (R, 1) 1.0 on interior rows

    # ---- conv1: 3x3 over relu(x); in-VMEM im2col via shifted-window slices ----
    xs_sc[0:n_pad, :] = jnp.zeros((n_pad, cin), jnp.float32)
    xs_sc[n_pad + R:, :] = jnp.zeros((n_pad, cin), jnp.float32)
    xs_sc[n_pad:n_pad + R, :] = jnp.maximum(x, 0.0)
    p1 = jnp.concatenate(
        [xs_sc[n_pad + off:n_pad + off + R, :] for off in offs], axis=1)
    h = jnp.dot(p1.astype(jnp.bfloat16), w1_ref[...],
                preferred_element_type=jnp.float32) + b1_ref[...]
    h = jnp.maximum(h, 0.0) * mask               # zero at padding rows

    # ---- conv2: 3x3 over h ----
    h_sc[0:n_pad, :] = jnp.zeros((n_pad, cmid), jnp.float32)
    h_sc[n_pad + R:, :] = jnp.zeros((n_pad, cmid), jnp.float32)
    h_sc[n_pad:n_pad + R, :] = h
    p2 = jnp.concatenate(
        [h_sc[n_pad + off:n_pad + off + R, :] for off in offs], axis=1)
    y = jnp.dot(p2.astype(jnp.bfloat16), w2_ref[...],
                preferred_element_type=jnp.float32) + b2_ref[...]

    skip = x if identity_skip else skip_ref[...]
    o_ref[...] = y * mask + skip                 # padding rows stay exactly zero


def residual_block_pf(x_pf, mask_pf, blk, padded_w, skip_pf=None):
    """Fused ResidualBlock.  x_pf: (R, Cin) padded-flat NHWC activation."""
    R, cin = x_pf.shape
    w1 = _conv_w(blk["w1"]); b1 = _bias(blk["b1"])
    w2 = _conv_w(blk["w2"]); b2 = _bias(blk["b2"])
    cmid, cout = w1.shape[1], w2.shape[1]
    n_pad = ((padded_w + 1 + 7) // 8) * 8        # >= max |offset|, sublane aligned
    offs = tuple((dy - 1) * padded_w + (dx - 1) for dy in range(3) for dx in range(3))
    identity = skip_pf is None
    inputs = [x_pf, mask_pf, w1, b1, w2, b2] + ([] if identity else [skip_pf])
    kern = functools.partial(_resblock_kernel, offs=offs, R=R, n_pad=n_pad,
                             identity_skip=identity)
    return pl.pallas_call(
        kern,
        out_shape=jax.ShapeDtypeStruct((R, cout), jnp.float32),
        in_specs=[_vmem() for _ in inputs],
        out_specs=_vmem(),
        scratch_shapes=[pltpu.VMEM((R + 2 * n_pad, cin), jnp.float32),
                        pltpu.VMEM((R + 2 * n_pad, cmid), jnp.float32)],
    )(*inputs)


# -----------------------------------------------------------------------------
# Kernel 3: fused AggressiveConvToGestalt + skip + sigmoid
# -----------------------------------------------------------------------------
def _acg_kernel(p1_ref, w1_ref, b1_ref, w2_ref, b2_ref, gskip_ref, o_ref, *, n_obj, n_taps):
    h = jnp.dot(p1_ref[...].astype(jnp.bfloat16), w1_ref[...],
                preferred_element_type=jnp.float32) + b1_ref[...]
    h = jnp.maximum(h, 0.0)                                  # (n_taps*n_obj, G)
    hw = jnp.concatenate([h[t * n_obj:(t + 1) * n_obj, :] for t in range(n_taps)], axis=1)
    g = jnp.dot(hw.astype(jnp.bfloat16), w2_ref[...],
                preferred_element_type=jnp.float32) + b2_ref[...] + gskip_ref[...]
    o_ref[...] = jax.nn.sigmoid(g)


# -----------------------------------------------------------------------------
# Kernel 4: fused position / std / priority heads
# -----------------------------------------------------------------------------
def _heads_kernel(alpha_ref, z_ref, gx_ref, gy_ref, o_ref, *, n_pix):
    z = z_ref[...]                                           # (BO, 3*n_pix) channel-major lanes
    c0 = z[:, 0:n_pix]
    c1 = z[:, n_pix:2 * n_pix]
    c2 = z[:, 2 * n_pix:3 * n_pix]
    # PixelToSTD: ForcedAlpha * mean(sigmoid(c0 - 10))
    std = alpha_ref[0, 0] * jnp.mean(jax.nn.sigmoid(c0 - 10.0), axis=-1, keepdims=True)
    # PixelToPosition: softmax over pixels, expectation against coordinate grids
    m = jnp.max(c1, axis=-1, keepdims=True)
    e = jnp.exp(c1 - m)
    p = e / jnp.sum(e, axis=-1, keepdims=True)
    x = jnp.sum(p * gx_ref[...], axis=-1, keepdims=True)
    y = jnp.sum(p * gy_ref[...], axis=-1, keepdims=True)
    # PixelToPriority: mean(tanh(c2))
    pri = jnp.mean(jnp.tanh(c2), axis=-1, keepdims=True)
    o_ref[...] = jnp.concatenate([x, y, std, pri], axis=-1)  # single (BO, 4) store


# -----------------------------------------------------------------------------
# JAX glue (boundary rearranges, tiny reductions, inferred helper modules)
# -----------------------------------------------------------------------------
def skip_channels_nhwc(x, out_c):
    """SkipConnection channel path on NHWC ('(c n)' grouping of the reference)."""
    in_c = x.shape[-1]
    if in_c == out_c:
        return x
    if out_c > in_c:
        return jnp.repeat(x, out_c // in_c, axis=-1)
    n = in_c // out_c
    s = x.shape
    return x.reshape(s[:-1] + (out_c, n)).mean(axis=-1)


def gaus2d(pos, size):
    # TODO(synk): Gaus2D is an external Loci helper not provided in the prompt;
    # re-implemented as the standard isotropic gaussian bump used there.
    H, W = size
    x = jnp.clip(pos[:, 0:1], -1.0, 1.0)[:, :, None, None]
    y = jnp.clip(pos[:, 1:2], -1.0, 1.0)[:, :, None, None]
    std = jnp.clip(pos[:, 2:3], 0.0, 1.0)[:, :, None, None]
    gx = (jnp.arange(H, dtype=jnp.float32) / (H - 1) * 2.0 - 1.0).reshape(1, 1, H, 1)
    gy = (jnp.arange(W, dtype=jnp.float32) / (W - 1) * 2.0 - 1.0).reshape(1, 1, 1, W)
    return jnp.exp(-((gx - x) ** 2 + (gy - y) ** 2) / (2.0 * std ** 2 + 1e-16))


# -----------------------------------------------------------------------------
# LociEncoder forward (level == 1, the module default)
# -----------------------------------------------------------------------------
def loci_encoder_forward(params, input_img, error, mask, object_, position, rawmask, *, cfg):
    f32 = jnp.float32
    B, c_img, H, W = input_img.shape
    O = cfg["num_objects"]
    c_obj = object_.shape[1] // O
    L1, HID, G = cfg["level1_channels"], cfg["hidden_channels"], cfg["gestalt_size"]
    Lh, Lw = cfg["latent_size"]
    BO = B * O

    # -------- InputPreprocessing[1] (built NCHW, one boundary transpose to NHWC) ------
    bg_mask = jnp.broadcast_to(mask[:, -1:, :, :], (B, O, H, W))
    obj_mask = mask[:, :-1]
    mask_others = jnp.sum(obj_mask, axis=1, keepdims=True) - obj_mask      # NeighbourChannels
    raw = rawmask[:, :-1]
    own_gaus = gaus2d(position.reshape(BO, 3), (H, W)).reshape(B, O, H, W)

    inp = jnp.broadcast_to(input_img[:, None], (B, O, c_img, H, W))
    err = jnp.broadcast_to(error[:, None], (B, O, 1, H, W))
    obj = object_.reshape(B, O, c_obj, H, W)
    cat = jnp.concatenate(
        [inp, err, obj_mask[:, :, None], mask_others[:, :, None], bg_mask[:, :, None],
         obj, own_gaus[:, :, None], raw[:, :, None]], axis=2)
    c_in = c_img + c_obj + 6
    x = cat.reshape(BO, c_in, H, W).astype(f32)
    x = jnp.transpose(x, (0, 2, 3, 1))                                     # NHWC from here on

    # -------- to_channels[1]: SkipConnection(img_channels, level1_channels) --------
    x = skip_channels_nhwc(x, L1)                                          # (BO, H, W, L1)

    # -------- layers1: PatchDownConv(L1, HID, k=4, alpha learned) --------
    k = 4
    h1, w1s = H // k, W // k
    xb = x.reshape(BO, h1, k, w1s, k, L1)
    skip = jnp.repeat(xb.mean(axis=(2, 4)), HID // L1, axis=-1)            # (BO,h1,w1,HID)
    patches = jnp.transpose(xb, (0, 1, 3, 2, 4, 5)).reshape(BO * h1 * w1s, k * k * L1)
    pd_out = pl.pallas_call(
        _patchdown_kernel,
        out_shape=jax.ShapeDtypeStruct((BO * h1 * w1s, HID), f32),
        in_specs=[_smem(), _vmem(), _vmem(), _vmem(), _vmem()],
        out_specs=_vmem(),
    )(jnp.asarray(params["l1_alpha"], f32).reshape(1, 1),
      patches, _conv_w(params["l1_w"]), _bias(params["l1_b"]),
      skip.reshape(BO * h1 * w1s, HID))

    # -------- padded-flat layout used for the whole residual stack --------
    Sp, Tp = Lh + 2, Lw + 2
    R = BO * Sp * Tp

    def to_pf(img):
        return jnp.pad(img, ((0, 0), (1, 1), (1, 1), (0, 0))).reshape(R, img.shape[-1])

    def from_pf(pf):
        return pf.reshape(BO, Sp, Tp, -1)[:, 1:1 + Lh, 1:1 + Lw, :]

    mask_pf = to_pf(jnp.ones((BO, Lh, Lw, 1), f32))
    x_pf = to_pf(pd_out.reshape(BO, Lh, Lw, HID))

    # -------- layers0 --------
    for blk in params["layers0"]:
        x_pf = residual_block_pf(x_pf, mask_pf, blk, Tp)

    # -------- gestalt encoder: ResBlocks + fused AggressiveConvToGestalt + sigmoid ----
    g_pf = x_pf
    for blk in params["gest_res"]:
        g_pf = residual_block_pf(g_pf, mask_pf, blk, Tp)
    g_img = from_pf(g_pf)                                                  # (BO, Lh, Lw, HID)
    gskip = jnp.repeat(g_img.mean(axis=(1, 2)), G // HID, axis=-1)         # (BO, G)
    gpad = jnp.pad(g_img, ((0, 0), (3, 3), (3, 3), (0, 0)))                # conv1 pad=3
    oy_n = (Lh + 2 * 3 - 5) // 3 + 1
    ox_n = (Lw + 2 * 3 - 5) // 3 + 1
    wins = []
    for oy in range(oy_n):                                                 # tap-major rows
        for ox in range(ox_n):
            wins.append(gpad[:, 3 * oy:3 * oy + 5, 3 * ox:3 * ox + 5, :].reshape(BO, 25 * HID))
    p1 = jnp.concatenate(wins, axis=0)                                     # (taps*BO, 25*HID)
    gestalt = pl.pallas_call(
        functools.partial(_acg_kernel, n_obj=BO, n_taps=oy_n * ox_n),
        out_shape=jax.ShapeDtypeStruct((BO, G), f32),
        in_specs=[_vmem()] * 6,
        out_specs=_vmem(),
    )(p1, _conv_w(params["acg_w1"]), _bias(params["acg_b1"]),
      _conv_w(params["acg_w2"]), _bias(params["acg_b2"]), gskip)

    # -------- position encoder --------
    z_pf = x_pf
    for blk in params["pos_res"]:
        z_pf = residual_block_pf(z_pf, mask_pf, blk, Tp)
    pos_skip = z_pf.reshape(R, 3, HID // 3).mean(axis=-1)                  # SkipConnection(HID,3)
    z_pf = residual_block_pf(z_pf, mask_pf, params["pos_last"], Tp, skip_pf=pos_skip)

    # -------- heads --------
    n_pix = Lh * Lw
    z_cm = jnp.transpose(from_pf(z_pf), (0, 3, 1, 2)).reshape(BO, 3 * n_pix)
    gx = jnp.broadcast_to((jnp.arange(Lh, dtype=f32) / (Lh - 1) * 2.0 - 1.0)[:, None],
                          (Lh, Lw)).reshape(1, n_pix)
    gy = jnp.broadcast_to((jnp.arange(Lw, dtype=f32) / (Lw - 1) * 2.0 - 1.0)[None, :],
                          (Lh, Lw)).reshape(1, n_pix)
    heads = pl.pallas_call(
        functools.partial(_heads_kernel, n_pix=n_pix),
        out_shape=jax.ShapeDtypeStruct((BO, 4), f32),
        in_specs=[_smem(), _vmem(), _vmem(), _vmem()],
        out_specs=_vmem(),
    )(jnp.asarray(params["std_alpha"], f32).reshape(1, 1), z_cm, gx, gy)

    # -------- to_shared: '(b o) c -> b (o c)' --------
    position_out = heads[:, 0:3].reshape(B, O * 3)                         # [x, y, std]
    gestalt_out = gestalt.reshape(B, O * G)
    priority_out = heads[:, 3:4].reshape(B, O)
    return position_out, gestalt_out, priority_out


# -----------------------------------------------------------------------------
# Deterministic parameter initialization (shapes follow the module __init__,
# weights stored in PyTorch (OC, IC, KH, KW) layout)
# -----------------------------------------------------------------------------
def _conv_params(key, oc, ic, kh, kw):
    kw_, kb_ = jax.random.split(key)
    scale = 0.5 / math.sqrt(ic * kh * kw)
    w = jax.random.normal(kw_, (oc, ic, kh, kw), jnp.float32) * scale
    b = jax.random.normal(kb_, (oc,), jnp.float32) * 0.01
    return w, b


def _res_params(key, ic, oc):
    k1, k2 = jax.random.split(key)
    w1, b1 = _conv_params(k1, oc, ic, 3, 3)
    w2, b2 = _conv_params(k2, oc, oc, 3, 3)
    return {"w1": w1, "b1": b1, "w2": w2, "b2": b2}


def init_params(key, level1_channels, hidden_channels, num_layers, gestalt_size, latent_size):
    n = 3 * num_layers + 4
    keys = jax.random.split(key, n)
    it = iter(range(n))
    p = {}
    p["l1_w"], p["l1_b"] = _conv_params(keys[next(it)], hidden_channels, level1_channels, 4, 4)
    p["l1_alpha"] = 1.0                       # PatchDownConv alpha init = th.zeros(1) + 1
    p["layers0"] = [_res_params(keys[next(it)], hidden_channels, hidden_channels)
                    for _ in range(num_layers)]
    p["gest_res"] = [_res_params(keys[next(it)], hidden_channels, hidden_channels)
                     for _ in range(num_layers)]
    kh = (latent_size[0] + 1) // 3 + 1
    kw = (latent_size[1] + 1) // 3 + 1
    p["acg_w1"], p["acg_b1"] = _conv_params(keys[next(it)], gestalt_size, hidden_channels, 5, 5)
    p["acg_w2"], p["acg_b2"] = _conv_params(keys[next(it)], gestalt_size, gestalt_size, kh, kw)
    p["pos_res"] = [_res_params(keys[next(it)], hidden_channels, hidden_channels)
                    for _ in range(num_layers)]
    p["pos_last"] = _res_params(keys[next(it)], hidden_channels, 3)
    # TODO(synk): ForcedAlpha inside PixelToSTD not provided; alpha = tanh(init), init != 0.
    p["std_alpha"] = math.tanh(1.0)
    return p


# -----------------------------------------------------------------------------
if __name__ == "__main__":
    key = jax.random.PRNGKey(0)

    # Module configuration (small, consistent with the forward pass at level 1)
    B, O = 2, 3
    input_size = (64, 64)                                       # full-resolution size
    latent_size = (input_size[0] // 16, input_size[1] // 16)    # (4, 4)
    H, W = input_size[0] // 4, input_size[1] // 4               # level-1 spatial (16, 16)
    c_img, c_obj = 3, 3
    level1_channels, hidden_channels = 24, 48
    num_layers = 1
    gestalt_size = 96

    ks = jax.random.split(key, 7)
    input_img = jax.random.uniform(ks[0], (B, c_img, H, W), jnp.float32)
    error = jax.random.uniform(ks[1], (B, 1, H, W), jnp.float32)
    mask = jax.nn.softmax(jax.random.normal(ks[2], (B, O + 1, H, W), jnp.float32), axis=1)
    object_ = jax.random.uniform(ks[3], (B, O * c_obj, H, W), jnp.float32)
    position = jax.random.uniform(ks[4], (B, O * 3), jnp.float32, minval=-1.0, maxval=1.0)
    rawmask = jax.nn.softmax(jax.random.normal(ks[5], (B, O + 1, H, W), jnp.float32), axis=1)

    params = init_params(ks[6], level1_channels, hidden_channels, num_layers,
                         gestalt_size, latent_size)
    cfg = {"num_objects": O, "level1_channels": level1_channels,
           "hidden_channels": hidden_channels, "gestalt_size": gestalt_size,
           "latent_size": latent_size}

    fwd = jax.jit(functools.partial(loci_encoder_forward, cfg=cfg))
    pos_out, gestalt_out, priority_out = fwd(
        params, input_img, error, mask, object_, position, rawmask)
    jax.block_until_ready((pos_out, gestalt_out, priority_out))

    assert pos_out.shape == (B, O * 3)
    assert gestalt_out.shape == (B, O * gestalt_size)
    assert priority_out.shape == (B, O)
    assert bool(jnp.all(jnp.isfinite(pos_out)))
    assert bool(jnp.all(jnp.isfinite(gestalt_out)))
    assert bool(jnp.all(jnp.isfinite(priority_out)))
    print("KERNEL_OK")
</pallas_src>

<mosaic_0001>
module attributes {stable_mosaic.version = 11 : i64} {
  func.func @_patchdown_kernel(%arg0: memref<1x1xf32, #tpu.memory_space<smem>>, %arg1: memref<96x384xf32, #tpu.memory_space<vmem>>, %arg2: memref<384x48xbf16, #tpu.memory_space<vmem>>, %arg3: memref<1x48xf32, #tpu.memory_space<vmem>>, %arg4: memref<96x48xf32, #tpu.memory_space<vmem>>, %arg5: memref<96x48xf32, #tpu.memory_space<vmem>>) attributes {dimension_semantics = [], scalar_prefetch = 0 : i64, scratch_operands = 0 : i64, tpu.core_type = #tpu.core_type<tc>} {
    %c0 = arith.constant 0 : index
    %c0_0 = arith.constant 0 : index
    %0 = memref.load %arg0[%c0, %c0_0] : memref<1x1xf32, #tpu.memory_space<smem>>
    %c0_1 = arith.constant 0 : index
    %c0_2 = arith.constant 0 : index
    %1 = vector.load %arg1[%c0_1, %c0_2] : memref<96x384xf32, #tpu.memory_space<vmem>>, vector<96x384xf32>
    %2 = arith.truncf %1 : vector<96x384xf32> to vector<96x384xbf16>
    %c0_3 = arith.constant 0 : index
    %c0_4 = arith.constant 0 : index
    %3 = vector.load %arg2[%c0_3, %c0_4] : memref<384x48xbf16, #tpu.memory_space<vmem>>, vector<384x48xbf16>
    %cst = arith.constant dense<0.000000e+00> : vector<96x48xf32>
    %4 = tpu.matmul %2, %3, %cst {dimension_numbers = #tpu.dot_dimension_numbers<[1], [0], [0], [1], [0, 0, 1, 1], [], []>} : vector<96x384xbf16>, vector<384x48xbf16>, vector<96x48xf32> -> vector<96x48xf32>
    %c0_5 = arith.constant 0 : index
    %c0_6 = arith.constant 0 : index
    %5 = vector.load %arg4[%c0_5, %c0_6] : memref<96x48xf32, #tpu.memory_space<vmem>>, vector<96x48xf32>
    %c0_7 = arith.constant 0 : index
    %c0_8 = arith.constant 0 : index
    %6 = vector.load %arg3[%c0_7, %c0_8] : memref<1x48xf32, #tpu.memory_space<vmem>>, vector<1x48xf32>
    %7 = vector.broadcast %6 : vector<1x48xf32> to vector<96x48xf32>
    %8 = arith.addf %4, %7 : vector<96x48xf32>
    %9 = vector.broadcast %0 : f32 to vector<96x48xf32>
    %10 = arith.mulf %9, %8 : vector<96x48xf32>
    %11 = arith.addf %5, %10 : vector<96x48xf32>
    %c0_9 = arith.constant 0 : index
    %c0_10 = arith.constant 0 : index
    %12 = vector.load %arg5[%c0_9, %c0_10] : memref<96x48xf32, #tpu.memory_space<vmem>>, vector<96x48xf32>
    tpu.vector_store %arg5[%c0_9, %c0_10], %11 {strides = array<i32>} : memref<96x48xf32, #tpu.memory_space<vmem>>, vector<96x48xf32>,
    return
  }
}

module attributes {stable_mosaic.version = 11 : i64} {
  func.func @_resblock_kernel(%arg0: memref<216x48xf32, #tpu.memory_space<vmem>>, %arg1: memref<216x1xf32, #tpu.memory_space<vmem>>, %arg2: memref<432x48xbf16, #tpu.memory_space<vmem>>, %arg3: memref<1x48xf32, #tpu.memory_space<vmem>>, %arg4: memref<432x48xbf16, #tpu.memory_space<vmem>>, %arg5: memref<1x48xf32, #tpu.memory_space<vmem>>, %arg6: memref<216x48xf32, #tpu.memory_space<vmem>>, %arg7: memref<232x48xf32, #tpu.memory_space<vmem>>, %arg8: memref<232x48xf32, #tpu.memory_space<vmem>>) attributes {dimension_semantics = [], scalar_prefetch = 0 : i64, scratch_operands = 2 : i64, tpu.core_type = #tpu.core_type<tc>} {
    %c0 = arith.constant 0 : index
    %c0_0 = arith.constant 0 : index
    %0 = vector.load %arg0[%c0, %c0_0] : memref<216x48xf32, #tpu.memory_space<vmem>>, vector<216x48xf32>
    %c0_1 = arith.constant 0 : index
    %c0_2 = arith.constant 0 : index
    %1 = vector.load %arg1[%c0_1, %c0_2] : memref<216x1xf32, #tpu.memory_space<vmem>>, vector<216x1xf32>
    %cst = arith.constant 0.000000e+00 : f32
    %2 = vector.broadcast %cst : f32 to vector<8x48xf32>
    %c0_3 = arith.constant 0 : index
    %c0_4 = arith.constant 0 : index
    %3 = vector.load %arg7[%c0_3, %c0_4] : memref<232x48xf32, #tpu.memory_space<vmem>>, vector<8x48xf32>
    tpu.vector_store %arg7[%c0_3, %c0_4], %2 {strides = array<i32>} : memref<232x48xf32, #tpu.memory_space<vmem>>, vector<8x48xf32>,
    %cst_5 = arith.constant 0.000000e+00 : f32
    %4 = vector.broadcast %cst_5 : f32 to vector<8x48xf32>
    %c224 = arith.constant 224 : index
    %c0_6 = arith.constant 0 : index
    %5 = vector.load %arg7[%c224, %c0_6] : memref<232x48xf32, #tpu.memory_space<vmem>>, vector<8x48xf32>
    tpu.vector_store %arg7[%c224, %c0_6], %4 {strides = array<i32>} : memref<232x48xf32, #tpu.memory_space<vmem>>, vector<8x48xf32>,
    %cst_7 = arith.constant 0.000000e+00 : f32
    %6 = vector.broadcast %cst_7 : f32 to vector<216x48xf32>
    %7 = arith.maximumf %0, %6 : vector<216x48xf32>
    %c8 = arith.constant 8 : index
    %c0_8 = arith.constant 0 : index
    %8 = vector.load %arg7[%c8, %c0_8] : memref<232x48xf32, #tpu.memory_space<vmem>>, vector<216x48xf32>
    tpu.vector_store %arg7[%c8, %c0_8], %7 {strides = array<i32>} : memref<232x48xf32, #tpu.memory_space<vmem>>, vector<216x48xf32>,
    %c1 = arith.constant 1 : index
    %c0_9 = arith.constant 0 : index
    %9 = vector.load %arg7[%c1, %c0_9] : memref<232x48xf32, #tpu.memory_space<vmem>>, vector<216x48xf32>
    %c2 = arith.constant 2 : index
    %c0_10 = arith.constant 0 : index
    %10 = vector.load %arg7[%c2, %c0_10] : memref<232x48xf32, #tpu.memory_space<vmem>>, vector<216x48xf32>
    %c3 = arith.constant 3 : index
    %c0_11 = arith.constant 0 : index
    %11 = vector.load %arg7[%c3, %c0_11] : memref<232x48xf32, #tpu.memory_space<vmem>>, vector<216x48xf32>
    %c7 = arith.constant 7 : index
    %c0_12 = arith.constant 0 : index
    %12 = vector.load %arg7[%c7, %c0_12] : memref<232x48xf32, #tpu.memory_space<vmem>>, vector<216x48xf32>
    %c8_13 = arith.constant 8 : index
    %c0_14 = arith.constant 0 : index
    %13 = vector.load %arg7[%c8_13, %c0_14] : memref<232x48xf32, #tpu.memory_space<vmem>>, vector<216x48xf32>
    %c9 = arith.constant 9 : index
    %c0_15 = arith.constant 0 : index
    %14 = vector.load %arg7[%c9, %c0_15] : memref<232x48xf32, #tpu.memory_space<vmem>>, vector<216x48xf32>
    %c13 = arith.constant 13 : index
    %c0_16 = arith.constant 0 : index
    %15 = vector.load %arg7[%c13, %c0_16] : memref<232x48xf32, #tpu.memory_space<vmem>>, vector<216x48xf32>
    %c14 = arith.constant 14 : index
    %c0_17 = arith.constant 0 : index
    %16 = vector.load %arg7[%c14, %c0_17] : memref<232x48xf32, #tpu.memory_space<vmem>>, vector<216x48xf32>
    %c15 = arith.constant 15 : index
    %c0_18 = arith.constant 0 : index
    %17 = vector.load %arg7[%c15, %c0_18] : memref<232x48xf32, #tpu.memory_space<vmem>>, vector<216x48xf32>
    %18 = tpu.concatenate %9, %10, %11, %12, %13, %14, %15, %16, %17 in 1 : vector<216x48xf32>, vector<216x48xf32>, vector<216x48xf32>, vector<216x48xf32>, vector<216x48xf32>, vector<216x48xf32>, vector<216x48xf32>, vector<216x48xf32>, vector<216x48xf32> -> vector<216x432xf32>
    %19 = arith.truncf %18 : vector<216x432xf32> to vector<216x432xbf16>
    %c0_19 = arith.constant 0 : index
    %c0_20 = arith.constant 0 : index
    %20 = vector.load %arg2[%c0_19, %c0_20] : memref<432x48xbf16, #tpu.memory_space<vmem>>, vector<432x48xbf16>
    %cst_21 = arith.constant dense<0.000000e+00> : vector<216x48xf32>
    %21 = tpu.matmul %19, %20, %cst_21 {dimension_numbers = #tpu.dot_dimension_numbers<[1], [0], [0], [1], [0, 0, 1, 1], [], []>} : vector<216x432xbf16>, vector<432x48xbf16>, vector<216x48xf32> -> vector<216x48xf32>
    %c0_22 = arith.constant 0 : index
    %c0_23 = arith.constant 0 : index
    %22 = vector.load %arg3[%c0_22, %c0_23] : memref<1x48xf32, #tpu.memory_space<vmem>>, vector<1x48xf32>
    %23 = vector.broadcast %22 : vector<1x48xf32> to vector<216x48xf32>
    %24 = arith.addf %21, %23 : vector<216x48xf32>
    %cst_24 = arith.constant 0.000000e+00 : f32
    %25 = vector.broadcast %cst_24 : f32 to vector<216x48xf32>
    %26 = arith.maximumf %24, %25 : vector<216x48xf32>
    %27 = vector.broadcast %1 : vector<216x1xf32> to vector<216x48xf32>
    %28 = arith.mulf %26, %27 : vector<216x48xf32>
    %cst_25 = arith.constant 0.000000e+00 : f32
    %29 = vector.broadcast %cst_25 : f32 to vector<8x48xf32>
    %c0_26 = arith.constant 0 : index
    %c0_27 = arith.constant 0 : index
    %30 = vector.load %arg8[%c0_26, %c0_27] : memref<232x48xf32, #tpu.memory_space<vmem>>, vector<8x48xf32>
    tpu.vector_store %arg8[%c0_26, %c0_27], %29 {strides = array<i32>} : memref<232x48xf32, #tpu.memory_space<vmem>>, vector<8x48xf32>,
    %cst_28 = arith.constant 0.000000e+00 : f32
    %31 = vector.broadcast %cst_28 : f32 to vector<8x48xf32>
    %c224_29 = arith.constant 224 : index
    %c0_30 = arith.constant 0 : index
    %32 = vector.load %arg8[%c224_29, %c0_30] : memref<232x48xf32, #tpu.memory_space<vmem>>, vector<8x48xf32>
    tpu.vector_store %arg8[%c224_29, %c0_30], %31 {strides = array<i32>} : memref<232x48xf32, #tpu.memory_space<vmem>>, vector<8x48xf32>,
    %c8_31 = arith.constant 8 : index
    %c0_32 = arith.constant 0 : index
    %33 = vector.load %arg8[%c8_31, %c0_32] : memref<232x48xf32, #tpu.memory_space<vmem>>, vector<216x48xf32>
    tpu.vector_store %arg8[%c8_31, %c0_32], %28 {strides = array<i32>} : memref<232x48xf32, #tpu.memory_space<vmem>>, vector<216x48xf32>,
    %c1_33 = arith.constant 1 : index
    %c0_34 = arith.constant 0 : index
    %34 = vector.load %arg8[%c1_33, %c0_34] : memref<232x48xf32, #tpu.memory_space<vmem>>, vector<216x48xf32>
    %c2_35 = arith.constant 2 : index
    %c0_36 = arith.constant 0 : index
    %35 = vector.load %arg8[%c2_35, %c0_36] : memref<232x48xf32, #tpu.memory_space<vmem>>, vector<216x48xf32>
    %c3_37 = arith.constant 3 : index
    %c0_38 = arith.constant 0 : index
    %36 = vector.load %arg8[%c3_37, %c0_38] : memref<232x48xf32, #tpu.memory_space<vmem>>, vector<216x48xf32>
    %c7_39 = arith.constant 7 : index
    %c0_40 = arith.constant 0 : index
    %37 = vector.load %arg8[%c7_39, %c0_40] : memref<232x48xf32, #tpu.memory_space<vmem>>, vector<216x48xf32>
    %c8_41 = arith.constant 8 : index
    %c0_42 = arith.constant 0 : index
    %38 = vector.load %arg8[%c8_41, %c0_42] : memref<232x48xf32, #tpu.memory_space<vmem>>, vector<216x48xf32>
    %c9_43 = arith.constant 9 : index
    %c0_44 = arith.constant 0 : index
    %39 = vector.load %arg8[%c9_43, %c0_44] : memref<232x48xf32, #tpu.memory_space<vmem>>, vector<216x48xf32>
    %c13_45 = arith.constant 13 : index
    %c0_46 = arith.constant 0 : index
    %40 = vector.load %arg8[%c13_45, %c0_46] : memref<232x48xf32, #tpu.memory_space<vmem>>, vector<216x48xf32>
    %c14_47 = arith.constant 14 : index
    %c0_48 = arith.constant 0 : index
    %41 = vector.load %arg8[%c14_47, %c0_48] : memref<232x48xf32, #tpu.memory_space<vmem>>, vector<216x48xf32>
    %c15_49 = arith.constant 15 : index
    %c0_50 = arith.constant 0 : index
    %42 = vector.load %arg8[%c15_49, %c0_50] : memref<232x48xf32, #tpu.memory_space<vmem>>, vector<216x48xf32>
    %43 = tpu.concatenate %34, %35, %36, %37, %38, %39, %40, %41, %42 in 1 : vector<216x48xf32>, vector<216x48xf32>, vector<216x48xf32>, vector<216x48xf32>, vector<216x48xf32>, vector<216x48xf32>, vector<216x48xf32>, vector<216x48xf32>, vector<216x48xf32> -> vector<216x432xf32>
    %44 = arith.truncf %43 : vector<216x432xf32> to vector<216x432xbf16>
    %c0_51 = arith.constant 0 : index
    %c0_52 = arith.constant 0 : index
    %45 = vector.load %arg4[%c0_51, %c0_52] : memref<432x48xbf16, #tpu.memory_space<vmem>>, vector<432x48xbf16>
    %cst_53 = arith.constant dense<0.000000e+00> : vector<216x48xf32>
    %46 = tpu.matmul %44, %45, %cst_53 {dimension_numbers = #tpu.dot_dimension_numbers<[1], [0], [0], [1], [0, 0, 1, 1], [], []>} : vector<216x432xbf16>, vector<432x48xbf16>, vector<216x48xf32> -> vector<216x48xf32>
    %c0_54 = arith.constant 0 : index
    %c0_55 = arith.constant 0 : index
    %47 = vector.load %arg5[%c0_54, %c0_55] : memref<1x48xf32, #tpu.memory_space<vmem>>, vector<1x48xf32>
    %48 = vector.broadcast %47 : vector<1x48xf32> to vector<216x48xf32>
    %49 = arith.addf %46, %48 : vector<216x48xf32>
    %50 = vector.broadcast %1 : vector<216x1xf32> to vector<216x48xf32>
    %51 = arith.mulf %49, %50 : vector<216x48xf32>
    %52 = arith.addf %51, %0 : vector<216x48xf32>
    %c0_56 = arith.constant 0 : index
    %c0_57 = arith.constant 0 : index
    %53 = vector.load %arg6[%c0_56, %c0_57] : memref<216x48xf32, #tpu.memory_space<vmem>>, vector<216x48xf32>
    tpu.vector_store %arg6[%c0_56, %c0_57], %52 {strides = array<i32>} : memref<216x48xf32, #tpu.memory_space<vmem>>, vector<216x48xf32>,
    return
  }
}

module attributes {stable_mosaic.version = 11 : i64} {
  func.func @_acg_kernel(%arg0: memref<24x1200xf32, #tpu.memory_space<vmem>>, %arg1: memref<1200x96xbf16, #tpu.memory_space<vmem>>, %arg2: memref<1x96xf32, #tpu.memory_space<vmem>>, %arg3: memref<384x96xbf16, #tpu.memory_space<vmem>>, %arg4: memref<1x96xf32, #tpu.memory_space<vmem>>, %arg5: memref<6x96xf32, #tpu.memory_space<vmem>>, %arg6: memref<6x96xf32, #tpu.memory_space<vmem>>) attributes {dimension_semantics = [], scalar_prefetch = 0 : i64, scratch_operands = 0 : i64, tpu.core_type = #tpu.core_type<tc>} {
    %c0 = arith.constant 0 : index
    %c0_0 = arith.constant 0 : index
    %0 = vector.load %arg0[%c0, %c0_0] : memref<24x1200xf32, #tpu.memory_space<vmem>>, vector<24x1200xf32>
    %1 = arith.truncf %0 : vector<24x1200xf32> to vector<24x1200xbf16>
    %c0_1 = arith.constant 0 : index
    %c0_2 = arith.constant 0 : index
    %2 = vector.load %arg1[%c0_1, %c0_2] : memref<1200x96xbf16, #tpu.memory_space<vmem>>, vector<1200x96xbf16>
    %cst = arith.constant dense<0.000000e+00> : vector<24x96xf32>
    %3 = tpu.matmul %1, %2, %cst {dimension_numbers = #tpu.dot_dimension_numbers<[1], [0], [0], [1], [0, 0, 1, 1], [], []>} : vector<24x1200xbf16>, vector<1200x96xbf16>, vector<24x96xf32> -> vector<24x96xf32>
    %c0_3 = arith.constant 0 : index
    %c0_4 = arith.constant 0 : index
    %4 = vector.load %arg2[%c0_3, %c0_4] : memref<1x96xf32, #tpu.memory_space<vmem>>, vector<1x96xf32>
    %5 = vector.broadcast %4 : vector<1x96xf32> to vector<24x96xf32>
    %6 = arith.addf %3, %5 : vector<24x96xf32>
    %cst_5 = arith.constant 0.000000e+00 : f32
    %7 = vector.broadcast %cst_5 : f32 to vector<24x96xf32>
    %8 = arith.maximumf %6, %7 : vector<24x96xf32>
    %9 = vector.extract_strided_slice %8 {offsets = [0, 0], sizes = [6, 96], strides = [1, 1]} : vector<24x96xf32> to vector<6x96xf32>
    %10 = vector.extract_strided_slice %8 {offsets = [6, 0], sizes = [6, 96], strides = [1, 1]} : vector<24x96xf32> to vector<6x96xf32>
    %11 = vector.extract_strided_slice %8 {offsets = [12, 0], sizes = [6, 96], strides = [1, 1]} : vector<24x96xf32> to vector<6x96xf32>
    %12 = vector.extract_strided_slice %8 {offsets = [18, 0], sizes = [6, 96], strides = [1, 1]} : vector<24x96xf32> to vector<6x96xf32>
    %13 = tpu.concatenate %9, %10, %11, %12 in 1 : vector<6x96xf32>, vector<6x96xf32>, vector<6x96xf32>, vector<6x96xf32> -> vector<6x384xf32>
    %14 = arith.truncf %13 : vector<6x384xf32> to vector<6x384xbf16>
    %c0_6 = arith.constant 0 : index
    %c0_7 = arith.constant 0 : index
    %15 = vector.load %arg3[%c0_6, %c0_7] : memref<384x96xbf16, #tpu.memory_space<vmem>>, vector<384x96xbf16>
    %cst_8 = arith.constant dense<0.000000e+00> : vector<6x96xf32>
    %16 = tpu.matmul %14, %15, %cst_8 {dimension_numbers = #tpu.dot_dimension_numbers<[1], [0], [0], [1], [0, 0, 1, 1], [], []>} : vector<6x384xbf16>, vector<384x96xbf16>, vector<6x96xf32> -> vector<6x96xf32>
    %c0_9 = arith.constant 0 : index
    %c0_10 = arith.constant 0 : index
    %17 = vector.load %arg4[%c0_9, %c0_10] : memref<1x96xf32, #tpu.memory_space<vmem>>, vector<1x96xf32>
    %18 = vector.broadcast %17 : vector<1x96xf32> to vector<6x96xf32>
    %19 = arith.addf %16, %18 : vector<6x96xf32>
    %c0_11 = arith.constant 0 : index
    %c0_12 = arith.constant 0 : index
    %20 = vector.load %arg5[%c0_11, %c0_12] : memref<6x96xf32, #tpu.memory_space<vmem>>, vector<6x96xf32>
    %21 = arith.addf %19, %20 : vector<6x96xf32>
    %22 = arith.negf %21 : vector<6x96xf32>
    %23 = math.exp %22 : vector<6x96xf32>
    %cst_13 = arith.constant 1.000000e+00 : f32
    %24 = vector.broadcast %cst_13 : f32 to vector<6x96xf32>
    %25 = arith.addf %24, %23 : vector<6x96xf32>
    %26 = arith.divf %24, %25 : vector<6x96xf32>
    %c0_14 = arith.constant 0 : index
    %c0_15 = arith.constant 0 : index
    %27 = vector.load %arg6[%c0_14, %c0_15] : memref<6x96xf32, #tpu.memory_space<vmem>>, vector<6x96xf32>
    tpu.vector_store %arg6[%c0_14, %c0_15], %26 {strides = array<i32>} : memref<6x96xf32, #tpu.memory_space<vmem>>, vector<6x96xf32>,
    return
  }
}

module attributes {stable_mosaic.version = 11 : i64} {
  func.func @_resblock_kernel(%arg0: memref<216x48xf32, #tpu.memory_space<vmem>>, %arg1: memref<216x1xf32, #tpu.memory_space<vmem>>, %arg2: memref<432x3xbf16, #tpu.memory_space<vmem>>, %arg3: memref<1x3xf32, #tpu.memory_space<vmem>>, %arg4: memref<27x3xbf16, #tpu.memory_space<vmem>>, %arg5: memref<1x3xf32, #tpu.memory_space<vmem>>, %arg6: memref<216x3xf32, #tpu.memory_space<vmem>>, %arg7: memref<216x3xf32, #tpu.memory_space<vmem>>, %arg8: memref<232x48xf32, #tpu.memory_space<vmem>>, %arg9: memref<232x3xf32, #tpu.memory_space<vmem>>) attributes {dimension_semantics = [], scalar_prefetch = 0 : i64, scratch_operands = 2 : i64, tpu.core_type = #tpu.core_type<tc>} {
    %c0 = arith.constant 0 : index
    %c0_0 = arith.constant 0 : index
    %0 = vector.load %arg0[%c0, %c0_0] : memref<216x48xf32, #tpu.memory_space<vmem>>, vector<216x48xf32>
    %c0_1 = arith.constant 0 : index
    %c0_2 = arith.constant 0 : index
    %1 = vector.load %arg1[%c0_1, %c0_2] : memref<216x1xf32, #tpu.memory_space<vmem>>, vector<216x1xf32>
    %cst = arith.constant 0.000000e+00 : f32
    %2 = vector.broadcast %cst : f32 to vector<8x48xf32>
    %c0_3 = arith.constant 0 : index
    %c0_4 = arith.constant 0 : index
    %3 = vector.load %arg8[%c0_3, %c0_4] : memref<232x48xf32, #tpu.memory_space<vmem>>, vector<8x48xf32>
    tpu.vector_store %arg8[%c0_3, %c0_4], %2 {strides = array<i32>} : memref<232x48xf32, #tpu.memory_space<vmem>>, vector<8x48xf32>,
    %cst_5 = arith.constant 0.000000e+00 : f32
    %4 = vector.broadcast %cst_5 : f32 to vector<8x48xf32>
    %c224 = arith.constant 224 : index
    %c0_6 = arith.constant 0 : index
    %5 = vector.load %arg8[%c224, %c0_6] : memref<232x48xf32, #tpu.memory_space<vmem>>, vector<8x48xf32>
    tpu.vector_store %arg8[%c224, %c0_6], %4 {strides = array<i32>} : memref<232x48xf32, #tpu.memory_space<vmem>>, vector<8x48xf32>,
    %cst_7 = arith.constant 0.000000e+00 : f32
    %6 = vector.broadcast %cst_7 : f32 to vector<216x48xf32>
    %7 = arith.maximumf %0, %6 : vector<216x48xf32>
    %c8 = arith.constant 8 : index
    %c0_8 = arith.constant 0 : index
    %8 = vector.load %arg8[%c8, %c0_8] : memref<232x48xf32, #tpu.memory_space<vmem>>, vector<216x48xf32>
    tpu.vector_store %arg8[%c8, %c0_8], %7 {strides = array<i32>} : memref<232x48xf32, #tpu.memory_space<vmem>>, vector<216x48xf32>,
    %c1 = arith.constant 1 : index
    %c0_9 = arith.constant 0 : index
    %9 = vector.load %arg8[%c1, %c0_9] : memref<232x48xf32, #tpu.memory_space<vmem>>, vector<216x48xf32>
    %c2 = arith.constant 2 : index
    %c0_10 = arith.constant 0 : index
    %10 = vector.load %arg8[%c2, %c0_10] : memref<232x48xf32, #tpu.memory_space<vmem>>, vector<216x48xf32>
    %c3 = arith.constant 3 : index
    %c0_11 = arith.constant 0 : index
    %11 = vector.load %arg8[%c3, %c0_11] : memref<232x48xf32, #tpu.memory_space<vmem>>, vector<216x48xf32>
    %c7 = arith.constant 7 : index
    %c0_12 = arith.constant 0 : index
    %12 = vector.load %arg8[%c7, %c0_12] : memref<232x48xf32, #tpu.memory_space<vmem>>, vector<216x48xf32>
    %c8_13 = arith.constant 8 : index
    %c0_14 = arith.constant 0 : index
    %13 = vector.load %arg8[%c8_13, %c0_14] : memref<232x48xf32, #tpu.memory_space<vmem>>, vector<216x48xf32>
    %c9 = arith.constant 9 : index
    %c0_15 = arith.constant 0 : index
    %14 = vector.load %arg8[%c9, %c0_15] : memref<232x48xf32, #tpu.memory_space<vmem>>, vector<216x48xf32>
    %c13 = arith.constant 13 : index
    %c0_16 = arith.constant 0 : index
    %15 = vector.load %arg8[%c13, %c0_16] : memref<232x48xf32, #tpu.memory_space<vmem>>, vector<216x48xf32>
    %c14 = arith.constant 14 : index
    %c0_17 = arith.constant 0 : index
    %16 = vector.load %arg8[%c14, %c0_17] : memref<232x48xf32, #tpu.memory_space<vmem>>, vector<216x48xf32>
    %c15 = arith.constant 15 : index
    %c0_18 = arith.constant 0 : index
    %17 = vector.load %arg8[%c15, %c0_18] : memref<232x48xf32, #tpu.memory_space<vmem>>, vector<216x48xf32>
    %18 = tpu.concatenate %9, %10, %11, %12, %13, %14, %15, %16, %17 in 1 : vector<216x48xf32>, vector<216x48xf32>, vector<216x48xf32>, vector<216x48xf32>, vector<216x48xf32>, vector<216x48xf32>, vector<216x48xf32>, vector<216x48xf32>, vector<216x48xf32> -> vector<216x432xf32>
    %19 = arith.truncf %18 : vector<216x432xf32> to vector<216x432xbf16>
    %c0_19 = arith.constant 0 : index
    %c0_20 = arith.constant 0 : index
    %20 = vector.load %arg2[%c0_19, %c0_20] : memref<432x3xbf16, #tpu.memory_space<vmem>>, vector<432x3xbf16>
    %cst_21 = arith.constant dense<0.000000e+00> : vector<216x3xf32>
    %21 = tpu.matmul %19, %20, %cst_21 {dimension_numbers = #tpu.dot_dimension_numbers<[1], [0], [0], [1], [0, 0, 1, 1], [], []>} : vector<216x432xbf16>, vector<432x3xbf16>, vector<216x3xf32> -> vector<216x3xf32>
    %c0_22 = arith.constant 0 : index
    %c0_23 = arith.constant 0 : index
    %22 = vector.load %arg3[%c0_22, %c0_23] : memref<1x3xf32, #tpu.memory_space<vmem>>, vector<1x3xf32>
    %23 = vector.broadcast %22 : vector<1x3xf32> to vector<216x3xf32>
    %24 = arith.addf %21, %23 : vector<216x3xf32>
    %cst_24 = arith.constant 0.000000e+00 : f32
    %25 = vector.broadcast %cst_24 : f32 to vector<216x3xf32>
    %26 = arith.maximumf %24, %25 : vector<216x3xf32>
    %27 = vector.broadcast %1 : vector<216x1xf32> to vector<216x3xf32>
    %28 = arith.mulf %26, %27 : vector<216x3xf32>
    %cst_25 = arith.constant 0.000000e+00 : f32
    %29 = vector.broadcast %cst_25 : f32 to vector<8x3xf32>
    %c0_26 = arith.constant 0 : index
    %c0_27 = arith.constant 0 : index
    %30 = vector.load %arg9[%c0_26, %c0_27] : memref<232x3xf32, #tpu.memory_space<vmem>>, vector<8x3xf32>
    tpu.vector_store %arg9[%c0_26, %c0_27], %29 {strides = array<i32>} : memref<232x3xf32, #tpu.memory_space<vmem>>, vector<8x3xf32>,
    %cst_28 = arith.constant 0.000000e+00 : f32
    %31 = vector.broadcast %cst_28 : f32 to vector<8x3xf32>
    %c224_29 = arith.constant 224 : index
    %c0_30 = arith.constant 0 : index
    %32 = vector.load %arg9[%c224_29, %c0_30] : memref<232x3xf32, #tpu.memory_space<vmem>>, vector<8x3xf32>
    tpu.vector_store %arg9[%c224_29, %c0_30], %31 {strides = array<i32>} : memref<232x3xf32, #tpu.memory_space<vmem>>, vector<8x3xf32>,
    %c8_31 = arith.constant 8 : index
    %c0_32 = arith.constant 0 : index
    %33 = vector.load %arg9[%c8_31, %c0_32] : memref<232x3xf32, #tpu.memory_space<vmem>>, vector<216x3xf32>
    tpu.vector_store %arg9[%c8_31, %c0_32], %28 {strides = array<i32>} : memref<232x3xf32, #tpu.memory_space<vmem>>, vector<216x3xf32>,
    %c1_33 = arith.constant 1 : index
    %c0_34 = arith.constant 0 : index
    %34 = vector.load %arg9[%c1_33, %c0_34] : memref<232x3xf32, #tpu.memory_space<vmem>>, vector<216x3xf32>
    %c2_35 = arith.constant 2 : index
    %c0_36 = arith.constant 0 : index
    %35 = vector.load %arg9[%c2_35, %c0_36] : memref<232x3xf32, #tpu.memory_space<vmem>>, vector<216x3xf32>
    %c3_37 = arith.constant 3 : index
    %c0_38 = arith.constant 0 : index
    %36 = vector.load %arg9[%c3_37, %c0_38] : memref<232x3xf32, #tpu.memory_space<vmem>>, vector<216x3xf32>
    %c7_39 = arith.constant 7 : index
    %c0_40 = arith.constant 0 : index
    %37 = vector.load %arg9[%c7_39, %c0_40] : memref<232x3xf32, #tpu.memory_space<vmem>>, vector<216x3xf32>
    %c8_41 = arith.constant 8 : index
    %c0_42 = arith.constant 0 : index
    %38 = vector.load %arg9[%c8_41, %c0_42] : memref<232x3xf32, #tpu.memory_space<vmem>>, vector<216x3xf32>
    %c9_43 = arith.constant 9 : index
    %c0_44 = arith.constant 0 : index
    %39 = vector.load %arg9[%c9_43, %c0_44] : memref<232x3xf32, #tpu.memory_space<vmem>>, vector<216x3xf32>
    %c13_45 = arith.constant 13 : index
    %c0_46 = arith.constant 0 : index
    %40 = vector.load %arg9[%c13_45, %c0_46] : memref<232x3xf32, #tpu.memory_space<vmem>>, vector<216x3xf32>
    %c14_47 = arith.constant 14 : index
    %c0_48 = arith.constant 0 : index
    %41 = vector.load %arg9[%c14_47, %c0_48] : memref<232x3xf32, #tpu.memory_space<vmem>>, vector<216x3xf32>
    %c15_49 = arith.constant 15 : index
    %c0_50 = arith.constant 0 : index
    %42 = vector.load %arg9[%c15_49, %c0_50] : memref<232x3xf32, #tpu.memory_space<vmem>>, vector<216x3xf32>
    %43 = tpu.concatenate %34, %35, %36, %37, %38, %39, %40, %41, %42 in 1 : vector<216x3xf32>, vector<216x3xf32>, vector<216x3xf32>, vector<216x3xf32>, vector<216x3xf32>, vector<216x3xf32>, vector<216x3xf32>, vector<216x3xf32>, vector<216x3xf32> -> vector<216x27xf32>
    %44 = arith.truncf %43 : vector<216x27xf32> to vector<216x27xbf16>
    %c0_51 = arith.constant 0 : index
    %c0_52 = arith.constant 0 : index
    %45 = vector.load %arg4[%c0_51, %c0_52] : memref<27x3xbf16, #tpu.memory_space<vmem>>, vector<27x3xbf16>
    %cst_53 = arith.constant dense<0.000000e+00> : vector<216x3xf32>
    %46 = tpu.matmul %44, %45, %cst_53 {dimension_numbers = #tpu.dot_dimension_numbers<[1], [0], [0], [1], [0, 0, 1, 1], [], []>} : vector<216x27xbf16>, vector<27x3xbf16>, vector<216x3xf32> -> vector<216x3xf32>
    %c0_54 = arith.constant 0 : index
    %c0_55 = arith.constant 0 : index
    %47 = vector.load %arg5[%c0_54, %c0_55] : memref<1x3xf32, #tpu.memory_space<vmem>>, vector<1x3xf32>
    %48 = vector.broadcast %47 : vector<1x3xf32> to vector<216x3xf32>
    %49 = arith.addf %46, %48 : vector<216x3xf32>
    %c0_56 = arith.constant 0 : index
    %c0_57 = arith.constant 0 : index
    %50 = vector.load %arg6[%c0_56, %c0_57] : memref<216x3xf32, #tpu.memory_space<vmem>>, vector<216x3xf32>
    %51 = vector.broadcast %1 : vector<216x1xf32> to vector<216x3xf32>
    %52 = arith.mulf %49, %51 : vector<216x3xf32>
    %53 = arith.addf %52, %50 : vector<216x3xf32>
    %c0_58 = arith.constant 0 : index
    %c0_59 = arith.constant 0 : index
    %54 = vector.load %arg7[%c0_58, %c0_59] : memref<216x3xf32, #tpu.memory_space<vmem>>, vector<216x3xf32>
    tpu.vector_store %arg7[%c0_58, %c0_59], %53 {strides = array<i32>} : memref<216x3xf32, #tpu.memory_space<vmem>>, vector<216x3xf32>,
    return
  }
}

module attributes {stable_mosaic.version = 11 : i64} {
  func.func @_heads_kernel(%arg0: memref<1x1xf32, #tpu.memory_space<smem>>, %arg1: memref<6x48xf32, #tpu.memory_space<vmem>>, %arg2: memref<1x16xf32, #tpu.memory_space<vmem>>, %arg3: memref<1x16xf32, #tpu.memory_space<vmem>>, %arg4: memref<6x4xf32, #tpu.memory_space<vmem>>) attributes {dimension_semantics = [], scalar_prefetch = 0 : i64, scratch_operands = 0 : i64, tpu.core_type = #tpu.core_type<tc>} {
    %c0 = arith.constant 0 : index
    %c0_0 = arith.constant 0 : index
    %0 = vector.load %arg1[%c0, %c0_0] : memref<6x48xf32, #tpu.memory_space<vmem>>, vector<6x48xf32>
    %1 = vector.extract_strided_slice %0 {offsets = [0, 0], sizes = [6, 16], strides = [1, 1]} : vector<6x48xf32> to vector<6x16xf32>
    %2 = vector.extract_strided_slice %0 {offsets = [0, 16], sizes = [6, 16], strides = [1, 1]} : vector<6x48xf32> to vector<6x16xf32>
    %3 = vector.extract_strided_slice %0 {offsets = [0, 32], sizes = [6, 16], strides = [1, 1]} : vector<6x48xf32> to vector<6x16xf32>
    %c0_1 = arith.constant 0 : index
    %c0_2 = arith.constant 0 : index
    %4 = memref.load %arg0[%c0_1, %c0_2] : memref<1x1xf32, #tpu.memory_space<smem>>
    %cst = arith.constant 1.000000e+01 : f32
    %5 = vector.broadcast %cst : f32 to vector<6x16xf32>
    %6 = arith.subf %1, %5 : vector<6x16xf32>
    %7 = arith.negf %6 : vector<6x16xf32>
    %8 = math.exp %7 : vector<6x16xf32>
    %cst_3 = arith.constant 1.000000e+00 : f32
    %9 = vector.broadcast %cst_3 : f32 to vector<6x16xf32>
    %10 = arith.addf %9, %8 : vector<6x16xf32>
    %11 = arith.divf %9, %10 : vector<6x16xf32>
    %cst_4 = arith.constant dense<0.000000e+00> : vector<6xf32>
    %12 = vector.multi_reduction <add>, %11, %cst_4 [1] : vector<6x16xf32> to vector<6xf32>
    %13 = vector.shape_cast %12 : vector<6xf32> to vector<6x1xf32>
    %cst_5 = arith.constant 1.600000e+01 : f32
    %14 = vector.broadcast %cst_5 : f32 to vector<6x1xf32>
    %15 = arith.divf %13, %14 : vector<6x1xf32>
    %16 = vector.broadcast %4 : f32 to vector<6x1xf32>
    %17 = arith.mulf %16, %15 : vector<6x1xf32>
    %cst_6 = arith.constant dense<0xFF800000> : vector<6xf32>
    %18 = vector.multi_reduction <maximumf>, %2, %cst_6 [1] : vector<6x16xf32> to vector<6xf32>
    %19 = vector.shape_cast %18 : vector<6xf32> to vector<6x1xf32>
    %20 = vector.broadcast %19 : vector<6x1xf32> to vector<6x16xf32>
    %21 = arith.subf %2, %20 : vector<6x16xf32>
    %22 = math.exp %21 : vector<6x16xf32>
    %cst_7 = arith.constant dense<0.000000e+00> : vector<6xf32>
    %23 = vector.multi_reduction <add>, %22, %cst_7 [1] : vector<6x16xf32> to vector<6xf32>
    %24 = vector.shape_cast %23 : vector<6xf32> to vector<6x1xf32>
    %25 = vector.broadcast %24 : vector<6x1xf32> to vector<6x16xf32>
    %26 = arith.divf %22, %25 : vector<6x16xf32>
    %c0_8 = arith.constant 0 : index
    %c0_9 = arith.constant 0 : index
    %27 = vector.load %arg2[%c0_8, %c0_9] : memref<1x16xf32, #tpu.memory_space<vmem>>, vector<1x16xf32>
    %28 = vector.broadcast %27 : vector<1x16xf32> to vector<6x16xf32>
    %29 = arith.mulf %26, %28 : vector<6x16xf32>
    %cst_10 = arith.constant dense<0.000000e+00> : vector<6xf32>
    %30 = vector.multi_reduction <add>, %29, %cst_10 [1] : vector<6x16xf32> to vector<6xf32>
    %31 = vector.shape_cast %30 : vector<6xf32> to vector<6x1xf32>
    %c0_11 = arith.constant 0 : index
    %c0_12 = arith.constant 0 : index
    %32 = vector.load %arg3[%c0_11, %c0_12] : memref<1x16xf32, #tpu.memory_space<vmem>>, vector<1x16xf32>
    %33 = vector.broadcast %32 : vector<1x16xf32> to vector<6x16xf32>
    %34 = arith.mulf %26, %33 : vector<6x16xf32>
    %cst_13 = arith.constant dense<0.000000e+00> : vector<6xf32>
    %35 = vector.multi_reduction <add>, %34, %cst_13 [1] : vector<6x16xf32> to vector<6xf32>
    %36 = vector.shape_cast %35 : vector<6xf32> to vector<6x1xf32>
    %37 = math.tanh %3 : vector<6x16xf32>
    %cst_14 = arith.constant dense<0.000000e+00> : vector<6xf32>
    %38 = vector.multi_reduction <add>, %37, %cst_14 [1] : vector<6x16xf32> to vector<6xf32>
    %39 = vector.shape_cast %38 : vector<6xf32> to vector<6x1xf32>
    %cst_15 = arith.constant 1.600000e+01 : f32
    %40 = vector.broadcast %cst_15 : f32 to vector<6x1xf32>
    %41 = arith.divf %39, %40 : vector<6x1xf32>
    %42 = tpu.concatenate %31, %36, %17, %41 in 1 : vector<6x1xf32>, vector<6x1xf32>, vector<6x1xf32>, vector<6x1xf32> -> vector<6x4xf32>
    %c0_16 = arith.constant 0 : index
    %c0_17 = arith.constant 0 : index
    %43 = vector.load %arg4[%c0_16, %c0_17] : memref<6x4xf32, #tpu.memory_space<vmem>>, vector<6x4xf32>
    tpu.vector_store %arg4[%c0_16, %c0_17], %42 {strides = array<i32>} : memref<6x4xf32, #tpu.memory_space<vmem>>, vector<6x4xf32>,
    return
  }
}

</mosaic_0001>

<bundles_post_ra>
// kernel: loci_encoder_forward.7
= control target key start
LH: loop header
LB: loop body
LE: loop exit
PB: predicated region body
PF: predicated region fallthrough
CT: control target
= control target key end

     0   :  { %vm475_vm0 = vcmask 392192   ;;  %s963_s2 = inlined_call_operand.vmem [shape: bf16[384,48], index: 2, kind: input, shape index: {}]   ;;  %s964_s1 = inlined_call_operand.vmem [shape: f32[96,384], index: 1, kind: input, shape index: {}]   ;;  %s965_s3 = inlined_call_operand.vmem [shape: f32[1,48], index: 3, kind: input, shape index: {}]   ;;  %s966_s0 = inlined_call_operand.<no memory space> [shape: f32[1,1], index: 0, kind: input, shape index: {}]   ;;  %s967_s4 = inlined_call_operand.vmem [shape: f32[96,48], index: 4, kind: input, shape index: {}]   ;;  %s968_s5 = inlined_call_operand.vmem [shape: f32[96,48], index: 5, kind: output, shape index: {}]  }
   0x1   :  { %v611_v0 = vld [vmem:[%s963_s2 + $0x78] sm:$0xff]   ;;  %v613_v2 = vld [vmem:[%s963_s2 + $0x70] sm:$0xff]   ;;  %v616_v5 = vld [vmem:[%s963_s2 + $0x68] sm:$0xff]  }
   0x2   :  { %v612_v1 = vld [vmem:[%s963_s2 + $0x38] sm:$0xff]   ;;  %517 = vmatprep.subr.bf16.mxu0 %v611_v0  ;;  %v615_v4 = vld [vmem:[%s963_s2 + $0x30] sm:$0xff]   ;;  %v618_v7 = vld [vmem:[%s963_s2 + $0x28] sm:$0xff]  }
   0x3   :  { %518 = vmatpush3.bf16.msra.mxu0 %v612_v1  ;;  %v614_v3 = vld [vmem:[%s963_s2 + $0xb8] sm:$0xff]   ;;  %v617_v6 = vld [vmem:[%s963_s2 + $0xb0] sm:$0xff]   ;;  %v619_v8 = vld [vmem:[%s963_s2 + $0x60] sm:$0xff]  }
   0x4   :  { %519 = vmatprep.subr.bf16.mxu0 %v613_v2  ;;  %583 = vmatprep.subr.bf16.mxu1 %v614_v3  ;;  %v620_v9 = vld [vmem:[%s963_s2 + $0xa8] sm:$0xff]   ;;  %v621_v10 = vld [vmem:[%s963_s2 + $0x20] sm:$0xff]   ;;  %v622_v11 = vld [vmem:[%s963_s2 + $0x58] sm:$0xff]  }
   0x5   :  { %584 = vmatpush3.bf16.msra.mxu1 %v614_v3  ;;  %v623_v12 = vld [vmem:[%s963_s2 + $0xa0] sm:$0xff]   ;;  %v624_v13 = vld [vmem:[%s963_s2 + $0x18] sm:$0xff]   ;;  %v625_v15 = vld [vmem:[%s963_s2 + $0x50] sm:$0xff]  }
   0x6   :  { %585 = vmatprep.subr.bf16.mxu1 %v617_v6  ;;  %v626_v14 = vld [vmem:[%s963_s2 + $0x98] sm:$0xff]   ;;  %v627_v16 = vld [vmem:[%s963_s2 + $0x10] sm:$0xff]   ;;  %v628_v18 = vld [vmem:[%s963_s2 + $0x48] sm:$0xff]  }
   0x7   :  { %520 = vmatpush3.bf16.msra.mxu0 %v615_v4  ;;  %v629_v17 = vld [vmem:[%s963_s2 + $0x90] sm:$0xff]   ;;  %v630_v19 = vld [vmem:[%s963_s2 + $0x8] sm:$0xff]   ;;  %v27_v22 = vld [vmem:[%s964_s1 + $0x20] sm:$0xff] }
   0x8   :  { %521 = vmatprep.subr.bf16.mxu0 %v616_v5  ;;  %v632_v20 = vld [vmem:[%s963_s2 + $0x88] sm:$0xff]   ;;  %v631_v23 = vld [vmem:[%s963_s2 + $0x40] sm:$0xff]   ;;  %v25_v25 = vld [vmem:[%s964_s1 + $0x10] sm:$0xff] }
   0x9   :  { %586 = vmatpush3.bf16.msra.mxu1 %v617_v6  ;;  %v24_v21 = vld [vmem:[%s964_s1 + $0x8] sm:$0xff]  ;;  %v633_v27 = vld [vmem:[%s963_s2] sm:$0xff]   ;;  %v26_v30 = vld [vmem:[%s964_s1 + $0x18] sm:$0xff] }
   0xa   :  { %587 = vmatprep.subr.bf16.mxu1 %v620_v9  ;;  %v60_v24 = vpack.c.bf16 %v27_v22, %v24_v21  ;;  %v28_v26 = vld [vmem:[%s964_s1 + $0x28] sm:$0xff]  ;;  %v23_v29 = vld [vmem:[%s964_s1] sm:$0xff]  ;;  %v30_v32 = vld [vmem:[%s964_s1 + $0x38] sm:$0xff] }
   0xb   :  { %522 = vmatpush3.bf16.msra.mxu0 %v618_v7  ;;  %v61_v28 = vpack.c.bf16 %v28_v26, %v25_v25  ;;  %v634_v31 = vld [vmem:[%s963_s2 + $0x80] sm:$0xff]   ;;  %v33_v33 = vld [vmem:[%s964_s1 + $0x50] sm:$0xff]  ;;  %v59_v34 = vpack.c.bf16 %v26_v30, %v23_v29  ;;  %v34_v36 = vld [vmem:[%s964_s1 + $0x58] sm:$0xff] }
   0xc   :  { %523 = vmatprep.subr.bf16.mxu0 %v619_v8  ;;  %320 = vmatprep.mubr.bf16.mxu0 %v60_v24  ;;  %v31_v35 = vld [vmem:[%s964_s1 + $0x40] sm:$0xff]  ;;  %v63_v37 = vpack.c.bf16 %v33_v33, %v30_v32  ;;  %v37_v38 = vld [vmem:[%s964_s1 + $0x70] sm:$0xff]  ;;  %v40_v39 = vld [vmem:[%s964_s1 + $0x88] sm:$0xff] }
   0xd   :  { %588 = vmatpush3.bf16.msra.mxu1 %v620_v9  ;;  %599 = vmatprep.mubr.bf16.mxu1 %v61_v28  ;;  %v64_v40 = vpack.c.bf16 %v34_v36, %v31_v35  ;;  %v67_v41 = vpack.c.bf16 %v40_v39, %v37_v38  ;;  %v29_v42 = vld [vmem:[%s964_s1 + $0x30] sm:$0xff]  ;;  %v32_v43 = vld [vmem:[%s964_s1 + $0x48] sm:$0xff]  ;;  %v39_v45 = vld [vmem:[%s964_s1 + $0x80] sm:$0xff] }
   0xe   :  { %589 = vmatprep.subr.bf16.mxu1 %v623_v12  ;;  %v36_v44 = vld [vmem:[%s964_s1 + $0x68] sm:$0xff]  ;;  %v62_v46 = vpack.c.bf16 %v32_v43, %v29_v42  ;;  %v43_v47 = vld [vmem:[%s964_s1 + $0xa0] sm:$0xff]  ;;  %v46_v48 = vld [vmem:[%s964_s1 + $0xb8] sm:$0xff] }
   0xf   :  { %524 = vmatpush3.bf16.msra.mxu0 %v621_v10  ;;  %v66_v49 = vpack.c.bf16 %v39_v45, %v36_v44  ;;  %v49_v50 = vld [vmem:[%s964_s1 + $0xd0] sm:$0xff]  ;;  %v52_v51 = vld [vmem:[%s964_s1 + $0xe8] sm:$0xff]  ;;  %v70_v52 = vpack.c.bf16 %v46_v48, %v43_v47  ;;  %v35_v54 = vld [vmem:[%s964_s1 + $0x60] sm:$0xff] }
  0x10   :  { %525 = vmatprep.subr.bf16.mxu0 %v622_v11  ;;  %v73_v53 = vpack.c.bf16 %v52_v51, %v49_v50  ;;  %v38_v55 = vld [vmem:[%s964_s1 + $0x78] sm:$0xff]  ;;  %v45_v57 = vld [vmem:[%s964_s1 + $0xb0] sm:$0xff]  ;;  %v55_v59 = vld [vmem:[%s964_s1 + $0x100] sm:$0xff] }
  0x11   :  { %590 = vmatpush3.bf16.msra.mxu1 %v623_v12  ;;  %v42_v56 = vld [vmem:[%s964_s1 + $0x98] sm:$0xff]  ;;  %v65_v58 = vpack.c.bf16 %v38_v55, %v35_v54  ;;  %v41_v63 = vld [vmem:[%s964_s1 + $0x90] sm:$0xff]  ;;  %v44_v0 = vld [vmem:[%s964_s1 + $0xa8] sm:$0xff] }
  0x12   :  { %591 = vmatprep.subr.bf16.mxu1 %v626_v14  ;;  %v58_v60 = vld [vmem:[%s964_s1 + $0x118] sm:$0xff]  ;;  %v69_v61 = vpack.c.bf16 %v45_v57, %v42_v56  ;;  %v48_v1 = vld [vmem:[%s964_s1 + $0xc8] sm:$0xff]  ;;  %v51_v2 = vld [vmem:[%s964_s1 + $0xe0] sm:$0xff]  ;;  %v68_v3 = vpack.c.bf16 %v44_v0, %v41_v63 }
  0x13   :  { %526 = vmatpush3.bf16.msra.mxu0 %v624_v13  ;;  %v76_v62 = vpack.c.bf16 %v58_v60, %v55_v59  ;;  %v72_v4 = vpack.c.bf16 %v51_v2, %v48_v1  ;;  %v47_v5 = vld [vmem:[%s964_s1 + $0xc0] sm:$0xff]  ;;  %v50_v6 = vld [vmem:[%s964_s1 + $0xd8] sm:$0xff]  ;;  %v57_v8 = vld [vmem:[%s964_s1 + $0x110] sm:$0xff] }
  0x14   :  { %527 = vmatprep.subr.bf16.mxu0 %v625_v15  ;;  %v54_v7 = vld [vmem:[%s964_s1 + $0xf8] sm:$0xff]  ;;  %v71_v9 = vpack.c.bf16 %v50_v6, %v47_v5  ;;  %v53_v11 = vld [vmem:[%s964_s1 + $0xf0] sm:$0xff]  ;;  %v56_v12 = vld [vmem:[%s964_s1 + $0x108] sm:$0xff] }
  0x15   :  { %592 = vmatpush3.bf16.msra.mxu1 %v626_v14  ;;  %v75_v10 = vpack.c.bf16 %v57_v8, %v54_v7  ;;  %v74_v13 = vpack.c.bf16 %v56_v12, %v53_v11  ;;  %v126_v36 = vld [vmem:[%s967_s4 + $0x8] sm:$0xff]  ;;  %v127_v45 = vld [vmem:[%s967_s4 + $0x10] sm:$0xff]  ;;  %v128_v54 = vld [vmem:[%s967_s4 + $0x18] sm:$0xff] }
  0x16   :  { %593 = vmatprep.subr.bf16.mxu1 %v629_v17  ;;  %v129_v63 = vld [vmem:[%s967_s4 + $0x20] sm:$0xff]  ;;  %v130_v8 = vld [vmem:[%s967_s4 + $0x28] sm:$0xff] }
  0x17   :  { %528 = vmatpush3.bf16.msra.mxu0 %v627_v16  ;;  %v848_v16 = vld [vmem:[%s965_s3] ss:$0 sm:$0xff] }
  0x18   :  { %529 = vmatprep.subr.bf16.mxu0 %v628_v18 }
  0x19   :  { %594 = vmatpush3.bf16.msra.mxu1 %v629_v17 }
  0x1a   :  { %595 = vmatprep.subr.bf16.mxu1 %v632_v20 }
  0x1b   :  { %530 = vmatpush3.bf16.msra.mxu0 %v630_v19 }
  0x1c   :  { %531 = vmatprep.subr.bf16.mxu0 %v631_v23  ;;  %v854_v23 = vstv %s966_s0 }
  0x1d   :  { %596 = vmatpush3.bf16.msra.mxu1 %v632_v20 }
  0x1e   :  { %597 = vmatprep.subr.bf16.mxu1 %v634_v31 }
  0x1f   :  { %532 = vmatpush3.bf16.msra.mxu0 %v633_v27  ;;  %v125_v27 = vld [vmem:[%s967_s4] sm:$0xff] }
  0x21   :  { %598 = vmatpush3.bf16.msra.mxu1 %v634_v31 }
  0x22   :  { %321 = vmatmul.mubr.bf16.vlgmr.msra.gmra.mxu0 %v59_v34 }
  0x23   :  { %328 = vmatprep.mubr.bf16.mxu0 %v63_v37 }
  0x24   :  { %600 = vmatmul.mubr.bf16.vlgmr.msra.gmra.mxu1 %v64_v40 }
  0x25   :  { %603 = vmatprep.mubr.bf16.mxu1 %v67_v41 }
  0x2a   :  { %329 = vmatmul.mubr.bf16.gmra.mxu0 %v62_v46 }
  0x2b   :  { %336 = vmatprep.mubr.bf16.mxu0 %v66_v49 }
  0x2c   :  { %604 = vmatmul.mubr.bf16.gmra.mxu1 %v70_v52 }
  0x2d   :  { %607 = vmatprep.mubr.bf16.mxu1 %v73_v53 }
  0x32   :  { %337 = vmatmul.mubr.bf16.gmra.mxu0 %v65_v58 }
  0x33   :  { %344 = vmatprep.mubr.bf16.mxu0 %v69_v61 }
  0x34   :  { %608 = vmatmul.mubr.bf16.gmra.mxu1 %v76_v62 }
  0x3a   :  { %345 = vmatmul.mubr.bf16.gmra.mxu0 %v68_v3 }
  0x3b   :  { %352 = vmatprep.mubr.bf16.mxu0 %v72_v4 }
  0x42   :  { %353 = vmatmul.mubr.bf16.gmra.mxu0 %v71_v9 }
  0x43   :  { %360 = vmatprep.mubr.bf16.mxu0 %v75_v10 }
  0x4a   :  { %361 = vmatmul.mubr.bf16.gmra.mxu0 %v74_v13 }
  0xe2   :  { %v533_v14 = vpop.f32.mrf.mxu0 }
  0xe4   :  { %v534_v15 = vpop.f32.mrf.mxu0  ;;  %v601_v18 = vpop.f32.mrf.mxu1 }
  0xe5   :  { %v535_v17 = vadd.f32 %v534_v15, %v533_v14 }
  0xe6   :  { %v536_v19 = vpop.f32.mrf.mxu0  ;;  %v403_v21 = vpop.f32.mrf.mxu1 }
  0xe7   :  { %v323_v20 = vadd.f32 %v535_v17, %v848_v16 }
  0xe8   :  { %v537_v22 = vpop.f32.mrf.mxu0  ;;  %v602_v26 = vpop.f32.mrf.mxu1 }
  0xe9   :  { %v538_v24 = vadd.f32 %v537_v22, %v536_v19  ;;  %v404_v25 = vadd.f32 %v403_v21, %v323_v20 }
  0xea   :  { %v539_v28 = vpop.f32.mrf.mxu0  ;;  %v406_v31 = vpop.f32.mrf.mxu1 }
  0xeb   :  { %v451_v29 = vmul.f32 %v854_v23, %v404_v25  ;;  %v326_v30 = vadd.f32 %v538_v24, %v848_v16 }
  0xec   :  { %v540_v32 = vpop.f32.mrf.mxu0  ;;  %v605_v38 = vpop.f32.mrf.mxu1 }
  0xed   :  { %v463_v33 = vadd.f32 %v451_v29, %v125_v27  ;;  %v541_v34 = vadd.f32 %v540_v32, %v539_v28  ;;  %v407_v35 = vadd.f32 %v406_v31, %v326_v30  ;;  %v132_v28 = vld [vmem:[%s967_s4 + $0x38] sm:$0xff] }
  0xee   :  { %v542_v37 = vpop.f32.mrf.mxu0  ;;  %v419_v47 = vpop.f32.mrf.mxu1 }
  0xef   :  { %476 = vst.msk [vmem:[%s968_s5] sm:$0xff] %vm475_vm0, %v463_v33  ;;  %v331_v39 = vadd.f32 %v541_v34, %v848_v16  ;;  %v452_v40 = vmul.f32 %v854_v23, %v407_v35 }
  0xf0   :  { %v543_v41 = vpop.f32.mrf.mxu0  ;;  %v606_v56 = vpop.f32.mrf.mxu1 }
  0xf1   :  { %v412_v42 = vadd.f32 %v601_v18, %v331_v39  ;;  %v464_v43 = vadd.f32 %v452_v40, %v126_v36  ;;  %v544_v44 = vadd.f32 %v543_v41, %v542_v37  ;;  %v131_v18 = vld [vmem:[%s967_s4 + $0x30] sm:$0xff]  ;;  %v133_v37 = vld [vmem:[%s967_s4 + $0x40] sm:$0xff] }
  0xf2   :  { %v545_v46 = vpop.f32.mrf.mxu0  ;;  %v422_v1 = vpop.f32.mrf.mxu1 }
  0xf3   :  { %v453_v48 = vmul.f32 %v854_v23, %v412_v42  ;;  %477 = vst.msk [vmem:[%s968_s5 + $0x8] sm:$0xff] %vm475_vm0, %v464_v43  ;;  %v334_v49 = vadd.f32 %v544_v44, %v848_v16 }
  0xf4   :  { %v546_v50 = vpop.f32.mrf.mxu0  ;;  %v609_v10 = vpop.f32.mrf.mxu1 }
  0xf5   :  { %v465_v51 = vadd.f32 %v453_v48, %v127_v45  ;;  %v415_v52 = vadd.f32 %v602_v26, %v334_v49  ;;  %v547_v53 = vadd.f32 %v546_v50, %v545_v46  ;;  %v134_v46 = vld [vmem:[%s967_s4 + $0x48] sm:$0xff] }
  0xf6   :  { %v548_v55 = vpop.f32.mrf.mxu0  ;;  %v435_v20 = vpop.f32.mrf.mxu1 }
  0xf7   :  { %478 = vst.msk [vmem:[%s968_s5 + $0x10] sm:$0xff] %vm475_vm0, %v465_v51  ;;  %v454_v57 = vmul.f32 %v854_v23, %v415_v52  ;;  %v339_v58 = vadd.f32 %v547_v53, %v848_v16 }
  0xf8   :  { %v549_v59 = vpop.f32.mrf.mxu0  ;;  %v610_v30 = vpop.f32.mrf.mxu1 }
  0xf9   :  { %v466_v60 = vadd.f32 %v454_v57, %v128_v54  ;;  %v550_v61 = vadd.f32 %v549_v59, %v548_v55  ;;  %v420_v62 = vadd.f32 %v419_v47, %v339_v58  ;;  %v135_v54 = vld [vmem:[%s967_s4 + $0x50] sm:$0xff]  ;;  %v136_v59 = vld [vmem:[%s967_s4 + $0x58] sm:$0xff] }
  0xfa   :  { %v551_v0 = vpop.f32.mrf.mxu0  ;;  %v438_v39 = vpop.f32.mrf.mxu1 }
  0xfb   :  { %479 = vst.msk [vmem:[%s968_s5 + $0x18] sm:$0xff] %vm475_vm0, %v466_v60  ;;  %v455_v2 = vmul.f32 %v854_v23, %v420_v62  ;;  %v342_v3 = vadd.f32 %v550_v61, %v848_v16 }
  0xfc   :  { %v552_v4 = vpop.f32.mrf.mxu0 }
  0xfd   :  { %v467_v5 = vadd.f32 %v455_v2, %v129_v63  ;;  %v553_v6 = vadd.f32 %v552_v4, %v551_v0  ;;  %v423_v7 = vadd.f32 %v422_v1, %v342_v3 }
  0xfe   :  { %v554_v9 = vpop.f32.mrf.mxu0 }
  0xff   :  { %480 = vst.msk [vmem:[%s968_s5 + $0x20] sm:$0xff] %vm475_vm0, %v467_v5  ;;  %v347_v11 = vadd.f32 %v553_v6, %v848_v16  ;;  %v456_v12 = vmul.f32 %v854_v23, %v423_v7 }
 0x100   :  { %v555_v13 = vpop.f32.mrf.mxu0 }
 0x101   :  { %v428_v14 = vadd.f32 %v605_v38, %v347_v11  ;;  %v468_v15 = vadd.f32 %v456_v12, %v130_v8  ;;  %v556_v17 = vadd.f32 %v555_v13, %v554_v9 }
 0x102   :  { %v557_v19 = vpop.f32.mrf.mxu0 }
 0x103   :  { %v457_v21 = vmul.f32 %v854_v23, %v428_v14  ;;  %481 = vst.msk [vmem:[%s968_s5 + $0x28] sm:$0xff] %vm475_vm0, %v468_v15  ;;  %v350_v22 = vadd.f32 %v556_v17, %v848_v16 }
 0x104   :  { %v558_v24 = vpop.f32.mrf.mxu0 }
 0x105   :  { %v469_v25 = vadd.f32 %v457_v21, %v131_v18  ;;  %v431_v26 = vadd.f32 %v606_v56, %v350_v22  ;;  %v559_v27 = vadd.f32 %v558_v24, %v557_v19 }
 0x106   :  { %v560_v29 = vpop.f32.mrf.mxu0 }
 0x107   :  { %482 = vst.msk [vmem:[%s968_s5 + $0x30] sm:$0xff] %vm475_vm0, %v469_v25  ;;  %v458_v31 = vmul.f32 %v854_v23, %v431_v26  ;;  %v355_v32 = vadd.f32 %v559_v27, %v848_v16 }
 0x108   :  { %v561_v33 = vpop.f32.mrf.mxu0 }
 0x109   :  { %v470_v34 = vadd.f32 %v458_v31, %v132_v28  ;;  %v562_v35 = vadd.f32 %v561_v33, %v560_v29  ;;  %v436_v36 = vadd.f32 %v435_v20, %v355_v32 }
 0x10a   :  { %v563_v38 = vpop.f32.mrf.mxu0 }
 0x10b   :  { %483 = vst.msk [vmem:[%s968_s5 + $0x38] sm:$0xff] %vm475_vm0, %v470_v34  ;;  %v459_v40 = vmul.f32 %v854_v23, %v436_v36  ;;  %v358_v41 = vadd.f32 %v562_v35, %v848_v16 }
 0x10c   :  { %v564_v42 = vpop.f32.mrf.mxu0 }
 0x10d   :  { %v471_v43 = vadd.f32 %v459_v40, %v133_v37  ;;  %v565_v44 = vadd.f32 %v564_v42, %v563_v38  ;;  %v439_v45 = vadd.f32 %v438_v39, %v358_v41 }
 0x10e   :  { %v566_v47 = vpop.f32.mrf.mxu0 }
 0x10f   :  { %484 = vst.msk [vmem:[%s968_s5 + $0x40] sm:$0xff] %vm475_vm0, %v471_v43  ;;  %v363_v48 = vadd.f32 %v565_v44, %v848_v16  ;;  %v460_v49 = vmul.f32 %v854_v23, %v439_v45 }
 0x110   :  { %v567_v50 = vpop.f32.mrf.mxu0 }
 0x111   :  { %v444_v51 = vadd.f32 %v609_v10, %v363_v48  ;;  %v472_v52 = vadd.f32 %v460_v49, %v134_v46  ;;  %v568_v53 = vadd.f32 %v567_v50, %v566_v47 }
 0x113   :  { %v461_v55 = vmul.f32 %v854_v23, %v444_v51  ;;  %485 = vst.msk [vmem:[%s968_s5 + $0x48] sm:$0xff] %vm475_vm0, %v472_v52  ;;  %v366_v56 = vadd.f32 %v568_v53, %v848_v16 }
 0x115   :  { %v473_v57 = vadd.f32 %v461_v55, %v135_v54  ;;  %v447_v58 = vadd.f32 %v610_v30, %v366_v56 }
 0x117   :  { %486 = vst.msk [vmem:[%s968_s5 + $0x50] sm:$0xff] %vm475_vm0, %v473_v57  ;;  %v462_v60 = vmul.f32 %v854_v23, %v447_v58 }
 0x119   :  { %v474_v61 = vadd.f32 %v462_v60, %v136_v59 }
 0x11b   :  { %487 = vst.msk [vmem:[%s968_s5 + $0x58] sm:$0xff] %vm475_vm0, %v474_v61 }

// kernel: loci_encoder_forward.8
= control target key start
LH: loop header
LB: loop body
LE: loop exit
PB: predicated region body
PF: predicated region fallthrough
CT: control target
= control target key end

     0   :  { %vm78_vm0 = vcmask 392192   ;;  %v5239_v3 = vmov 0.0   ;;  %s5240_s27 = smov 48   ;;  %s5241_s28 = smov 96   ;;  %vm1109_vm1 = vcmask 785408   ;;  %vm1137_vm2 = vcmask 130048   ;;  %s7377_s0 = inlined_call_operand.vmem [shape: f32[216,48], index: 0, kind: input, shape index: {}]   ;;  %s7378_s2 = inlined_call_operand.vmem [shape: bf16[432,48], index: 2, kind: input, shape index: {}]   ;;  %s7379_s1 = inlined_call_operand.vmem [shape: f32[216,1], index: 1, kind: input, shape index: {}]   ;;  %s7380_s4 = inlined_call_operand.vmem [shape: bf16[432,48], index: 4, kind: input, shape index: {}]   ;;  %s7381_s3 = inlined_call_operand.vmem [shape: f32[1,48], index: 3, kind: input, shape index: {}]   ;;  %s7382_s5 = inlined_call_operand.vmem [shape: f32[1,48], index: 5, kind: input, shape index: {}]   ;;  %s7383_s6 = inlined_call_operand.vmem [shape: f32[216,48], index: 6, kind: output, shape index: {}]  }
   0x1   :  { %v27_v0 = vld [vmem:[%s7377_s0 + $0x18] sm:$0xff]  ;;  %v28_v1 = vld [vmem:[%s7377_s0 + $0x20] sm:$0xff]  ;;  %v29_v2 = vld [vmem:[%s7377_s0 + $0x28] sm:$0xff]  ;;  %79 = vst.msk [vmem:[#allocation2] sm:$0xff] %vm78_vm0, %v5239_v3  ;;  %s5242_s29 = smov 16   ;;  %s5244_s13 = smov 64  }
   0x2   :  { %80 = vst.msk [vmem:[#allocation2 + $0xe0] sm:$0xff] %vm78_vm0, %v5239_v3  ;;  %2075 = vst.msk [vmem:[#allocation3] sm:$0xff] %vm78_vm0, %v5239_v3  ;;  %v84_v4 = vmax.f32 %v27_v0, 0.0  ;;  %v85_v5 = vmax.f32 %v28_v1, 0.0  ;;  %v86_v6 = vmax.f32 %v29_v2, 0.0  ;;  %v24_v7 = vld [vmem:[%s7377_s0] sm:$0xff] }
   0x3   :  { %2076 = vst.msk [vmem:[#allocation3 + $0xe0] sm:$0xff] %vm78_vm0, %v5239_v3  ;;  %v25_v8 = vld [vmem:[%s7377_s0 + $0x8] sm:$0xff]  ;;  %v30_v9 = vld [vmem:[%s7377_s0 + $0x30] sm:$0xff]  ;;  %v81_v10 = vmax.f32 %v24_v7, 0.0  ;;  %v31_v12 = vld [vmem:[%s7377_s0 + $0x38] sm:$0xff]  ;;  %s5246_s20 = smov 80  }
   0x4   :  { %v82_v11 = vmax.f32 %v25_v8, 0.0  ;;  %v87_v13 = vmax.f32 %v30_v9, 0.0  ;;  %v26_v14 = vld [vmem:[%s7377_s0 + $0x10] sm:$0xff]  ;;  %v33_v15 = vld [vmem:[%s7377_s0 + $0x48] sm:$0xff]  ;;  %111 = vst.msk [vmem:[#allocation2 + $0x20] sm:$0xff] %vm78_vm0, %v84_v4  ;;  %112 = vst.msk [vmem:[#allocation2 + $0x28] sm:$0xff] %vm78_vm0, %v85_v5 }
   0x5   :  { %113 = vst.msk [vmem:[#allocation2 + $0x30] sm:$0xff] %vm78_vm0, %v86_v6  ;;  %v88_v16 = vmax.f32 %v31_v12, 0.0  ;;  %v83_v17 = vmax.f32 %v26_v14, 0.0  ;;  %v34_v18 = vld [vmem:[%s7377_s0 + $0x50] sm:$0xff]  ;;  %v35_v19 = vld [vmem:[%s7377_s0 + $0x58] sm:$0xff]  ;;  %v90_v20 = vmax.f32 %v33_v15, 0.0 }
   0x6   :  { %v32_v21 = vld [vmem:[%s7377_s0 + $0x40] sm:$0xff]  ;;  %108 = vst.msk [vmem:[#allocation2 + $0x8] sm:$0xff] %vm78_vm0, %v81_v10  ;;  %109 = vst.msk [vmem:[#allocation2 + $0x10] sm:$0xff] %vm78_vm0, %v82_v11  ;;  %v91_v22 = vmax.f32 %v34_v18, 0.0  ;;  %v92_v23 = vmax.f32 %v35_v19, 0.0  ;;  %v37_v25 = vld [vmem:[%s7377_s0 + $0x68] sm:$0xff] }
   0x7   :  { %114 = vst.msk [vmem:[#allocation2 + $0x38] sm:$0xff] %vm78_vm0, %v87_v13  ;;  %v89_v24 = vmax.f32 %v32_v21, 0.0  ;;  %v38_v26 = vld [vmem:[%s7377_s0 + $0x70] sm:$0xff]  ;;  %v39_v27 = vld [vmem:[%s7377_s0 + $0x78] sm:$0xff]  ;;  %115 = vst.msk [vmem:[#allocation2 + $0x40] sm:$0xff] %vm78_vm0, %v88_v16  ;;  %v94_v28 = vmax.f32 %v37_v25, 0.0 }
   0x8   :  { %110 = vst.msk [vmem:[#allocation2 + $0x18] sm:$0xff] %vm78_vm0, %v83_v17  ;;  %117 = vst.msk [vmem:[#allocation2 + $0x50] sm:$0xff] %vm78_vm0, %v90_v20  ;;  %v95_v29 = vmax.f32 %v38_v26, 0.0  ;;  %v96_v30 = vmax.f32 %v39_v27, 0.0  ;;  %v36_v31 = vld [vmem:[%s7377_s0 + $0x60] sm:$0xff]  ;;  %v41_v32 = vld [vmem:[%s7377_s0 + $0x88] sm:$0xff] }
   0x9   :  { %v42_v33 = vld [vmem:[%s7377_s0 + $0x90] sm:$0xff]  ;;  %118 = vst.msk [vmem:[#allocation2 + $0x58] sm:$0xff] %vm78_vm0, %v91_v22  ;;  %119 = vst.msk [vmem:[#allocation2 + $0x60] sm:$0xff] %vm78_vm0, %v92_v23  ;;  %v93_v34 = vmax.f32 %v36_v31, 0.0  ;;  %v43_v35 = vld [vmem:[%s7377_s0 + $0x98] sm:$0xff]  ;;  %v98_v36 = vmax.f32 %v41_v32, 0.0 }
   0xa   :  { %116 = vst.msk [vmem:[#allocation2 + $0x48] sm:$0xff] %vm78_vm0, %v89_v24  ;;  %v99_v37 = vmax.f32 %v42_v33, 0.0  ;;  %v40_v38 = vld [vmem:[%s7377_s0 + $0x80] sm:$0xff]  ;;  %v45_v39 = vld [vmem:[%s7377_s0 + $0xa8] sm:$0xff]  ;;  %121 = vst.msk [vmem:[#allocation2 + $0x70] sm:$0xff] %vm78_vm0, %v94_v28  ;;  %v100_v40 = vmax.f32 %v43_v35, 0.0 }
   0xb   :  { %122 = vst.msk [vmem:[#allocation2 + $0x78] sm:$0xff] %vm78_vm0, %v95_v29  ;;  %123 = vst.msk [vmem:[#allocation2 + $0x80] sm:$0xff] %vm78_vm0, %v96_v30  ;;  %v97_v41 = vmax.f32 %v40_v38, 0.0  ;;  %v46_v42 = vld [vmem:[%s7377_s0 + $0xb0] sm:$0xff]  ;;  %v47_v43 = vld [vmem:[%s7377_s0 + $0xb8] sm:$0xff]  ;;  %v102_v44 = vmax.f32 %v45_v39, 0.0 }
   0xc   :  { %v44_v45 = vld [vmem:[%s7377_s0 + $0xa0] sm:$0xff]  ;;  %120 = vst.msk [vmem:[#allocation2 + $0x68] sm:$0xff] %vm78_vm0, %v93_v34  ;;  %125 = vst.msk [vmem:[#allocation2 + $0x90] sm:$0xff] %vm78_vm0, %v98_v36  ;;  %v103_v46 = vmax.f32 %v46_v42, 0.0  ;;  %v104_v47 = vmax.f32 %v47_v43, 0.0  ;;  %v49_v49 = vld [vmem:[%s7377_s0 + $0xc8] sm:$0xff] }
   0xd   :  { %126 = vst.msk [vmem:[#allocation2 + $0x98] sm:$0xff] %vm78_vm0, %v99_v37  ;;  %v101_v48 = vmax.f32 %v44_v45, 0.0  ;;  %v50_v50 = vld [vmem:[%s7377_s0 + $0xd0] sm:$0xff]  ;;  %v48_v51 = vld [vmem:[%s7377_s0 + $0xc0] sm:$0xff]  ;;  %127 = vst.msk [vmem:[#allocation2 + $0xa0] sm:$0xff] %vm78_vm0, %v100_v40  ;;  %v106_v52 = vmax.f32 %v49_v49, 0.0 }
   0xe   :  { %124 = vst.msk [vmem:[#allocation2 + $0x88] sm:$0xff] %vm78_vm0, %v97_v41  ;;  %129 = vst.msk [vmem:[#allocation2 + $0xb0] sm:$0xff] %vm78_vm0, %v102_v44  ;;  %v107_v53 = vmax.f32 %v50_v50, 0.0  ;;  %v105_v54 = vmax.f32 %v48_v51, 0.0  ;;  %v166_v55 = vld [vmem:[#allocation2 + $0x22] sm:$0xff]  ;;  %v167_v56 = vld [vmem:[#allocation2 + $0x2a] sm:$0xff] }
   0xf   :  { %130 = vst.msk [vmem:[#allocation2 + $0xb8] sm:$0xff] %vm78_vm0, %v103_v46  ;;  %131 = vst.msk [vmem:[#allocation2 + $0xc0] sm:$0xff] %vm78_vm0, %v104_v47  ;;  %v4237_v57 = vpack.i.bf16 %v167_v56, %v166_v55  ;;  %v162_v58 = vld [vmem:[#allocation2 + $0x2] sm:$0xff]  ;;  %v163_v59 = vld [vmem:[#allocation2 + $0xa] sm:$0xff]  ;;  %s5247_s21 = smov 32   ;;  %vm1165_vm3 = vcmask 523264  }
  0x10   :  { %128 = vst.msk [vmem:[#allocation2 + $0xa8] sm:$0xff] %vm78_vm0, %v101_v48  ;;  %v168_v60 = vld [vmem:[#allocation2 + $0x32] sm:$0xff]  ;;  %133 = vst.msk [vmem:[#allocation2 + $0xd0] sm:$0xff] %vm78_vm0, %v106_v52  ;;  %v4227_v61 = vpack.i.bf16 %v163_v59, %v162_v58  ;;  %v169_v62 = vld [vmem:[#allocation2 + $0x3a] sm:$0xff]  ;;  %vm1193_vm4 = vcmask 916480   ;;  %vm1221_vm5 = vcmask 261120  }
  0x11   :  { %134 = vst.msk [vmem:[#allocation2 + $0xd8] sm:$0xff] %vm78_vm0, %v107_v53  ;;  %132 = vst.msk [vmem:[#allocation2 + $0xc8] sm:$0xff] %vm78_vm0, %v105_v54  ;;  %v164_v63 = vld [vmem:[#allocation2 + $0x12] sm:$0xff]  ;;  %v165_v0 = vld [vmem:[#allocation2 + $0x1a] sm:$0xff]  ;;  %4238 = vrot.lane.b32.xlu1 %v4237_v57, %s5240_s27  ;;  %v4242_v1 = vpack.i.bf16 %v169_v62, %v168_v60  ;;  %vm1249_vm6 = vcmask 654336  }
  0x12   :  { %4228 = vrot.lane.b32.xlu0 %v4227_v61, %s5240_s27  ;;  %v4232_v2 = vpack.i.bf16 %v165_v0, %v164_v63  ;;  %v172_v3 = vld [vmem:[#allocation2 + $0x52] sm:$0xff]  ;;  %v173_v4 = vld [vmem:[#allocation2 + $0x5a] sm:$0xff]  ;;  %v170_v5 = vld [vmem:[#allocation2 + $0x42] sm:$0xff] }
  0x13   :  { %v171_v6 = vld [vmem:[#allocation2 + $0x4a] sm:$0xff]  ;;  %v4252_v7 = vpack.i.bf16 %v173_v4, %v172_v3  ;;  %v176_v9 = vld [vmem:[#allocation2 + $0x72] sm:$0xff]  ;;  %v177_v10 = vld [vmem:[#allocation2 + $0x7a] sm:$0xff] }
  0x14   :  { %v4247_v8 = vpack.i.bf16 %v171_v6, %v170_v5  ;;  %v174_v11 = vld [vmem:[#allocation2 + $0x62] sm:$0xff]  ;;  %v175_v12 = vld [vmem:[#allocation2 + $0x6a] sm:$0xff]  ;;  %v4262_v13 = vpack.i.bf16 %v177_v10, %v176_v9  ;;  %v180_v15 = vld [vmem:[#allocation2 + $0x92] sm:$0xff] }
  0x15   :  { %4243 = vrot.lane.b32.xlu1 %v4242_v1, %s5240_s27  ;;  %v4257_v14 = vpack.i.bf16 %v175_v12, %v174_v11  ;;  %v181_v16 = vld [vmem:[#allocation2 + $0x9a] sm:$0xff]  ;;  %v178_v17 = vld [vmem:[#allocation2 + $0x82] sm:$0xff]  ;;  %v179_v18 = vld [vmem:[#allocation2 + $0x8a] sm:$0xff] }
  0x16   :  { %4233 = vrot.lane.b32.xlu0 %v4232_v2, %s5240_s27  ;;  %v4272_v19 = vpack.i.bf16 %v181_v16, %v180_v15  ;;  %v4267_v20 = vpack.i.bf16 %v179_v18, %v178_v17  ;;  %v184_v21 = vld [vmem:[#allocation2 + $0xb2] sm:$0xff]  ;;  %v185_v22 = vld [vmem:[#allocation2 + $0xba] sm:$0xff]  ;;  %v5411_v32 = vld [vmem:[#allocation2 + $0x27] sm:$0xff] }
  0x17   :  { %v182_v23 = vld [vmem:[#allocation2 + $0xa2] sm:$0xff]  ;;  %v183_v24 = vld [vmem:[#allocation2 + $0xaa] sm:$0xff]  ;;  %v4282_v25 = vpack.i.bf16 %v185_v22, %v184_v21  ;;  %v5406_v29 = vld [vmem:[#allocation2 + $0x37] sm:$0xff] }
  0x18   :  { %v186_v26 = vld [vmem:[#allocation2 + $0xc2] sm:$0xff]  ;;  %v187_v27 = vld [vmem:[#allocation2 + $0xca] sm:$0xff]  ;;  %v4277_v31 = vpack.i.bf16 %v183_v24, %v182_v23  ;;  %v5415_v34 = vld [vmem:[#allocation2 + $0x57] sm:$0xff] }
  0x19   :  { %4253 = vrot.lane.b32.xlu1 %v4252_v7, %s5240_s27  ;;  %v5404_v28 = vld [vmem:[#allocation2 + $0x1f] sm:$0xff]  ;;  %v5413_v33 = vld [vmem:[#allocation2 + $0x2f] sm:$0xff]  ;;  %v5423_v38 = vld [vmem:[#allocation2 + $0x47] sm:$0xff]  ;;  %v4287_v54 = vpack.i.bf16 %v187_v27, %v186_v26 }
  0x1a   :  { %4248 = vrot.lane.b32.xlu0 %v4247_v8, %s5240_s27  ;;  %v5408_v30 = vld [vmem:[#allocation2 + $0x3f] sm:$0xff]  ;;  %v5425_v39 = vld [vmem:[#allocation2 + $0x4f] sm:$0xff]  ;;  %v5431_v45 = vld [vmem:[#allocation2 + $0x77] sm:$0xff] }
  0x1b   :  { %v5421_v37 = vld [vmem:[#allocation2 + $0x5f] sm:$0xff]  ;;  %v188_v40 = vld [vmem:[#allocation2 + $0xd2] sm:$0xff]  ;;  %7455 = vst [vmem:[#allocation5_spill] sm:$0xff] %v5431_v45  ;;  %v5435_v47 = vld [vmem:[#allocation2 + $0x67] sm:$0xff] }
  0x1c   :  { %7454 = vst [vmem:[#allocation4_spill] sm:$0xff] %v5421_v37  ;;  %v191_v41 = vld [vmem:[#allocation2 + $0x13] sm:$0xff]  ;;  %v192_v42 = vld [vmem:[#allocation2 + $0x1b] sm:$0xff]  ;;  %7457 = vst [vmem:[#allocation7_spill] sm:$0xff] %v5435_v47 }
  0x1d   :  { %4263 = vrot.lane.b32.xlu1 %v4262_v13, %s5240_s27  ;;  %v5433_v46 = vld [vmem:[#allocation2 + $0x7f] sm:$0xff]  ;;  %v190_v49 = vld [vmem:[#allocation2 + $0xb] sm:$0xff]  ;;  %v5442_v52 = vld [vmem:[#allocation2 + $0x97] sm:$0xff]  ;;  %v4297_v5 = vpack.i.bf16 %v192_v42, %v191_v41 }
  0x1e   :  { %4258 = vrot.lane.b32.xlu0 %v4257_v14, %s5240_s27  ;;  %7456 = vst [vmem:[#allocation6_spill] sm:$0xff] %v5433_v46  ;;  %v189_v48 = vld [vmem:[#allocation2 + $0x3] sm:$0xff]  ;;  %v5438_v50 = vld [vmem:[#allocation2 + $0x6f] sm:$0xff]  ;;  %7459 = vst [vmem:[#allocation9_spill] sm:$0xff] %v5442_v52 }
  0x1f   :  { %7458 = vst [vmem:[#allocation8_spill] sm:$0xff] %v5438_v50  ;;  %v5444_v53 = vld [vmem:[#allocation2 + $0x9f] sm:$0xff]  ;;  %v5449_v56 = vld [vmem:[#allocation2 + $0x87] sm:$0xff]  ;;  %v5451_v57 = vld [vmem:[#allocation2 + $0x8f] sm:$0xff]  ;;  %v4292_v8 = vpack.i.bf16 %v190_v49, %v189_v48 }
  0x20   :  { %7460 = vst [vmem:[#allocation10_spill] sm:$0xff] %v5444_v53  ;;  %7461 = vst [vmem:[#allocation11_spill] sm:$0xff] %v5449_v56  ;;  %v5453_v58 = vld [vmem:[#allocation2 + $0xb7] sm:$0xff]  ;;  %v5459_v61 = vld [vmem:[#allocation2 + $0xbf] sm:$0xff] }
  0x21   :  { %4273 = vrot.lane.b32.xlu1 %v4272_v19, %s5240_s27  ;;  %7462 = vst [vmem:[#allocation12_spill] sm:$0xff] %v5451_v57  ;;  %7463 = vst [vmem:[#allocation13_spill] sm:$0xff] %v5453_v58  ;;  %v5461_v62 = vld [vmem:[#allocation2 + $0xa7] sm:$0xff]  ;;  %v5463_v63 = vld [vmem:[#allocation2 + $0xaf] sm:$0xff] }
  0x22   :  { %4268 = vrot.lane.b32.xlu0 %v4267_v20, %s5240_s27  ;;  %7464 = vst [vmem:[#allocation14_spill] sm:$0xff] %v5459_v61  ;;  %7465 = vst [vmem:[#allocation15_spill] sm:$0xff] %v5461_v62  ;;  %v5469_v2 = vld [vmem:[#allocation2 + $0xcf] sm:$0xff]  ;;  %v5471_v3 = vld [vmem:[#allocation2 + $0xd7] sm:$0xff] }
  0x23   :  { %7466 = vst [vmem:[#allocation16_spill] sm:$0xff] %v5463_v63  ;;  %7467 = vst [vmem:[#allocation17_spill] sm:$0xff] %v5469_v2  ;;  %v5473_v4 = vld [vmem:[#allocation2 + $0xc7] sm:$0xff]  ;;  %v195_v9 = vld [vmem:[#allocation2 + $0x33] sm:$0xff] }
  0x24   :  { %7468 = vst [vmem:[#allocation18_spill] sm:$0xff] %v5471_v3  ;;  %7469 = vst [vmem:[#allocation19_spill] sm:$0xff] %v5473_v4  ;;  %v196_v10 = vld [vmem:[#allocation2 + $0x3b] sm:$0xff]  ;;  %v193_v11 = vld [vmem:[#allocation2 + $0x23] sm:$0xff] }
  0x25   :  { %4283 = vrot.lane.b32.xlu1 %v4282_v25, %s5240_s27  ;;  %v194_v12 = vld [vmem:[#allocation2 + $0x2b] sm:$0xff]  ;;  %v4307_v13 = vpack.i.bf16 %v196_v10, %v195_v9  ;;  %v199_v15 = vld [vmem:[#allocation2 + $0x53] sm:$0xff]  ;;  %v200_v16 = vld [vmem:[#allocation2 + $0x5b] sm:$0xff] }
  0x26   :  { %4278 = vrot.lane.b32.xlu0 %v4277_v31, %s5240_s27  ;;  %v4302_v14 = vpack.i.bf16 %v194_v12, %v193_v11  ;;  %v197_v17 = vld [vmem:[#allocation2 + $0x43] sm:$0xff]  ;;  %v198_v18 = vld [vmem:[#allocation2 + $0x4b] sm:$0xff]  ;;  %v4317_v19 = vpack.i.bf16 %v200_v16, %v199_v15  ;;  %v203_v21 = vld [vmem:[#allocation2 + $0x73] sm:$0xff] }
  0x27   :  { %v4312_v20 = vpack.i.bf16 %v198_v18, %v197_v17  ;;  %v204_v22 = vld [vmem:[#allocation2 + $0x7b] sm:$0xff]  ;;  %v201_v23 = vld [vmem:[#allocation2 + $0x63] sm:$0xff]  ;;  %v202_v24 = vld [vmem:[#allocation2 + $0x6b] sm:$0xff] }
  0x28   :  { %v4327_v25 = vpack.i.bf16 %v204_v22, %v203_v21  ;;  %v4322_v26 = vpack.i.bf16 %v202_v24, %v201_v23  ;;  %v207_v27 = vld [vmem:[#allocation2 + $0x93] sm:$0xff]  ;;  %v208_v31 = vld [vmem:[#allocation2 + $0x9b] sm:$0xff]  ;;  %v206_v41 = vld [vmem:[#allocation2 + $0x8b] sm:$0xff]  ;;  %v4367_v21 = vpack.i.bf16 %v5413_v33, %v5411_v32  ;;  %v4382_v22 = vpack.i.bf16 %v5421_v37, %v5415_v34 }
  0x29   :  { %405 = vrot.lane.b32.xlu1 %v188_v40, %s5240_s27  ;;  %v205_v40 = vld [vmem:[#allocation2 + $0x83] sm:$0xff]  ;;  %v4337_v42 = vpack.i.bf16 %v208_v31, %v207_v27  ;;  %v211_v49 = vld [vmem:[#allocation2 + $0xb3] sm:$0xff]  ;;  %v214_v12 = vld [vmem:[#allocation2 + $0xcb] sm:$0xff]  ;;  %v4377_v23 = vpack.i.bf16 %v5425_v39, %v5423_v38  ;;  %v4387_v27 = vpack.i.bf16 %v5438_v50, %v5435_v47 }
  0x2a   :  { %4288 = vrot.lane.b32.xlu0 %v4287_v54, %s5240_s27  ;;  %v4332_v48 = vpack.i.bf16 %v206_v41, %v205_v40  ;;  %v212_v54 = vld [vmem:[#allocation2 + $0xbb] sm:$0xff]  ;;  %v213_v11 = vld [vmem:[#allocation2 + $0xc3] sm:$0xff]  ;;  %v5495_v17 = vld [vmem:[#allocation2 + $0xf] sm:$0xff]  ;;  %v4402_v40 = vpack.i.bf16 %v5444_v53, %v5442_v52 }
  0x2b   :  { %v4347_v9 = vpack.i.bf16 %v212_v54, %v211_v49  ;;  %v5493_v15 = vld [vmem:[#allocation2 + $0x17] sm:$0xff]  ;;  %v216_v16 = vld [vmem:[#allocation2 + $0x7] sm:$0xff]  ;;  %v4412_v54 = vpack.i.bf16 %v5459_v61, %v5453_v58 }
  0x2c   :  { %v4362_v18 = vpack.i.bf16 %v5404_v28, %v5493_v15  ;;  %v5139_v24 = vld [vmem:[%s7378_s2 + $0xb8] sm:$0xff]   ;;  %v5140_v31 = vld [vmem:[%s7378_s2 + $0xb0] sm:$0xff]   ;;  %v5143_v49 = vld [vmem:[%s7378_s2 + $0xa8] sm:$0xff]  }
  0x2d   :  { %4298 = vrot.lane.b32.xlu1 %v4297_v5, %s5241_s28  ;;  %v209_v5 = vld [vmem:[#allocation2 + $0xa3] sm:$0xff]  ;;  %v5141_v41 = vld [vmem:[%s7378_s2 + $0x78] sm:$0xff]   ;;  %v283_v44 = vld [vmem:[#allocation2 + $0x6d] sm:$0xff] }
  0x2e   :  { %4293 = vrot.lane.b32.xlu0 %v4292_v8, %s5241_s28  ;;  %v210_v8 = vld [vmem:[#allocation2 + $0xab] sm:$0xff]  ;;  %4018 = vmatprep.subr.bf16.mxu0 %v5141_v41  ;;  %v280_v6 = vld [vmem:[#allocation2 + $0x55] sm:$0xff]  ;;  %v281_v1 = vld [vmem:[#allocation2 + $0x5d] sm:$0xff] }
  0x2f   :  { %v4342_v10 = vpack.i.bf16 %v210_v8, %v209_v5  ;;  %v5144_v5 = vld [vmem:[%s7378_s2 + $0x70] sm:$0xff]   ;;  %v282_v59 = vld [vmem:[#allocation2 + $0x65] sm:$0xff] }
  0x30   :  { %v5145_v8 = vld [vmem:[%s7378_s2 + $0x30] sm:$0xff]   ;;  %v5720_v55 = vld [vmem:[#allocation2 + $0x61] sm:$0xff] }
  0x31   :  { %4308 = vrot.lane.b32.xlu1 %v4307_v13, %s5241_s28  ;;  %v215_v13 = vld [vmem:[#allocation2 + $0xd3] sm:$0xff]  ;;  %7474 = vst [vmem:[#allocation24_spill] sm:$0xff] %v5720_v55  ;;  %v290_v52 = vld [vmem:[#allocation2 + $0xa5] sm:$0xff] }
  0x32   :  { %4303 = vrot.lane.b32.xlu0 %v4302_v14, %s5241_s28  ;;  %v4352_v14 = vpack.i.bf16 %v214_v12, %v213_v11  ;;  %v245_v11 = vld [vmem:[#allocation2 + $0x18] sm:$0xff]  ;;  %v246_v12 = vld [vmem:[#allocation2 + $0x20] sm:$0xff]  ;;  %v248_v41 = vld [vmem:[#allocation2 + $0x30] sm:$0xff] }
  0x33   :  { %v5731_v51 = vld [vmem:[#allocation2 + $0x71] sm:$0xff] }
  0x34   :  { %7478 = vst [vmem:[#allocation28_spill] sm:$0xff] %v5731_v51  ;;  %v284_v35 = vld [vmem:[#allocation2 + $0x75] sm:$0xff]  ;;  %v287_v58 = vld [vmem:[#allocation2 + $0x8d] sm:$0xff] }
  0x35   :  { %4318 = vrot.lane.b32.xlu1 %v4317_v19, %s5241_s28  ;;  %v4357_v19 = vpack.i.bf16 %v5495_v17, %v216_v16  ;;  %v5149_v16 = vld [vmem:[%s7378_s2 + $0x98] sm:$0xff]   ;;  %v61_v50 = vld [vmem:[%s7379_s1 + $0x50] sm:$0xff] }
  0x36   :  { %4313 = vrot.lane.b32.xlu0 %v4312_v20, %s5241_s28  ;;  %v4372_v20 = vpack.i.bf16 %v5408_v30, %v5406_v29 }
  0x39   :  { %4328 = vrot.lane.b32.xlu1 %v4327_v25, %s5241_s28  ;;  %v7384_v25 = vmov 0  }
  0x3a   :  { %4323 = vrot.lane.b32.xlu0 %v4322_v26, %s5241_s28  ;;  %1742 = vmatprep.subr.bf16.mxu1 %v7384_v25  ;;  %v4392_v26 = vpack.i.bf16 %v5433_v46, %v5431_v45 }
  0x3b   :  { %4683 = vset.pattern.permute.xlu1 %v7384_v25  ;;  %1743 = vmatpush1.bf16.msra.mxu1 %v5139_v24  ;;  %v5150_v24 = vld [vmem:[%s7378_s2 + $0x60] sm:$0xff]  }
  0x3c   :  { %4682 = vset.pattern.permute.xlu0 %v7384_v25  ;;  %1744 = vmatprep.subr.bf16.mxu1 %v7384_v25 }
  0x3d   :  { %4338 = vrot.lane.b32.xlu1 %v4337_v42, %s5241_s28  ;;  %v4397_v42 = vpack.i.bf16 %v5451_v57, %v5449_v56  ;;  %v293_v56 = vld [vmem:[#allocation2 + $0xbd] sm:$0xff] }
  0x3e   :  { %4333 = vrot.lane.b32.xlu0 %v4332_v48, %s5241_s28  ;;  %v5142_v48 = vld [vmem:[%s7378_s2 + $0x38] sm:$0xff]  }
  0x3f   :  { %1745 = vmatpush1.bf16.msra.mxu1 %v5140_v31  ;;  %4019 = vmatpush3.bf16.msra.mxu0 %v5142_v48  ;;  %v254_v48 = vld [vmem:[#allocation2 + $0x60] sm:$0xff] }
  0x40   :  { %1746 = vmatprep.subr.bf16.mxu1 %v7384_v25  ;;  %4020 = vmatprep.subr.bf16.mxu0 %v5144_v5  ;;  %v5153_v5 = vld [vmem:[%s7378_s2 + $0x58] sm:$0xff]  }
  0x41   :  { %4348 = vrot.lane.b32.xlu1 %v4347_v9, %s5241_s28  ;;  %v5146_v9 = vld [vmem:[%s7378_s2 + $0xa0] sm:$0xff]  }
  0x42   :  { %4343 = vrot.lane.b32.xlu0 %v4342_v10, %s5241_s28  ;;  %v4407_v10 = vpack.i.bf16 %v5463_v63, %v5461_v62 }
  0x43   :  { %1747 = vmatpush1.bf16.msra.mxu1 %v5143_v49  ;;  %4021 = vmatpush3.bf16.msra.mxu0 %v5145_v8  ;;  %v5154_v8 = vld [vmem:[%s7378_s2 + $0x18] sm:$0xff]  }
  0x44   :  { %1748 = vmatprep.subr.bf16.mxu1 %v7384_v25 }
  0x45   :  { %513 = vrot.lane.b32.xlu1 %v215_v13, %s5241_s28  ;;  %v5147_v13 = vld [vmem:[%s7378_s2 + $0x68] sm:$0xff]  }
  0x46   :  { %4353 = vrot.lane.b32.xlu0 %v4352_v14, %s5241_s28  ;;  %v5148_v14 = vld [vmem:[%s7378_s2 + $0x28] sm:$0xff]   ;;  %4022 = vmatprep.subr.bf16.mxu0 %v5147_v13  ;;  %v5156_v13 = vld [vmem:[%s7378_s2 + $0x50] sm:$0xff]  }
  0x47   :  { %1749 = vmatpush1.bf16.msra.mxu1 %v5146_v9  ;;  %4023 = vmatpush3.bf16.msra.mxu0 %v5148_v14  ;;  %v5155_v9 = vld [vmem:[%s7378_s2 + $0x88] sm:$0xff]   ;;  %v5157_v14 = vld [vmem:[%s7378_s2 + $0x10] sm:$0xff]  }
  0x48   :  { %1750 = vmatprep.subr.bf16.mxu1 %v7384_v25  ;;  %4024 = vmatprep.subr.bf16.mxu0 %v5150_v24  ;;  %v261_v24 = vld [vmem:[#allocation2 + $0x98] sm:$0xff] }
  0x49   :  { %4363 = vrot.lane.b32.xlu1 %v4362_v18, %s5242_s29  ;;  %v4417_v18 = vpack.i.bf16 %v5469_v2, %v5473_v4  ;;  %v285_v2 = vld [vmem:[#allocation2 + $0x7d] sm:$0xff] }
  0x4a   :  { %4358 = vrot.lane.b32.xlu0 %v4357_v19, %s5242_s29  ;;  %v243_v19 = vld [vmem:[#allocation2 + $0x8] sm:$0xff] }
  0x4b   :  { %1751 = vmatpush1.bf16.msra.mxu1 %v5149_v16  ;;  %v5158_v16 = vld [vmem:[%s7378_s2 + $0x80] sm:$0xff]  }
  0x4c   :  { %1752 = vmatprep.subr.bf16.mxu1 %v7384_v25  ;;  %v5750_v4 = vld [vmem:[#allocation2 + $0x81] sm:$0xff] }
  0x4d   :  { %4373 = vrot.lane.b32.xlu1 %v4372_v20, %s5242_s29  ;;  %v244_v20 = vld [vmem:[#allocation2 + $0x10] sm:$0xff]  ;;  %7480 = vst [vmem:[#allocation30_spill] sm:$0xff] %v5750_v4 }
  0x4e   :  { %4368 = vrot.lane.b32.xlu0 %v4367_v21, %s5242_s29  ;;  %v249_v21 = vld [vmem:[#allocation2 + $0x38] sm:$0xff]  ;;  %v4422_v31 = vpack.i.bf16 %v244_v20, %v243_v19  ;;  %v258_v20 = vld [vmem:[#allocation2 + $0x80] sm:$0xff] }
  0x4f   :  { %v257_v19 = vld [vmem:[#allocation2 + $0x78] sm:$0xff] }
  0x51   :  { %4383 = vrot.lane.b32.xlu1 %v4382_v22, %s5242_s29  ;;  %v250_v22 = vld [vmem:[#allocation2 + $0x40] sm:$0xff] }
  0x52   :  { %4378 = vrot.lane.b32.xlu0 %v4377_v23, %s5242_s29  ;;  %v4427_v23 = vpack.i.bf16 %v246_v12, %v245_v11  ;;  %v4437_v49 = vpack.i.bf16 %v250_v22, %v249_v21  ;;  %v252_v11 = vld [vmem:[#allocation2 + $0x50] sm:$0xff]  ;;  %v255_v21 = vld [vmem:[#allocation2 + $0x68] sm:$0xff] }
  0x53   :  { %v256_v22 = vld [vmem:[#allocation2 + $0x70] sm:$0xff] }
  0x55   :  { %4393 = vrot.lane.b32.xlu1 %v4392_v26, %s5242_s29  ;;  %v5151_v26 = vld [vmem:[%s7378_s2 + $0x20] sm:$0xff]  }
  0x56   :  { %4388 = vrot.lane.b32.xlu0 %v4387_v27, %s5242_s29  ;;  %v5152_v27 = vld [vmem:[%s7378_s2 + $0x90] sm:$0xff]   ;;  %4025 = vmatpush3.bf16.msra.mxu0 %v5151_v26  ;;  %v5159_v26 = vld [vmem:[%s7378_s2 + $0x48] sm:$0xff]  }
  0x57   :  { %1753 = vmatpush1.bf16.msra.mxu1 %v5152_v27  ;;  %4026 = vmatprep.subr.bf16.mxu0 %v5153_v5  ;;  %v4452_v27 = vpack.i.bf16 %v256_v22, %v255_v21  ;;  %v5163_v5 = vld [vmem:[%s7378_s2] sm:$0xff]   ;;  %v5643_v21 = vld [vmem:[#allocation2 + $0x9] sm:$0xff]  ;;  %v5645_v22 = vld [vmem:[#allocation2 + $0x11] sm:$0xff] }
  0x58   :  { %1754 = vmatprep.subr.bf16.mxu1 %v7384_v25 }
  0x59   :  { %4403 = vrot.lane.b32.xlu1 %v4402_v40, %s5242_s29  ;;  %v247_v40 = vld [vmem:[#allocation2 + $0x28] sm:$0xff] }
  0x5a   :  { %4398 = vrot.lane.b32.xlu0 %v4397_v42, %s5242_s29  ;;  %v253_v42 = vld [vmem:[#allocation2 + $0x58] sm:$0xff]  ;;  %4027 = vmatpush3.bf16.msra.mxu0 %v5154_v8  ;;  %v5164_v8 = vld [vmem:[%s7378_s2 + $0xc8] sm:$0xff]  }
  0x5b   :  { %1755 = vmatpush1.bf16.msra.mxu1 %v5155_v9  ;;  %v4447_v12 = vpack.i.bf16 %v254_v48, %v253_v42  ;;  %4028 = vmatprep.subr.bf16.mxu0 %v5156_v13  ;;  %v259_v42 = vld [vmem:[#allocation2 + $0x88] sm:$0xff]  ;;  %v260_v48 = vld [vmem:[#allocation2 + $0x90] sm:$0xff] }
  0x5c   :  { %1756 = vmatprep.subr.bf16.mxu1 %v7384_v25  ;;  %v4462_v9 = vpack.i.bf16 %v260_v48, %v259_v42  ;;  %v264_v13 = vld [vmem:[#allocation2 + $0xb0] sm:$0xff]  ;;  %v274_v48 = vld [vmem:[#allocation2 + $0x25] sm:$0xff] }
  0x5d   :  { %4413 = vrot.lane.b32.xlu1 %v4412_v54, %s5242_s29  ;;  %v251_v54 = vld [vmem:[#allocation2 + $0x48] sm:$0xff] }
  0x5e   :  { %4408 = vrot.lane.b32.xlu0 %v4407_v10, %s5242_s29  ;;  %v4432_v10 = vpack.i.bf16 %v248_v41, %v247_v40  ;;  %4029 = vmatpush3.bf16.msra.mxu0 %v5157_v14  ;;  %v5160_v40 = vld [vmem:[%s7378_s2 + $0x8] sm:$0xff]   ;;  %v5161_v41 = vld [vmem:[%s7378_s2 + $0xd0] sm:$0xff]  }
  0x5f   :  { %1757 = vmatpush1.bf16.msra.mxu1 %v5158_v16  ;;  %4030 = vmatprep.subr.bf16.mxu0 %v5159_v26  ;;  %v4482_v26 = vpack.i.bf16 %v5645_v22, %v5643_v21 }
  0x60   :  { %1768 = vmatprep.subr.bf16.mxu1 %v7384_v25 }
  0x61   :  { %621 = vrot.lane.b32.xlu1 %v5471_v3, %s5242_s29  ;;  %v286_v3 = vld [vmem:[#allocation2 + $0x85] sm:$0xff] }
  0x62   :  { %4418 = vrot.lane.b32.xlu0 %v4417_v18, %s5242_s29  ;;  %v4442_v18 = vpack.i.bf16 %v252_v11, %v251_v54  ;;  %4031 = vmatpush3.bf16.msra.mxu0 %v5160_v40  ;;  %v5162_v54 = vld [vmem:[%s7378_s2 + $0x40] sm:$0xff]   ;;  %v271_v40 = vld [vmem:[#allocation2 + $0xd] sm:$0xff] }
  0x63   :  { %1769 = vmatpush2.bf16.msra.mxu1 %v5161_v41  ;;  %v266_v11 = vld [vmem:[#allocation2 + $0xc0] sm:$0xff]  ;;  %4032 = vmatprep.subr.bf16.mxu0 %v5162_v54  ;;  %v272_v41 = vld [vmem:[#allocation2 + $0x15] sm:$0xff] }
  0x64   :  { %1770 = vmatprep.subr.bf16.mxu1 %v7384_v25  ;;  %v5659_v54 = vld [vmem:[#allocation2 + $0x21] sm:$0xff] }
  0x65   :  { %4428 = vrot.lane.b32.xlu1 %v4427_v23, %s5244_s13  ;;  %v4457_v23 = vpack.i.bf16 %v258_v20, %v257_v19  ;;  %v268_v19 = vld [vmem:[#allocation2 + $0xd0] sm:$0xff]  ;;  %v5165_v20 = vld [vmem:[%s7378_s2 + $0xc0] sm:$0xff]   ;;  %s5245_s2 = smov 112  }
  0x66   :  { %4423 = vrot.lane.b32.xlu0 %v4422_v31, %s5244_s13  ;;  %v262_v31 = vld [vmem:[#allocation2 + $0xa0] sm:$0xff]  ;;  %4033 = vmatpush3.bf16.msra.mxu0 %v5163_v5 }
  0x67   :  { %1771 = vmatpush2.bf16.msra.mxu1 %v5164_v8 }
  0x68   :  { %1772 = vmatprep.subr.bf16.mxu1 %v7384_v25 }
  0x69   :  { %4438 = vrot.lane.b32.xlu1 %v4437_v49, %s5244_s13  ;;  %v4467_v49 = vpack.i.bf16 %v262_v31, %v261_v24  ;;  %v299_v31 = vld [vmem:[#allocation2 + $0x16] sm:$0xff] }
  0x6a   :  { %4433 = vrot.lane.b32.xlu0 %v4432_v10, %s5244_s13  ;;  %v265_v10 = vld [vmem:[#allocation2 + $0xb8] sm:$0xff] }
  0x6b   :  { %v4477_v14 = vpack.i.bf16 %v266_v11, %v265_v10  ;;  %1773 = vmatpush2.bf16.msra.mxu1 %v5165_v20  ;;  %v5667_v10 = vld [vmem:[#allocation2 + $0x31] sm:$0xff] }
  0x6c   :  { %3705 = vmatprep.subr.bf16.mxu1 %v7384_v25  ;;  %v303_v20 = vld [vmem:[#allocation2 + $0x36] sm:$0xff]  ;;  %v279_v25 = vld [vmem:[#allocation2 + $0x4d] sm:$0xff] }
  0x6d   :  { %4448 = vrot.lane.b32.xlu1 %v4447_v12, %s5244_s13  ;;  %v263_v12 = vld [vmem:[#allocation2 + $0xa8] sm:$0xff] }
  0x6e   :  { %4443 = vrot.lane.b32.xlu0 %v4442_v18, %s5244_s13  ;;  %v4472_v16 = vpack.i.bf16 %v264_v13, %v263_v12  ;;  %v267_v18 = vld [vmem:[#allocation2 + $0xc8] sm:$0xff]  ;;  %v300_v12 = vld [vmem:[#allocation2 + $0x1e] sm:$0xff] }
  0x6f   :  { %v4487_v24 = vpack.i.bf16 %v268_v19, %v267_v18  ;;  %v301_v13 = vld [vmem:[#allocation2 + $0x26] sm:$0xff]  ;;  %v302_v19 = vld [vmem:[#allocation2 + $0x2e] sm:$0xff] }
  0x70   :  { %v4512_v18 = vpack.i.bf16 %v301_v13, %v300_v12 }
  0x71   :  { %4458 = vrot.lane.b32.xlu1 %v4457_v23, %s5244_s13  ;;  %v1280_v23 = vpack.c.bf16 %v5493_v15, %v5495_v17  ;;  %v4492_v15 = vpack.i.bf16 %v272_v41, %v271_v40  ;;  %v273_v17 = vld [vmem:[#allocation2 + $0x1d] sm:$0xff] }
  0x72   :  { %4453 = vrot.lane.b32.xlu0 %v4452_v27, %s5244_s13  ;;  %v298_v27 = vld [vmem:[#allocation2 + $0xe] sm:$0xff]  ;;  %v4507_v5 = vpack.i.bf16 %v274_v48, %v273_v17  ;;  %v277_v41 = vld [vmem:[#allocation2 + $0x3d] sm:$0xff] }
  0x73   :  { %3962 = vmatprep.mubr.msk.bf16.mxu1 %vm78_vm0, %v1280_v23  ;;  %v4497_v42 = vpack.i.bf16 %v299_v31, %v298_v27  ;;  %v4527_v31 = vpack.i.bf16 %v303_v20, %v302_v19  ;;  %v5685_v17 = vld [vmem:[#allocation2 + $0x41] sm:$0xff]  ;;  %v5699_v20 = vld [vmem:[#allocation2 + $0x49] sm:$0xff] }
  0x75   :  { %4468 = vrot.lane.b32.xlu1 %v4467_v49, %s5244_s13  ;;  %v5657_v49 = vld [vmem:[#allocation2 + $0x19] sm:$0xff] }
  0x76   :  { %4463 = vrot.lane.b32.xlu0 %v4462_v9, %s5244_s13  ;;  %v4502_v8 = vpack.i.bf16 %v5659_v54, %v5657_v49  ;;  %v5665_v9 = vld [vmem:[#allocation2 + $0x29] sm:$0xff] }
  0x79   :  { %4478 = vrot.lane.b32.xlu1 %v4477_v14, %s5244_s13 }
  0x7a   :  { %4473 = vrot.lane.b32.xlu0 %v4472_v16, %s5244_s13  ;;  %v4517_v16 = vpack.i.bf16 %v5667_v10, %v5665_v9 }
  0x7d   :  { %4488 = vrot.lane.b32.xlu1 %v4487_v24, %s5244_s13  ;;  %v275_v24 = vld [vmem:[#allocation2 + $0x2d] sm:$0xff] }
  0x7e   :  { %4483 = vrot.lane.b32.xlu0 %v4482_v26, %s5245_s2  ;;  %v276_v26 = vld [vmem:[#allocation2 + $0x35] sm:$0xff] }
  0x7f   :  { %v4522_v40 = vpack.i.bf16 %v276_v26, %v275_v24  ;;  %v5701_v24 = vld [vmem:[#allocation2 + $0x51] sm:$0xff] }
  0x80   :  { %v4547_v26 = vpack.i.bf16 %v5701_v24, %v5699_v20 }
  0x81   :  { %4498 = vrot.lane.b32.xlu1 %v4497_v42, %s5246_s20  ;;  %v278_v42 = vld [vmem:[#allocation2 + $0x45] sm:$0xff] }
  0x82   :  { %4493 = vrot.lane.b32.xlu0 %v4492_v15, %s5247_s21 }
  0x83   :  { %v5669_v11 = vpop.permute.xlu1 %4238 }
  0x84   :  { %v5671_v14 = vpop.permute.xlu0 %4228  ;;  %v4240_v45 = vunpack.i.l.bf16 %v5669_v11 }
  0x85   :  { %4508 = vrot.lane.b32.xlu1 %v4507_v5, %s5247_s21  ;;  %v4537_v5 = vpack.i.bf16 %v278_v42, %v277_v41  ;;  %v307_v41 = vld [vmem:[#allocation2 + $0x56] sm:$0xff] }
  0x86   :  { %4503 = vrot.lane.b32.xlu0 %v4502_v8, %s5245_s2  ;;  %v5690_v8 = vld [vmem:[#allocation2 + $0x39] sm:$0xff] }
  0x87   :  { %v5677_v23 = vpop.permute.xlu1 %4243  ;;  %v4532_v12 = vpack.i.bf16 %v5685_v17, %v5690_v8 }
  0x88   :  { %v5679_v27 = vpop.permute.xlu0 %4233 }
  0x89   :  { %4518 = vrot.lane.b32.xlu1 %v4517_v16, %s5245_s2  ;;  %v304_v16 = vld [vmem:[#allocation2 + $0x3e] sm:$0xff] }
  0x8a   :  { %4513 = vrot.lane.b32.xlu0 %v4512_v18, %s5246_s20  ;;  %v305_v18 = vld [vmem:[#allocation2 + $0x46] sm:$0xff] }
  0x8b   :  { %v5683_v15 = vpop.permute.xlu1 %4253 }
  0x8c   :  { %v5687_v48 = vpop.permute.xlu0 %4248 }
  0x8d   :  { %4528 = vrot.lane.b32.xlu1 %v4527_v31, %s5246_s20  ;;  %v4542_v31 = vpack.i.bf16 %v305_v18, %v304_v16  ;;  %v4567_v16 = vpack.i.bf16 %v282_v59, %v281_v1  ;;  %v5718_v18 = vld [vmem:[#allocation2 + $0x59] sm:$0xff]  ;;  %v310_v1 = vld [vmem:[#allocation2 + $0x6e] sm:$0xff] }
  0x8e   :  { %4523 = vrot.lane.b32.xlu0 %v4522_v40, %s5247_s21  ;;  %v306_v40 = vld [vmem:[#allocation2 + $0x4e] sm:$0xff] }
  0x8f   :  { %v5695_v13 = vpop.permute.xlu1 %4263  ;;  %v4557_v0 = vpack.i.bf16 %v307_v41, %v306_v40  ;;  %v5729_v41 = vld [vmem:[#allocation2 + $0x69] sm:$0xff] }
  0x90   :  { %v5697_v19 = vpop.permute.xlu0 %4258  ;;  %7477 = vst [vmem:[#allocation27_spill] sm:$0xff] %v5729_v41  ;;  %v4577_v59 = vpack.i.bf16 %v5731_v51, %v5729_v41  ;;  %v64_v41 = vld [vmem:[%s7379_s1 + $0x68] sm:$0xff] }
  0x91   :  { %4538 = vrot.lane.b32.xlu1 %v4537_v5, %s5247_s21  ;;  %v4552_v5 = vpack.i.bf16 %v280_v6, %v279_v25  ;;  %v308_v6 = vld [vmem:[#allocation2 + $0x5e] sm:$0xff]  ;;  %v309_v25 = vld [vmem:[#allocation2 + $0x66] sm:$0xff] }
  0x92   :  { %4533 = vrot.lane.b32.xlu0 %v4532_v12, %s5245_s2 }
  0x93   :  { %v5707_v42 = vpop.permute.xlu1 %4273 }
  0x94   :  { %7470 = vst [vmem:[#allocation20_spill] sm:$0xff] %v5707_v42  ;;  %v5709_v7 = vpop.permute.xlu0 %4268 }
  0x95   :  { %7471 = vst [vmem:[#allocation21_spill] sm:$0xff] %v5709_v7  ;;  %4548 = vrot.lane.b32.xlu1 %v4547_v26, %s5245_s2  ;;  %v4562_v26 = vpack.i.bf16 %v5720_v55, %v5718_v18  ;;  %v4230_v7 = vunpack.i.l.bf16 %v5671_v14 }
  0x96   :  { %4543 = vrot.lane.b32.xlu0 %v4542_v31, %s5246_s20 }
  0x97   :  { %v5713_v60 = vpop.permute.xlu1 %4283 }
  0x98   :  { %7472 = vst [vmem:[#allocation22_spill] sm:$0xff] %v5713_v60  ;;  %v5715_v12 = vpop.permute.xlu0 %4278  ;;  %v288_v60 = vld [vmem:[#allocation2 + $0x95] sm:$0xff] }
  0x99   :  { %7473 = vst [vmem:[#allocation23_spill] sm:$0xff] %v5715_v12  ;;  %4558 = vrot.lane.b32.xlu1 %v4557_v0, %s5246_s20  ;;  %v4572_v0 = vpack.i.bf16 %v309_v25, %v308_v6  ;;  %v4597_v6 = vpack.i.bf16 %v286_v3, %v285_v2  ;;  %v5748_v25 = vld [vmem:[#allocation2 + $0x79] sm:$0xff]  ;;  %v4612_v57 = vpack.i.bf16 %v288_v60, %v287_v58  ;;  %v155_v12 = vld [vmem:[#allocation2 + $0xa1] sm:$0xff] }
  0x9a   :  { %4553 = vrot.lane.b32.xlu0 %v4552_v5, %s5247_s21  ;;  %v311_v5 = vld [vmem:[#allocation2 + $0x76] sm:$0xff]  ;;  %7479 = vst [vmem:[#allocation29_spill] sm:$0xff] %v5748_v25  ;;  %v317_v58 = vld [vmem:[#allocation2 + $0xa6] sm:$0xff] }
  0x9b   :  { %v5725_v31 = vpop.permute.xlu1 %405 }
  0x9c   :  { %7475 = vst [vmem:[#allocation25_spill] sm:$0xff] %v5725_v31  ;;  %v5727_v40 = vpop.permute.xlu0 %4288  ;;  %v4587_v31 = vpack.i.bf16 %v311_v5, %v310_v1  ;;  %v5759_v5 = vld [vmem:[#allocation2 + $0x89] sm:$0xff] }
  0x9d   :  { %7476 = vst [vmem:[#allocation26_spill] sm:$0xff] %v5727_v40  ;;  %4568 = vrot.lane.b32.xlu1 %v4567_v16, %s5247_s21  ;;  %v4582_v16 = vpack.i.bf16 %v284_v35, %v283_v44  ;;  %v312_v35 = vld [vmem:[#allocation2 + $0x7e] sm:$0xff]  ;;  %v313_v44 = vld [vmem:[#allocation2 + $0x86] sm:$0xff]  ;;  %7481 = vst [vmem:[#allocation31_spill] sm:$0xff] %v5759_v5 }
  0x9e   :  { %4563 = vrot.lane.b32.xlu0 %v4562_v26, %s5245_s2  ;;  %v153_v40 = vld [vmem:[#allocation2 + $0x91] sm:$0xff]  ;;  %v4602_v3 = vpack.i.bf16 %v313_v44, %v312_v35  ;;  %v5775_v44 = vld [vmem:[#allocation2 + $0x99] sm:$0xff] }
  0x9f   :  { %v5737_v43 = vpop.permute.xlu1 %4298  ;;  %v4607_v2 = vpack.i.bf16 %v153_v40, %v5759_v5  ;;  %7485 = vst [vmem:[#allocation35_spill] sm:$0xff] %v5775_v44 }
  0xa0   :  { %v5739_v36 = vpop.permute.xlu0 %4293  ;;  %v4301_v37 = vunpack.i.h.bf16 %v5737_v43 }
  0xa1   :  { %4578 = vrot.lane.b32.xlu1 %v4577_v59, %s5245_s2  ;;  %v4592_v59 = vpack.i.bf16 %v5750_v4, %v5748_v25  ;;  %v296_v4 = vld [vmem:[#allocation2 + $0xd5] sm:$0xff] }
  0xa2   :  { %4573 = vrot.lane.b32.xlu0 %v4572_v0, %s5246_s20 }
  0xa3   :  { %v5743_v61 = vpop.permute.xlu1 %4308 }
  0xa4   :  { %v5745_v26 = vpop.permute.xlu0 %4303 }
  0xa5   :  { %4588 = vrot.lane.b32.xlu1 %v4587_v31, %s5246_s20  ;;  %v314_v31 = vld [vmem:[#allocation2 + $0x8e] sm:$0xff] }
  0xa6   :  { %4583 = vrot.lane.b32.xlu0 %v4582_v16, %s5247_s21  ;;  %v315_v16 = vld [vmem:[#allocation2 + $0x96] sm:$0xff] }
  0xa7   :  { %v5755_v0 = vpop.permute.xlu1 %4318  ;;  %v4617_v62 = vpack.i.bf16 %v315_v16, %v314_v31  ;;  %v156_v16 = vld [vmem:[#allocation2 + $0xa9] sm:$0xff] }
  0xa8   :  { %v5757_v1 = vpop.permute.xlu0 %4313 }
  0xa9   :  { %4598 = vrot.lane.b32.xlu1 %v4597_v6, %s5247_s21  ;;  %v289_v6 = vld [vmem:[#allocation2 + $0x9d] sm:$0xff] }
  0xaa   :  { %4593 = vrot.lane.b32.xlu0 %v4592_v59, %s5245_s2  ;;  %v4627_v35 = vpack.i.bf16 %v290_v52, %v289_v6  ;;  %v319_v6 = vld [vmem:[#allocation2 + $0xb6] sm:$0xff] }
  0xab   :  { %v5764_v63 = vpop.permute.xlu1 %4328 }
  0xac   :  { %7482 = vst [vmem:[#allocation32_spill] sm:$0xff] %v5764_v63  ;;  %v5766_v53 = vpop.permute.xlu0 %4323  ;;  %v63_v63 = vld [vmem:[%s7379_s1 + $0x60] sm:$0xff] }
  0xad   :  { %4608 = vrot.lane.b32.xlu1 %v4607_v2, %s5245_s2  ;;  %v4622_v2 = vpack.i.bf16 %v155_v12, %v5775_v44  ;;  %v292_v12 = vld [vmem:[#allocation2 + $0xb5] sm:$0xff] }
  0xae   :  { %4603 = vrot.lane.b32.xlu0 %v4602_v3, %s5246_s20  ;;  %v316_v3 = vld [vmem:[#allocation2 + $0x9e] sm:$0xff] }
  0xaf   :  { %v5770_v40 = vpop.permute.xlu1 %4338  ;;  %v4632_v52 = vpack.i.bf16 %v317_v58, %v316_v3  ;;  %v158_v58 = vld [vmem:[#allocation2 + $0xb9] sm:$0xff] }
  0xb0   :  { %7483 = vst [vmem:[#allocation33_spill] sm:$0xff] %v5770_v40  ;;  %v5772_v59 = vpop.permute.xlu0 %4333  ;;  %v157_v40 = vld [vmem:[#allocation2 + $0xb1] sm:$0xff] }
  0xb1   :  { %7484 = vst [vmem:[#allocation34_spill] sm:$0xff] %v5772_v59  ;;  %4618 = vrot.lane.b32.xlu1 %v4617_v62, %s5246_s20  ;;  %v4637_v5 = vpack.i.bf16 %v157_v40, %v156_v16  ;;  %v318_v62 = vld [vmem:[#allocation2 + $0xae] sm:$0xff]  ;;  %v159_v16 = vld [vmem:[#allocation2 + $0xc1] sm:$0xff] }
  0xb2   :  { %4613 = vrot.lane.b32.xlu0 %v4612_v57, %s5247_s21  ;;  %v291_v57 = vld [vmem:[#allocation2 + $0xad] sm:$0xff] }
  0xb3   :  { %v5779_v31 = vpop.permute.xlu1 %4348  ;;  %v322_v59 = vld [vmem:[#allocation2 + $0xce] sm:$0xff] }
  0xb4   :  { %7486 = vst [vmem:[#allocation36_spill] sm:$0xff] %v5779_v31  ;;  %v5781_v60 = vpop.permute.xlu0 %4343  ;;  %v4647_v31 = vpack.i.bf16 %v319_v6, %v318_v62  ;;  %v321_v62 = vld [vmem:[#allocation2 + $0xc6] sm:$0xff] }
  0xb5   :  { %7487 = vst [vmem:[#allocation37_spill] sm:$0xff] %v5781_v60  ;;  %4628 = vrot.lane.b32.xlu1 %v4627_v35, %s5247_s21  ;;  %v4642_v60 = vpack.i.bf16 %v292_v12, %v291_v57  ;;  %v294_v35 = vld [vmem:[#allocation2 + $0xc5] sm:$0xff] }
  0xb6   :  { %4623 = vrot.lane.b32.xlu0 %v4622_v2, %s5245_s2  ;;  %v4657_v3 = vpack.i.bf16 %v294_v35, %v293_v56  ;;  %v160_v57 = vld [vmem:[#allocation2 + $0xc9] sm:$0xff] }
  0xb7   :  { %v5785_v46 = vpop.permute.xlu1 %513  ;;  %v295_v35 = vld [vmem:[#allocation2 + $0xcd] sm:$0xff] }
  0xb8   :  { %7488 = vst [vmem:[#allocation38_spill] sm:$0xff] %v5785_v46  ;;  %v5787_v44 = vpop.permute.xlu0 %4353  ;;  %v4652_v46 = vpack.i.bf16 %v159_v16, %v158_v58  ;;  %v269_v58 = vld [vmem:[#allocation2 + $0xd8] sm:$0xff]  ;;  %v4672_v16 = vpack.i.bf16 %v296_v4, %v295_v35 }
  0xb9   :  { %7489 = vst [vmem:[#allocation39_spill] sm:$0xff] %v5787_v44  ;;  %4638 = vrot.lane.b32.xlu1 %v4637_v5, %s5245_s2  ;;  %v320_v5 = vld [vmem:[#allocation2 + $0xbe] sm:$0xff] }
  0xba   :  { %4633 = vrot.lane.b32.xlu0 %v4632_v52, %s5246_s20  ;;  %v161_v52 = vld [vmem:[#allocation2 + $0xd1] sm:$0xff]  ;;  %v324_v4 = vld [vmem:[#allocation2 + $0xde] sm:$0xff] }
  0xbb   :  { %v5791_v40 = vpop.permute.xlu1 %4363  ;;  %v4667_v12 = vpack.i.bf16 %v161_v52, %v160_v57 }
  0xbc   :  { %v5793_v2 = vpop.permute.xlu0 %4358 }
  0xbd   :  { %4648 = vrot.lane.b32.xlu1 %v4647_v31, %s5246_s20  ;;  %v4662_v31 = vpack.i.bf16 %v321_v62, %v320_v5 }
  0xbe   :  { %4643 = vrot.lane.b32.xlu0 %v4642_v60, %s5247_s21 }
  0xbf   :  { %v5797_v44 = vpop.permute.xlu1 %4373 }
  0xc0   :  { %v5799_v6 = vpop.permute.xlu0 %4368 }
  0xc1   :  { %4658 = vrot.lane.b32.xlu1 %v4657_v3, %s5247_s21  ;;  %v323_v3 = vld [vmem:[#allocation2 + $0xd6] sm:$0xff] }
  0xc2   :  { %4653 = vrot.lane.b32.xlu0 %v4652_v46, %s5245_s2  ;;  %v270_v46 = vld [vmem:[#allocation2 + $0xd9] sm:$0xff]  ;;  %v4677_v5 = vpack.i.bf16 %v323_v3, %v322_v59  ;;  %v52_v59 = vld [vmem:[%s7379_s1 + $0x8] sm:$0xff] }
  0xc3   :  { %v5803_v56 = vpop.permute.xlu1 %4383 }
  0xc4   :  { %v5805_v60 = vpop.permute.xlu0 %4378 }
  0xc5   :  { %4668 = vrot.lane.b32.xlu1 %v4667_v12, %s5245_s2 }
  0xc6   :  { %4663 = vrot.lane.b32.xlu0 %v4662_v31, %s5246_s20  ;;  %v297_v31 = vld [vmem:[#allocation2 + $0xdd] sm:$0xff] }
  0xc7   :  { %v5809_v42 = vpop.permute.xlu1 %4393 }
  0xc8   :  { %7490 = vst [vmem:[#allocation40_spill] sm:$0xff] %v5809_v42  ;;  %v5811_v52 = vpop.permute.xlu0 %4388 }
  0xc9   :  { %729 = vrot.lane.b32.xlu1 %v269_v58, %s5244_s13 }
  0xca   :  { %4673 = vrot.lane.b32.xlu0 %v4672_v16, %s5247_s21  ;;  %v51_v16 = vld [vmem:[%s7379_s1] sm:$0xff] }
  0xcb   :  { %v5815_v62 = vpop.permute.xlu1 %4403 }
  0xcc   :  { %7491 = vst [vmem:[#allocation41_spill] sm:$0xff] %v5815_v62  ;;  %v5817_v57 = vpop.permute.xlu0 %4398  ;;  %v59_v62 = vld [vmem:[%s7379_s1 + $0x40] sm:$0xff] }
  0xcd   :  { %7492 = vst [vmem:[#allocation42_spill] sm:$0xff] %v5817_v57  ;;  %837 = vrot.lane.b32.xlu1 %v270_v46, %s5245_s2  ;;  %v53_v46 = vld [vmem:[%s7379_s1 + $0x10] sm:$0xff] }
  0xce   :  { %4678 = vrot.lane.b32.xlu0 %v4677_v5, %s5246_s20 }
  0xcf   :  { %v5821_v12 = vpop.permute.xlu1 %4413 }
  0xd0   :  { %7493 = vst [vmem:[#allocation43_spill] sm:$0xff] %v5821_v12  ;;  %v5823_v35 = vpop.permute.xlu0 %4408  ;;  %v57_v12 = vld [vmem:[%s7379_s1 + $0x30] sm:$0xff] }
  0xd1   :  { %7494 = vst [vmem:[#allocation44_spill] sm:$0xff] %v5823_v35  ;;  %1053 = vrot.lane.b32.xlu1 %v324_v4, %s5246_s20  ;;  %v54_v4 = vld [vmem:[%s7379_s1 + $0x18] sm:$0xff] }
  0xd2   :  { %945 = vrot.lane.b32.xlu0 %v297_v31, %s5247_s21 }
  0xd3   :  { %v5830_v58 = vpop.permute.xlu1 %621 }
  0xd4   :  { %7495 = vst [vmem:[#allocation45_spill] sm:$0xff] %v5830_v58  ;;  %v5835_v3 = vpop.permute.xlu0 %4418  ;;  %v55_v58 = vld [vmem:[%s7379_s1 + $0x20] sm:$0xff] }
  0xd5   :  { %7496 = vst [vmem:[#allocation46_spill] sm:$0xff] %v5835_v3  ;;  %1920 = vperm.xlu1 %4683, %v52_v59  }
  0xd6   :  { %1915 = vperm.xlu0 %4682, %v51_v16   ;;  %v56_v16 = vld [vmem:[%s7379_s1 + $0x28] sm:$0xff] }
  0xd7   :  { %v5840_v5 = vpop.permute.xlu1 %4428 }
  0xd8   :  { %v5845_v31 = vpop.permute.xlu0 %4423  ;;  %v4431_v55 = vunpack.i.h.bf16 %v5840_v5 }
  0xd9   :  { %1925 = vperm.xlu1 %4683, %v53_v46  }
  0xda   :  { %1930 = vperm.xlu0 %4682, %v54_v4   ;;  %v58_v4 = vld [vmem:[%s7379_s1 + $0x38] sm:$0xff] }
  0xdb   :  { %v5850_v59 = vpop.permute.xlu1 %4438 }
  0xdc   :  { %v5855_v3 = vpop.permute.xlu0 %4433 }
  0xdd   :  { %1935 = vperm.xlu1 %4683, %v55_v58  }
  0xde   :  { %1940 = vperm.xlu0 %4682, %v56_v16   ;;  %v60_v16 = vld [vmem:[%s7379_s1 + $0x48] sm:$0xff] }
  0xdf   :  { %v5860_v46 = vpop.permute.xlu1 %4448 }
  0xe0   :  { %v5865_v35 = vpop.permute.xlu0 %4443 }
  0xe1   :  { %1945 = vperm.xlu1 %4683, %v57_v12   ;;  %v4241_v12 = vunpack.i.h.bf16 %v5669_v11  ;;  %v4246_v11 = vunpack.i.h.bf16 %v5677_v23 }
  0xe2   :  { %1950 = vperm.xlu0 %4682, %v58_v4   ;;  %v62_v4 = vld [vmem:[%s7379_s1 + $0x58] sm:$0xff] }
  0xe3   :  { %v5870_v58 = vpop.permute.xlu1 %4458 }
  0xe4   :  { %7497 = vst [vmem:[#allocation47_spill] sm:$0xff] %v5870_v58  ;;  %v5875_v57 = vpop.permute.xlu0 %4453  ;;  %v4245_v58 = vunpack.i.l.bf16 %v5677_v23  ;;  %v5905_v23 = vsel %vm78_vm0, %v5665_v9, %v4241_v12  ;;  %v4425_v12 = vunpack.i.l.bf16 %v5845_v31 }
  0xe5   :  { %1955 = vperm.xlu1 %4683, %v59_v62   ;;  %v4231_v62 = vunpack.i.h.bf16 %v5671_v14  ;;  %v4300_v14 = vunpack.i.l.bf16 %v5737_v43 }
  0xe6   :  { %1960 = vperm.xlu0 %4682, %v60_v16   ;;  %v135_v16 = vld [vmem:[#allocation2 + $0x1] sm:$0xff]  ;;  %v5922_v43 = vsel %vm78_vm0, %v5667_v10, %v4245_v58 }
  0xe7   :  { %v5882_v25 = vpop.permute.xlu1 %4468  ;;  %v1083_v9 = vsel %vm78_vm0, %v5643_v21, %v4231_v62  ;;  %v65_v21 = vld [vmem:[%s7379_s1 + $0x70] sm:$0xff] }
  0xe8   :  { %7498 = vst [vmem:[#allocation48_spill] sm:$0xff] %v5882_v25  ;;  %v5888_v51 = vpop.permute.xlu0 %4463  ;;  %v4235_v25 = vunpack.i.l.bf16 %v5679_v27 }
  0xe9   :  { %7499 = vst [vmem:[#allocation49_spill] sm:$0xff] %v5888_v51  ;;  %1965 = vperm.xlu1 %4683, %v61_v50   ;;  %v4236_v51 = vunpack.i.h.bf16 %v5679_v27  ;;  %v1086_v50 = vsel %vm78_vm0, %v5659_v54, %v4240_v45  ;;  %v4295_v27 = vunpack.i.l.bf16 %v5739_v36  ;;  %v4361_v45 = vunpack.i.h.bf16 %v5793_v2 }
  0xea   :  { %1970 = vperm.xlu0 %4682, %v62_v4   ;;  %v4296_v4 = vunpack.i.h.bf16 %v5739_v36  ;;  %v4360_v54 = vunpack.i.l.bf16 %v5793_v2  ;;  %v4426_v36 = vunpack.i.h.bf16 %v5845_v31 }
  0xeb   :  { %v5899_v42 = vpop.permute.xlu1 %4478  ;;  %v1085_v31 = vsel %vm78_vm0, %v5657_v49, %v4236_v51 }
  0xec   :  { %7500 = vst [vmem:[#allocation50_spill] sm:$0xff] %v5899_v42  ;;  %v5913_v47 = vpop.permute.xlu0 %4473  ;;  %v1082_v42 = vsel %vm78_vm0, %v135_v16, %v4230_v7  ;;  %v1084_v7 = vsel %vm78_vm0, %v5645_v22, %v4235_v25  ;;  %v5930_v16 = vsel %vm78_vm0, %v5690_v8, %v4246_v11  ;;  %v66_v8 = vld [vmem:[%s7379_s1 + $0x78] sm:$0xff]  ;;  %v1111_v62 = vsel %vm1109_vm1, %v1083_v9, %v4296_v4  ;;  %v67_v9 = vld [vmem:[%s7379_s1 + $0x80] sm:$0xff] }
  0xed   :  { %7501 = vst [vmem:[#allocation51_spill] sm:$0xff] %v5913_v47  ;;  %1975 = vperm.xlu1 %4683, %v63_v63   ;;  %v5942_v22 = vsel %vm1109_vm1, %v1084_v7, %v4300_v14  ;;  %v5951_v11 = vsel %vm1109_vm1, %v1085_v31, %v4301_v37  ;;  %v1138_v51 = vsel %vm1137_vm2, %v4295_v27, %v4360_v54  ;;  %v4366_v7 = vunpack.i.h.bf16 %v5791_v40 }
  0xee   :  { %1980 = vperm.xlu0 %4682, %v64_v41   ;;  %v1110_v41 = vsel %vm1109_vm1, %v1082_v42, %v4295_v27  ;;  %v1139_v49 = vsel %vm1137_vm2, %v4296_v4, %v4361_v45  ;;  %v1166_v25 = vsel %vm1165_vm3, %v1138_v51, %v4425_v12 }
  0xef   :  { %v5937_v2 = vpop.permute.xlu1 %4488  ;;  %v1167_v42 = vsel %vm1165_vm3, %v1139_v49, %v4426_v36  ;;  %v1277_v51 = vpack.c.bf16 %v1111_v62, %v1110_v41  ;;  %v1141_v47 = vsel %vm1137_vm2, %v4301_v37, %v4366_v7  ;;  %v69_v41 = vld [vmem:[%s7379_s1 + $0x90] sm:$0xff]  ;;  %v4371_v62 = vunpack.i.h.bf16 %v5799_v6 }
  0xf0   :  { %7502 = vst [vmem:[#allocation52_spill] sm:$0xff] %v5937_v2  ;;  %v4484_v58 = vpop.permute.xlu0 %4483  ;;  %v4365_v2 = vunpack.i.l.bf16 %v5791_v40  ;;  %v68_v40 = vld [vmem:[%s7379_s1 + $0x88] sm:$0xff]  ;;  %v4435_v7 = vunpack.i.l.bf16 %v5855_v3 }
  0xf1   :  { %v4486_v10 = vunpack.i.h.bf16 %v4484_v58  ;;  %v4485_v63 = vunpack.i.l.bf16 %v4484_v58  ;;  %1985 = vperm.xlu1 %4683, %v65_v21  }
  0xf2   :  { %1990 = vperm.xlu0 %4682, %v66_v8   ;;  %v4306_v8 = vunpack.i.h.bf16 %v5745_v26  ;;  %v1140_v45 = vsel %vm1137_vm2, %v4300_v14, %v4365_v2  ;;  %v4436_v2 = vunpack.i.h.bf16 %v5855_v3  ;;  %v71_v3 = vld [vmem:[%s7379_s1 + $0xa0] sm:$0xff] }
  0xf3   :  { %v4499_v58 = vpop.permute.xlu1 %4498  ;;  %v1194_v27 = vsel %vm1193_vm4, %v1166_v25, %v4485_v63  ;;  %v1195_v4 = vsel %vm1193_vm4, %v1167_v42, %v4486_v10  ;;  %v7503_v25 = vunpack.i.l.bf16 %v5745_v26 }
  0xf4   :  { %v4501_v54 = vunpack.i.h.bf16 %v4499_v58  ;;  %v4500_v36 = vunpack.i.l.bf16 %v4499_v58  ;;  %v4494_v12 = vpop.permute.xlu0 %4493  ;;  %v1278_v21 = vpack.c.bf16 %v1195_v4, %v1194_v27  ;;  %v4430_v58 = vunpack.i.l.bf16 %v5840_v5  ;;  %v70_v5 = vld [vmem:[%s7379_s1 + $0x98] sm:$0xff] }
  0xf5   :  { %v4496_v49 = vunpack.i.h.bf16 %v4494_v12  ;;  %v4495_v31 = vunpack.i.l.bf16 %v4494_v12  ;;  %v5974_v42 = vsel %vm1109_vm1, %v1086_v50, %v7503_v25  ;;  %1995 = vperm.xlu1 %4683, %v67_v9   ;;  %v4370_v50 = vunpack.i.l.bf16 %v5799_v6 }
  0xf6   :  { %1630 = vmatprep.mubr.bf16.mxu0 %v1278_v21  ;;  %2000 = vperm.xlu0 %4682, %v68_v40  }
  0xf7   :  { %1631 = vmatmul.mubr.bf16.vlgmr.msra.gmra.mxu0 %v1277_v51  ;;  %v4509_v9 = vpop.permute.xlu1 %4508  ;;  %v1222_v14 = vsel %vm1221_vm5, %v4485_v63, %v4495_v31  ;;  %v1223_v37 = vsel %vm1221_vm5, %v4486_v10, %v4496_v49  ;;  %v1168_v10 = vsel %vm1165_vm3, %v1140_v45, %v4430_v58  ;;  %v1169_v31 = vsel %vm1165_vm3, %v1141_v47, %v4431_v55  ;;  %v72_v55 = vld [vmem:[%s7379_s1 + $0xa8] sm:$0xff] }
  0xf8   :  { %v4504_v27 = vpop.permute.xlu0 %4503  ;;  %v1250_v4 = vsel %vm1249_vm6, %v1222_v14, %v4500_v36  ;;  %v1251_v40 = vsel %vm1249_vm6, %v1223_v37, %v4501_v54  ;;  %v4510_v6 = vunpack.i.l.bf16 %v4509_v9  ;;  %v4511_v63 = vunpack.i.h.bf16 %v4509_v9 }
  0xf9   :  { %v4506_v12 = vunpack.i.h.bf16 %v4504_v27  ;;  %v4505_v21 = vunpack.i.l.bf16 %v4504_v27  ;;  %v1279_v51 = vpack.c.bf16 %v1251_v40, %v1250_v4  ;;  %2005 = vperm.xlu1 %4683, %v69_v41   ;;  %v5998_v49 = vsel %vm1109_vm1, %v5905_v23, %v4306_v8 }
  0xfa   :  { %2010 = vperm.xlu0 %4682, %v70_v5   ;;  %v7504_v54 = vmov %v7503_v25  ;;  %v1143_v25 = vsel %vm1137_vm2, %v4306_v8, %v4371_v62  ;;  %v4311_v27 = vunpack.i.h.bf16 %v5743_v61 }
  0xfb   :  { %v1142_v36 = vsel %vm1137_vm2, %v7504_v54, %v4370_v50  ;;  %1775 = vmatmul.mubr.bf16.vlgmr.msra.gmra.mxu1 %v1279_v51  ;;  %v4519_v41 = vpop.permute.xlu1 %4518  ;;  %v1196_v45 = vsel %vm1193_vm4, %v1168_v10, %v4505_v21  ;;  %v1197_v47 = vsel %vm1193_vm4, %v1169_v31, %v4506_v12  ;;  %v7505_v50 = vpack.c.bf16 %v5411_v32, %v5404_v28  ;;  %v73_v28 = vld [vmem:[%s7379_s1 + $0xb0] sm:$0xff] }
  0xfc   :  { %v4521_v23 = vunpack.i.h.bf16 %v4519_v41  ;;  %v4520_v58 = vunpack.i.l.bf16 %v4519_v41  ;;  %v4514_v9 = vpop.permute.xlu0 %4513  ;;  %v1282_v14 = vpack.c.bf16 %v1197_v47, %v1196_v45  ;;  %v1170_v26 = vsel %vm1165_vm3, %v1142_v36, %v4435_v7 }
  0xfd   :  { %3963 = vmatprep.mubr.msk.bf16.mxu1 %vm78_vm0, %v7505_v50  ;;  %v4516_v8 = vunpack.i.h.bf16 %v4514_v9  ;;  %v4515_v62 = vunpack.i.l.bf16 %v4514_v9  ;;  %v1171_v37 = vsel %vm1165_vm3, %v1143_v25, %v4436_v2  ;;  %v1224_v5 = vsel %vm1221_vm5, %v4505_v21, %v4510_v6  ;;  %2015 = vperm.xlu1 %4683, %v71_v3   ;;  %v75_v9 = vld [vmem:[%s7379_s1 + $0xc0] sm:$0xff] }
  0xfe   :  { %1638 = vmatprep.mubr.bf16.mxu0 %v1282_v14  ;;  %v1198_v4 = vsel %vm1193_vm4, %v1170_v26, %v4520_v58  ;;  %v1199_v40 = vsel %vm1193_vm4, %v1171_v37, %v4521_v23  ;;  %v1225_v7 = vsel %vm1221_vm5, %v4506_v12, %v4511_v63  ;;  %2020 = vperm.xlu0 %4682, %v72_v55   ;;  %v4375_v32 = vunpack.i.l.bf16 %v5797_v44  ;;  %v74_v12 = vld [vmem:[%s7379_s1 + $0xb8] sm:$0xff] }
  0xff   :  { %v7506_v2 = vpack.c.bf16 %v5951_v11, %v5942_v22  ;;  %v4529_v6 = vpop.permute.xlu1 %4528  ;;  %v1286_v21 = vpack.c.bf16 %v1199_v40, %v1198_v4  ;;  %v1252_v51 = vsel %vm1249_vm6, %v1224_v5, %v4515_v62  ;;  %v1253_v10 = vsel %vm1249_vm6, %v1225_v7, %v4516_v8  ;;  %v76_v8 = vld [vmem:[%s7379_s1 + $0xc8] sm:$0xff] }
 0x100   :  { %v4376_v63 = vunpack.i.h.bf16 %v5797_v44  ;;  %v4531_v31 = vunpack.i.h.bf16 %v4529_v6  ;;  %v4530_v3 = vunpack.i.l.bf16 %v4529_v6  ;;  %v4524_v54 = vpop.permute.xlu0 %4523  ;;  %v1283_v36 = vpack.c.bf16 %v1253_v10, %v1252_v51 }
 0x101   :  { %1639 = vmatmul.mubr.bf16.gmra.mxu0 %v7506_v2  ;;  %v4310_v25 = vunpack.i.l.bf16 %v5743_v61  ;;  %v4526_v22 = vunpack.i.h.bf16 %v4524_v54  ;;  %v4525_v11 = vunpack.i.l.bf16 %v4524_v54  ;;  %v1285_v41 = vpack.c.bf16 %v5998_v49, %v5974_v42  ;;  %2025 = vperm.xlu1 %4683, %v73_v28  }
 0x102   :  { %1646 = vmatprep.mubr.bf16.mxu0 %v1286_v21  ;;  %v4316_v45 = vunpack.i.h.bf16 %v5757_v1  ;;  %v4315_v47 = vunpack.i.l.bf16 %v5757_v1  ;;  %v4441_v55 = vunpack.i.h.bf16 %v5850_v59  ;;  %v4440_v44 = vunpack.i.l.bf16 %v5850_v59  ;;  %2030 = vperm.xlu0 %4682, %v74_v12  }
 0x103   :  { %v1144_v14 = vsel %vm1137_vm2, %v4310_v25, %v4375_v32  ;;  %v4380_v26 = vunpack.i.l.bf16 %v5805_v60  ;;  %1783 = vmatmul.mubr.bf16.gmra.mxu1 %v1283_v36  ;;  %v4539_v42 = vpop.permute.xlu1 %4538  ;;  %v1226_v49 = vsel %vm1221_vm5, %v4520_v58, %v4525_v11  ;;  %v1227_v50 = vsel %vm1221_vm5, %v4521_v23, %v4526_v22 }
 0x104   :  { %v1145_v59 = vsel %vm1137_vm2, %v4311_v27, %v4376_v63  ;;  %v4381_v62 = vunpack.i.h.bf16 %v5805_v60  ;;  %v4534_v37 = vpop.permute.xlu0 %4533  ;;  %v7507_v5 = vpack.c.bf16 %v5406_v29, %v5413_v33  ;;  %v1254_v58 = vsel %vm1249_vm6, %v1226_v49, %v4530_v3  ;;  %v77_v29 = vld [vmem:[%s7379_s1 + $0xd0] sm:$0xff] }
 0x105   :  { %v1255_v23 = vsel %vm1249_vm6, %v1227_v50, %v4531_v31  ;;  %v4541_v4 = vunpack.i.h.bf16 %v4539_v42  ;;  %v4540_v40 = vunpack.i.l.bf16 %v4539_v42  ;;  %v4536_v7 = vunpack.i.h.bf16 %v4534_v37  ;;  %2035 = vperm.xlu1 %4683, %v75_v9  }
 0x106   :  { %3964 = vmatprep.mubr.msk.bf16.mxu1 %vm78_vm0, %v7507_v5  ;;  %v4535_v28 = vunpack.i.l.bf16 %v4534_v37  ;;  %v4446_v32 = vunpack.i.h.bf16 %v5865_v35  ;;  %v4445_v2 = vunpack.i.l.bf16 %v5865_v35  ;;  %v1172_v60 = vsel %vm1165_vm3, %v1144_v14, %v4440_v44  ;;  %2040 = vperm.xlu0 %4682, %v76_v8  }
 0x107   :  { %v1173_v6 = vsel %vm1165_vm3, %v1145_v59, %v4441_v55  ;;  %v1146_v33 = vsel %vm1137_vm2, %v4315_v47, %v4380_v26  ;;  %v4549_v21 = vpop.permute.xlu1 %4548  ;;  %v1287_v35 = vpack.c.bf16 %v1255_v23, %v1254_v58  ;;  %v1147_v12 = vsel %vm1137_vm2, %v4316_v45, %v4381_v62 }
 0x108   :  { %v1200_v51 = vsel %vm1193_vm4, %v1172_v60, %v4535_v28  ;;  %v1201_v10 = vsel %vm1193_vm4, %v1173_v6, %v4536_v7  ;;  %v4551_v63 = vunpack.i.h.bf16 %v4549_v21  ;;  %v4550_v31 = vunpack.i.l.bf16 %v4549_v21  ;;  %v4544_v3 = vpop.permute.xlu0 %4543 }
 0x109   :  { %1647 = vmatmul.mubr.bf16.gmra.mxu0 %v1285_v41  ;;  %v1290_v54 = vpack.c.bf16 %v1201_v10, %v1200_v51  ;;  %v4546_v36 = vunpack.i.h.bf16 %v4544_v3  ;;  %v4545_v22 = vunpack.i.l.bf16 %v4544_v3  ;;  %v1228_v11 = vsel %vm1221_vm5, %v4535_v28, %v4540_v40  ;;  %2045 = vperm.xlu1 %4683, %v77_v29  }
 0x10a   :  { %v1229_v41 = vsel %vm1221_vm5, %v4536_v7, %v4541_v4  ;;  %v1116_v55 = vsel %vm1109_vm1, %v5922_v43, %v4310_v25  ;;  %v1117_v44 = vsel %vm1109_vm1, %v5930_v16, %v4311_v27  ;;  %v1174_v9 = vsel %vm1165_vm3, %v1146_v33, %v4445_v2 }
 0x10b   :  { %1654 = vmatprep.mubr.bf16.mxu0 %v1290_v54  ;;  %v1175_v14 = vsel %vm1165_vm3, %v1147_v12, %v4446_v32  ;;  %1791 = vmatmul.mubr.bf16.gmra.mxu1 %v1287_v35  ;;  %v4559_v26 = vpop.permute.xlu1 %4558  ;;  %v1202_v42 = vsel %vm1193_vm4, %v1174_v9, %v4550_v31  ;;  %v7508_v50 = vunpack.i.l.bf16 %v5687_v48  ;;  %v7509_v61 = vunpack.i.h.bf16 %v5687_v48 }
 0x10c   :  { %v1203_v49 = vsel %vm1193_vm4, %v1175_v14, %v4551_v63  ;;  %v4386_v27 = vunpack.i.h.bf16 %v5803_v56  ;;  %v4385_v25 = vunpack.i.l.bf16 %v5803_v56  ;;  %v4554_v8 = vpop.permute.xlu0 %4553  ;;  %v7510_v59 = vpack.c.bf16 %v5423_v38, %v5408_v30 }
 0x10d   :  { %v1090_v43 = vsel %vm78_vm0, %v5685_v17, %v7508_v50  ;;  %v1091_v16 = vsel %vm78_vm0, %v5699_v20, %v7509_v61  ;;  %v1256_v62 = vsel %vm1249_vm6, %v1228_v11, %v4545_v22  ;;  %v1257_v37 = vsel %vm1249_vm6, %v1229_v41, %v4546_v36 }
 0x10e   :  { %3965 = vmatprep.mubr.msk.bf16.mxu1 %vm78_vm0, %v7510_v59  ;;  %v4321_v17 = vunpack.i.h.bf16 %v5755_v0  ;;  %v4556_v48 = vunpack.i.h.bf16 %v4554_v8  ;;  %v4555_v5 = vunpack.i.l.bf16 %v4554_v8  ;;  %v1289_v58 = vpack.c.bf16 %v1117_v44, %v1116_v55 }
 0x10f   :  { %v4320_v20 = vunpack.i.l.bf16 %v5755_v0  ;;  %v4451_v23 = vunpack.i.h.bf16 %v5860_v46  ;;  %v4450_v56 = vunpack.i.l.bf16 %v5860_v46  ;;  %v1294_v4 = vpack.c.bf16 %v1203_v49, %v1202_v42  ;;  %v4569_v38 = vpop.permute.xlu1 %4568 }
 0x110   :  { %v4256_v30 = vunpack.i.h.bf16 %v5683_v15  ;;  %v1291_v40 = vpack.c.bf16 %v1257_v37, %v1256_v62  ;;  %v1118_v7 = vsel %vm1109_vm1, %v1090_v43, %v4315_v47  ;;  %v1119_v28 = vsel %vm1109_vm1, %v1091_v16, %v4316_v45  ;;  %v4564_v60 = vpop.permute.xlu0 %4563 }
 0x111   :  { %1655 = vmatmul.mubr.bf16.gmra.mxu0 %v1289_v58  ;;  %v1148_v0 = vsel %vm1137_vm2, %v4320_v20, %v4385_v25  ;;  %v1149_v32 = vsel %vm1137_vm2, %v4321_v17, %v4386_v27  ;;  %v4561_v2 = vunpack.i.h.bf16 %v4559_v26  ;;  %v4560_v46 = vunpack.i.l.bf16 %v4559_v26  ;;  %v7513_v58 = vld [vmem:[#allocation24_spill] sm:$0xff] }
 0x112   :  { %1662 = vmatprep.mubr.bf16.mxu0 %v1294_v4  ;;  %v4566_v6 = vunpack.i.h.bf16 %v4564_v60  ;;  %v4565_v29 = vunpack.i.l.bf16 %v4564_v60  ;;  %v1230_v33 = vsel %vm1221_vm5, %v4550_v31, %v4555_v5  ;;  %v1231_v21 = vsel %vm1221_vm5, %v4551_v63, %v4556_v48  ;;  %v7514_v4 = vld [vmem:[#allocation7_spill] sm:$0xff] }
 0x113   :  { %v1176_v47 = vsel %vm1165_vm3, %v1148_v0, %v4450_v56  ;;  %v1177_v1 = vsel %vm1165_vm3, %v1149_v32, %v4451_v23  ;;  %v7511_v45 = vunpack.i.l.bf16 %v5683_v15  ;;  %v4261_v10 = vunpack.i.h.bf16 %v5697_v19  ;;  %v6128_v35 = vpop.permute.xlu1 %4578  ;;  %1799 = vmatmul.mubr.bf16.gmra.mxu1 %v1291_v40  ;;  %v7518_v0 = vld [vmem:[#allocation40_spill] sm:$0xff] }
 0x114   :  { %v1204_v12 = vsel %vm1193_vm4, %v1176_v47, %v4565_v29  ;;  %v1205_v31 = vsel %vm1193_vm4, %v1177_v1, %v4566_v6  ;;  %v1093_v63 = vsel %vm78_vm0, %v5718_v18, %v4256_v30  ;;  %v4260_v3 = vunpack.i.l.bf16 %v5697_v19  ;;  %v4574_v54 = vpop.permute.xlu0 %4573  ;;  %v7515_v30 = vld [vmem:[#allocation4_spill] sm:$0xff] }
 0x115   :  { %v1092_v51 = vsel %vm78_vm0, %v5701_v24, %v7511_v45  ;;  %v1293_v36 = vpack.c.bf16 %v1119_v28, %v1118_v7  ;;  %v7512_v15 = vpack.c.bf16 %v5415_v34, %v5425_v39  ;;  %v1258_v24 = vsel %vm1249_vm6, %v1230_v33, %v4560_v46  ;;  %v7517_v7 = vld [vmem:[#allocation27_spill] sm:$0xff] }
 0x116   :  { %v1259_v22 = vsel %vm1249_vm6, %v1231_v21, %v4561_v2  ;;  %v4391_v11 = vunpack.i.h.bf16 %v5811_v52  ;;  %v4390_v41 = vunpack.i.l.bf16 %v5811_v52  ;;  %v4571_v55 = vunpack.i.h.bf16 %v4569_v38  ;;  %v7520_v33 = vld [vmem:[#allocation47_spill] sm:$0xff] }
 0x117   :  { %3966 = vmatprep.mubr.msk.bf16.mxu1 %vm78_vm0, %v7512_v15  ;;  %v4570_v44 = vunpack.i.l.bf16 %v4569_v38  ;;  %v4326_v18 = vunpack.i.h.bf16 %v5766_v53  ;;  %v4456_v19 = vunpack.i.h.bf16 %v5875_v57  ;;  %v4455_v9 = vunpack.i.l.bf16 %v5875_v57  ;;  %v6149_v42 = vpop.permute.xlu1 %4588 }
 0x118   :  { %v1298_v14 = vpack.c.bf16 %v1205_v31, %v1204_v12  ;;  %v4325_v34 = vunpack.i.l.bf16 %v5766_v53  ;;  %v4581_v39 = vunpack.i.h.bf16 %v6128_v35  ;;  %v4580_v26 = vunpack.i.l.bf16 %v6128_v35  ;;  %v4584_v43 = vpop.permute.xlu0 %4583 }
 0x119   :  { %1663 = vmatmul.mubr.bf16.gmra.mxu0 %v1293_v36  ;;  %v1295_v49 = vpack.c.bf16 %v1259_v22, %v1258_v24  ;;  %v4576_v52 = vunpack.i.h.bf16 %v4574_v54  ;;  %v4575_v50 = vunpack.i.l.bf16 %v4574_v54  ;;  %v1120_v61 = vsel %vm1109_vm1, %v1092_v51, %v4320_v20 }
 0x11a   :  { %1670 = vmatprep.mubr.bf16.mxu0 %v1298_v14  ;;  %v1121_v16 = vsel %vm1109_vm1, %v1093_v63, %v4321_v17  ;;  %v1150_v57 = vsel %vm1137_vm2, %v4325_v34, %v4390_v41  ;;  %v1151_v53 = vsel %vm1137_vm2, %v4326_v18, %v4391_v11  ;;  %v1232_v27 = vsel %vm1221_vm5, %v4565_v29, %v4570_v44  ;;  %v7521_v44 = vld [vmem:[#allocation28_spill] sm:$0xff] }
 0x11b   :  { %v1233_v25 = vsel %vm1221_vm5, %v4566_v6, %v4571_v55  ;;  %v4266_v8 = vunpack.i.h.bf16 %v5695_v13  ;;  %v1178_v59 = vsel %vm1165_vm3, %v1150_v57, %v4455_v9  ;;  %v1179_v62 = vsel %vm1165_vm3, %v1151_v53, %v4456_v19  ;;  %v6161_v48 = vpop.permute.xlu1 %4598  ;;  %1807 = vmatmul.mubr.bf16.gmra.mxu1 %v1295_v49  ;;  %v7519_v6 = vld [vmem:[#allocation32_spill] sm:$0xff]  ;;  %v7522_v9 = vld [vmem:[#allocation21_spill] sm:$0xff]  ;;  %v7527_v53 = vld [vmem:[#allocation42_spill] sm:$0xff] }
 0x11c   :  { %v4265_v37 = vunpack.i.l.bf16 %v5695_v13  ;;  %v1206_v17 = vsel %vm1193_vm4, %v1178_v59, %v4580_v26  ;;  %v1207_v5 = vsel %vm1193_vm4, %v1179_v62, %v4581_v39  ;;  %v1094_v20 = vsel %vm78_vm0, %v7513_v58, %v4260_v3  ;;  %v6167_v23 = vpop.permute.xlu0 %4593  ;;  %v7528_v62 = vld [vmem:[#allocation34_spill] sm:$0xff] }
 0x11d   :  { %v1297_v56 = vpack.c.bf16 %v1121_v16, %v1120_v61  ;;  %v7516_v38 = vpack.c.bf16 %v7514_v4, %v7515_v30  ;;  %v1260_v13 = vsel %vm1249_vm6, %v1232_v27, %v4575_v50  ;;  %v1261_v40 = vsel %vm1249_vm6, %v1233_v25, %v4576_v52  ;;  %v7524_v50 = vld [vmem:[#allocation5_spill] sm:$0xff] }
 0x11e   :  { %v1095_v28 = vsel %vm78_vm0, %v7517_v7, %v4261_v10  ;;  %v4396_v32 = vunpack.i.h.bf16 %v7518_v0  ;;  %v4395_v2 = vunpack.i.l.bf16 %v7518_v0  ;;  %v4586_v46 = vunpack.i.h.bf16 %v4584_v43 }
 0x11f   :  { %3967 = vmatprep.mubr.msk.bf16.mxu1 %vm78_vm0, %v7516_v38  ;;  %v4585_v60 = vunpack.i.l.bf16 %v4584_v43  ;;  %v4331_v29 = vunpack.i.h.bf16 %v7519_v6  ;;  %v4461_v21 = vunpack.i.h.bf16 %v7520_v33  ;;  %v4460_v47 = vunpack.i.l.bf16 %v7520_v33  ;;  %v6187_v63 = vpop.permute.xlu1 %4608  ;;  %v7525_v43 = vld [vmem:[#allocation8_spill] sm:$0xff] }
 0x120   :  { %v1302_v1 = vpack.c.bf16 %v1207_v5, %v1206_v17  ;;  %v4330_v45 = vunpack.i.l.bf16 %v7519_v6  ;;  %v4596_v51 = vunpack.i.h.bf16 %v6167_v23  ;;  %v4595_v35 = vunpack.i.l.bf16 %v6167_v23  ;;  %v4604_v3 = vpop.permute.xlu0 %4603  ;;  %v7529_v17 = vld [vmem:[#allocation49_spill] sm:$0xff] }
 0x121   :  { %1671 = vmatmul.mubr.bf16.gmra.mxu0 %v1297_v56  ;;  %v1299_v10 = vpack.c.bf16 %v1261_v40, %v1260_v13  ;;  %v4591_v12 = vunpack.i.h.bf16 %v6149_v42  ;;  %v4590_v31 = vunpack.i.l.bf16 %v6149_v42  ;;  %v1122_v54 = vsel %vm1109_vm1, %v1094_v20, %v4325_v34  ;;  %v7523_v42 = vld [vmem:[#allocation29_spill] sm:$0xff] }
 0x122   :  { %1678 = vmatprep.mubr.bf16.mxu0 %v1302_v1  ;;  %v1123_v36 = vsel %vm1109_vm1, %v1095_v28, %v4326_v18  ;;  %v1152_v15 = vsel %vm1137_vm2, %v4330_v45, %v4395_v2  ;;  %v1153_v24 = vsel %vm1137_vm2, %v4331_v29, %v4396_v32  ;;  %v1234_v22 = vsel %vm1221_vm5, %v4580_v26, %v4585_v60 }
 0x123   :  { %v1235_v11 = vsel %vm1221_vm5, %v4581_v39, %v4586_v46  ;;  %v1180_v41 = vsel %vm1165_vm3, %v1152_v15, %v4460_v47  ;;  %v1181_v55 = vsel %vm1165_vm3, %v1153_v24, %v4461_v21  ;;  %v1096_v19 = vsel %vm78_vm0, %v7521_v44, %v4265_v37  ;;  %1815 = vmatmul.mubr.bf16.gmra.mxu1 %v1299_v10  ;;  %v6220_v20 = vpop.permute.xlu1 %4618  ;;  %v7530_v46 = vld [vmem:[#allocation20_spill] sm:$0xff]  ;;  %v7536_v24 = vld [vmem:[#allocation41_spill] sm:$0xff] }
 0x124   :  { %v4271_v14 = vunpack.i.h.bf16 %v7522_v9  ;;  %v1208_v18 = vsel %vm1193_vm4, %v1180_v41, %v4595_v35  ;;  %v1209_v34 = vsel %vm1193_vm4, %v1181_v55, %v4596_v51  ;;  %v1097_v49 = vsel %vm78_vm0, %v7523_v42, %v4266_v8  ;;  %v6205_v39 = vpop.permute.xlu0 %4613  ;;  %v7537_v44 = vld [vmem:[#allocation33_spill] sm:$0xff] }
 0x125   :  { %v4270_v26 = vunpack.i.l.bf16 %v7522_v9  ;;  %v1301_v52 = vpack.c.bf16 %v1123_v36, %v1122_v54  ;;  %v7526_v61 = vpack.c.bf16 %v7524_v50, %v7525_v43  ;;  %v1262_v16 = vsel %vm1249_vm6, %v1234_v22, %v4590_v31  ;;  %v7533_v31 = vld [vmem:[#allocation6_spill] sm:$0xff]  ;;  %v7535_v36 = vld [vmem:[#allocation31_spill] sm:$0xff]  ;;  %v7538_v9 = vld [vmem:[#allocation48_spill] sm:$0xff] }
 0x126   :  { %v1263_v57 = vsel %vm1249_vm6, %v1235_v11, %v4591_v12  ;;  %v4401_v27 = vunpack.i.h.bf16 %v7527_v53  ;;  %v4400_v25 = vunpack.i.l.bf16 %v7527_v53  ;;  %v4601_v8 = vunpack.i.h.bf16 %v6161_v48  ;;  %v7532_v12 = vld [vmem:[#allocation11_spill] sm:$0xff] }
 0x127   :  { %3968 = vmatprep.mubr.msk.bf16.mxu1 %vm78_vm0, %v7526_v61  ;;  %v4600_v59 = vunpack.i.l.bf16 %v6161_v48  ;;  %v4336_v37 = vunpack.i.h.bf16 %v7528_v62  ;;  %v4466_v5 = vunpack.i.h.bf16 %v7529_v17  ;;  %v4465_v58 = vunpack.i.l.bf16 %v7529_v17  ;;  %v6241_v10 = vpop.permute.xlu1 %4628  ;;  %v5193_v17 = vld [vmem:[#allocation2 + $0x91] sm:$0xff] }
 0x128   :  { %v1306_v23 = vpack.c.bf16 %v1209_v34, %v1208_v18  ;;  %v4335_v56 = vunpack.i.l.bf16 %v7528_v62  ;;  %v4611_v4 = vunpack.i.h.bf16 %v6187_v63  ;;  %v4610_v30 = vunpack.i.l.bf16 %v6187_v63  ;;  %v6232_v6 = vpop.permute.xlu0 %4623 }
 0x129   :  { %1679 = vmatmul.mubr.bf16.gmra.mxu0 %v1301_v52  ;;  %v1303_v38 = vpack.c.bf16 %v1263_v57, %v1262_v16  ;;  %v4606_v13 = vunpack.i.h.bf16 %v4604_v3  ;;  %v4605_v40 = vunpack.i.l.bf16 %v4604_v3  ;;  %v1124_v48 = vsel %vm1109_vm1, %v1096_v19, %v4330_v45  ;;  %v7531_v45 = vld [vmem:[#allocation30_spill] sm:$0xff] }
 0x12a   :  { %1686 = vmatprep.mubr.bf16.mxu0 %v1306_v23  ;;  %v1125_v7 = vsel %vm1109_vm1, %v1097_v49, %v4331_v29  ;;  %v1154_v28 = vsel %vm1137_vm2, %v4335_v56, %v4400_v25  ;;  %v1155_v0 = vsel %vm1137_vm2, %v4336_v37, %v4401_v27  ;;  %v1236_v32 = vsel %vm1221_vm5, %v4595_v35, %v4600_v59 }
 0x12b   :  { %v1237_v2 = vsel %vm1221_vm5, %v4596_v51, %v4601_v8  ;;  %v4276_v60 = vunpack.i.h.bf16 %v7530_v46  ;;  %v1182_v33 = vsel %vm1165_vm3, %v1154_v28, %v4465_v58  ;;  %v1183_v21 = vsel %vm1165_vm3, %v1155_v0, %v4466_v5  ;;  %1823 = vmatmul.mubr.bf16.gmra.mxu1 %v1303_v38  ;;  %v6269_v8 = vpop.permute.xlu1 %4638  ;;  %v7539_v58 = vld [vmem:[#allocation23_spill] sm:$0xff]  ;;  %v7544_v0 = vld [vmem:[#allocation44_spill] sm:$0xff] }
 0x12c   :  { %v4275_v47 = vunpack.i.l.bf16 %v7530_v46  ;;  %v1210_v29 = vsel %vm1193_vm4, %v1182_v33, %v4610_v30  ;;  %v1211_v1 = vsel %vm1193_vm4, %v1183_v21, %v4611_v4  ;;  %v1098_v35 = vsel %vm78_vm0, %v7531_v45, %v4270_v26  ;;  %v7546_v21 = vld [vmem:[#allocation51_spill] sm:$0xff] }
 0x12d   :  { %v1305_v51 = vpack.c.bf16 %v1125_v7, %v1124_v48  ;;  %v7534_v63 = vpack.c.bf16 %v7532_v12, %v7533_v31  ;;  %v1264_v3 = vsel %vm1249_vm6, %v1236_v32, %v4605_v40  ;;  %v1265_v54 = vsel %vm1249_vm6, %v1237_v2, %v4606_v13  ;;  %v7541_v13 = vld [vmem:[#allocation9_spill] sm:$0xff]  ;;  %v7542_v40 = vld [vmem:[#allocation12_spill] sm:$0xff] }
 0x12e   :  { %v1099_v15 = vsel %vm78_vm0, %v7535_v36, %v4271_v14  ;;  %v4406_v22 = vunpack.i.h.bf16 %v7536_v24  ;;  %v4405_v11 = vunpack.i.l.bf16 %v7536_v24  ;;  %v4616_v41 = vunpack.i.h.bf16 %v6205_v39 }
 0x12f   :  { %3969 = vmatprep.mubr.msk.bf16.mxu1 %vm78_vm0, %v7534_v63  ;;  %v4615_v55 = vunpack.i.l.bf16 %v6205_v39  ;;  %v4341_v19 = vunpack.i.h.bf16 %v7537_v44  ;;  %v4471_v18 = vunpack.i.h.bf16 %v7538_v9  ;;  %v4470_v34 = vunpack.i.l.bf16 %v7538_v9  ;;  %v4634_v39 = vpop.permute.xlu0 %4633 }
 0x130   :  { %v1310_v42 = vpack.c.bf16 %v1211_v1, %v1210_v29  ;;  %v4340_v49 = vunpack.i.l.bf16 %v7537_v44  ;;  %v4626_v26 = vunpack.i.h.bf16 %v6232_v6  ;;  %v4625_v14 = vunpack.i.l.bf16 %v6232_v6  ;;  %v7545_v6 = vld [vmem:[#allocation37_spill] sm:$0xff] }
 0x131   :  { %1687 = vmatmul.mubr.bf16.gmra.mxu0 %v1305_v51  ;;  %v1307_v52 = vpack.c.bf16 %v1265_v54, %v1264_v3  ;;  %v4621_v50 = vunpack.i.h.bf16 %v6220_v20  ;;  %v4620_v43 = vunpack.i.l.bf16 %v6220_v20  ;;  %v1126_v61 = vsel %vm1109_vm1, %v1098_v35, %v4335_v56  ;;  %v7540_v56 = vld [vmem:[#allocation35_spill] sm:$0xff]  ;;  %v4649_v54 = vpop.permute.xlu1 %4648 }
 0x132   :  { %1694 = vmatprep.mubr.bf16.mxu0 %v1310_v42  ;;  %v1127_v16 = vsel %vm1109_vm1, %v1099_v15, %v4336_v37  ;;  %v1156_v57 = vsel %vm1137_vm2, %v4340_v49, %v4405_v11  ;;  %v1157_v53 = vsel %vm1137_vm2, %v4341_v19, %v4406_v22  ;;  %v1238_v27 = vsel %vm1221_vm5, %v4610_v30, %v4615_v55 }
 0x133   :  { %v1239_v25 = vsel %vm1221_vm5, %v4611_v4, %v4616_v41  ;;  %v1184_v59 = vsel %vm1165_vm3, %v1156_v57, %v4470_v34  ;;  %v1185_v62 = vsel %vm1165_vm3, %v1157_v53, %v4471_v18  ;;  %v1100_v5 = vsel %vm78_vm0, %v5193_v17, %v4275_v47  ;;  %1831 = vmatmul.mubr.bf16.gmra.mxu1 %v1307_v52  ;;  %v4644_v1 = vpop.permute.xlu0 %4643  ;;  %v5194_v18 = vld [vmem:[#allocation2 + $0xa1] sm:$0xff] }
 0x134   :  { %v4281_v20 = vunpack.i.h.bf16 %v7539_v58  ;;  %v1212_v37 = vsel %vm1193_vm4, %v1184_v59, %v4625_v14  ;;  %v1213_v23 = vsel %vm1193_vm4, %v1185_v62, %v4626_v26  ;;  %v1101_v30 = vsel %vm78_vm0, %v7540_v56, %v4276_v60  ;;  %v7548_v52 = vld [vmem:[#allocation10_spill] sm:$0xff] }
 0x135   :  { %v4280_v4 = vunpack.i.l.bf16 %v7539_v58  ;;  %v1309_v38 = vpack.c.bf16 %v1127_v16, %v1126_v61  ;;  %v7543_v48 = vpack.c.bf16 %v7541_v13, %v7542_v40  ;;  %v1266_v7 = vsel %vm1249_vm6, %v1238_v27, %v4620_v43  ;;  %v5195_v43 = vld [vmem:[#allocation2 + $0xa9] sm:$0xff]  ;;  %v7552_v59 = vld [vmem:[#allocation50_spill] sm:$0xff] }
 0x136   :  { %v1267_v28 = vsel %vm1249_vm6, %v1239_v25, %v4621_v50  ;;  %v4411_v32 = vunpack.i.h.bf16 %v7544_v0  ;;  %v4410_v2 = vunpack.i.l.bf16 %v7544_v0  ;;  %v4631_v46 = vunpack.i.h.bf16 %v6241_v10  ;;  %v7550_v61 = vld [vmem:[#allocation43_spill] sm:$0xff]  ;;  %v7551_v25 = vld [vmem:[#allocation36_spill] sm:$0xff] }
 0x137   :  { %3970 = vmatprep.mubr.msk.bf16.mxu1 %vm78_vm0, %v7543_v48  ;;  %v4630_v60 = vunpack.i.l.bf16 %v6241_v10  ;;  %v4346_v33 = vunpack.i.h.bf16 %v7545_v6  ;;  %v4476_v47 = vunpack.i.h.bf16 %v7546_v21  ;;  %v4475_v29 = vunpack.i.l.bf16 %v7546_v21  ;;  %v6307_v34 = vpop.permute.xlu0 %4653 }
 0x138   :  { %v1314_v45 = vpack.c.bf16 %v1213_v23, %v1212_v37  ;;  %v4345_v35 = vunpack.i.l.bf16 %v7545_v6  ;;  %v4641_v51 = vunpack.i.h.bf16 %v6269_v8  ;;  %v4640_v12 = vunpack.i.l.bf16 %v6269_v8 }
 0x139   :  { %1695 = vmatmul.mubr.bf16.gmra.mxu0 %v1309_v38  ;;  %v1311_v31 = vpack.c.bf16 %v1267_v28, %v1266_v7  ;;  %v4636_v63 = vunpack.i.h.bf16 %v4634_v39  ;;  %v4635_v3 = vunpack.i.l.bf16 %v4634_v39  ;;  %v1128_v10 = vsel %vm1109_vm1, %v1100_v5, %v4340_v49  ;;  %v7547_v49 = vld [vmem:[#allocation15_spill] sm:$0xff]  ;;  %v4659_v5 = vpop.permute.xlu1 %4658 }
 0x13a   :  { %1702 = vmatprep.mubr.bf16.mxu0 %v1314_v45  ;;  %v1129_v36 = vsel %vm1109_vm1, %v1101_v30, %v4341_v19  ;;  %v1158_v15 = vsel %vm1137_vm2, %v4345_v35, %v4410_v2  ;;  %v1159_v24 = vsel %vm1137_vm2, %v4346_v33, %v4411_v32  ;;  %v1240_v22 = vsel %vm1221_vm5, %v4625_v14, %v4630_v60  ;;  %v7555_v45 = vld [vmem:[#allocation16_spill] sm:$0xff] }
 0x13b   :  { %v1241_v11 = vsel %vm1221_vm5, %v4626_v26, %v4631_v46  ;;  %v1186_v41 = vsel %vm1165_vm3, %v1158_v15, %v4475_v29  ;;  %v1187_v55 = vsel %vm1165_vm3, %v1159_v24, %v4476_v47  ;;  %1839 = vmatmul.mubr.bf16.gmra.mxu1 %v1311_v31  ;;  %v1102_v19 = vsel %vm78_vm0, %v5194_v18, %v4280_v4  ;;  %v4664_v0 = vpop.permute.xlu0 %4663  ;;  %v7553_v46 = vld [vmem:[#allocation22_spill] sm:$0xff]  ;;  %v7559_v24 = vld [vmem:[#allocation52_spill] sm:$0xff] }
 0x13c   :  { %v1214_v44 = vsel %vm1193_vm4, %v1186_v41, %v4640_v12  ;;  %v1215_v9 = vsel %vm1193_vm4, %v1187_v55, %v4641_v51  ;;  %v1313_v42 = vpack.c.bf16 %v1129_v36, %v1128_v10  ;;  %v7549_v14 = vpack.c.bf16 %v7547_v49, %v7548_v52  ;;  %v7557_v31 = vld [vmem:[#allocation46_spill] sm:$0xff]  ;;  %v7558_v36 = vld [vmem:[#allocation39_spill] sm:$0xff]  ;;  %v5196_v49 = vld [vmem:[#allocation2 + $0xb1] sm:$0xff] }
 0x13d   :  { %v1268_v26 = vsel %vm1249_vm6, %v1240_v22, %v4635_v3  ;;  %v1269_v50 = vsel %vm1249_vm6, %v1241_v11, %v4636_v63  ;;  %v1103_v39 = vsel %vm78_vm0, %v5195_v43, %v4281_v20  ;;  %v4416_v16 = vunpack.i.h.bf16 %v7550_v61  ;;  %v4669_v47 = vpop.permute.xlu1 %4668 }
 0x13e   :  { %3971 = vmatprep.mubr.msk.bf16.mxu1 %vm78_vm0, %v7549_v14  ;;  %v4415_v57 = vunpack.i.l.bf16 %v7550_v61  ;;  %v4646_v53 = vunpack.i.h.bf16 %v4644_v1  ;;  %v4645_v27 = vunpack.i.l.bf16 %v4644_v1  ;;  %v4351_v8 = vunpack.i.h.bf16 %v7551_v25  ;;  %v7554_v1 = vld [vmem:[#allocation13_spill] sm:$0xff] }
 0x13f   :  { %v4481_v62 = vunpack.i.h.bf16 %v7552_v59  ;;  %v4480_v17 = vunpack.i.l.bf16 %v7552_v59  ;;  %v1318_v58 = vpack.c.bf16 %v1215_v9, %v1214_v44  ;;  %v4350_v37 = vunpack.i.l.bf16 %v7551_v25  ;;  %v5197_v14 = vld [vmem:[#allocation2 + $0xb9] sm:$0xff] }
 0x140   :  { %v4656_v23 = vunpack.i.h.bf16 %v6307_v34  ;;  %v4655_v20 = vunpack.i.l.bf16 %v6307_v34  ;;  %v1315_v56 = vpack.c.bf16 %v1269_v50, %v1268_v26  ;;  %v4651_v30 = vunpack.i.h.bf16 %v4649_v54 }
 0x141   :  { %1703 = vmatmul.mubr.bf16.gmra.mxu0 %v1313_v42  ;;  %v4650_v4 = vunpack.i.l.bf16 %v4649_v54  ;;  %v1130_v38 = vsel %vm1109_vm1, %v1102_v19, %v4345_v35  ;;  %v1131_v13 = vsel %vm1109_vm1, %v1103_v39, %v4346_v33  ;;  %v1160_v40 = vsel %vm1137_vm2, %v4350_v37, %v4415_v57  ;;  %v4674_v19 = vpop.permute.xlu0 %4673 }
 0x142   :  { %1710 = vmatprep.mubr.bf16.mxu0 %v1318_v58  ;;  %v1161_v48 = vsel %vm1137_vm2, %v4351_v8, %v4416_v16  ;;  %v1242_v7 = vsel %vm1221_vm5, %v4640_v12, %v4645_v27  ;;  %v1243_v28 = vsel %vm1221_vm5, %v4641_v51, %v4646_v53  ;;  %v1188_v32 = vsel %vm1165_vm3, %v1160_v40, %v4480_v17  ;;  %v730_v16 = vpop.permute.xlu1 %729  ;;  %v7560_v17 = vld [vmem:[#allocation26_spill] sm:$0xff]  ;;  %v7561_v58 = vld [vmem:[#allocation19_spill] sm:$0xff] }
 0x143   :  { %v1189_v2 = vsel %vm1165_vm3, %v1161_v48, %v4481_v62  ;;  %v4286_v60 = vunpack.i.h.bf16 %v7553_v46  ;;  %1847 = vmatmul.mubr.bf16.gmra.mxu1 %v1315_v56  ;;  %v1216_v6 = vsel %vm1193_vm4, %v1188_v32, %v4655_v20  ;;  %v4285_v21 = vunpack.i.l.bf16 %v7553_v46  ;;  %v5198_v32 = vld [vmem:[#allocation2 + $0xc1] sm:$0xff]  ;;  %v7564_v46 = vld [vmem:[#allocation45_spill] sm:$0xff] }
 0x144   :  { %v1217_v33 = vsel %vm1193_vm4, %v1189_v2, %v4656_v23  ;;  %v1317_v29 = vpack.c.bf16 %v1131_v13, %v1130_v38  ;;  %v7556_v35 = vpack.c.bf16 %v7554_v1, %v7555_v45  ;;  %v1270_v51 = vsel %vm1249_vm6, %v1242_v7, %v4650_v4 }
 0x145   :  { %v1271_v12 = vsel %vm1249_vm6, %v1243_v28, %v4651_v30  ;;  %v4421_v63 = vunpack.i.h.bf16 %v7557_v31  ;;  %v4420_v3 = vunpack.i.l.bf16 %v7557_v31  ;;  %v4661_v54 = vunpack.i.h.bf16 %v4659_v5  ;;  %v4679_v13 = vpop.permute.xlu0 %4678  ;;  %v7567_v31 = vld [vmem:[#allocation17_spill] sm:$0xff] }
 0x146   :  { %3972 = vmatprep.mubr.msk.bf16.mxu1 %vm78_vm0, %v7556_v35  ;;  %v4660_v10 = vunpack.i.l.bf16 %v4659_v5  ;;  %v4356_v15 = vunpack.i.h.bf16 %v7558_v36  ;;  %v4491_v22 = vunpack.i.h.bf16 %v7559_v24  ;;  %v4490_v11 = vunpack.i.l.bf16 %v7559_v24  ;;  %v838_v7 = vpop.permute.xlu1 %837 }
 0x147   :  { %v1322_v41 = vpack.c.bf16 %v1217_v33, %v1216_v6  ;;  %v4355_v55 = vunpack.i.l.bf16 %v7558_v36  ;;  %v4671_v44 = vunpack.i.h.bf16 %v4669_v47  ;;  %v4670_v9 = vunpack.i.l.bf16 %v4669_v47  ;;  %v5199_v33 = vld [vmem:[#allocation2 + $0xc9] sm:$0xff]  ;;  %v325_v36 = vld [vmem:[#allocation2 + $0xdf] sm:$0xff] }
 0x148   :  { %v1319_v18 = vpack.c.bf16 %v1271_v12, %v1270_v51  ;;  %v4666_v34 = vunpack.i.h.bf16 %v4664_v0  ;;  %v4665_v42 = vunpack.i.l.bf16 %v4664_v0  ;;  %v1104_v52 = vsel %vm78_vm0, %v5196_v49, %v4285_v21  ;;  %v7566_v12 = vld [vmem:[#allocation18_spill] sm:$0xff] }
 0x149   :  { %1711 = vmatmul.mubr.bf16.gmra.mxu0 %v1317_v29  ;;  %v1105_v26 = vsel %vm78_vm0, %v5197_v14, %v4286_v60  ;;  %v1162_v50 = vsel %vm1137_vm2, %v4355_v55, %v4420_v3  ;;  %v1163_v43 = vsel %vm1137_vm2, %v4356_v15, %v4421_v63  ;;  %v1244_v39 = vsel %vm1221_vm5, %v4655_v20, %v4660_v10  ;;  %v7562_v20 = vld [vmem:[#allocation14_spill] sm:$0xff]  ;;  %v5167_v14 = vld [vmem:[%s7380_s4 + $0x38] sm:$0xff]  }
 0x14a   :  { %1718 = vmatprep.mubr.bf16.mxu0 %v1322_v41  ;;  %v1245_v61 = vsel %vm1221_vm5, %v4656_v23, %v4661_v54  ;;  %v1132_v57 = vsel %vm1109_vm1, %v1104_v52, %v4350_v37  ;;  %v1133_v53 = vsel %vm1109_vm1, %v1105_v26, %v4351_v8  ;;  %v1190_v27 = vsel %vm1165_vm3, %v1162_v50, %v4490_v11  ;;  %v7565_v60 = vld [vmem:[#allocation38_spill] sm:$0xff]  ;;  %v5200_v41 = vld [vmem:[#allocation2 + $0xd1] sm:$0xff] }
 0x14b   :  { %v1191_v25 = vsel %vm1165_vm3, %v1163_v43, %v4491_v22  ;;  %1855 = vmatmul.mubr.bf16.gmra.mxu1 %v1319_v18  ;;  %v1218_v59 = vsel %vm1193_vm4, %v1190_v27, %v4670_v9  ;;  %v4290_v5 = vunpack.i.l.bf16 %v7560_v17  ;;  %v7563_v56 = vpack.c.bf16 %v7561_v58, %v7562_v20  ;;  %v946_v22 = vpop.permute.xlu0 %945  ;;  %v1054_v18 = vpop.permute.xlu1 %1053  ;;  %v5166_v52 = vld [vmem:[%s7380_s4 + $0x78] sm:$0xff]   ;;  %v5169_v43 = vld [vmem:[%s7380_s4 + $0xb0] sm:$0xff]   ;;  %v5175_v58 = vld [vmem:[%s7380_s4 + $0x28] sm:$0xff]  }
 0x14c   :  { %v1219_v62 = vsel %vm1193_vm4, %v1191_v25, %v4671_v44  ;;  %v1272_v37 = vsel %vm1249_vm6, %v1244_v39, %v4665_v42  ;;  %v1273_v8 = vsel %vm1249_vm6, %v1245_v61, %v4666_v34  ;;  %v4291_v23 = vunpack.i.h.bf16 %v7560_v17  ;;  %4118 = vmatprep.subr.bf16.mxu0 %v5166_v52  ;;  %v5168_v26 = vld [vmem:[%s7380_s4 + $0xb8] sm:$0xff]   ;;  %v6409_v61 = vld [vmem:[%s7381_s3] ss:$0 sm:$0xff] }
 0x14d   :  { %3973 = vmatprep.mubr.msk.bf16.mxu1 %vm78_vm0, %v7563_v56  ;;  %v1321_v30 = vpack.c.bf16 %v1133_v53, %v1132_v57  ;;  %v4676_v4 = vunpack.i.h.bf16 %v4674_v19  ;;  %v4675_v38 = vunpack.i.l.bf16 %v4674_v19  ;;  %v1326_v40 = vpack.c.bf16 %v1219_v62, %v1218_v59  ;;  %4119 = vmatpush3.bf16.msra.mxu0 %v5167_v14  ;;  %v5171_v57 = vld [vmem:[%s7380_s4 + $0x70] sm:$0xff]   ;;  %v5173_v17 = vld [vmem:[%s7380_s4 + $0xa0] sm:$0xff]  }
 0x14e   :  { %v1323_v48 = vpack.c.bf16 %v1273_v8, %v1272_v37  ;;  %v4681_v28 = vunpack.i.h.bf16 %v4679_v13  ;;  %v4680_v0 = vunpack.i.l.bf16 %v4679_v13  ;;  %v1106_v2 = vsel %vm78_vm0, %v5198_v32, %v4290_v5  ;;  %3706 = vmatpush1.bf16.msra.mxu1 %v5168_v26  ;;  %v5172_v53 = vld [vmem:[%s7380_s4 + $0x30] sm:$0xff]   ;;  %4120 = vmatprep.subr.bf16.mxu0 %v5171_v57  ;;  %v5174_v5 = vld [vmem:[%s7380_s4 + $0x68] sm:$0xff]   ;;  %v5177_v13 = vld [vmem:[%s7380_s4 + $0x60] sm:$0xff]  }
 0x14f   :  { %v1164_v6 = vsel %vm1137_vm2, %v7565_v60, %v7564_v46  ;;  %v1107_v21 = vsel %vm78_vm0, %v5199_v33, %v4291_v23  ;;  %v1246_v47 = vsel %vm1221_vm5, %v4670_v9, %v4675_v38  ;;  %v1247_v29 = vsel %vm1221_vm5, %v4671_v44, %v4676_v4  ;;  %v5176_v38 = vld [vmem:[%s7380_s4 + $0x98] sm:$0xff]   ;;  %v5185_v26 = vld [vmem:[%s7380_s4 + $0x80] sm:$0xff]   ;;  %v5187_v57 = vld [vmem:[%s7380_s4 + $0x8] sm:$0xff]  }
 0x150   :  { %v1192_v1 = vsel %vm1165_vm3, %v1164_v6, %v730_v16  ;;  %v1134_v45 = vsel %vm1109_vm1, %v1106_v2, %v4355_v55  ;;  %v1135_v35 = vsel %vm1109_vm1, %v1107_v21, %v4356_v15  ;;  %v7568_v63 = vpack.c.bf16 %v7566_v12, %v7567_v31  ;;  %v7569_v55 = vld [vmem:[#allocation25_spill] sm:$0xff]  ;;  %v5170_v16 = vld [vmem:[%s7380_s4 + $0xa8] sm:$0xff]   ;;  %v6444_v2 = vpop.permute.xlu1 %1920 }
 0x151   :  { %1719 = vmatmul.mubr.bf16.gmra.mxu0 %v1321_v30  ;;  %v1220_v51 = vsel %vm1193_vm4, %v1192_v1, %v838_v7  ;;  %v1274_v3 = vsel %vm1249_vm6, %v1246_v47, %v4680_v0  ;;  %v1275_v54 = vsel %vm1249_vm6, %v1247_v29, %v4681_v28  ;;  %v1325_v10 = vpack.c.bf16 %v1135_v35, %v1134_v45  ;;  %v5179_v47 = vld [vmem:[%s7380_s4 + $0x90] sm:$0xff]   ;;  %v5180_v29 = vld [vmem:[%s7380_s4 + $0x58] sm:$0xff]  }
 0x152   :  { %1726 = vmatprep.mubr.bf16.mxu0 %v1326_v40  ;;  %v1330_v24 = vpack.c.bf16 %v1220_v51, %v1220_v51  ;;  %v1327_v11 = vpack.c.bf16 %v1275_v54, %v1274_v3  ;;  %v1332_v15 = vpack.c.bf16 %v325_v36, %v325_v36  ;;  %v1108_v44 = vsel %vm78_vm0, %v5200_v41, %v7569_v55  ;;  %v5178_v40 = vld [vmem:[%s7380_s4 + $0x20] sm:$0xff]   ;;  %v5181_v12 = vld [vmem:[%s7380_s4 + $0x18] sm:$0xff]   ;;  %v5182_v36 = vld [vmem:[%s7380_s4 + $0x88] sm:$0xff]  }
 0x153   :  { %1863 = vmatmul.mubr.bf16.gmra.mxu1 %v1323_v48  ;;  %v1248_v9 = vsel %vm1221_vm5, %v838_v7, %v946_v22  ;;  %v1136_v19 = vsel %vm1109_vm1, %v1108_v44, %v7565_v60  ;;  %v7570_v50 = vmov 0   ;;  %4121 = vmatpush3.bf16.msra.mxu0 %v5172_v53  ;;  %v6441_v48 = vpop.permute.xlu0 %1915  ;;  %v5184_v44 = vld [vmem:[%s7380_s4 + $0x10] sm:$0xff]  }
 0x154   :  { %3974 = vmatprep.mubr.msk.bf16.mxu1 %vm78_vm0, %v7568_v63  ;;  %v1276_v34 = vsel %vm1249_vm6, %v1248_v9, %v1054_v18  ;;  %v1329_v42 = vpack.c.bf16 %v1136_v19, %v1136_v19  ;;  %3707 = vmatprep.subr.bf16.mxu1 %v7570_v50  ;;  %v6467_v22 = vpop.permute.xlu1 %1925 }
 0x155   :  { %v1331_v49 = vpack.c.bf16 %v1276_v34, %v1276_v34  ;;  %3708 = vmatpush1.bf16.msra.mxu1 %v5169_v43  ;;  %4122 = vmatprep.subr.bf16.mxu0 %v5174_v5 }
 0x156   :  { %3709 = vmatprep.subr.bf16.mxu1 %v7570_v50 }
 0x157   :  { %4123 = vmatpush3.bf16.msra.mxu0 %v5175_v58 }
 0x158   :  { %4124 = vmatprep.subr.bf16.mxu0 %v5177_v13 }
 0x159   :  { %1727 = vmatmul.mubr.bf16.gmra.mxu0 %v1325_v10  ;;  %3710 = vmatpush1.bf16.msra.mxu1 %v5170_v16  ;;  %v5186_v16 = vld [vmem:[%s7380_s4 + $0x48] sm:$0xff]  }
 0x15a   :  { %1734 = vmatprep.mubr.bf16.mxu0 %v1330_v24  ;;  %3711 = vmatprep.subr.bf16.mxu1 %v7570_v50  ;;  %v5183_v24 = vld [vmem:[%s7380_s4 + $0x50] sm:$0xff]  }
 0x15b   :  { %1871 = vmatmul.mubr.bf16.gmra.mxu1 %v1327_v11  ;;  %4125 = vmatpush3.bf16.msra.mxu0 %v5178_v40  ;;  %v5188_v40 = vld [vmem:[%s7380_s4 + $0xd0] sm:$0xff]  }
 0x15c   :  { %3975 = vmatprep.mubr.msk.bf16.mxu1 %vm78_vm0, %v1332_v15  ;;  %4126 = vmatprep.subr.bf16.mxu0 %v5180_v29 }
 0x15d   :  { %3712 = vmatpush1.bf16.msra.mxu1 %v5173_v17 }
 0x15e   :  { %3713 = vmatprep.subr.bf16.mxu1 %v7570_v50 }
 0x15f   :  { %4127 = vmatpush3.bf16.msra.mxu0 %v5181_v12 }
 0x160   :  { %4128 = vmatprep.subr.bf16.mxu0 %v5183_v24 }
 0x161   :  { %1735 = vmatmul.mubr.bf16.gmra.mxu0 %v1329_v42  ;;  %3714 = vmatpush1.bf16.msra.mxu1 %v5176_v38 }
 0x162   :  { %3715 = vmatprep.subr.bf16.mxu1 %v7570_v50 }
 0x163   :  { %1879 = vmatmul.mubr.bf16.gmra.mxu1 %v1331_v49  ;;  %4129 = vmatpush3.bf16.msra.mxu0 %v5184_v44  ;;  %v6476_v49 = vpop.permute.xlu0 %1930 }
 0x164   :  { %4130 = vmatprep.subr.bf16.mxu0 %v5186_v16 }
 0x165   :  { %3716 = vmatpush1.bf16.msra.mxu1 %v5179_v47 }
 0x166   :  { %3717 = vmatprep.subr.bf16.mxu1 %v7570_v50 }
 0x167   :  { %4131 = vmatpush3.bf16.msra.mxu0 %v5187_v57 }
 0x169   :  { %3718 = vmatpush1.bf16.msra.mxu1 %v5182_v36 }
 0x16a   :  { %3719 = vmatprep.subr.bf16.mxu1 %v7570_v50 }
 0x16d   :  { %3720 = vmatpush1.bf16.msra.mxu1 %v5185_v26 }
 0x16e   :  { %3731 = vmatprep.subr.bf16.mxu1 %v7570_v50 }
 0x171   :  { %3732 = vmatpush2.bf16.msra.mxu1 %v5188_v40 }
 0x172   :  { %3733 = vmatprep.subr.bf16.mxu1 %v7570_v50 }
 0x1b7   :  { %v4034_v39 = vpop.f32.mrf.mxu0 }
 0x1b9   :  { %v4035_v27 = vpop.f32.mrf.mxu0 }
 0x1ba   :  { %v4036_v25 = vadd.f32 %v4035_v27, %v4034_v39 }
 0x1bb   :  { %v4037_v59 = vpop.f32.mrf.mxu0  ;;  %v1776_v62 = vpop.f32.mrf.mxu1 }
 0x1bc   :  { %v1633_v20 = vadd.f32 %v4036_v25, %v6409_v61 }
 0x1bd   :  { %v4038_v56 = vpop.f32.mrf.mxu0  ;;  %v1778_v37 = vpop.f32.mrf.mxu1 }
 0x1be   :  { %v1777_v8 = vadd.f32 %v1776_v62, %v1633_v20  ;;  %v4039_v23 = vadd.f32 %v4038_v56, %v4037_v59  ;;  %v6491_v56 = vpop.permute.xlu1 %1935 }
 0x1bf   :  { %v1779_v4 = vpop.f32.mrf.mxu1 }
 0x1c0   :  { %v1886_v7 = vmax.f32 %v1777_v8, 0.0  ;;  %v1636_v28 = vadd.f32 %v4039_v23, %v6409_v61 }
 0x1c1   :  { %v4040_v30 = vpop.f32.mrf.mxu0  ;;  %v1781_v32 = vpop.f32.mrf.mxu1 }
 0x1c2   :  { %v2048_v46 = vmul.f32 %v6441_v48, %v1886_v7  ;;  %v1780_v60 = vadd.f32 %v1779_v4, %v1636_v28  ;;  %v5189_v7 = vld [vmem:[%s7380_s4 + $0x40] sm:$0xff]  }
 0x1c3   :  { %v4041_v0 = vpop.f32.mrf.mxu0  ;;  %v1784_v21 = vpop.f32.mrf.mxu1  ;;  %4132 = vmatprep.subr.bf16.mxu0 %v5189_v7 }
 0x1c4   :  { %v4042_v6 = vadd.f32 %v4041_v0, %v4040_v30  ;;  %2077 = vst.msk [vmem:[#allocation3 + $0x8] sm:$0xff] %vm78_vm0, %v2048_v46  ;;  %v1887_v1 = vmax.f32 %v1780_v60, 0.0  ;;  %v5190_v60 = vld [vmem:[%s7380_s4] sm:$0xff]  }
 0x1c5   :  { %v4043_v33 = vpop.f32.mrf.mxu0  ;;  %v1786_v51 = vpop.f32.mrf.mxu1  ;;  %4133 = vmatpush3.bf16.msra.mxu0 %v5190_v60 }
 0x1c6   :  { %v1641_v45 = vadd.f32 %v4042_v6, %v6409_v61  ;;  %v2049_v31 = vmul.f32 %v6444_v2, %v1887_v1 }
 0x1c7   :  { %v4044_v35 = vpop.f32.mrf.mxu0  ;;  %v1787_v10 = vpop.f32.mrf.mxu1 }
 0x1c8   :  { %v1785_v63 = vadd.f32 %v1784_v21, %v1641_v45  ;;  %v4045_v3 = vadd.f32 %v4044_v35, %v4043_v33  ;;  %2078 = vst.msk [vmem:[#allocation3 + $0x10] sm:$0xff] %vm78_vm0, %v2049_v31  ;;  %v6509_v45 = vpop.permute.xlu0 %1940 }
 0x1c9   :  { %v4046_v54 = vpop.f32.mrf.mxu0  ;;  %v1789_v55 = vpop.f32.mrf.mxu1 }
 0x1ca   :  { %v1888_v11 = vmax.f32 %v1785_v63, 0.0  ;;  %v1644_v15 = vadd.f32 %v4045_v3, %v6409_v61 }
 0x1cb   :  { %v4047_v41 = vpop.f32.mrf.mxu0  ;;  %v1792_v42 = vpop.f32.mrf.mxu1  ;;  %v2185_v59 = vld [vmem:[#allocation3 + $0x7] sm:$0xff] }
 0x1cc   :  { %v2050_v9 = vmul.f32 %v6467_v22, %v1888_v11  ;;  %v1788_v18 = vadd.f32 %v1787_v10, %v1644_v15  ;;  %v4048_v19 = vadd.f32 %v4047_v41, %v4046_v54  ;;  %v2131_v58 = vld [vmem:[#allocation3 + $0x2] sm:$0xff] }
 0x1cd   :  { %v4049_v34 = vpop.f32.mrf.mxu0  ;;  %v1794_v39 = vpop.f32.mrf.mxu1  ;;  %v2158_v46 = vld [vmem:[#allocation3 + $0x3] sm:$0xff] }
 0x1ce   :  { %2079 = vst.msk [vmem:[#allocation3 + $0x18] sm:$0xff] %vm78_vm0, %v2050_v9  ;;  %v1889_v52 = vmax.f32 %v1788_v18, 0.0  ;;  %v1649_v14 = vadd.f32 %v4048_v19, %v6409_v61  ;;  %v5191_v10 = vld [vmem:[%s7380_s4 + $0xc8] sm:$0xff]   ;;  %v2212_v55 = vld [vmem:[#allocation3 + $0x8] sm:$0xff]  ;;  %v6522_v18 = vpop.permute.xlu1 %1945  ;;  %v5192_v39 = vld [vmem:[%s7380_s4 + $0xc0] sm:$0xff]  }
 0x1cf   :  { %v4050_v43 = vpop.f32.mrf.mxu0  ;;  %v1795_v17 = vpop.f32.mrf.mxu1  ;;  %v2186_v5 = vld [vmem:[#allocation3 + $0xf] sm:$0xff]  ;;  %3734 = vmatpush2.bf16.msra.mxu1 %v5191_v10  ;;  %7571 = vst [vmem:[#allocation24_spill] sm:$0xff] %v6522_v18 }
 0x1d0   :  { %v2051_v53 = vmul.f32 %v6476_v49, %v1889_v52  ;;  %v1793_v27 = vadd.f32 %v1792_v42, %v1649_v14  ;;  %v4051_v25 = vadd.f32 %v4050_v43, %v4049_v34  ;;  %v2132_v20 = vld [vmem:[#allocation3 + $0xa] sm:$0xff]  ;;  %v4694_v23 = vpack.i.bf16 %v2186_v5, %v2185_v59  ;;  %3735 = vmatprep.subr.bf16.mxu1 %v7570_v50 }
 0x1d1   :  { %v4052_v62 = vpop.f32.mrf.mxu0  ;;  %v4684_v30 = vpack.i.bf16 %v2132_v20, %v2131_v58  ;;  %v2159_v4 = vld [vmem:[#allocation3 + $0xb] sm:$0xff]  ;;  %v1797_v13 = vpop.f32.mrf.mxu1 }
 0x1d2   :  { %2080 = vst.msk [vmem:[#allocation3 + $0x20] sm:$0xff] %vm78_vm0, %v2051_v53  ;;  %v1890_v37 = vmax.f32 %v1793_v27, 0.0  ;;  %v1652_v8 = vadd.f32 %v4051_v25, %v6409_v61  ;;  %4695 = vrot.lane.b32.xlu1 %v4694_v23, %s5242_s29  ;;  %v4689_v47 = vpack.i.bf16 %v2159_v4, %v2158_v46  ;;  %v2105_v29 = vld [vmem:[#allocation3 + $0x9] sm:$0xff]  ;;  %v6548_v46 = vpop.permute.xlu1 %1955 }
 0x1d3   :  { %v4053_v38 = vpop.f32.mrf.mxu0  ;;  %4685 = vrot.lane.b32.xlu0 %v4684_v30, %s5240_s27  ;;  %v1800_v33 = vpop.f32.mrf.mxu1  ;;  %v2213_v54 = vld [vmem:[#allocation3 + $0x10] sm:$0xff]  ;;  %3736 = vmatpush2.bf16.msra.mxu1 %v5192_v39  ;;  %7573 = vst [vmem:[#allocation4_spill] sm:$0xff] %v6548_v46 }
 0x1d4   :  { %v2052_v28 = vmul.f32 %v6491_v56, %v1890_v37  ;;  %v1796_v0 = vadd.f32 %v1795_v17, %v1652_v8  ;;  %v4054_v32 = vadd.f32 %v4053_v38, %v4052_v62  ;;  %v4699_v42 = vpack.i.bf16 %v2213_v54, %v2212_v55  ;;  %v2240_v50 = vld [vmem:[#allocation3 + $0xd] sm:$0xff]  ;;  %v6537_v17 = vpop.permute.xlu0 %1950 }
 0x1d5   :  { %v4055_v6 = vpop.f32.mrf.mxu0  ;;  %v6507_v21 = vld [vmem:[#allocation3 + $0x17] sm:$0xff]  ;;  %v1802_v3 = vpop.f32.mrf.mxu1  ;;  %7572 = vst [vmem:[#allocation7_spill] sm:$0xff] %v6537_v17 }
 0x1d6   :  { %v2106_v1 = vld [vmem:[#allocation3 + $0x11] sm:$0xff]  ;;  %2081 = vst.msk [vmem:[#allocation3 + $0x28] sm:$0xff] %vm78_vm0, %v2052_v28  ;;  %v1891_v35 = vmax.f32 %v1796_v0, 0.0  ;;  %v1657_v51 = vadd.f32 %v4054_v32, %v6409_v61  ;;  %v3243_v12 = vpack.c.bf16 %v6507_v21, %v2186_v5 }
 0x1d7   :  { %v4704_v31 = vpack.i.bf16 %v2106_v1, %v2105_v29  ;;  %v4056_v63 = vpop.f32.mrf.mxu0  ;;  %4690 = vrot.lane.b32.xlu0 %v4689_v47, %s5241_s28  ;;  %v1803_v41 = vpop.f32.mrf.mxu1  ;;  %v2133_v44 = vld [vmem:[#allocation3 + $0x12] sm:$0xff] }
 0x1d8   :  { %v2053_v36 = vmul.f32 %v6509_v45, %v1891_v35  ;;  %v4057_v24 = vadd.f32 %v4056_v63, %v4055_v6  ;;  %v1801_v11 = vadd.f32 %v1800_v33, %v1657_v51  ;;  %4004 = vmatprep.mubr.msk.bf16.mxu1 %vm78_vm0, %v3243_v12  ;;  %v2241_v43 = vld [vmem:[#allocation3 + $0x15] sm:$0xff] }
 0x1d9   :  { %4705 = vrot.lane.b32.xlu1 %v4704_v31, %s5245_s2  ;;  %v4058_v15 = vpop.f32.mrf.mxu0  ;;  %v2134_v9 = vld [vmem:[#allocation3 + $0x1a] sm:$0xff]  ;;  %v1805_v26 = vpop.f32.mrf.mxu1  ;;  %v4709_v20 = vpack.i.bf16 %v2241_v43, %v2240_v50  ;;  %v2267_v32 = vld [vmem:[#allocation3 + $0xe] sm:$0xff] }
 0x1da   :  { %2082 = vst.msk [vmem:[#allocation3 + $0x30] sm:$0xff] %vm78_vm0, %v2053_v36  ;;  %v1892_v19 = vmax.f32 %v1801_v11, 0.0  ;;  %v1660_v34 = vadd.f32 %v4057_v24, %v6409_v61  ;;  %v4719_v52 = vpack.i.bf16 %v2134_v9, %v2133_v44  ;;  %v6532_v27 = vld [vmem:[#allocation3 + $0x1f] sm:$0xff]  ;;  %v2268_v30 = vld [vmem:[#allocation3 + $0x16] sm:$0xff]  ;;  %v6557_v24 = vpop.permute.xlu0 %1960 }
 0x1db   :  { %v4059_v14 = vpop.f32.mrf.mxu0  ;;  %4700 = vrot.lane.b32.xlu0 %v4699_v42, %s5244_s13  ;;  %v1808_v59 = vpop.f32.mrf.mxu1  ;;  %v4729_v8 = vpack.i.bf16 %v6532_v27, %v6507_v21  ;;  %v2215_v7 = vld [vmem:[#allocation3 + $0x20] sm:$0xff]  ;;  %v4714_v33 = vpack.i.bf16 %v2268_v30, %v2267_v32  ;;  %v2214_v21 = vld [vmem:[#allocation3 + $0x18] sm:$0xff]  ;;  %7574 = vst [vmem:[#allocation27_spill] sm:$0xff] %v6557_v24 }
 0x1dc   :  { %v2054_v16 = vmul.f32 %v6522_v18, %v1892_v19  ;;  %v4060_v57 = vadd.f32 %v4059_v14, %v4058_v15  ;;  %v1804_v53 = vadd.f32 %v1803_v41, %v1660_v34  ;;  %v4734_v29 = vpack.i.bf16 %v2215_v7, %v2214_v21  ;;  %v2161_v35 = vld [vmem:[#allocation3 + $0x1b] sm:$0xff]  ;;  %v2160_v10 = vld [vmem:[#allocation3 + $0x13] sm:$0xff] }
 0x1dd   :  { %4720 = vrot.lane.b32.xlu1 %v4719_v52, %s5240_s27  ;;  %v4061_v25 = vpop.f32.mrf.mxu0  ;;  %v6535_v62 = vld [vmem:[#allocation3 + $0x27] sm:$0xff]  ;;  %v1810_v23 = vpop.f32.mrf.mxu1  ;;  %v4724_v41 = vpack.i.bf16 %v2161_v35, %v2160_v10  ;;  %v6561_v55 = vld [vmem:[#allocation3 + $0x19] sm:$0xff] }
 0x1de   :  { %2083 = vst.msk [vmem:[#allocation3 + $0x38] sm:$0xff] %vm78_vm0, %v2054_v16  ;;  %v1893_v5 = vmax.f32 %v1804_v53, 0.0  ;;  %v1665_v58 = vadd.f32 %v4060_v57, %v6409_v61  ;;  %v2108_v63 = vld [vmem:[#allocation3 + $0x21] sm:$0xff]  ;;  %v6571_v53 = vpop.permute.xlu1 %1965 }
 0x1df   :  { %v4062_v37 = vpop.f32.mrf.mxu0  ;;  %4710 = vrot.lane.b32.xlu0 %v4709_v20, %s5247_s21  ;;  %v1811_v0 = vpop.f32.mrf.mxu1  ;;  %v4739_v19 = vpack.i.bf16 %v2108_v63, %v6561_v55  ;;  %v2243_v42 = vld [vmem:[#allocation3 + $0x25] sm:$0xff]  ;;  %v2242_v57 = vld [vmem:[#allocation3 + $0x1d] sm:$0xff]  ;;  %7575 = vst [vmem:[#allocation40_spill] sm:$0xff] %v6571_v53 }
 0x1e0   :  { %v2055_v38 = vmul.f32 %v6537_v17, %v1893_v5  ;;  %v4063_v13 = vadd.f32 %v4062_v37, %v4061_v25  ;;  %v1809_v40 = vadd.f32 %v1808_v59, %v1665_v58  ;;  %v4744_v50 = vpack.i.bf16 %v2243_v42, %v2242_v57  ;;  %v2270_v37 = vld [vmem:[#allocation3 + $0x26] sm:$0xff]  ;;  %v2269_v7 = vld [vmem:[#allocation3 + $0x1e] sm:$0xff] }
 0x1e1   :  { %4730 = vrot.lane.b32.xlu1 %v4729_v8, %s5242_s29  ;;  %v4064_v28 = vpop.f32.mrf.mxu0  ;;  %v1813_v1 = vpop.f32.mrf.mxu1  ;;  %v6563_v44 = vld [vmem:[#allocation3 + $0x2f] sm:$0xff] }
 0x1e2   :  { %2084 = vst.msk [vmem:[#allocation3 + $0x40] sm:$0xff] %vm78_vm0, %v2055_v38  ;;  %v1894_v60 = vmax.f32 %v1809_v40, 0.0  ;;  %v1668_v6 = vadd.f32 %v4063_v13, %v6409_v61  ;;  %v4759_v58 = vpack.i.bf16 %v6563_v44, %v6535_v62  ;;  %v2217_v38 = vld [vmem:[#allocation3 + $0x30] sm:$0xff] }
 0x1e3   :  { %v4065_v47 = vpop.f32.mrf.mxu0  ;;  %4715 = vrot.lane.b32.xlu0 %v4714_v33, %s5246_s20  ;;  %v1816_v54 = vpop.f32.mrf.mxu1  ;;  %v2216_v33 = vld [vmem:[#allocation3 + $0x28] sm:$0xff] }
 0x1e4   :  { %v2056_v51 = vmul.f32 %v6548_v46, %v1894_v60  ;;  %v4066_v12 = vadd.f32 %v4065_v47, %v4064_v28  ;;  %v1812_v31 = vadd.f32 %v1811_v0, %v1668_v6  ;;  %v6582_v0 = vpop.permute.xlu0 %1970  ;;  %v4749_v6 = vpack.i.bf16 %v2270_v37, %v2269_v7  ;;  %v2163_v35 = vld [vmem:[#allocation3 + $0x2b] sm:$0xff] }
 0x1e5   :  { %4735 = vrot.lane.b32.xlu1 %v4734_v29, %s5244_s13  ;;  %v4067_v3 = vpop.f32.mrf.mxu0  ;;  %v6555_v36 = vld [vmem:[#allocation3 + $0x37] sm:$0xff]  ;;  %v1818_v34 = vpop.f32.mrf.mxu1  ;;  %7576 = vst [vmem:[#allocation32_spill] sm:$0xff] %v6582_v0  ;;  %v4764_v29 = vpack.i.bf16 %v2217_v38, %v2216_v33 }
 0x1e6   :  { %2085 = vst.msk [vmem:[#allocation3 + $0x48] sm:$0xff] %vm78_vm0, %v2056_v51  ;;  %v1895_v11 = vmax.f32 %v1812_v31, 0.0  ;;  %v1673_v15 = vadd.f32 %v4066_v12, %v6409_v61  ;;  %v2135_v34 = vld [vmem:[#allocation3 + $0x22] sm:$0xff] }
 0x1e7   :  { %v4068_v9 = vpop.f32.mrf.mxu0  ;;  %4725 = vrot.lane.b32.xlu0 %v4724_v41, %s5241_s28  ;;  %v1819_v16 = vpop.f32.mrf.mxu1 }
 0x1e8   :  { %v2057_v14 = vmul.f32 %v6557_v24, %v1895_v11  ;;  %v4069_v26 = vadd.f32 %v4068_v9, %v4067_v3  ;;  %v1817_v43 = vadd.f32 %v1816_v54, %v1673_v15  ;;  %v2136_v3 = vld [vmem:[#allocation3 + $0x2a] sm:$0xff]  ;;  %v6593_v15 = vpop.permute.xlu1 %1975 }
 0x1e9   :  { %4740 = vrot.lane.b32.xlu1 %v4739_v19, %s5245_s2  ;;  %v4070_v39 = vpop.f32.mrf.mxu0  ;;  %v1821_v20 = vpop.f32.mrf.mxu1  ;;  %v6586_v21 = vld [vmem:[#allocation3 + $0x3f] sm:$0xff]  ;;  %7577 = vst [vmem:[#allocation47_spill] sm:$0xff] %v6593_v15 }
 0x1ea   :  { %2086 = vst.msk [vmem:[#allocation3 + $0x50] sm:$0xff] %vm78_vm0, %v2057_v14  ;;  %v1896_v25 = vmax.f32 %v1817_v43, 0.0  ;;  %v1676_v59 = vadd.f32 %v4069_v26, %v6409_v61  ;;  %v2162_v11 = vld [vmem:[#allocation3 + $0x23] sm:$0xff]  ;;  %v4769_v14 = vpack.i.bf16 %v2136_v3, %v2135_v34  ;;  %v2110_v43 = vld [vmem:[#allocation3 + $0x31] sm:$0xff]  ;;  %v6604_v20 = vpop.permute.xlu0 %1980 }
 0x1eb   :  { %v4071_v5 = vpop.f32.mrf.mxu0  ;;  %4745 = vrot.lane.b32.xlu0 %v4744_v50, %s5247_s21  ;;  %v1824_v40 = vpop.f32.mrf.mxu1  ;;  %v4754_v19 = vpack.i.bf16 %v2163_v35, %v2162_v11  ;;  %7578 = vst [vmem:[#allocation28_spill] sm:$0xff] %v6604_v20  ;;  %v2271_v3 = vld [vmem:[#allocation3 + $0x2e] sm:$0xff] }
 0x1ec   :  { %v2058_v8 = vmul.f32 %v6571_v53, %v1896_v25  ;;  %v4072_v23 = vadd.f32 %v4071_v5, %v4070_v39  ;;  %v1820_v30 = vadd.f32 %v1819_v16, %v1676_v59  ;;  %v2245_v25 = vld [vmem:[#allocation3 + $0x35] sm:$0xff]  ;;  %v6600_v5 = vld [vmem:[#allocation3 + $0x29] sm:$0xff]  ;;  %v6616_v35 = vpop.permute.xlu1 %1985 }
 0x1ed   :  { %4760 = vrot.lane.b32.xlu1 %v4759_v58, %s5242_s29  ;;  %v4073_v13 = vpop.f32.mrf.mxu0  ;;  %v6580_v28 = vld [vmem:[#allocation3 + $0x47] sm:$0xff]  ;;  %v1826_v1 = vpop.f32.mrf.mxu1  ;;  %7579 = vst [vmem:[#allocation21_spill] sm:$0xff] %v6616_v35 }
 0x1ee   :  { %2087 = vst.msk [vmem:[#allocation3 + $0x58] sm:$0xff] %vm78_vm0, %v2058_v8  ;;  %v1897_v32 = vmax.f32 %v1820_v30, 0.0  ;;  %v1681_v60 = vadd.f32 %v4072_v23, %v6409_v61  ;;  %v4774_v23 = vpack.i.bf16 %v2110_v43, %v6600_v5  ;;  %v2244_v30 = vld [vmem:[#allocation3 + $0x2d] sm:$0xff]  ;;  %v2218_v43 = vld [vmem:[#allocation3 + $0x38] sm:$0xff] }
 0x1ef   :  { %v4074_v47 = vpop.f32.mrf.mxu0  ;;  %4750 = vrot.lane.b32.xlu0 %v4749_v6, %s5246_s20  ;;  %v1827_v10 = vpop.f32.mrf.mxu1 }
 0x1f0   :  { %v2059_v12 = vmul.f32 %v6582_v0, %v1897_v32  ;;  %v4075_v31 = vadd.f32 %v4074_v47, %v4073_v13  ;;  %v1825_v63 = vadd.f32 %v1824_v40, %v1681_v60  ;;  %v4779_v40 = vpack.i.bf16 %v2245_v25, %v2244_v30  ;;  %v2272_v47 = vld [vmem:[#allocation3 + $0x36] sm:$0xff] }
 0x1f1   :  { %4765 = vrot.lane.b32.xlu1 %v4764_v29, %s5244_s13  ;;  %v4076_v54 = vpop.f32.mrf.mxu0  ;;  %v1829_v26 = vpop.f32.mrf.mxu1  ;;  %v6609_v38 = vld [vmem:[#allocation3 + $0x4f] sm:$0xff] }
 0x1f2   :  { %2088 = vst.msk [vmem:[#allocation3 + $0x60] sm:$0xff] %vm78_vm0, %v2059_v12  ;;  %v1898_v41 = vmax.f32 %v1825_v63, 0.0  ;;  %v1684_v9 = vadd.f32 %v4075_v31, %v6409_v61  ;;  %v4794_v63 = vpack.i.bf16 %v6586_v21, %v6555_v36 }
 0x1f3   :  { %v4077_v42 = vpop.f32.mrf.mxu0  ;;  %4755 = vrot.lane.b32.xlu0 %v4754_v19, %s5241_s28  ;;  %v1832_v50 = vpop.f32.mrf.mxu1 }
 0x1f4   :  { %v2060_v39 = vmul.f32 %v6593_v15, %v1898_v41  ;;  %v4078_v16 = vadd.f32 %v4077_v42, %v4076_v54  ;;  %v1828_v57 = vadd.f32 %v1827_v10, %v1684_v9  ;;  %v4784_v10 = vpack.i.bf16 %v2272_v47, %v2271_v3  ;;  %v2219_v41 = vld [vmem:[#allocation3 + $0x40] sm:$0xff]  ;;  %v5202_v15 = vld [vmem:[#allocation3 + $0x9] sm:$0xff] }
 0x1f5   :  { %4770 = vrot.lane.b32.xlu1 %v4769_v14, %s5240_s27  ;;  %v4079_v59 = vpop.f32.mrf.mxu0  ;;  %v6602_v58 = vld [vmem:[#allocation3 + $0x57] sm:$0xff]  ;;  %v1834_v7 = vpop.f32.mrf.mxu1 }
 0x1f6   :  { %2089 = vst.msk [vmem:[#allocation3 + $0x68] sm:$0xff] %vm78_vm0, %v2060_v39  ;;  %v1899_v37 = vmax.f32 %v1828_v57, 0.0  ;;  %v1689_v8 = vadd.f32 %v4078_v16, %v6409_v61  ;;  %v2165_v42 = vld [vmem:[#allocation3 + $0x3b] sm:$0xff]  ;;  %v6627_v16 = vpop.permute.xlu0 %1990 }
 0x1f7   :  { %v4080_v13 = vpop.f32.mrf.mxu0  ;;  %4775 = vrot.lane.b32.xlu0 %v4774_v23, %s5245_s2  ;;  %v1835_v1 = vpop.f32.mrf.mxu1  ;;  %7580 = vst [vmem:[#allocation29_spill] sm:$0xff] %v6627_v16  ;;  %v2222_v51 = vld [vmem:[#allocation3 + $0x58] sm:$0xff] }
 0x1f8   :  { %v2061_v60 = vmul.f32 %v6604_v20, %v1899_v37  ;;  %v4081_v6 = vadd.f32 %v4080_v13, %v4079_v59  ;;  %v1833_v33 = vadd.f32 %v1832_v50, %v1689_v8  ;;  %v4799_v59 = vpack.i.bf16 %v2219_v41, %v2218_v43  ;;  %v2164_v50 = vld [vmem:[#allocation3 + $0x33] sm:$0xff]  ;;  %v2246_v43 = vld [vmem:[#allocation3 + $0x3d] sm:$0xff] }
 0x1f9   :  { %4780 = vrot.lane.b32.xlu1 %v4779_v40, %s5247_s21  ;;  %v4082_v29 = vpop.f32.mrf.mxu0  ;;  %v1837_v11 = vpop.f32.mrf.mxu1  ;;  %v6631_v37 = vld [vmem:[#allocation3 + $0x5f] sm:$0xff]  ;;  %v4789_v23 = vpack.i.bf16 %v2165_v42, %v2164_v50 }
 0x1fa   :  { %2090 = vst.msk [vmem:[#allocation3 + $0x70] sm:$0xff] %vm78_vm0, %v2061_v60  ;;  %v1900_v12 = vmax.f32 %v1833_v33, 0.0  ;;  %v1692_v31 = vadd.f32 %v4081_v6, %v6409_v61  ;;  %v2138_v13 = vld [vmem:[#allocation3 + $0x3a] sm:$0xff] }
 0x1fb   :  { %v4083_v54 = vpop.f32.mrf.mxu0  ;;  %4795 = vrot.lane.b32.xlu0 %v4794_v63, %s5242_s29  ;;  %v1840_v26 = vpop.f32.mrf.mxu1  ;;  %v2112_v33 = vld [vmem:[#allocation3 + $0x41] sm:$0xff] }
 0x1fc   :  { %v2062_v9 = vmul.f32 %v6616_v35, %v1900_v12  ;;  %v4084_v19 = vadd.f32 %v4083_v54, %v4082_v29  ;;  %v1836_v34 = vadd.f32 %v1835_v1, %v1692_v31  ;;  %v2137_v1 = vld [vmem:[#allocation3 + $0x32] sm:$0xff]  ;;  %v6638_v12 = vpop.permute.xlu1 %1995 }
 0x1fd   :  { %4785 = vrot.lane.b32.xlu1 %v4784_v10, %s5246_s20  ;;  %v4085_v14 = vpop.f32.mrf.mxu0  ;;  %v6625_v39 = vld [vmem:[#allocation3 + $0x67] sm:$0xff]  ;;  %v1842_v30 = vpop.f32.mrf.mxu1  ;;  %7581 = vst [vmem:[#allocation5_spill] sm:$0xff] %v6638_v12  ;;  %v4804_v3 = vpack.i.bf16 %v2138_v13, %v2137_v1  ;;  %v6642_v54 = vld [vmem:[#allocation3 + $0x39] sm:$0xff]  ;;  %v4829_v13 = vpack.i.bf16 %v6609_v38, %v6580_v28  ;;  %v2221_v1 = vld [vmem:[#allocation3 + $0x50] sm:$0xff] }
 0x1fe   :  { %2091 = vst.msk [vmem:[#allocation3 + $0x78] sm:$0xff] %vm78_vm0, %v2062_v9  ;;  %v1901_v57 = vmax.f32 %v1836_v34, 0.0  ;;  %v1697_v25 = vadd.f32 %v4084_v19, %v6409_v61  ;;  %v4809_v11 = vpack.i.bf16 %v2112_v33, %v6642_v54  ;;  %v2247_v9 = vld [vmem:[#allocation3 + $0x45] sm:$0xff] }
 0x1ff   :  { %v4086_v8 = vpop.f32.mrf.mxu0  ;;  %4800 = vrot.lane.b32.xlu0 %v4799_v59, %s5244_s13  ;;  %v1843_v29 = vpop.f32.mrf.mxu1  ;;  %v2116_v4 = vld [vmem:[#allocation3 + $0x61] sm:$0xff] }
 0x200   :  { %v2063_v7 = vmul.f32 %v6627_v16, %v1901_v57  ;;  %v4087_v60 = vadd.f32 %v4086_v8, %v4085_v14  ;;  %v1841_v6 = vadd.f32 %v1840_v26, %v1697_v25  ;;  %v6650_v25 = vpop.permute.xlu0 %2000  ;;  %v4814_v8 = vpack.i.bf16 %v2247_v9, %v2246_v43  ;;  %v2104_v16 = vld [vmem:[#allocation3 + $0x1] sm:$0xff] }
 0x201   :  { %4790 = vrot.lane.b32.xlu1 %v4789_v23, %s5241_s28  ;;  %v4088_v47 = vpop.f32.mrf.mxu0  ;;  %v1845_v41 = vpop.f32.mrf.mxu1  ;;  %7582 = vst [vmem:[#allocation8_spill] sm:$0xff] %v6650_v25  ;;  %v6654_v23 = vld [vmem:[#allocation3 + $0x6f] sm:$0xff] }
 0x202   :  { %2092 = vst.msk [vmem:[#allocation3 + $0x80] sm:$0xff] %vm78_vm0, %v2063_v7  ;;  %v1902_v31 = vmax.f32 %v1841_v6, 0.0  ;;  %v1700_v63 = vadd.f32 %v4087_v60, %v6409_v61  ;;  %v2274_v60 = vld [vmem:[#allocation3 + $0x46] sm:$0xff] }
 0x203   :  { %v4089_v10 = vpop.f32.mrf.mxu0  ;;  %4805 = vrot.lane.b32.xlu0 %v4804_v3, %s5240_s27  ;;  %v1848_v26 = vpop.f32.mrf.mxu1  ;;  %v2273_v3 = vld [vmem:[#allocation3 + $0x3e] sm:$0xff] }
 0x204   :  { %v2064_v19 = vmul.f32 %v6638_v12, %v1902_v31  ;;  %v4090_v34 = vadd.f32 %v4089_v10, %v4088_v47  ;;  %v1844_v42 = vadd.f32 %v1843_v29, %v1700_v63  ;;  %v6663_v10 = vpop.permute.xlu1 %2005  ;;  %v4819_v9 = vpack.i.bf16 %v2274_v60, %v2273_v3  ;;  %v6672_v60 = vpop.permute.xlu0 %2010 }
 0x205   :  { %4810 = vrot.lane.b32.xlu1 %v4809_v11, %s5245_s2  ;;  %v4091_v14 = vpop.f32.mrf.mxu0  ;;  %v6648_v57 = vld [vmem:[#allocation3 + $0x77] sm:$0xff]  ;;  %v1850_v7 = vpop.f32.mrf.mxu1  ;;  %7583 = vst [vmem:[#allocation42_spill] sm:$0xff] %v6663_v10  ;;  %7584 = vst [vmem:[#allocation34_spill] sm:$0xff] %v6672_v60 }
 0x206   :  { %2093 = vst.msk [vmem:[#allocation3 + $0x88] sm:$0xff] %vm78_vm0, %v2064_v19  ;;  %v1903_v59 = vmax.f32 %v1844_v42, 0.0  ;;  %v1705_v50 = vadd.f32 %v4090_v34, %v6409_v61  ;;  %v2220_v19 = vld [vmem:[#allocation3 + $0x48] sm:$0xff] }
 0x207   :  { %v4092_v30 = vpop.f32.mrf.mxu0  ;;  %4815 = vrot.lane.b32.xlu0 %v4814_v8, %s5247_s21  ;;  %v1851_v63 = vpop.f32.mrf.mxu1  ;;  %v4834_v42 = vpack.i.bf16 %v2221_v1, %v2220_v19  ;;  %v2140_v8 = vld [vmem:[#allocation3 + $0x4a] sm:$0xff]  ;;  %v2276_v19 = vld [vmem:[#allocation3 + $0x56] sm:$0xff] }
 0x208   :  { %v2065_v33 = vmul.f32 %v6650_v25, %v1903_v59  ;;  %v4093_v47 = vadd.f32 %v4092_v30, %v4091_v14  ;;  %v1849_v29 = vadd.f32 %v1848_v26, %v1705_v50  ;;  %v2167_v26 = vld [vmem:[#allocation3 + $0x4b] sm:$0xff]  ;;  %v2166_v7 = vld [vmem:[#allocation3 + $0x43] sm:$0xff] }
 0x209   :  { %4830 = vrot.lane.b32.xlu1 %v4829_v13, %s5242_s29  ;;  %v4094_v31 = vpop.f32.mrf.mxu0  ;;  %v1853_v14 = vpop.f32.mrf.mxu1  ;;  %v4824_v1 = vpack.i.bf16 %v2167_v26, %v2166_v7 }
 0x20a   :  { %2094 = vst.msk [vmem:[#allocation3 + $0x90] sm:$0xff] %vm78_vm0, %v2065_v33  ;;  %v1904_v11 = vmax.f32 %v1849_v29, 0.0  ;;  %v1708_v41 = vadd.f32 %v4093_v47, %v6409_v61  ;;  %v6685_v7 = vpop.permute.xlu1 %2015 }
 0x20b   :  { %v4095_v34 = vpop.f32.mrf.mxu0  ;;  %4820 = vrot.lane.b32.xlu0 %v4819_v9, %s5246_s20  ;;  %v1856_v13 = vpop.f32.mrf.mxu1  ;;  %v2114_v9 = vld [vmem:[#allocation3 + $0x51] sm:$0xff]  ;;  %7585 = vst [vmem:[#allocation49_spill] sm:$0xff] %v6685_v7 }
 0x20c   :  { %v2066_v43 = vmul.f32 %v6663_v10, %v1904_v11  ;;  %v4096_v59 = vadd.f32 %v4095_v34, %v4094_v31  ;;  %v1852_v50 = vadd.f32 %v1851_v63, %v1708_v41  ;;  %v2139_v31 = vld [vmem:[#allocation3 + $0x42] sm:$0xff]  ;;  %v2144_v10 = vld [vmem:[#allocation3 + $0x6a] sm:$0xff] }
 0x20d   :  { %4835 = vrot.lane.b32.xlu1 %v4834_v42, %s5244_s13  ;;  %v4097_v30 = vpop.f32.mrf.mxu0  ;;  %v6670_v33 = vld [vmem:[#allocation3 + $0x87] sm:$0xff]  ;;  %v6676_v63 = vld [vmem:[#allocation3 + $0x7f] sm:$0xff]  ;;  %v4839_v11 = vpack.i.bf16 %v2140_v8, %v2139_v31  ;;  %v1858_v41 = vpop.f32.mrf.mxu1 }
 0x20e   :  { %2095 = vst.msk [vmem:[#allocation3 + $0x98] sm:$0xff] %vm78_vm0, %v2066_v43  ;;  %v1905_v47 = vmax.f32 %v1852_v50, 0.0  ;;  %v1713_v29 = vadd.f32 %v4096_v59, %v6409_v61  ;;  %v2249_v43 = vld [vmem:[#allocation3 + $0x55] sm:$0xff]  ;;  %v6683_v50 = vld [vmem:[#allocation3 + $0x49] sm:$0xff]  ;;  %v6708_v52 = vpop.permute.xlu1 %2025 }
 0x20f   :  { %v4098_v3 = vpop.f32.mrf.mxu0  ;;  %4825 = vrot.lane.b32.xlu0 %v4824_v1, %s5241_s28  ;;  %v1859_v59 = vpop.f32.mrf.mxu1  ;;  %7587 = vst [vmem:[#allocation30_spill] sm:$0xff] %v6708_v52 }
 0x210   :  { %v2067_v34 = vmul.f32 %v6672_v60, %v1905_v47  ;;  %v4099_v42 = vadd.f32 %v4098_v3, %v4097_v30  ;;  %v1857_v14 = vadd.f32 %v1856_v13, %v1713_v29  ;;  %v4844_v47 = vpack.i.bf16 %v2114_v9, %v6683_v50  ;;  %v2248_v30 = vld [vmem:[#allocation3 + $0x4d] sm:$0xff] }
 0x211   :  { %4840 = vrot.lane.b32.xlu1 %v4839_v11, %s5240_s27  ;;  %v4100_v26 = vpop.f32.mrf.mxu0  ;;  %v4849_v29 = vpack.i.bf16 %v2249_v43, %v2248_v30  ;;  %v1861_v1 = vpop.f32.mrf.mxu1 }
 0x212   :  { %2096 = vst.msk [vmem:[#allocation3 + $0xa0] sm:$0xff] %vm78_vm0, %v2067_v34  ;;  %v1906_v8 = vmax.f32 %v1857_v14, 0.0  ;;  %v1716_v31 = vadd.f32 %v4099_v42, %v6409_v61  ;;  %v6695_v42 = vpop.permute.xlu0 %2020 }
 0x213   :  { %v4101_v13 = vpop.f32.mrf.mxu0  ;;  %4845 = vrot.lane.b32.xlu0 %v4844_v47, %s5245_s2  ;;  %v1864_v34 = vpop.f32.mrf.mxu1  ;;  %7586 = vst [vmem:[#allocation20_spill] sm:$0xff] %v6695_v42 }
 0x214   :  { %v2068_v3 = vmul.f32 %v6685_v7, %v1906_v8  ;;  %v4102_v11 = vadd.f32 %v4101_v13, %v4100_v26  ;;  %v1860_v41 = vadd.f32 %v1859_v59, %v1716_v31  ;;  %v4864_v26 = vpack.i.bf16 %v6631_v37, %v6602_v58  ;;  %v2275_v59 = vld [vmem:[#allocation3 + $0x4e] sm:$0xff]  ;;  %v2223_v13 = vld [vmem:[#allocation3 + $0x60] sm:$0xff] }
 0x215   :  { %4850 = vrot.lane.b32.xlu1 %v4849_v29, %s5247_s21  ;;  %v4103_v6 = vpop.f32.mrf.mxu0  ;;  %v6693_v14 = vld [vmem:[#allocation3 + $0x97] sm:$0xff]  ;;  %v6701_v8 = vld [vmem:[#allocation3 + $0x8f] sm:$0xff]  ;;  %v4854_v47 = vpack.i.bf16 %v2276_v19, %v2275_v59  ;;  %v1866_v30 = vpop.f32.mrf.mxu1 }
 0x216   :  { %2097 = vst.msk [vmem:[#allocation3 + $0xa8] sm:$0xff] %vm78_vm0, %v2068_v3  ;;  %v1907_v9 = vmax.f32 %v1860_v41, 0.0  ;;  %v1721_v43 = vadd.f32 %v4102_v11, %v6409_v61  ;;  %v2169_v11 = vld [vmem:[#allocation3 + $0x5b] sm:$0xff]  ;;  %v4869_v30 = vpack.i.bf16 %v2223_v13, %v2222_v51  ;;  %v2168_v29 = vld [vmem:[#allocation3 + $0x53] sm:$0xff] }
 0x217   :  { %v4104_v31 = vpop.f32.mrf.mxu0  ;;  %4865 = vrot.lane.b32.xlu0 %v4864_v26, %s5242_s29  ;;  %v1867_v32 = vpop.f32.mrf.mxu1 }
 0x218   :  { %v2069_v1 = vmul.f32 %v6695_v42, %v1907_v9  ;;  %v4105_v40 = vadd.f32 %v4104_v31, %v4103_v6  ;;  %v1865_v3 = vadd.f32 %v1864_v34, %v1721_v43  ;;  %v4859_v6 = vpack.i.bf16 %v2169_v11, %v2168_v29  ;;  %v2142_v43 = vld [vmem:[#allocation3 + $0x5a] sm:$0xff] }
 0x219   :  { %4855 = vrot.lane.b32.xlu1 %v4854_v47, %s5246_s20  ;;  %v4106_v41 = vpop.f32.mrf.mxu0  ;;  %v1869_v34 = vpop.f32.mrf.mxu1  ;;  %v6723_v29 = vld [vmem:[#allocation3 + $0x59] sm:$0xff] }
 0x21a   :  { %2098 = vst.msk [vmem:[#allocation3 + $0xb0] sm:$0xff] %vm78_vm0, %v2069_v1  ;;  %v1908_v19 = vmax.f32 %v1865_v3, 0.0  ;;  %v1724_v59 = vadd.f32 %v4105_v40, %v6409_v61  ;;  %v2141_v3 = vld [vmem:[#allocation3 + $0x52] sm:$0xff]  ;;  %v6717_v61 = vpop.permute.xlu0 %2030  ;;  %v6725_v11 = vld [vmem:[#allocation3 + $0x9f] sm:$0xff] }
 0x21b   :  { %v4107_v9 = vpop.f32.mrf.mxu0  ;;  %4870 = vrot.lane.b32.xlu0 %v4869_v30, %s5244_s13  ;;  %v1872_v1 = vpop.f32.mrf.mxu1  ;;  %7588 = vst [vmem:[#allocation11_spill] sm:$0xff] %v6717_v61  ;;  %v5201_v40 = vld [vmem:[%s7381_s3] ss:$0 sm:$0xff]  ;;  %v4874_v13 = vpack.i.bf16 %v2142_v43, %v2141_v3  ;;  %v2251_v30 = vld [vmem:[#allocation3 + $0x65] sm:$0xff] }
 0x21c   :  { %v2070_v26 = vmul.f32 %v6708_v52, %v1908_v19  ;;  %v4108_v31 = vadd.f32 %v4107_v9, %v4106_v41  ;;  %v1868_v47 = vadd.f32 %v1867_v32, %v1724_v59  ;;  %v4879_v19 = vpack.i.bf16 %v2116_v4, %v6723_v29  ;;  %v6733_v3 = vpop.permute.xlu1 %2035 }
 0x21d   :  { %4860 = vrot.lane.b32.xlu1 %v4859_v6, %s5241_s28  ;;  %v4109_v42 = vpop.f32.mrf.mxu0  ;;  %v6715_v7 = vld [vmem:[#allocation3 + $0xa7] sm:$0xff]  ;;  %v1874_v59 = vpop.f32.mrf.mxu1  ;;  %7589 = vst [vmem:[#allocation6_spill] sm:$0xff] %v6733_v3 }
 0x21e   :  { %2099 = vst.msk [vmem:[#allocation3 + $0xb8] sm:$0xff] %vm78_vm0, %v2070_v26  ;;  %v1909_v51 = vmax.f32 %v1868_v47, 0.0  ;;  %v1729_v32 = vadd.f32 %v5201_v40, %v4108_v31  ;;  %v2250_v47 = vld [vmem:[#allocation3 + $0x5d] sm:$0xff] }
 0x21f   :  { %v4110_v41 = vpop.f32.mrf.mxu0  ;;  %4875 = vrot.lane.b32.xlu0 %v4874_v13, %s5240_s27  ;;  %v1875_v31 = vpop.f32.mrf.mxu1  ;;  %v4884_v52 = vpack.i.bf16 %v2251_v30, %v2250_v47 }
 0x220   :  { %v2071_v6 = vmul.f32 %v6717_v61, %v1909_v51  ;;  %v4111_v34 = vadd.f32 %v4110_v41, %v4109_v42  ;;  %v1873_v26 = vadd.f32 %v1872_v1, %v1729_v32  ;;  %v4899_v51 = vpack.i.bf16 %v6654_v23, %v6625_v39  ;;  %v2278_v1 = vld [vmem:[#allocation3 + $0x66] sm:$0xff]  ;;  %v6743_v30 = vpop.permute.xlu0 %2040 }
 0x221   :  { %4880 = vrot.lane.b32.xlu1 %v4879_v19, %s5245_s2  ;;  %v4112_v43 = vpop.f32.mrf.mxu0  ;;  %v1877_v42 = vpop.f32.mrf.mxu1  ;;  %v2225_v19 = vld [vmem:[#allocation3 + $0x70] sm:$0xff]  ;;  %7590 = vst [vmem:[#allocation31_spill] sm:$0xff] %v6743_v30 }
 0x222   :  { %2100 = vst.msk [vmem:[#allocation3 + $0xc0] sm:$0xff] %vm78_vm0, %v2071_v6  ;;  %v1910_v4 = vmax.f32 %v1873_v26, 0.0  ;;  %v1732_v59 = vadd.f32 %v5201_v40, %v4111_v34  ;;  %v2277_v26 = vld [vmem:[#allocation3 + $0x5e] sm:$0xff] }
 0x223   :  { %v4113_v60 = vpop.f32.mrf.mxu0  ;;  %4885 = vrot.lane.b32.xlu0 %v4884_v52, %s5247_s21  ;;  %v1880_v6 = vpop.f32.mrf.mxu1  ;;  %v4889_v61 = vpack.i.bf16 %v2278_v1, %v2277_v26 }
 0x224   :  { %v2072_v32 = vmul.f32 %v6733_v3, %v1910_v4  ;;  %v4114_v13 = vadd.f32 %v4113_v60, %v4112_v43  ;;  %v1876_v41 = vadd.f32 %v1875_v31, %v1732_v59  ;;  %v2224_v4 = vld [vmem:[#allocation3 + $0x68] sm:$0xff] }
 0x225   :  { %4900 = vrot.lane.b32.xlu1 %v4899_v51, %s5242_s29  ;;  %v4115_v9 = vpop.f32.mrf.mxu0  ;;  %v6741_v34 = vld [vmem:[#allocation3 + $0xb7] sm:$0xff]  ;;  %v6746_v60 = vld [vmem:[#allocation3 + $0xaf] sm:$0xff]  ;;  %v4904_v52 = vpack.i.bf16 %v2225_v19, %v2224_v4  ;;  %v1882_v59 = vpop.f32.mrf.mxu1 }
 0x226   :  { %2101 = vst.msk [vmem:[#allocation3 + $0xc8] sm:$0xff] %vm78_vm0, %v2072_v32  ;;  %v1911_v47 = vmax.f32 %v1876_v41, 0.0  ;;  %v1737_v42 = vadd.f32 %v5201_v40, %v4114_v13  ;;  %v2171_v31 = vld [vmem:[#allocation3 + $0x6b] sm:$0xff]  ;;  %v2170_v40 = vld [vmem:[#allocation3 + $0x63] sm:$0xff]  ;;  %v6754_v19 = vpop.permute.xlu1 %2045  ;;  %v6780_v9 = vld [vmem:[#allocation3 + $0x79] sm:$0xff] }
 0x227   :  { %v4116_v43 = vpop.f32.mrf.mxu0  ;;  %4890 = vrot.lane.b32.xlu0 %v4889_v61, %s5246_s20  ;;  %v1883_v1 = vpop.f32.mrf.mxu1  ;;  %v4894_v13 = vpack.i.bf16 %v2171_v31, %v2170_v40  ;;  %v2143_v41 = vld [vmem:[#allocation3 + $0x62] sm:$0xff]  ;;  %7591 = vst [vmem:[#allocation41_spill] sm:$0xff] %v6754_v19  ;;  %v6756_v4 = vld [vmem:[#allocation3 + $0x71] sm:$0xff]  ;;  %v4934_v40 = vpack.i.bf16 %v6676_v63, %v6648_v57 }
 0x228   :  { %v2073_v51 = vmul.f32 %v6743_v30, %v1911_v47  ;;  %v1881_v3 = vadd.f32 %v1880_v6, %v1737_v42  ;;  %v4909_v26 = vpack.i.bf16 %v2144_v10, %v2143_v41  ;;  %v2253_v61 = vld [vmem:[#allocation3 + $0x75] sm:$0xff]  ;;  %v6761_v47 = vld [vmem:[#allocation3 + $0x69] sm:$0xff] }
 0x229   :  { %4905 = vrot.lane.b32.xlu1 %v4904_v52, %s5244_s13  ;;  %v1884_v43 = vpop.f32.mrf.mxu1  ;;  %v6763_v42 = vld [vmem:[#allocation3 + $0xbf] sm:$0xff]  ;;  %v4914_v10 = vpack.i.bf16 %v6756_v4, %v6761_v47  ;;  %v2252_v52 = vld [vmem:[#allocation3 + $0x6d] sm:$0xff] }
 0x22a   :  { %2102 = vst.msk [vmem:[#allocation3 + $0xd0] sm:$0xff] %vm78_vm0, %v2073_v51  ;;  %v1912_v32 = vmax.f32 %v1881_v3, 0.0  ;;  %v4919_v59 = vpack.i.bf16 %v2253_v61, %v2252_v52  ;;  %v2280_v51 = vld [vmem:[#allocation3 + $0x76] sm:$0xff]  ;;  %v2279_v1 = vld [vmem:[#allocation3 + $0x6e] sm:$0xff] }
 0x22b   :  { %4895 = vrot.lane.b32.xlu0 %v4894_v13, %s5241_s28  ;;  %v2227_v13 = vld [vmem:[#allocation3 + $0x80] sm:$0xff] }
 0x22c   :  { %v2074_v6 = vmul.f32 %v6754_v19, %v1912_v32  ;;  %v4924_v32 = vpack.i.bf16 %v2280_v51, %v2279_v1  ;;  %v2173_v41 = vld [vmem:[#allocation3 + $0x7b] sm:$0xff] }
 0x22d   :  { %4910 = vrot.lane.b32.xlu1 %v4909_v26, %s5240_s27  ;;  %v6765_v3 = vld [vmem:[#allocation3 + $0xc7] sm:$0xff]  ;;  %v2226_v26 = vld [vmem:[#allocation3 + $0x78] sm:$0xff] }
 0x22e   :  { %2103 = vst.msk [vmem:[#allocation3 + $0xd8] sm:$0xff] %vm78_vm0, %v2074_v6  ;;  %v4939_v43 = vpack.i.bf16 %v2227_v13, %v2226_v26  ;;  %v2172_v6 = vld [vmem:[#allocation3 + $0x73] sm:$0xff]  ;;  %v2254_v1 = vld [vmem:[#allocation3 + $0x7d] sm:$0xff]  ;;  %v4969_v13 = vpack.i.bf16 %v6701_v8, %v6670_v33 }
 0x22f   :  { %4915 = vrot.lane.b32.xlu0 %v4914_v10, %s5245_s2  ;;  %v4929_v61 = vpack.i.bf16 %v2173_v41, %v2172_v6  ;;  %v2146_v52 = vld [vmem:[#allocation3 + $0x7a] sm:$0xff]  ;;  %v2282_v41 = vld [vmem:[#allocation3 + $0x86] sm:$0xff]  ;;  %v2229_v26 = vld [vmem:[#allocation3 + $0x90] sm:$0xff] }
 0x230   :  { %v2120_v10 = vld [vmem:[#allocation3 + $0x81] sm:$0xff] }
 0x231   :  { %4920 = vrot.lane.b32.xlu1 %v4919_v59, %s5247_s21  ;;  %v2145_v59 = vld [vmem:[#allocation3 + $0x72] sm:$0xff]  ;;  %v4949_v51 = vpack.i.bf16 %v2120_v10, %v6780_v9  ;;  %v2147_v19 = vld [vmem:[#allocation3 + $0x82] sm:$0xff] }
 0x232   :  { %v4944_v31 = vpack.i.bf16 %v2146_v52, %v2145_v59  ;;  %v2175_v10 = vld [vmem:[#allocation3 + $0x8b] sm:$0xff]  ;;  %v2174_v59 = vld [vmem:[#allocation3 + $0x83] sm:$0xff] }
 0x233   :  { %4935 = vrot.lane.b32.xlu0 %v4934_v40, %s5242_s29  ;;  %v2255_v40 = vld [vmem:[#allocation3 + $0x85] sm:$0xff] }
 0x235   :  { %4925 = vrot.lane.b32.xlu1 %v4924_v32, %s5246_s20  ;;  %v4954_v32 = vpack.i.bf16 %v2255_v40, %v2254_v1  ;;  %v4964_v1 = vpack.i.bf16 %v2175_v10, %v2174_v59  ;;  %v2284_v10 = vld [vmem:[#allocation3 + $0x96] sm:$0xff] }
 0x237   :  { %4940 = vrot.lane.b32.xlu0 %v4939_v43, %s5244_s13  ;;  %v2281_v43 = vld [vmem:[#allocation3 + $0x7e] sm:$0xff] }
 0x238   :  { %v4959_v6 = vpack.i.bf16 %v2282_v41, %v2281_v43  ;;  %v6793_v41 = vld [vmem:[#allocation3 + $0x89] sm:$0xff] }
 0x239   :  { %4930 = vrot.lane.b32.xlu1 %v4929_v61, %s5241_s28  ;;  %v2228_v61 = vld [vmem:[#allocation3 + $0x88] sm:$0xff] }
 0x23a   :  { %v4974_v52 = vpack.i.bf16 %v2229_v26, %v2228_v61 }
 0x23b   :  { %4945 = vrot.lane.b32.xlu0 %v4944_v31, %s5240_s27  ;;  %v2148_v31 = vld [vmem:[#allocation3 + $0x8a] sm:$0xff] }
 0x23c   :  { %v4979_v30 = vpack.i.bf16 %v2148_v31, %v2147_v19  ;;  %v2283_v31 = vld [vmem:[#allocation3 + $0x8e] sm:$0xff] }
 0x23d   :  { %4950 = vrot.lane.b32.xlu1 %v4949_v51, %s5245_s2  ;;  %v4994_v20 = vpack.i.bf16 %v2284_v10, %v2283_v31  ;;  %v2177_v10 = vld [vmem:[#allocation3 + $0x9b] sm:$0xff] }
 0x23f   :  { %4955 = vrot.lane.b32.xlu0 %v4954_v32, %s5247_s21  ;;  %v2122_v32 = vld [vmem:[#allocation3 + $0x91] sm:$0xff] }
 0x240   :  { %v4984_v43 = vpack.i.bf16 %v2122_v32, %v6793_v41  ;;  %v5004_v32 = vpack.i.bf16 %v6725_v11, %v6693_v14 }
 0x241   :  { %4970 = vrot.lane.b32.xlu1 %v4969_v13, %s5242_s29  ;;  %v2257_v13 = vld [vmem:[#allocation3 + $0x95] sm:$0xff] }
 0x243   :  { %4960 = vrot.lane.b32.xlu0 %v4959_v6, %s5246_s20  ;;  %v2256_v6 = vld [vmem:[#allocation3 + $0x8d] sm:$0xff] }
 0x244   :  { %v4696_v51 = vpop.permute.xlu1 %4695  ;;  %v4989_v12 = vpack.i.bf16 %v2257_v13, %v2256_v6 }
 0x245   :  { %4975 = vrot.lane.b32.xlu1 %v4974_v52, %s5244_s13  ;;  %v4686_v40 = vpop.permute.xlu0 %4685 }
 0x246   :  { %v4688_v61 = vunpack.i.h.bf16 %v4686_v40  ;;  %v4687_v52 = vunpack.i.l.bf16 %v4686_v40 }
 0x247   :  { %4965 = vrot.lane.b32.xlu0 %v4964_v1, %s5241_s28  ;;  %v4697_v1 = vunpack.i.l.bf16 %v4696_v51 }
 0x248   :  { %v3051_v40 = vsel %vm78_vm0, %v2104_v16, %v4687_v52  ;;  %v3052_v13 = vsel %vm78_vm0, %v5202_v15, %v4688_v61  ;;  %v2230_v52 = vld [vmem:[#allocation3 + $0x98] sm:$0xff] }
 0x249   :  { %4980 = vrot.lane.b32.xlu1 %v4979_v30, %s5240_s27  ;;  %v4691_v26 = vpop.permute.xlu0 %4690  ;;  %v4698_v30 = vunpack.i.h.bf16 %v4696_v51 }
 0x24a   :  { %v4693_v59 = vunpack.i.h.bf16 %v4691_v26  ;;  %v4692_v19 = vunpack.i.l.bf16 %v4691_v26 }
 0x24b   :  { %v6796_v25 = vpop.permute.xlu1 %4705  ;;  %4985 = vrot.lane.b32.xlu0 %v4984_v43, %s5245_s2  ;;  %v2231_v43 = vld [vmem:[#allocation3 + $0xa0] sm:$0xff] }
 0x24c   :  { %v3105_v51 = vsel %vm1137_vm2, %v4692_v19, %v4697_v1  ;;  %v4708_v53 = vunpack.i.h.bf16 %v6796_v25  ;;  %v4707_v24 = vunpack.i.l.bf16 %v6796_v25  ;;  %v3078_v16 = vsel %vm1109_vm1, %v3051_v40, %v4692_v19  ;;  %v2176_v1 = vld [vmem:[#allocation3 + $0x93] sm:$0xff] }
 0x24d   :  { %4990 = vrot.lane.b32.xlu1 %v4989_v12, %s5247_s21  ;;  %v4701_v35 = vpop.permute.xlu0 %4700  ;;  %v3106_v12 = vsel %vm1137_vm2, %v4693_v59, %v4698_v30  ;;  %v3079_v15 = vsel %vm1109_vm1, %v3052_v13, %v4693_v59  ;;  %v5009_v30 = vpack.i.bf16 %v2231_v43, %v2230_v52  ;;  %v4999_v17 = vpack.i.bf16 %v2177_v10, %v2176_v1  ;;  %v2150_v19 = vld [vmem:[#allocation3 + $0x9a] sm:$0xff] }
 0x24e   :  { %v4703_v6 = vunpack.i.h.bf16 %v4701_v35  ;;  %v4702_v26 = vunpack.i.l.bf16 %v4701_v35  ;;  %v3240_v40 = vpack.c.bf16 %v3079_v15, %v3078_v16  ;;  %v2259_v16 = vld [vmem:[#allocation3 + $0xa5] sm:$0xff]  ;;  %v2258_v1 = vld [vmem:[#allocation3 + $0x9d] sm:$0xff] }
 0x24f   :  { %v6804_v0 = vpop.permute.xlu1 %4720  ;;  %5005 = vrot.lane.b32.xlu0 %v5004_v32, %s5242_s29  ;;  %v2286_v15 = vld [vmem:[#allocation3 + $0xa6] sm:$0xff] }
 0x250   :  { %v3132_v35 = vsel %vm1165_vm3, %v3105_v51, %v4702_v26  ;;  %v3133_v61 = vsel %vm1165_vm3, %v3106_v12, %v4703_v6  ;;  %v2124_v6 = vld [vmem:[#allocation3 + $0xa1] sm:$0xff]  ;;  %v6820_v12 = vld [vmem:[#allocation3 + $0x99] sm:$0xff]  ;;  %v4722_v52 = vunpack.i.l.bf16 %v6804_v0 }
 0x251   :  { %4995 = vrot.lane.b32.xlu1 %v4994_v20, %s5246_s20  ;;  %v4711_v31 = vpop.permute.xlu0 %4710  ;;  %v3159_v46 = vsel %vm1193_vm4, %v3132_v35, %v4707_v24  ;;  %v3160_v25 = vsel %vm1193_vm4, %v3133_v61, %v4708_v53  ;;  %v2149_v20 = vld [vmem:[#allocation3 + $0x92] sm:$0xff]  ;;  %v4723_v61 = vunpack.i.h.bf16 %v6804_v0  ;;  %v5039_v0 = vpack.i.bf16 %v6746_v60, %v6715_v7 }
 0x252   :  { %v3241_v18 = vpack.c.bf16 %v3160_v25, %v3159_v46  ;;  %v4713_v59 = vunpack.i.h.bf16 %v4711_v31  ;;  %v4712_v13 = vunpack.i.l.bf16 %v4711_v31  ;;  %v5014_v43 = vpack.i.bf16 %v2150_v19, %v2149_v20  ;;  %v2285_v25 = vld [vmem:[#allocation3 + $0x9e] sm:$0xff] }
 0x253   :  { %v4731_v32 = vpop.permute.xlu1 %4730  ;;  %5010 = vrot.lane.b32.xlu0 %v5009_v30, %s5244_s13  ;;  %v5019_v46 = vpack.i.bf16 %v2124_v6, %v6820_v12  ;;  %v5024_v6 = vpack.i.bf16 %v2259_v16, %v2258_v1  ;;  %v5029_v20 = vpack.i.bf16 %v2286_v15, %v2285_v25  ;;  %v2233_v16 = vld [vmem:[#allocation3 + $0xb0] sm:$0xff] }
 0x254   :  { %3593 = vmatprep.mubr.bf16.mxu0 %v3241_v18  ;;  %v3187_v18 = vsel %vm1221_vm5, %v4708_v53, %v4713_v59 }
 0x255   :  { %5000 = vrot.lane.b32.xlu1 %v4999_v17, %s5241_s28  ;;  %v4716_v26 = vpop.permute.xlu0 %4715  ;;  %3594 = vmatmul.mubr.bf16.vlgmr.msra.gmra.mxu0 %v3240_v40  ;;  %v3186_v17 = vsel %vm1221_vm5, %v4707_v24, %v4712_v13  ;;  %v4733_v24 = vunpack.i.h.bf16 %v4731_v32  ;;  %v4732_v13 = vunpack.i.l.bf16 %v4731_v32 }
 0x256   :  { %v4718_v51 = vunpack.i.h.bf16 %v4716_v26  ;;  %v4717_v35 = vunpack.i.l.bf16 %v4716_v26 }
 0x257   :  { %v4736_v10 = vpop.permute.xlu1 %4735  ;;  %5015 = vrot.lane.b32.xlu0 %v5014_v43, %s5240_s27  ;;  %v3054_v43 = vsel %vm78_vm0, %v6561_v55, %v4723_v61  ;;  %v7592_v55 = vpack.c.bf16 %v6535_v62, %v6532_v27 }
 0x258   :  { %v3213_v31 = vsel %vm1249_vm6, %v3186_v17, %v4717_v35  ;;  %v3214_v30 = vsel %vm1249_vm6, %v3187_v18, %v4718_v51  ;;  %v5203_v51 = vld [vmem:[#allocation3 + $0x11] sm:$0xff]  ;;  %v4737_v17 = vunpack.i.l.bf16 %v4736_v10 }
 0x259   :  { %5020 = vrot.lane.b32.xlu1 %v5019_v46, %s5245_s2  ;;  %v3242_v19 = vpack.c.bf16 %v3214_v30, %v3213_v31  ;;  %v4726_v40 = vpop.permute.xlu0 %4725  ;;  %v3053_v35 = vsel %vm78_vm0, %v5203_v51, %v4722_v52  ;;  %v4738_v46 = vunpack.i.h.bf16 %v4736_v10  ;;  %v2232_v52 = vld [vmem:[#allocation3 + $0xa8] sm:$0xff] }
 0x25a   :  { %v4728_v53 = vunpack.i.h.bf16 %v4726_v40  ;;  %v4727_v59 = vunpack.i.l.bf16 %v4726_v40  ;;  %v5044_v40 = vpack.i.bf16 %v2233_v16, %v2232_v52  ;;  %v6858_v52 = vld [vmem:[#allocation3 + $0xa9] sm:$0xff] }
 0x25b   :  { %v4741_v26 = vpop.permute.xlu1 %4740  ;;  %5025 = vrot.lane.b32.xlu0 %v5024_v6, %s5247_s21  ;;  %3738 = vmatmul.mubr.bf16.vlgmr.msra.gmra.mxu1 %v3242_v19 }
 0x25c   :  { %v3107_v18 = vsel %vm1137_vm2, %v4727_v59, %v4732_v13  ;;  %v3108_v15 = vsel %vm1137_vm2, %v4728_v53, %v4733_v24  ;;  %v4743_v32 = vunpack.i.h.bf16 %v4741_v26  ;;  %v4742_v31 = vunpack.i.l.bf16 %v4741_v26  ;;  %4005 = vmatprep.mubr.msk.bf16.mxu1 %vm78_vm0, %v7592_v55  ;;  %v2179_v24 = vld [vmem:[#allocation3 + $0xab] sm:$0xff]  ;;  %v2261_v55 = vld [vmem:[#allocation3 + $0xb5] sm:$0xff] }
 0x25d   :  { %5040 = vrot.lane.b32.xlu1 %v5039_v0, %s5242_s29  ;;  %v4746_v61 = vpop.permute.xlu0 %4745  ;;  %v3134_v10 = vsel %vm1165_vm3, %v3107_v18, %v4737_v17  ;;  %v3135_v30 = vsel %vm1165_vm3, %v3108_v15, %v4738_v46  ;;  %v3080_v1 = vsel %vm1109_vm1, %v3053_v35, %v4727_v59  ;;  %v3081_v25 = vsel %vm1109_vm1, %v3054_v43, %v4728_v53  ;;  %v2152_v26 = vld [vmem:[#allocation3 + $0xaa] sm:$0xff]  ;;  %v2151_v43 = vld [vmem:[#allocation3 + $0xa2] sm:$0xff] }
 0x25e   :  { %v3161_v6 = vsel %vm1193_vm4, %v3134_v10, %v4742_v31  ;;  %v3162_v0 = vsel %vm1193_vm4, %v3135_v30, %v4743_v32  ;;  %v4748_v27 = vunpack.i.h.bf16 %v4746_v61  ;;  %v4747_v62 = vunpack.i.l.bf16 %v4746_v61  ;;  %v2178_v46 = vld [vmem:[#allocation3 + $0xa3] sm:$0xff]  ;;  %v6852_v15 = vld [vmem:[#allocation3 + $0xb1] sm:$0xff] }
 0x25f   :  { %v4761_v19 = vpop.permute.xlu1 %4760  ;;  %5030 = vrot.lane.b32.xlu0 %v5029_v20, %s5246_s20  ;;  %v3245_v13 = vpack.c.bf16 %v3162_v0, %v3161_v6  ;;  %v3244_v51 = vpack.c.bf16 %v3081_v25, %v3080_v1  ;;  %v5034_v53 = vpack.i.bf16 %v2179_v24, %v2178_v46  ;;  %v5049_v18 = vpack.i.bf16 %v2152_v26, %v2151_v43  ;;  %v2260_v10 = vld [vmem:[#allocation3 + $0xad] sm:$0xff] }
 0x260   :  { %v3188_v20 = vsel %vm1221_vm5, %v4742_v31, %v4747_v62  ;;  %v3189_v61 = vsel %vm1221_vm5, %v4743_v32, %v4748_v27  ;;  %v5059_v6 = vpack.i.bf16 %v2261_v55, %v2260_v10  ;;  %v4763_v31 = vunpack.i.h.bf16 %v4761_v19 }
 0x261   :  { %5045 = vrot.lane.b32.xlu1 %v5044_v40, %s5244_s13  ;;  %v4751_v59 = vpop.permute.xlu0 %4750  ;;  %3601 = vmatprep.mubr.bf16.mxu0 %v3245_v13  ;;  %v5054_v40 = vpack.i.bf16 %v6852_v15, %v6858_v52  ;;  %v4762_v24 = vunpack.i.l.bf16 %v4761_v19  ;;  %v5074_v19 = vpack.i.bf16 %v6763_v42, %v6741_v34 }
 0x262   :  { %v4753_v35 = vunpack.i.h.bf16 %v4751_v59  ;;  %v4752_v17 = vunpack.i.l.bf16 %v4751_v59  ;;  %3602 = vmatmul.mubr.bf16.gmra.mxu0 %v3244_v51  ;;  %v2288_v51 = vld [vmem:[#allocation3 + $0xb6] sm:$0xff] }
 0x263   :  { %v4766_v16 = vpop.permute.xlu1 %4765  ;;  %5035 = vrot.lane.b32.xlu0 %v5034_v53, %s5241_s28  ;;  %v7593_v53 = vpack.c.bf16 %v6555_v36, %v6563_v44  ;;  %v2235_v36 = vld [vmem:[#allocation3 + $0xc0] sm:$0xff] }
 0x264   :  { %v3215_v30 = vsel %vm1249_vm6, %v3188_v20, %v4752_v17  ;;  %v3216_v1 = vsel %vm1249_vm6, %v3189_v61, %v4753_v35  ;;  %v4768_v43 = vunpack.i.h.bf16 %v4766_v16  ;;  %v4767_v35 = vunpack.i.l.bf16 %v4766_v16  ;;  %v2287_v61 = vld [vmem:[#allocation3 + $0xae] sm:$0xff]  ;;  %v2181_v44 = vld [vmem:[#allocation3 + $0xbb] sm:$0xff] }
 0x265   :  { %5050 = vrot.lane.b32.xlu1 %v5049_v18, %s5240_s27  ;;  %v4756_v25 = vpop.permute.xlu0 %4755  ;;  %v3246_v0 = vpack.c.bf16 %v3216_v1, %v3215_v30  ;;  %v5204_v18 = vld [vmem:[#allocation3 + $0x21] sm:$0xff] }
 0x266   :  { %v4758_v32 = vunpack.i.h.bf16 %v4756_v25  ;;  %v4757_v27 = vunpack.i.l.bf16 %v4756_v25  ;;  %v5064_v25 = vpack.i.bf16 %v2288_v51, %v2287_v61 }
 0x267   :  { %v4771_v62 = vpop.permute.xlu1 %4770  ;;  %5055 = vrot.lane.b32.xlu0 %v5054_v40, %s5245_s2  ;;  %3746 = vmatmul.mubr.bf16.gmra.mxu1 %v3246_v0 }
 0x268   :  { %v4773_v13 = vunpack.i.h.bf16 %v4771_v62  ;;  %v4772_v26 = vunpack.i.l.bf16 %v4771_v62  ;;  %v3109_v46 = vsel %vm1137_vm2, %v4757_v27, %v4762_v24  ;;  %v3110_v59 = vsel %vm1137_vm2, %v4758_v32, %v4763_v31  ;;  %4006 = vmatprep.mubr.msk.bf16.mxu1 %vm78_vm0, %v7593_v53  ;;  %v2234_v24 = vld [vmem:[#allocation3 + $0xb8] sm:$0xff] }
 0x269   :  { %5060 = vrot.lane.b32.xlu1 %v5059_v6, %s5247_s21  ;;  %v4776_v20 = vpop.permute.xlu0 %4775  ;;  %v3136_v40 = vsel %vm1165_vm3, %v3109_v46, %v4767_v35  ;;  %v3137_v16 = vsel %vm1165_vm3, %v3110_v59, %v4768_v43  ;;  %v5079_v51 = vpack.i.bf16 %v2235_v36, %v2234_v24  ;;  %v2180_v53 = vld [vmem:[#allocation3 + $0xb3] sm:$0xff] }
 0x26a   :  { %v3056_v17 = vsel %vm78_vm0, %v6600_v5, %v4773_v13  ;;  %v3055_v55 = vsel %vm78_vm0, %v5204_v18, %v4772_v26  ;;  %v4778_v10 = vunpack.i.h.bf16 %v4776_v20  ;;  %v4777_v30 = vunpack.i.l.bf16 %v4776_v20  ;;  %v2154_v43 = vld [vmem:[#allocation3 + $0xba] sm:$0xff]  ;;  %v2153_v20 = vld [vmem:[#allocation3 + $0xb2] sm:$0xff] }
 0x26b   :  { %v4781_v1 = vpop.permute.xlu1 %4780  ;;  %5075 = vrot.lane.b32.xlu0 %v5074_v19, %s5242_s29  ;;  %v3082_v6 = vsel %vm1109_vm1, %v3055_v55, %v4757_v27  ;;  %v3083_v5 = vsel %vm1109_vm1, %v3056_v17, %v4758_v32  ;;  %v5069_v35 = vpack.i.bf16 %v2181_v44, %v2180_v53  ;;  %v6886_v32 = vld [vmem:[#allocation3 + $0xc1] sm:$0xff]  ;;  %v6898_v24 = vld [vmem:[#allocation3 + $0xcf] sm:$0xff] }
 0x26c   :  { %v4783_v0 = vunpack.i.h.bf16 %v4781_v1  ;;  %v4782_v31 = vunpack.i.l.bf16 %v4781_v1  ;;  %v3163_v62 = vsel %vm1193_vm4, %v3136_v40, %v4777_v30  ;;  %v3164_v13 = vsel %vm1193_vm4, %v3137_v16, %v4778_v10  ;;  %v2290_v53 = vld [vmem:[#allocation3 + $0xc6] sm:$0xff] }
 0x26d   :  { %5065 = vrot.lane.b32.xlu1 %v5064_v25, %s5246_s20  ;;  %v4796_v26 = vpop.permute.xlu0 %4795  ;;  %v3249_v19 = vpack.c.bf16 %v3164_v13, %v3163_v62  ;;  %v3248_v59 = vpack.c.bf16 %v3083_v5, %v3082_v6  ;;  %v5084_v1 = vpack.i.bf16 %v2154_v43, %v2153_v20  ;;  %v6891_v25 = vld [vmem:[#allocation3 + $0xb9] sm:$0xff] }
 0x26e   :  { %v3191_v17 = vsel %vm1221_vm5, %v4778_v10, %v4783_v0  ;;  %v3190_v55 = vsel %vm1221_vm5, %v4777_v30, %v4782_v31  ;;  %v5089_v16 = vpack.i.bf16 %v6886_v32, %v6891_v25  ;;  %v2263_v10 = vld [vmem:[#allocation3 + $0xc5] sm:$0xff]  ;;  %v4798_v5 = vunpack.i.h.bf16 %v4796_v26 }
 0x26f   :  { %v4786_v46 = vpop.permute.xlu1 %4785  ;;  %5080 = vrot.lane.b32.xlu0 %v5079_v51, %s5244_s13  ;;  %3609 = vmatprep.mubr.bf16.mxu0 %v3249_v19  ;;  %v4797_v30 = vunpack.i.l.bf16 %v4796_v26  ;;  %v2262_v51 = vld [vmem:[#allocation3 + $0xbd] sm:$0xff]  ;;  %v7594_v26 = vpack.c.bf16 %v6580_v28, %v6586_v21  ;;  %v5205_v21 = vld [vmem:[#allocation3 + $0x31] sm:$0xff] }
 0x270   :  { %v4788_v27 = vunpack.i.h.bf16 %v4786_v46  ;;  %v4787_v18 = vunpack.i.l.bf16 %v4786_v46  ;;  %3610 = vmatmul.mubr.bf16.gmra.mxu0 %v3248_v59  ;;  %v5094_v59 = vpack.i.bf16 %v2263_v10, %v2262_v51  ;;  %v2236_v10 = vld [vmem:[#allocation3 + $0xc8] sm:$0xff] }
 0x271   :  { %5070 = vrot.lane.b32.xlu1 %v5069_v35, %s5241_s28  ;;  %v4801_v61 = vpop.permute.xlu0 %4800 }
 0x272   :  { %v3217_v36 = vsel %vm1249_vm6, %v3190_v55, %v4787_v18  ;;  %v3218_v44 = vsel %vm1249_vm6, %v3191_v17, %v4788_v27  ;;  %v4803_v62 = vunpack.i.h.bf16 %v4801_v61  ;;  %v4802_v13 = vunpack.i.l.bf16 %v4801_v61  ;;  %v2289_v55 = vld [vmem:[#allocation3 + $0xbe] sm:$0xff] }
 0x273   :  { %v4791_v40 = vpop.permute.xlu1 %4790  ;;  %v3250_v6 = vpack.c.bf16 %v3218_v44, %v3217_v36  ;;  %5085 = vrot.lane.b32.xlu0 %v5084_v1, %s5240_s27  ;;  %v5109_v17 = vpack.i.bf16 %v6898_v24, %v6765_v3  ;;  %v5099_v1 = vpack.i.bf16 %v2290_v53, %v2289_v55  ;;  %v2237_v36 = vld [vmem:[#allocation3 + $0xd0] sm:$0xff] }
 0x274   :  { %v4793_v0 = vunpack.i.h.bf16 %v4791_v40  ;;  %v4792_v31 = vunpack.i.l.bf16 %v4791_v40 }
 0x275   :  { %5090 = vrot.lane.b32.xlu1 %v5089_v16, %s5245_s2  ;;  %3754 = vmatmul.mubr.bf16.gmra.mxu1 %v3250_v6  ;;  %v4806_v35 = vpop.permute.xlu0 %4805 }
 0x276   :  { %v3112_v19 = vsel %vm1137_vm2, %v4793_v0, %v4798_v5  ;;  %v3111_v46 = vsel %vm1137_vm2, %v4792_v31, %v4797_v30  ;;  %4007 = vmatprep.mubr.msk.bf16.mxu1 %vm78_vm0, %v7594_v26  ;;  %v4808_v43 = vunpack.i.h.bf16 %v4806_v35  ;;  %v4807_v27 = vunpack.i.l.bf16 %v4806_v35 }
 0x277   :  { %v4811_v18 = vpop.permute.xlu1 %4810  ;;  %5095 = vrot.lane.b32.xlu0 %v5094_v59, %s5247_s21  ;;  %v3138_v40 = vsel %vm1165_vm3, %v3111_v46, %v4802_v13  ;;  %v3139_v16 = vsel %vm1165_vm3, %v3112_v19, %v4803_v62  ;;  %v5114_v26 = vpack.i.bf16 %v2237_v36, %v2236_v10  ;;  %v2156_v62 = vld [vmem:[#allocation3 + $0xca] sm:$0xff] }
 0x278   :  { %v4813_v20 = vunpack.i.h.bf16 %v4811_v18  ;;  %v4812_v61 = vunpack.i.l.bf16 %v4811_v18  ;;  %v3058_v28 = vsel %vm78_vm0, %v6642_v54, %v4808_v43  ;;  %v3057_v44 = vsel %vm78_vm0, %v5205_v21, %v4807_v27  ;;  %v2183_v43 = vld [vmem:[#allocation3 + $0xcb] sm:$0xff]  ;;  %v2182_v13 = vld [vmem:[#allocation3 + $0xc3] sm:$0xff] }
 0x279   :  { %5110 = vrot.lane.b32.xlu1 %v5109_v17, %s5242_s29  ;;  %v4816_v6 = vpop.permute.xlu0 %4815  ;;  %v3084_v51 = vsel %vm1109_vm1, %v3057_v44, %v4792_v31  ;;  %v3085_v53 = vsel %vm1109_vm1, %v3058_v28, %v4793_v0  ;;  %v5104_v46 = vpack.i.bf16 %v2183_v43, %v2182_v13  ;;  %v2155_v31 = vld [vmem:[#allocation3 + $0xc2] sm:$0xff]  ;;  %v6922_v28 = vld [vmem:[#allocation3 + $0xd1] sm:$0xff] }
 0x27a   :  { %v3165_v5 = vsel %vm1193_vm4, %v3138_v40, %v4812_v61  ;;  %v3166_v30 = vsel %vm1193_vm4, %v3139_v16, %v4813_v20  ;;  %v3252_v59 = vpack.c.bf16 %v3085_v53, %v3084_v51  ;;  %v4818_v27 = vunpack.i.h.bf16 %v4816_v6  ;;  %v2265_v43 = vld [vmem:[#allocation3 + $0xd5] sm:$0xff] }
 0x27b   :  { %v4831_v54 = vpop.permute.xlu1 %4830  ;;  %v3253_v35 = vpack.c.bf16 %v3166_v30, %v3165_v5  ;;  %v4817_v18 = vunpack.i.l.bf16 %v4816_v6  ;;  %5100 = vrot.lane.b32.xlu0 %v5099_v1, %s5246_s20  ;;  %v5119_v36 = vpack.i.bf16 %v2156_v62, %v2155_v31  ;;  %v6928_v1 = vld [vmem:[#allocation3 + $0xc9] sm:$0xff]  ;;  %v7595_v62 = vpack.c.bf16 %v6602_v58, %v6609_v38  ;;  %v2292_v58 = vld [vmem:[#allocation3 + $0xd6] sm:$0xff] }
 0x27c   :  { %v3193_v44 = vsel %vm1221_vm5, %v4813_v20, %v4818_v27  ;;  %v5124_v10 = vpack.i.bf16 %v6922_v28, %v6928_v1  ;;  %v4833_v30 = vunpack.i.h.bf16 %v4831_v54  ;;  %v4832_v51 = vunpack.i.l.bf16 %v4831_v54 }
 0x27d   :  { %5115 = vrot.lane.b32.xlu1 %v5114_v26, %s5244_s13  ;;  %3617 = vmatprep.mubr.bf16.mxu0 %v3253_v35  ;;  %v4821_v19 = vpop.permute.xlu0 %4820  ;;  %v3192_v21 = vsel %vm1221_vm5, %v4812_v61, %v4817_v18 }
 0x27e   :  { %3618 = vmatmul.mubr.bf16.gmra.mxu0 %v3252_v59  ;;  %v4823_v17 = vunpack.i.h.bf16 %v4821_v19  ;;  %v4822_v0 = vunpack.i.l.bf16 %v4821_v19  ;;  %v2184_v59 = vld [vmem:[#allocation3 + $0xd3] sm:$0xff] }
 0x27f   :  { %v4836_v55 = vpop.permute.xlu1 %4835  ;;  %5105 = vrot.lane.b32.xlu0 %v5104_v46, %s5241_s28  ;;  %v5206_v46 = vld [vmem:[#allocation3 + $0x41] sm:$0xff] }
 0x280   :  { %v3219_v40 = vsel %vm1249_vm6, %v3192_v21, %v4822_v0  ;;  %v3220_v16 = vsel %vm1249_vm6, %v3193_v44, %v4823_v17  ;;  %v4838_v54 = vunpack.i.h.bf16 %v4836_v55  ;;  %v4837_v13 = vunpack.i.l.bf16 %v4836_v55  ;;  %v2264_v0 = vld [vmem:[#allocation3 + $0xcd] sm:$0xff] }
 0x281   :  { %5120 = vrot.lane.b32.xlu1 %v5119_v36, %s5240_s27  ;;  %v4826_v6 = vpop.permute.xlu0 %4825  ;;  %v3254_v5 = vpack.c.bf16 %v3220_v16, %v3219_v40  ;;  %v6945_v40 = vld [vmem:[#allocation3 + $0xd7] sm:$0xff]  ;;  %v5129_v16 = vpack.i.bf16 %v2265_v43, %v2264_v0 }
 0x282   :  { %v4828_v61 = vunpack.i.h.bf16 %v4826_v6  ;;  %v4827_v53 = vunpack.i.l.bf16 %v4826_v6  ;;  %v2238_v43 = vld [vmem:[#allocation3 + $0xd8] sm:$0xff] }
 0x283   :  { %v4841_v20 = vpop.permute.xlu1 %4840  ;;  %5125 = vrot.lane.b32.xlu0 %v5124_v10, %s5245_s2  ;;  %3762 = vmatmul.mubr.bf16.gmra.mxu1 %v3254_v5 }
 0x284   :  { %v4843_v26 = vunpack.i.h.bf16 %v4841_v20  ;;  %v4842_v35 = vunpack.i.l.bf16 %v4841_v20  ;;  %v3113_v27 = vsel %vm1137_vm2, %v4827_v53, %v4832_v51  ;;  %v3114_v18 = vsel %vm1137_vm2, %v4828_v61, %v4833_v30  ;;  %4008 = vmatprep.mubr.msk.bf16.mxu1 %vm78_vm0, %v7595_v62 }
 0x285   :  { %2482 = vrot.lane.b32.xlu1 %v2184_v59, %s5241_s28  ;;  %v4846_v17 = vpop.permute.xlu0 %4845  ;;  %v3140_v38 = vsel %vm1165_vm3, %v3113_v27, %v4837_v13  ;;  %v3141_v55 = vsel %vm1165_vm3, %v3114_v18, %v4838_v54 }
 0x286   :  { %v3060_v19 = vsel %vm78_vm0, %v6683_v50, %v4843_v26  ;;  %v3059_v31 = vsel %vm78_vm0, %v5206_v46, %v4842_v35  ;;  %v4848_v36 = vunpack.i.h.bf16 %v4846_v17  ;;  %v4847_v21 = vunpack.i.l.bf16 %v4846_v17  ;;  %v2291_v26 = vld [vmem:[#allocation3 + $0xce] sm:$0xff] }
 0x287   :  { %v4851_v44 = vpop.permute.xlu1 %4850  ;;  %2590 = vrot.lane.b32.xlu0 %v6945_v40, %s5242_s29  ;;  %v3086_v50 = vsel %vm1109_vm1, %v3059_v31, %v4827_v53  ;;  %v3087_v6 = vsel %vm1109_vm1, %v3060_v19, %v4828_v61  ;;  %v5134_v27 = vpack.i.bf16 %v2292_v58, %v2291_v26  ;;  %v2157_v17 = vld [vmem:[#allocation3 + $0xd2] sm:$0xff]  ;;  %v2266_v26 = vld [vmem:[#allocation3 + $0xdd] sm:$0xff] }
 0x288   :  { %v4853_v10 = vunpack.i.h.bf16 %v4851_v44  ;;  %v4852_v5 = vunpack.i.l.bf16 %v4851_v44  ;;  %v3167_v30 = vsel %vm1193_vm4, %v3140_v38, %v4847_v21  ;;  %v3168_v51 = vsel %vm1193_vm4, %v3141_v55, %v4848_v36 }
 0x289   :  { %5130 = vrot.lane.b32.xlu1 %v5129_v16, %s5247_s21  ;;  %v4866_v20 = vpop.permute.xlu0 %4865  ;;  %v3257_v35 = vpack.c.bf16 %v3168_v51, %v3167_v30  ;;  %v3256_v62 = vpack.c.bf16 %v3087_v6, %v3086_v50 }
 0x28a   :  { %v3195_v61 = vsel %vm1221_vm5, %v4848_v36, %v4853_v10  ;;  %v3194_v53 = vsel %vm1221_vm5, %v4847_v21, %v4852_v5  ;;  %v4868_v44 = vunpack.i.h.bf16 %v4866_v20  ;;  %v4867_v16 = vunpack.i.l.bf16 %v4866_v20  ;;  %v2239_v36 = vld [vmem:[#allocation3 + $0xd9] sm:$0xff] }
 0x28b   :  { %v4856_v59 = vpop.permute.xlu1 %4855  ;;  %2698 = vrot.lane.b32.xlu0 %v2238_v43, %s5244_s13  ;;  %3625 = vmatprep.mubr.bf16.mxu0 %v3257_v35  ;;  %v7596_v10 = vpack.c.bf16 %v6625_v39, %v6631_v37  ;;  %v2293_v43 = vld [vmem:[#allocation3 + $0xde] sm:$0xff] }
 0x28c   :  { %v4858_v18 = vunpack.i.h.bf16 %v4856_v59  ;;  %v4857_v54 = vunpack.i.l.bf16 %v4856_v59  ;;  %3626 = vmatmul.mubr.bf16.gmra.mxu0 %v3256_v62  ;;  %v5207_v62 = vld [vmem:[#allocation3 + $0x51] sm:$0xff] }
 0x28d   :  { %5135 = vrot.lane.b32.xlu1 %v5134_v27, %s5246_s20  ;;  %v4871_v13 = vpop.permute.xlu0 %4870 }
 0x28e   :  { %v3221_v19 = vsel %vm1249_vm6, %v3194_v53, %v4857_v54  ;;  %v3222_v46 = vsel %vm1249_vm6, %v3195_v61, %v4858_v18  ;;  %v4873_v55 = vunpack.i.h.bf16 %v4871_v13  ;;  %v4872_v21 = vunpack.i.l.bf16 %v4871_v13 }
 0x28f   :  { %v4861_v31 = vpop.permute.xlu1 %4860  ;;  %v3258_v0 = vpack.c.bf16 %v3222_v46, %v3221_v19  ;;  %2374 = vrot.lane.b32.xlu0 %v2157_v17, %s5240_s27 }
 0x290   :  { %v4863_v58 = vunpack.i.h.bf16 %v4861_v31  ;;  %v4862_v38 = vunpack.i.l.bf16 %v4861_v31 }
 0x291   :  { %2806 = vrot.lane.b32.xlu1 %v2239_v36, %s5245_s2  ;;  %3770 = vmatmul.mubr.bf16.gmra.mxu1 %v3258_v0  ;;  %v4876_v5 = vpop.permute.xlu0 %4875 }
 0x292   :  { %v3116_v50 = vsel %vm1137_vm2, %v4863_v58, %v4868_v44  ;;  %v3115_v6 = vsel %vm1137_vm2, %v4862_v38, %v4867_v16  ;;  %4009 = vmatprep.mubr.msk.bf16.mxu1 %vm78_vm0, %v7596_v10  ;;  %v4878_v30 = vunpack.i.h.bf16 %v4876_v5  ;;  %v4877_v51 = vunpack.i.l.bf16 %v4876_v5 }
 0x293   :  { %v4881_v20 = vpop.permute.xlu1 %4880  ;;  %2914 = vrot.lane.b32.xlu0 %v2266_v26, %s5247_s21  ;;  %v3142_v39 = vsel %vm1165_vm3, %v3115_v6, %v4872_v21  ;;  %v3143_v37 = vsel %vm1165_vm3, %v3116_v50, %v4873_v55 }
 0x294   :  { %v4883_v35 = vunpack.i.h.bf16 %v4881_v20  ;;  %v4882_v59 = vunpack.i.l.bf16 %v4881_v20  ;;  %v3062_v27 = vsel %vm78_vm0, %v6723_v29, %v4878_v30  ;;  %v3061_v18 = vsel %vm78_vm0, %v5207_v62, %v4877_v51 }
 0x295   :  { %3022 = vrot.lane.b32.xlu1 %v2293_v43, %s5246_s20  ;;  %v4886_v54 = vpop.permute.xlu0 %4885  ;;  %v3088_v13 = vsel %vm1109_vm1, %v3061_v18, %v4862_v38  ;;  %v3089_v19 = vsel %vm1109_vm1, %v3062_v27, %v4863_v58 }
 0x296   :  { %v3169_v61 = vsel %vm1193_vm4, %v3142_v39, %v4882_v59  ;;  %v3170_v53 = vsel %vm1193_vm4, %v3143_v37, %v4883_v35  ;;  %v3260_v31 = vpack.c.bf16 %v3089_v19, %v3088_v13  ;;  %v4888_v17 = vunpack.i.h.bf16 %v4886_v54 }
 0x297   :  { %v4901_v46 = vpop.permute.xlu1 %4900  ;;  %v3261_v29 = vpack.c.bf16 %v3170_v53, %v3169_v61  ;;  %v4887_v0 = vunpack.i.l.bf16 %v4886_v54  ;;  %v5208_v54 = vld [vmem:[#allocation3 + $0x61] sm:$0xff] }
 0x298   :  { %v3197_v50 = vsel %vm1221_vm5, %v4883_v35, %v4888_v17  ;;  %v4903_v5 = vunpack.i.h.bf16 %v4901_v46  ;;  %v4902_v30 = vunpack.i.l.bf16 %v4901_v46  ;;  %v7597_v35 = vpack.c.bf16 %v6648_v57, %v6654_v23 }
 0x299   :  { %3633 = vmatprep.mubr.bf16.mxu0 %v3261_v29  ;;  %v4891_v44 = vpop.permute.xlu0 %4890  ;;  %v3196_v21 = vsel %vm1221_vm5, %v4882_v59, %v4887_v0 }
 0x29a   :  { %3634 = vmatmul.mubr.bf16.gmra.mxu0 %v3260_v31  ;;  %v4893_v16 = vunpack.i.h.bf16 %v4891_v44  ;;  %v4892_v36 = vunpack.i.l.bf16 %v4891_v44 }
 0x29b   :  { %v4906_v55 = vpop.permute.xlu1 %4905 }
 0x29c   :  { %v3223_v6 = vsel %vm1249_vm6, %v3196_v21, %v4892_v36  ;;  %v3224_v38 = vsel %vm1249_vm6, %v3197_v50, %v4893_v16  ;;  %v4908_v18 = vunpack.i.h.bf16 %v4906_v55  ;;  %v4907_v39 = vunpack.i.l.bf16 %v4906_v55 }
 0x29d   :  { %v4896_v58 = vpop.permute.xlu0 %4895  ;;  %v3262_v10 = vpack.c.bf16 %v3224_v38, %v3223_v6 }
 0x29e   :  { %v4898_v51 = vunpack.i.h.bf16 %v4896_v58  ;;  %v4897_v20 = vunpack.i.l.bf16 %v4896_v58 }
 0x29f   :  { %v4911_v26 = vpop.permute.xlu1 %4910  ;;  %3778 = vmatmul.mubr.bf16.gmra.mxu1 %v3262_v10 }
 0x2a0   :  { %v4913_v43 = vunpack.i.h.bf16 %v4911_v26  ;;  %v4912_v27 = vunpack.i.l.bf16 %v4911_v26  ;;  %v3117_v62 = vsel %vm1137_vm2, %v4897_v20, %v4902_v30  ;;  %v3118_v59 = vsel %vm1137_vm2, %v4898_v51, %v4903_v5  ;;  %4010 = vmatprep.mubr.msk.bf16.mxu1 %vm78_vm0, %v7597_v35 }
 0x2a1   :  { %v4916_v53 = vpop.permute.xlu0 %4915  ;;  %v3144_v29 = vsel %vm1165_vm3, %v3117_v62, %v4907_v39  ;;  %v3145_v31 = vsel %vm1165_vm3, %v3118_v59, %v4908_v18 }
 0x2a2   :  { %v3064_v37 = vsel %vm78_vm0, %v6761_v47, %v4913_v43  ;;  %v3063_v61 = vsel %vm78_vm0, %v5208_v54, %v4912_v27  ;;  %v4918_v13 = vunpack.i.h.bf16 %v4916_v53  ;;  %v4917_v19 = vunpack.i.l.bf16 %v4916_v53 }
 0x2a3   :  { %v4921_v46 = vpop.permute.xlu1 %4920  ;;  %v3090_v57 = vsel %vm1109_vm1, %v3063_v61, %v4897_v20  ;;  %v3091_v23 = vsel %vm1109_vm1, %v3064_v37, %v4898_v51  ;;  %v7598_v37 = vpack.c.bf16 %v6670_v33, %v6676_v63 }
 0x2a4   :  { %v4923_v17 = vunpack.i.h.bf16 %v4921_v46  ;;  %v4922_v0 = vunpack.i.l.bf16 %v4921_v46  ;;  %v3171_v44 = vsel %vm1193_vm4, %v3144_v29, %v4917_v19  ;;  %v3172_v47 = vsel %vm1193_vm4, %v3145_v31, %v4918_v13 }
 0x2a5   :  { %v4936_v16 = vpop.permute.xlu0 %4935  ;;  %v3265_v36 = vpack.c.bf16 %v3172_v47, %v3171_v44  ;;  %v3264_v21 = vpack.c.bf16 %v3091_v23, %v3090_v57 }
 0x2a6   :  { %v3199_v38 = vsel %vm1221_vm5, %v4918_v13, %v4923_v17  ;;  %v3198_v58 = vsel %vm1221_vm5, %v4917_v19, %v4922_v0  ;;  %v4938_v26 = vunpack.i.h.bf16 %v4936_v16  ;;  %v4937_v43 = vunpack.i.l.bf16 %v4936_v16 }
 0x2a7   :  { %v4926_v55 = vpop.permute.xlu1 %4925  ;;  %3641 = vmatprep.mubr.bf16.mxu0 %v3265_v36 }
 0x2a8   :  { %v4928_v50 = vunpack.i.h.bf16 %v4926_v55  ;;  %v4927_v6 = vunpack.i.l.bf16 %v4926_v55  ;;  %3642 = vmatmul.mubr.bf16.gmra.mxu0 %v3264_v21 }
 0x2a9   :  { %v4941_v10 = vpop.permute.xlu0 %4940 }
 0x2aa   :  { %v3225_v5 = vsel %vm1249_vm6, %v3198_v58, %v4927_v6  ;;  %v3226_v30 = vsel %vm1249_vm6, %v3199_v38, %v4928_v50  ;;  %v4943_v59 = vunpack.i.h.bf16 %v4941_v10  ;;  %v4942_v35 = vunpack.i.l.bf16 %v4941_v10 }
 0x2ab   :  { %v4931_v51 = vpop.permute.xlu1 %4930  ;;  %v3266_v20 = vpack.c.bf16 %v3226_v30, %v3225_v5 }
 0x2ac   :  { %v4933_v27 = vunpack.i.h.bf16 %v4931_v51  ;;  %v4932_v62 = vunpack.i.l.bf16 %v4931_v51 }
 0x2ad   :  { %3786 = vmatmul.mubr.bf16.gmra.mxu1 %v3266_v20  ;;  %v4946_v54 = vpop.permute.xlu0 %4945 }
 0x2ae   :  { %v3120_v18 = vsel %vm1137_vm2, %v4933_v27, %v4938_v26  ;;  %v3119_v39 = vsel %vm1137_vm2, %v4932_v62, %v4937_v43  ;;  %4011 = vmatprep.mubr.msk.bf16.mxu1 %vm78_vm0, %v7598_v37  ;;  %v4948_v61 = vunpack.i.h.bf16 %v4946_v54  ;;  %v4947_v53 = vunpack.i.l.bf16 %v4946_v54 }
 0x2af   :  { %v4951_v13 = vpop.permute.xlu1 %4950  ;;  %v3146_v57 = vsel %vm1165_vm3, %v3119_v39, %v4942_v35  ;;  %v3147_v23 = vsel %vm1165_vm3, %v3120_v18, %v4943_v59  ;;  %v7599_v37 = vpack.c.bf16 %v6693_v14, %v6701_v8 }
 0x2b0   :  { %v4953_v19 = vunpack.i.h.bf16 %v4951_v13  ;;  %v4952_v46 = vunpack.i.l.bf16 %v4951_v13  ;;  %v3066_v29 = vsel %vm78_vm0, %v6780_v9, %v4948_v61  ;;  %v3065_v31 = vsel %vm78_vm0, %v6756_v4, %v4947_v53  ;;  %v5209_v13 = vld [vmem:[#allocation3 + $0x81] sm:$0xff] }
 0x2b1   :  { %v4956_v17 = vpop.permute.xlu0 %4955  ;;  %v3092_v0 = vsel %vm1109_vm1, %v3065_v31, %v4932_v62  ;;  %v3093_v44 = vsel %vm1109_vm1, %v3066_v29, %v4933_v27 }
 0x2b2   :  { %v3173_v33 = vsel %vm1193_vm4, %v3146_v57, %v4952_v46  ;;  %v3174_v63 = vsel %vm1193_vm4, %v3147_v23, %v4953_v19  ;;  %v3268_v36 = vpack.c.bf16 %v3093_v44, %v3092_v0  ;;  %v4958_v9 = vunpack.i.h.bf16 %v4956_v17 }
 0x2b3   :  { %v4971_v47 = vpop.permute.xlu1 %4970  ;;  %v3269_v16 = vpack.c.bf16 %v3174_v63, %v3173_v33  ;;  %v4957_v55 = vunpack.i.l.bf16 %v4956_v17 }
 0x2b4   :  { %v3201_v58 = vsel %vm1221_vm5, %v4953_v19, %v4958_v9  ;;  %v4973_v20 = vunpack.i.h.bf16 %v4971_v47  ;;  %v4972_v26 = vunpack.i.l.bf16 %v4971_v47 }
 0x2b5   :  { %3649 = vmatprep.mubr.bf16.mxu0 %v3269_v16  ;;  %v4961_v4 = vpop.permute.xlu0 %4960  ;;  %v3200_v38 = vsel %vm1221_vm5, %v4952_v46, %v4957_v55 }
 0x2b6   :  { %3650 = vmatmul.mubr.bf16.gmra.mxu0 %v3268_v36  ;;  %v4963_v21 = vunpack.i.h.bf16 %v4961_v4  ;;  %v4962_v50 = vunpack.i.l.bf16 %v4961_v4 }
 0x2b7   :  { %v4976_v6 = vpop.permute.xlu1 %4975 }
 0x2b8   :  { %v3227_v10 = vsel %vm1249_vm6, %v3200_v38, %v4962_v50  ;;  %v3228_v5 = vsel %vm1249_vm6, %v3201_v58, %v4963_v21  ;;  %v4978_v54 = vunpack.i.h.bf16 %v4976_v6  ;;  %v4977_v61 = vunpack.i.l.bf16 %v4976_v6 }
 0x2b9   :  { %v4966_v30 = vpop.permute.xlu0 %4965  ;;  %v3270_v51 = vpack.c.bf16 %v3228_v5, %v3227_v10 }
 0x2ba   :  { %v4968_v43 = vunpack.i.h.bf16 %v4966_v30  ;;  %v4967_v27 = vunpack.i.l.bf16 %v4966_v30 }
 0x2bb   :  { %v4981_v62 = vpop.permute.xlu1 %4980  ;;  %3794 = vmatmul.mubr.bf16.gmra.mxu1 %v3270_v51 }
 0x2bc   :  { %v4983_v59 = vunpack.i.h.bf16 %v4981_v62  ;;  %v4982_v35 = vunpack.i.l.bf16 %v4981_v62  ;;  %v3121_v18 = vsel %vm1137_vm2, %v4967_v27, %v4972_v26  ;;  %v3122_v39 = vsel %vm1137_vm2, %v4968_v43, %v4973_v20  ;;  %4012 = vmatprep.mubr.msk.bf16.mxu1 %vm78_vm0, %v7599_v37 }
 0x2bd   :  { %v4986_v46 = vpop.permute.xlu0 %4985  ;;  %v3148_v23 = vsel %vm1165_vm3, %v3121_v18, %v4977_v61  ;;  %v3149_v17 = vsel %vm1165_vm3, %v3122_v39, %v4978_v54 }
 0x2be   :  { %v3068_v53 = vsel %vm78_vm0, %v6793_v41, %v4983_v59  ;;  %v3067_v19 = vsel %vm78_vm0, %v5209_v13, %v4982_v35  ;;  %v4988_v29 = vunpack.i.h.bf16 %v4986_v46  ;;  %v4987_v31 = vunpack.i.l.bf16 %v4986_v46  ;;  %v5210_v13 = vld [vmem:[#allocation3 + $0x91] sm:$0xff] }
 0x2bf   :  { %v4991_v57 = vpop.permute.xlu1 %4990  ;;  %v3094_v14 = vsel %vm1109_vm1, %v3067_v19, %v4967_v27  ;;  %v3095_v8 = vsel %vm1109_vm1, %v3068_v53, %v4968_v43  ;;  %v7600_v59 = vpack.c.bf16 %v6715_v7, %v6725_v11 }
 0x2c0   :  { %v4993_v33 = vunpack.i.h.bf16 %v4991_v57  ;;  %v4992_v63 = vunpack.i.l.bf16 %v4991_v57  ;;  %v3175_v0 = vsel %vm1193_vm4, %v3148_v23, %v4987_v31  ;;  %v3176_v41 = vsel %vm1193_vm4, %v3149_v17, %v4988_v29 }
 0x2c1   :  { %v5006_v44 = vpop.permute.xlu0 %5005  ;;  %v3273_v47 = vpack.c.bf16 %v3176_v41, %v3175_v0  ;;  %v3272_v36 = vpack.c.bf16 %v3095_v8, %v3094_v14 }
 0x2c2   :  { %v3203_v4 = vsel %vm1221_vm5, %v4988_v29, %v4993_v33  ;;  %v3202_v21 = vsel %vm1221_vm5, %v4987_v31, %v4992_v63  ;;  %v5008_v5 = vunpack.i.h.bf16 %v5006_v44  ;;  %v5007_v30 = vunpack.i.l.bf16 %v5006_v44 }
 0x2c3   :  { %v4996_v16 = vpop.permute.xlu1 %4995  ;;  %3657 = vmatprep.mubr.bf16.mxu0 %v3273_v47 }
 0x2c4   :  { %v4998_v9 = vunpack.i.h.bf16 %v4996_v16  ;;  %v4997_v55 = vunpack.i.l.bf16 %v4996_v16  ;;  %3658 = vmatmul.mubr.bf16.gmra.mxu0 %v3272_v36 }
 0x2c5   :  { %v5011_v50 = vpop.permute.xlu0 %5010 }
 0x2c6   :  { %v3229_v6 = vsel %vm1249_vm6, %v3202_v21, %v4997_v55  ;;  %v3230_v38 = vsel %vm1249_vm6, %v3203_v4, %v4998_v9  ;;  %v5013_v26 = vunpack.i.h.bf16 %v5011_v50  ;;  %v5012_v43 = vunpack.i.l.bf16 %v5011_v50 }
 0x2c7   :  { %v5001_v58 = vpop.permute.xlu1 %5000  ;;  %v3274_v10 = vpack.c.bf16 %v3230_v38, %v3229_v6 }
 0x2c8   :  { %v5003_v51 = vunpack.i.h.bf16 %v5001_v58  ;;  %v5002_v20 = vunpack.i.l.bf16 %v5001_v58 }
 0x2c9   :  { %3802 = vmatmul.mubr.bf16.gmra.mxu1 %v3274_v10  ;;  %v5016_v35 = vpop.permute.xlu0 %5015 }
 0x2ca   :  { %v3124_v27 = vsel %vm1137_vm2, %v5003_v51, %v5008_v5  ;;  %v3123_v62 = vsel %vm1137_vm2, %v5002_v20, %v5007_v30  ;;  %4013 = vmatprep.mubr.msk.bf16.mxu1 %vm78_vm0, %v7600_v59  ;;  %v5018_v18 = vunpack.i.h.bf16 %v5016_v35  ;;  %v5017_v39 = vunpack.i.l.bf16 %v5016_v35 }
 0x2cb   :  { %v5021_v37 = vpop.permute.xlu1 %5020  ;;  %v3150_v46 = vsel %vm1165_vm3, %v3123_v62, %v5012_v43  ;;  %v3151_v29 = vsel %vm1165_vm3, %v3124_v27, %v5013_v26  ;;  %v5211_v62 = vld [vmem:[#allocation3 + $0xa1] sm:$0xff] }
 0x2cc   :  { %v5023_v54 = vunpack.i.h.bf16 %v5021_v37  ;;  %v5022_v61 = vunpack.i.l.bf16 %v5021_v37  ;;  %v3070_v53 = vsel %vm78_vm0, %v6820_v12, %v5018_v18  ;;  %v3069_v19 = vsel %vm78_vm0, %v5210_v13, %v5017_v39 }
 0x2cd   :  { %v5026_v31 = vpop.permute.xlu0 %5025  ;;  %v3096_v57 = vsel %vm1109_vm1, %v3069_v19, %v5002_v20  ;;  %v3097_v23 = vsel %vm1109_vm1, %v3070_v53, %v5003_v51  ;;  %v7601_v20 = vpack.c.bf16 %v6741_v34, %v6746_v60 }
 0x2ce   :  { %v3177_v7 = vsel %vm1193_vm4, %v3150_v46, %v5022_v61  ;;  %v3178_v11 = vsel %vm1193_vm4, %v3151_v29, %v5023_v54  ;;  %v3276_v8 = vpack.c.bf16 %v3097_v23, %v3096_v57  ;;  %v5028_v12 = vunpack.i.h.bf16 %v5026_v31 }
 0x2cf   :  { %v5041_v17 = vpop.permute.xlu1 %5040  ;;  %v3277_v14 = vpack.c.bf16 %v3178_v11, %v3177_v7  ;;  %v5027_v33 = vunpack.i.l.bf16 %v5026_v31 }
 0x2d0   :  { %v3205_v16 = vsel %vm1221_vm5, %v5023_v54, %v5028_v12  ;;  %v5043_v21 = vunpack.i.h.bf16 %v5041_v17  ;;  %v5042_v50 = vunpack.i.l.bf16 %v5041_v17 }
 0x2d1   :  { %3665 = vmatprep.mubr.bf16.mxu0 %v3277_v14  ;;  %v5031_v63 = vpop.permute.xlu0 %5030  ;;  %v3204_v47 = vsel %vm1221_vm5, %v5022_v61, %v5027_v33 }
 0x2d2   :  { %3666 = vmatmul.mubr.bf16.gmra.mxu0 %v3276_v8  ;;  %v5033_v0 = vunpack.i.h.bf16 %v5031_v63  ;;  %v5032_v41 = vunpack.i.l.bf16 %v5031_v63 }
 0x2d3   :  { %v5046_v44 = vpop.permute.xlu1 %5045 }
 0x2d4   :  { %v3231_v36 = vsel %vm1249_vm6, %v3204_v47, %v5032_v41  ;;  %v3232_v9 = vsel %vm1249_vm6, %v3205_v16, %v5033_v0  ;;  %v5048_v26 = vunpack.i.h.bf16 %v5046_v44  ;;  %v5047_v43 = vunpack.i.l.bf16 %v5046_v44 }
 0x2d5   :  { %v5036_v55 = vpop.permute.xlu0 %5035  ;;  %v3278_v4 = vpack.c.bf16 %v3232_v9, %v3231_v36 }
 0x2d6   :  { %v5038_v6 = vunpack.i.h.bf16 %v5036_v55  ;;  %v5037_v38 = vunpack.i.l.bf16 %v5036_v55 }
 0x2d7   :  { %v5051_v58 = vpop.permute.xlu1 %5050  ;;  %3810 = vmatmul.mubr.bf16.gmra.mxu1 %v3278_v4  ;;  %v7602_v4 = vpack.c.bf16 %v6765_v3, %v6763_v42 }
 0x2d8   :  { %v5053_v10 = vunpack.i.h.bf16 %v5051_v58  ;;  %v5052_v5 = vunpack.i.l.bf16 %v5051_v58  ;;  %v3125_v30 = vsel %vm1137_vm2, %v5037_v38, %v5042_v50  ;;  %v3126_v51 = vsel %vm1137_vm2, %v5038_v6, %v5043_v21  ;;  %4014 = vmatprep.mubr.msk.bf16.mxu1 %vm78_vm0, %v7601_v20 }
 0x2d9   :  { %v5056_v35 = vpop.permute.xlu0 %5055  ;;  %v3152_v54 = vsel %vm1165_vm3, %v3125_v30, %v5047_v43  ;;  %v3153_v61 = vsel %vm1165_vm3, %v3126_v51, %v5048_v26 }
 0x2da   :  { %v3072_v27 = vsel %vm78_vm0, %v6858_v52, %v5053_v10  ;;  %v3071_v59 = vsel %vm78_vm0, %v5211_v62, %v5052_v5  ;;  %v5058_v18 = vunpack.i.h.bf16 %v5056_v35  ;;  %v5057_v39 = vunpack.i.l.bf16 %v5056_v35 }
 0x2db   :  { %v5061_v37 = vpop.permute.xlu1 %5060  ;;  %v3098_v34 = vsel %vm1109_vm1, %v3071_v59, %v5037_v38  ;;  %v3099_v60 = vsel %vm1109_vm1, %v3072_v27, %v5038_v6 }
 0x2dc   :  { %v5063_v53 = vunpack.i.h.bf16 %v5061_v37  ;;  %v5062_v13 = vunpack.i.l.bf16 %v5061_v37  ;;  %v3179_v19 = vsel %vm1193_vm4, %v3152_v54, %v5057_v39  ;;  %v3180_v52 = vsel %vm1193_vm4, %v3153_v61, %v5058_v18 }
 0x2dd   :  { %v5076_v46 = vpop.permute.xlu0 %5075  ;;  %v3281_v29 = vpack.c.bf16 %v3180_v52, %v3179_v19  ;;  %v3280_v7 = vpack.c.bf16 %v3099_v60, %v3098_v34 }
 0x2de   :  { %v3207_v23 = vsel %vm1221_vm5, %v5058_v18, %v5063_v53  ;;  %v3206_v17 = vsel %vm1221_vm5, %v5057_v39, %v5062_v13  ;;  %v5078_v0 = vunpack.i.h.bf16 %v5076_v46  ;;  %v5077_v41 = vunpack.i.l.bf16 %v5076_v46 }
 0x2df   :  { %v5066_v31 = vpop.permute.xlu1 %5065  ;;  %3673 = vmatprep.mubr.bf16.mxu0 %v3281_v29  ;;  %v3291_v13 = vpack.c.bf16 %v6945_v40, %v6898_v24 }
 0x2e0   :  { %v5068_v11 = vunpack.i.h.bf16 %v5066_v31  ;;  %v5067_v57 = vunpack.i.l.bf16 %v5066_v31  ;;  %3674 = vmatmul.mubr.bf16.gmra.mxu0 %v3280_v7 }
 0x2e1   :  { %v5081_v14 = vpop.permute.xlu0 %5080 }
 0x2e2   :  { %v3233_v8 = vsel %vm1249_vm6, %v3206_v17, %v5067_v57  ;;  %v3234_v12 = vsel %vm1249_vm6, %v3207_v23, %v5068_v11  ;;  %v5083_v16 = vunpack.i.h.bf16 %v5081_v14  ;;  %v5082_v36 = vunpack.i.l.bf16 %v5081_v14 }
 0x2e3   :  { %v5071_v33 = vpop.permute.xlu1 %5070  ;;  %v3282_v63 = vpack.c.bf16 %v3234_v12, %v3233_v8 }
 0x2e4   :  { %v5073_v44 = vunpack.i.h.bf16 %v5071_v33  ;;  %v5072_v47 = vunpack.i.l.bf16 %v5071_v33 }
 0x2e5   :  { %3818 = vmatmul.mubr.bf16.gmra.mxu1 %v3282_v63  ;;  %v5086_v21 = vpop.permute.xlu0 %5085 }
 0x2e6   :  { %v3128_v9 = vsel %vm1137_vm2, %v5073_v44, %v5078_v0  ;;  %v3127_v55 = vsel %vm1137_vm2, %v5072_v47, %v5077_v41  ;;  %4015 = vmatprep.mubr.msk.bf16.mxu1 %vm78_vm0, %v7602_v4  ;;  %v5088_v50 = vunpack.i.h.bf16 %v5086_v21  ;;  %v5087_v6 = vunpack.i.l.bf16 %v5086_v21 }
 0x2e7   :  { %v5091_v38 = vpop.permute.xlu1 %5090  ;;  %v3154_v51 = vsel %vm1165_vm3, %v3127_v55, %v5082_v36  ;;  %v3155_v20 = vsel %vm1165_vm3, %v3128_v9, %v5083_v16 }
 0x2e8   :  { %v5093_v58 = vunpack.i.h.bf16 %v5091_v38  ;;  %v5092_v10 = vunpack.i.l.bf16 %v5091_v38  ;;  %v3074_v5 = vsel %vm78_vm0, %v6891_v25, %v5088_v50  ;;  %v3073_v30 = vsel %vm78_vm0, %v6852_v15, %v5087_v6 }
 0x2e9   :  { %v5096_v26 = vpop.permute.xlu0 %5095  ;;  %v3100_v43 = vsel %vm1109_vm1, %v3073_v30, %v5072_v47  ;;  %v3101_v27 = vsel %vm1109_vm1, %v3074_v5, %v5073_v44 }
 0x2ea   :  { %v3181_v42 = vsel %vm1193_vm4, %v3154_v51, %v5092_v10  ;;  %v3182_v3 = vsel %vm1193_vm4, %v3155_v20, %v5093_v58  ;;  %v3284_v35 = vpack.c.bf16 %v3101_v27, %v3100_v43  ;;  %v5098_v25 = vunpack.i.h.bf16 %v5096_v26  ;;  %v2294_v20 = vld [vmem:[#allocation3 + $0xdf] sm:$0xff] }
 0x2eb   :  { %v5111_v62 = vpop.permute.xlu1 %5110  ;;  %v3285_v59 = vpack.c.bf16 %v3182_v3, %v3181_v42  ;;  %v5097_v18 = vunpack.i.l.bf16 %v5096_v26 }
 0x2ec   :  { %v3209_v34 = vsel %vm1221_vm5, %v5093_v58, %v5098_v25  ;;  %v5113_v46 = vunpack.i.h.bf16 %v5111_v62  ;;  %v5112_v29 = vunpack.i.l.bf16 %v5111_v62 }
 0x2ed   :  { %3681 = vmatprep.mubr.bf16.mxu0 %v3285_v59  ;;  %v5101_v15 = vpop.permute.xlu0 %5100  ;;  %v3208_v61 = vsel %vm1221_vm5, %v5092_v10, %v5097_v18 }
 0x2ee   :  { %3682 = vmatmul.mubr.bf16.gmra.mxu0 %v3284_v35  ;;  %v5103_v39 = vunpack.i.h.bf16 %v5101_v15  ;;  %v5102_v37 = vunpack.i.l.bf16 %v5101_v15  ;;  %v3295_v15 = vpack.c.bf16 %v2294_v20, %v2294_v20 }
 0x2ef   :  { %v5116_v54 = vpop.permute.xlu1 %5115 }
 0x2f0   :  { %v3235_v60 = vsel %vm1249_vm6, %v3208_v61, %v5102_v37  ;;  %v3236_v53 = vsel %vm1249_vm6, %v3209_v34, %v5103_v39  ;;  %v5118_v8 = vunpack.i.h.bf16 %v5116_v54  ;;  %v5117_v12 = vunpack.i.l.bf16 %v5116_v54 }
 0x2f1   :  { %v5106_v19 = vpop.permute.xlu0 %5105  ;;  %v3286_v52 = vpack.c.bf16 %v3236_v53, %v3235_v60 }
 0x2f2   :  { %v5108_v31 = vunpack.i.h.bf16 %v5106_v19  ;;  %v5107_v7 = vunpack.i.l.bf16 %v5106_v19  ;;  %v7132_v19 = vld [vmem:[%s7382_s5] ss:$0 sm:$0xff] }
 0x2f3   :  { %v5121_v11 = vpop.permute.xlu1 %5120  ;;  %3826 = vmatmul.mubr.bf16.gmra.mxu1 %v3286_v52 }
 0x2f4   :  { %v5123_v57 = vunpack.i.h.bf16 %v5121_v11  ;;  %v5122_v23 = vunpack.i.l.bf16 %v5121_v11  ;;  %v3129_v17 = vsel %vm1137_vm2, %v5107_v7, %v5112_v29  ;;  %v3130_v14 = vsel %vm1137_vm2, %v5108_v31, %v5113_v46  ;;  %4016 = vmatprep.mubr.msk.bf16.mxu1 %vm78_vm0, %v3291_v13 }
 0x2f5   :  { %v5126_v33 = vpop.permute.xlu0 %5125  ;;  %v3156_v44 = vsel %vm1165_vm3, %v3129_v17, %v5117_v12  ;;  %v3157_v47 = vsel %vm1165_vm3, %v3130_v14, %v5118_v8  ;;  %v5212_v12 = vld [vmem:[%s7377_s0] sm:$0xff] }
 0x2f6   :  { %v3076_v24 = vsel %vm78_vm0, %v6928_v1, %v5123_v57  ;;  %v3075_v40 = vsel %vm78_vm0, %v6886_v32, %v5122_v23  ;;  %v5128_v63 = vunpack.i.h.bf16 %v5126_v33  ;;  %v5127_v0 = vunpack.i.l.bf16 %v5126_v33 }
 0x2f7   :  { %v2483_v41 = vpop.permute.xlu1 %2482  ;;  %v3102_v16 = vsel %vm1109_vm1, %v3075_v40, %v5107_v7  ;;  %v3103_v36 = vsel %vm1109_vm1, %v3076_v24, %v5108_v31 }
 0x2f8   :  { %v3183_v9 = vsel %vm1193_vm4, %v3156_v44, %v5127_v0  ;;  %v3184_v55 = vsel %vm1193_vm4, %v3157_v47, %v5128_v63  ;;  %v3288_v32 = vpack.c.bf16 %v3103_v36, %v3102_v16 }
 0x2f9   :  { %v2591_v1 = vpop.permute.xlu0 %2590  ;;  %v3289_v4 = vpack.c.bf16 %v3184_v55, %v3183_v9 }
 0x2fa   :  { %v3131_v26 = vsel %vm1137_vm2, %v2483_v41, %v2591_v1 }
 0x2fb   :  { %v5131_v21 = vpop.permute.xlu1 %5130  ;;  %3689 = vmatprep.mubr.bf16.mxu0 %v3289_v4 }
 0x2fc   :  { %v5133_v50 = vunpack.i.h.bf16 %v5131_v21  ;;  %v5132_v6 = vunpack.i.l.bf16 %v5131_v21  ;;  %3690 = vmatmul.mubr.bf16.gmra.mxu0 %v3288_v32 }
 0x2fd   :  { %v2699_v38 = vpop.permute.xlu0 %2698 }
 0x2fe   :  { %v3211_v30 = vsel %vm1221_vm5, %v5128_v63, %v5133_v50  ;;  %v3210_v51 = vsel %vm1221_vm5, %v5127_v0, %v5132_v6  ;;  %v3158_v27 = vsel %vm1165_vm3, %v3131_v26, %v2699_v38  ;;  %v5214_v6 = vld [vmem:[%s7377_s0 + $0x10] sm:$0xff] }
 0x2ff   :  { %v5136_v58 = vpop.permute.xlu1 %5135 }
 0x300   :  { %v5138_v10 = vunpack.i.h.bf16 %v5136_v58  ;;  %v5137_v5 = vunpack.i.l.bf16 %v5136_v58 }
 0x301   :  { %v2375_v42 = vpop.permute.xlu0 %2374 }
 0x302   :  { %v3237_v3 = vsel %vm1249_vm6, %v3210_v51, %v5137_v5  ;;  %v3238_v43 = vsel %vm1249_vm6, %v3211_v30, %v5138_v10  ;;  %v3077_v62 = vsel %vm78_vm0, %v6922_v28, %v2375_v42 }
 0x303   :  { %v2807_v59 = vpop.permute.xlu1 %2806  ;;  %v3290_v35 = vpack.c.bf16 %v3238_v43, %v3237_v3  ;;  %v3104_v25 = vsel %vm1109_vm1, %v3077_v62, %v2483_v41 }
 0x304   :  { %v3185_v18 = vsel %vm1193_vm4, %v3158_v27, %v2807_v59  ;;  %v3292_v37 = vpack.c.bf16 %v3104_v25, %v3104_v25 }
 0x305   :  { %v3293_v39 = vpack.c.bf16 %v3185_v18, %v3185_v18  ;;  %3834 = vmatmul.mubr.bf16.gmra.mxu1 %v3290_v35  ;;  %v2915_v54 = vpop.permute.xlu0 %2914 }
 0x306   :  { %4017 = vmatprep.mubr.msk.bf16.mxu1 %vm78_vm0, %v3295_v15  ;;  %v3212_v61 = vsel %vm1221_vm5, %v2807_v59, %v2915_v54 }
 0x307   :  { %v3023_v34 = vpop.permute.xlu1 %3022  ;;  %3697 = vmatprep.mubr.bf16.mxu0 %v3293_v39  ;;  %v5216_v39 = vld [vmem:[%s7377_s0 + $0x20] sm:$0xff] }
 0x308   :  { %v3239_v60 = vsel %vm1249_vm6, %v3212_v61, %v3023_v34  ;;  %3698 = vmatmul.mubr.bf16.gmra.mxu0 %v3292_v37 }
 0x309   :  { %v3294_v28 = vpack.c.bf16 %v3239_v60, %v3239_v60 }
 0x30d   :  { %3842 = vmatmul.mubr.bf16.gmra.mxu1 %v3294_v28 }
 0x315   :  { %v4134_v53 = vpop.f32.mrf.mxu0 }
 0x317   :  { %v4135_v13 = vpop.f32.mrf.mxu0 }
 0x318   :  { %v4136_v52 = vadd.f32 %v4135_v13, %v4134_v53 }
 0x319   :  { %v4137_v46 = vpop.f32.mrf.mxu0 }
 0x31a   :  { %v3596_v29 = vadd.f32 %v4136_v52, %v7132_v19 }
 0x31b   :  { %v4138_v31 = vpop.f32.mrf.mxu0  ;;  %v3739_v7 = vpop.f32.mrf.mxu1 }
 0x31c   :  { %v4139_v11 = vadd.f32 %v4138_v31, %v4137_v46  ;;  %v3740_v57 = vadd.f32 %v3739_v7, %v3596_v29 }
 0x31d   :  { %v3741_v23 = vpop.f32.mrf.mxu1 }
 0x31e   :  { %v3849_v17 = vmul.f32 %v3740_v57, %v6441_v48  ;;  %v3599_v14 = vadd.f32 %v4139_v11, %v7132_v19  ;;  %v5213_v48 = vld [vmem:[%s7377_s0 + $0x8] sm:$0xff]  ;;  %v7603_v11 = vld [vmem:[#allocation24_spill] sm:$0xff] }
 0x31f   :  { %v3742_v8 = vpop.f32.mrf.mxu1 }
 0x320   :  { %v3876_v24 = vadd.f32 %v5212_v12, %v3849_v17  ;;  %v3743_v40 = vadd.f32 %v3742_v8, %v3599_v14  ;;  %v5218_v14 = vld [vmem:[%s7377_s0 + $0x30] sm:$0xff] }
 0x321   :  { %v3744_v33 = vpop.f32.mrf.mxu1 }
 0x322   :  { %3903 = vst.msk [vmem:[%s7383_s6] sm:$0xff] %vm78_vm0, %v3876_v24  ;;  %v3850_v63 = vmul.f32 %v3743_v40, %v6444_v2  ;;  %v4140_v0 = vpop.f32.mrf.mxu0  ;;  %v7604_v40 = vld [vmem:[#allocation7_spill] sm:$0xff] }
 0x324   :  { %v3877_v41 = vadd.f32 %v5213_v48, %v3850_v63  ;;  %v4141_v44 = vpop.f32.mrf.mxu0  ;;  %v5219_v63 = vld [vmem:[%s7377_s0 + $0x38] sm:$0xff] }
 0x325   :  { %v4142_v47 = vadd.f32 %v4141_v44, %v4140_v0 }
 0x326   :  { %3904 = vst.msk [vmem:[%s7383_s6 + $0x8] sm:$0xff] %vm78_vm0, %v3877_v41  ;;  %v4143_v16 = vpop.f32.mrf.mxu0 }
 0x327   :  { %v3604_v36 = vadd.f32 %v4142_v47, %v7132_v19  ;;  %v3747_v9 = vpop.f32.mrf.mxu1 }
 0x328   :  { %v4144_v55 = vpop.f32.mrf.mxu0 }
 0x329   :  { %v3748_v1 = vadd.f32 %v3747_v9, %v3604_v36  ;;  %v4145_v2 = vadd.f32 %v4144_v55, %v4143_v16  ;;  %v3749_v4 = vpop.f32.mrf.mxu1 }
 0x32b   :  { %v3851_v21 = vmul.f32 %v3748_v1, %v6467_v22  ;;  %v3607_v32 = vadd.f32 %v4145_v2, %v7132_v19  ;;  %v3750_v50 = vpop.f32.mrf.mxu1  ;;  %v5215_v22 = vld [vmem:[%s7377_s0 + $0x18] sm:$0xff] }
 0x32d   :  { %v3878_v38 = vadd.f32 %v5214_v6, %v3851_v21  ;;  %v3751_v58 = vadd.f32 %v3750_v50, %v3607_v32  ;;  %v3752_v10 = vpop.f32.mrf.mxu1  ;;  %v7605_v21 = vld [vmem:[#allocation4_spill] sm:$0xff] }
 0x32f   :  { %3905 = vst.msk [vmem:[%s7383_s6 + $0x10] sm:$0xff] %vm78_vm0, %v3878_v38  ;;  %v3852_v5 = vmul.f32 %v3751_v58, %v6476_v49  ;;  %v5220_v38 = vld [vmem:[%s7377_s0 + $0x40] sm:$0xff] }
 0x330   :  { %v4146_v30 = vpop.f32.mrf.mxu0 }
 0x331   :  { %v3879_v51 = vadd.f32 %v5215_v22, %v3852_v5  ;;  %v7606_v5 = vld [vmem:[#allocation27_spill] sm:$0xff] }
 0x332   :  { %v4147_v20 = vpop.f32.mrf.mxu0 }
 0x333   :  { %3906 = vst.msk [vmem:[%s7383_s6 + $0x18] sm:$0xff] %vm78_vm0, %v3879_v51  ;;  %v4148_v26 = vadd.f32 %v4147_v20, %v4146_v30  ;;  %v5221_v51 = vld [vmem:[%s7377_s0 + $0x48] sm:$0xff] }
 0x334   :  { %v4149_v3 = vpop.f32.mrf.mxu0 }
 0x335   :  { %v3755_v42 = vpop.f32.mrf.mxu1  ;;  %v3612_v43 = vadd.f32 %v4148_v26, %v7132_v19 }
 0x336   :  { %v4150_v62 = vpop.f32.mrf.mxu0 }
 0x337   :  { %v3757_v27 = vpop.f32.mrf.mxu1  ;;  %v3756_v49 = vadd.f32 %v3755_v42, %v3612_v43  ;;  %v4151_v59 = vadd.f32 %v4150_v62, %v4149_v3 }
 0x339   :  { %v3758_v35 = vpop.f32.mrf.mxu1  ;;  %v3853_v25 = vmul.f32 %v3756_v49, %v6491_v56  ;;  %v3615_v18 = vadd.f32 %v4151_v59, %v7132_v19  ;;  %v5217_v56 = vld [vmem:[%s7377_s0 + $0x28] sm:$0xff] }
 0x33b   :  { %v3760_v15 = vpop.f32.mrf.mxu1  ;;  %v3880_v37 = vadd.f32 %v5216_v39, %v3853_v25  ;;  %v3759_v54 = vadd.f32 %v3758_v35, %v3615_v18  ;;  %v7607_v25 = vld [vmem:[#allocation40_spill] sm:$0xff] }
 0x33d   :  { %3907 = vst.msk [vmem:[%s7383_s6 + $0x20] sm:$0xff] %vm78_vm0, %v3880_v37  ;;  %v3854_v61 = vmul.f32 %v3759_v54, %v6509_v45  ;;  %v5222_v37 = vld [vmem:[%s7377_s0 + $0x50] sm:$0xff] }
 0x33e   :  { %v4152_v34 = vpop.f32.mrf.mxu0 }
 0x33f   :  { %v3881_v60 = vadd.f32 %v5217_v56, %v3854_v61  ;;  %v7608_v56 = vld [vmem:[#allocation32_spill] sm:$0xff] }
 0x340   :  { %v4153_v28 = vpop.f32.mrf.mxu0 }
 0x341   :  { %v4154_v53 = vadd.f32 %v4153_v28, %v4152_v34  ;;  %3908 = vst.msk [vmem:[%s7383_s6 + $0x28] sm:$0xff] %vm78_vm0, %v3881_v60  ;;  %v5223_v28 = vld [vmem:[%s7377_s0 + $0x58] sm:$0xff] }
 0x342   :  { %v4155_v13 = vpop.f32.mrf.mxu0 }
 0x343   :  { %v3620_v52 = vadd.f32 %v4154_v53, %v7132_v19  ;;  %v3763_v29 = vpop.f32.mrf.mxu1 }
 0x344   :  { %v4156_v46 = vpop.f32.mrf.mxu0 }
 0x345   :  { %v4157_v31 = vadd.f32 %v4156_v46, %v4155_v13  ;;  %v3764_v45 = vadd.f32 %v3763_v29, %v3620_v52  ;;  %v3765_v7 = vpop.f32.mrf.mxu1 }
 0x347   :  { %v3855_v57 = vmul.f32 %v3764_v45, %v7603_v11  ;;  %v3623_v23 = vadd.f32 %v4157_v31, %v7132_v19  ;;  %v3766_v17 = vpop.f32.mrf.mxu1 }
 0x349   :  { %v3882_v8 = vadd.f32 %v5218_v14, %v3855_v57  ;;  %v3767_v12 = vadd.f32 %v3766_v17, %v3623_v23  ;;  %v3768_v24 = vpop.f32.mrf.mxu1  ;;  %v7609_v14 = vld [vmem:[#allocation47_spill] sm:$0xff] }
 0x34b   :  { %3909 = vst.msk [vmem:[%s7383_s6 + $0x30] sm:$0xff] %vm78_vm0, %v3882_v8  ;;  %v3856_v33 = vmul.f32 %v3767_v12, %v7604_v40  ;;  %v5224_v40 = vld [vmem:[%s7377_s0 + $0x60] sm:$0xff] }
 0x34c   :  { %v4158_v48 = vpop.f32.mrf.mxu0 }
 0x34d   :  { %v3883_v0 = vadd.f32 %v5219_v63, %v3856_v33 }
 0x34e   :  { %v4159_v41 = vpop.f32.mrf.mxu0 }
 0x34f   :  { %3910 = vst.msk [vmem:[%s7383_s6 + $0x38] sm:$0xff] %vm78_vm0, %v3883_v0  ;;  %v4160_v44 = vadd.f32 %v4159_v41, %v4158_v48  ;;  %v7610_v0 = vld [vmem:[#allocation28_spill] sm:$0xff] }
 0x350   :  { %v4161_v16 = vpop.f32.mrf.mxu0 }
 0x351   :  { %v3771_v47 = vpop.f32.mrf.mxu1  ;;  %v3628_v36 = vadd.f32 %v4160_v44, %v7132_v19  ;;  %v5225_v44 = vld [vmem:[%s7377_s0 + $0x68] sm:$0xff] }
 0x352   :  { %v4162_v55 = vpop.f32.mrf.mxu0 }
 0x353   :  { %v3773_v9 = vpop.f32.mrf.mxu1  ;;  %v3772_v1 = vadd.f32 %v3771_v47, %v3628_v36  ;;  %v4163_v2 = vadd.f32 %v4162_v55, %v4161_v16 }
 0x355   :  { %v3774_v4 = vpop.f32.mrf.mxu1  ;;  %v3857_v32 = vmul.f32 %v3772_v1, %v7605_v21  ;;  %v3631_v50 = vadd.f32 %v4163_v2, %v7132_v19 }
 0x357   :  { %v3776_v6 = vpop.f32.mrf.mxu1  ;;  %v3884_v58 = vadd.f32 %v5220_v38, %v3857_v32  ;;  %v3775_v10 = vadd.f32 %v3774_v4, %v3631_v50  ;;  %v7611_v50 = vld [vmem:[#allocation21_spill] sm:$0xff] }
 0x359   :  { %3911 = vst.msk [vmem:[%s7383_s6 + $0x40] sm:$0xff] %vm78_vm0, %v3884_v58  ;;  %v3858_v30 = vmul.f32 %v3775_v10, %v7606_v5  ;;  %v5226_v10 = vld [vmem:[%s7377_s0 + $0x70] sm:$0xff] }
 0x35a   :  { %v4164_v22 = vpop.f32.mrf.mxu0 }
 0x35b   :  { %v3885_v20 = vadd.f32 %v5221_v51, %v3858_v30  ;;  %v7612_v51 = vld [vmem:[#allocation29_spill] sm:$0xff] }
 0x35c   :  { %v4165_v26 = vpop.f32.mrf.mxu0 }
 0x35d   :  { %v4166_v42 = vadd.f32 %v4165_v26, %v4164_v22  ;;  %3912 = vst.msk [vmem:[%s7383_s6 + $0x48] sm:$0xff] %vm78_vm0, %v3885_v20  ;;  %v5227_v26 = vld [vmem:[%s7377_s0 + $0x78] sm:$0xff] }
 0x35e   :  { %v4167_v3 = vpop.f32.mrf.mxu0 }
 0x35f   :  { %v3636_v43 = vadd.f32 %v4166_v42, %v7132_v19  ;;  %v3779_v62 = vpop.f32.mrf.mxu1 }
 0x360   :  { %v4168_v27 = vpop.f32.mrf.mxu0 }
 0x361   :  { %v4169_v49 = vadd.f32 %v4168_v27, %v4167_v3  ;;  %v3780_v59 = vadd.f32 %v3779_v62, %v3636_v43  ;;  %v3781_v35 = vpop.f32.mrf.mxu1 }
 0x363   :  { %v3859_v18 = vmul.f32 %v3780_v59, %v7607_v25  ;;  %v3639_v15 = vadd.f32 %v4169_v49, %v7132_v19  ;;  %v3782_v39 = vpop.f32.mrf.mxu1 }
 0x365   :  { %v3886_v54 = vadd.f32 %v5222_v37, %v3859_v18  ;;  %v3783_v61 = vadd.f32 %v3782_v39, %v3639_v15  ;;  %v3784_v34 = vpop.f32.mrf.mxu1  ;;  %v7613_v37 = vld [vmem:[#allocation5_spill] sm:$0xff] }
 0x367   :  { %3913 = vst.msk [vmem:[%s7383_s6 + $0x50] sm:$0xff] %vm78_vm0, %v3886_v54  ;;  %v3860_v60 = vmul.f32 %v3783_v61, %v7608_v56  ;;  %v5228_v56 = vld [vmem:[%s7377_s0 + $0x80] sm:$0xff] }
 0x368   :  { %v4170_v13 = vpop.f32.mrf.mxu0 }
 0x369   :  { %v3887_v53 = vadd.f32 %v5223_v28, %v3860_v60 }
 0x36a   :  { %v4171_v52 = vpop.f32.mrf.mxu0 }
 0x36b   :  { %3914 = vst.msk [vmem:[%s7383_s6 + $0x58] sm:$0xff] %vm78_vm0, %v3887_v53  ;;  %v4172_v46 = vadd.f32 %v4171_v52, %v4170_v13  ;;  %v7614_v53 = vld [vmem:[#allocation8_spill] sm:$0xff] }
 0x36c   :  { %v4173_v31 = vpop.f32.mrf.mxu0 }
 0x36d   :  { %v3787_v29 = vpop.f32.mrf.mxu1  ;;  %v3644_v45 = vadd.f32 %v4172_v46, %v7132_v19  ;;  %v5229_v46 = vld [vmem:[%s7377_s0 + $0x88] sm:$0xff] }
 0x36e   :  { %v4174_v11 = vpop.f32.mrf.mxu0 }
 0x36f   :  { %v3789_v7 = vpop.f32.mrf.mxu1  ;;  %v3788_v57 = vadd.f32 %v3787_v29, %v3644_v45  ;;  %v4175_v23 = vadd.f32 %v4174_v11, %v4173_v31 }
 0x371   :  { %v3790_v17 = vpop.f32.mrf.mxu1  ;;  %v3861_v8 = vmul.f32 %v3788_v57, %v7609_v14  ;;  %v3647_v12 = vadd.f32 %v4175_v23, %v7132_v19 }
 0x373   :  { %v3792_v24 = vpop.f32.mrf.mxu1  ;;  %v3888_v33 = vadd.f32 %v5224_v40, %v3861_v8  ;;  %v3791_v63 = vadd.f32 %v3790_v17, %v3647_v12  ;;  %v7615_v12 = vld [vmem:[#allocation42_spill] sm:$0xff] }
 0x375   :  { %3915 = vst.msk [vmem:[%s7383_s6 + $0x60] sm:$0xff] %vm78_vm0, %v3888_v33  ;;  %v3862_v48 = vmul.f32 %v3791_v63, %v7610_v0  ;;  %v5230_v63 = vld [vmem:[%s7377_s0 + $0x90] sm:$0xff] }
 0x376   :  { %v4176_v41 = vpop.f32.mrf.mxu0 }
 0x377   :  { %v3889_v47 = vadd.f32 %v5225_v44, %v3862_v48  ;;  %v7616_v44 = vld [vmem:[#allocation34_spill] sm:$0xff] }
 0x378   :  { %v4177_v16 = vpop.f32.mrf.mxu0 }
 0x379   :  { %v4178_v36 = vadd.f32 %v4177_v16, %v4176_v41  ;;  %3916 = vst.msk [vmem:[%s7383_s6 + $0x68] sm:$0xff] %vm78_vm0, %v3889_v47  ;;  %v5231_v16 = vld [vmem:[%s7377_s0 + $0x98] sm:$0xff] }
 0x37a   :  { %v4179_v9 = vpop.f32.mrf.mxu0 }
 0x37b   :  { %v3652_v55 = vadd.f32 %v4178_v36, %v7132_v19  ;;  %v3795_v2 = vpop.f32.mrf.mxu1 }
 0x37c   :  { %v4180_v1 = vpop.f32.mrf.mxu0 }
 0x37d   :  { %v4181_v4 = vadd.f32 %v4180_v1, %v4179_v9  ;;  %v3796_v21 = vadd.f32 %v3795_v2, %v3652_v55  ;;  %v3797_v32 = vpop.f32.mrf.mxu1 }
 0x37f   :  { %v3863_v6 = vmul.f32 %v3796_v21, %v7611_v50  ;;  %v3655_v38 = vadd.f32 %v4181_v4, %v7132_v19  ;;  %v3798_v58 = vpop.f32.mrf.mxu1 }
 0x381   :  { %v3890_v5 = vadd.f32 %v5226_v10, %v3863_v6  ;;  %v3799_v30 = vadd.f32 %v3798_v58, %v3655_v38  ;;  %v3800_v22 = vpop.f32.mrf.mxu1  ;;  %v7617_v10 = vld [vmem:[#allocation49_spill] sm:$0xff] }
 0x383   :  { %3917 = vst.msk [vmem:[%s7383_s6 + $0x70] sm:$0xff] %vm78_vm0, %v3890_v5  ;;  %v3864_v20 = vmul.f32 %v3799_v30, %v7612_v51  ;;  %v5232_v51 = vld [vmem:[%s7377_s0 + $0xa0] sm:$0xff] }
 0x384   :  { %v4182_v3 = vpop.f32.mrf.mxu0 }
 0x385   :  { %v3891_v42 = vadd.f32 %v5227_v26, %v3864_v20 }
 0x386   :  { %v4183_v43 = vpop.f32.mrf.mxu0 }
 0x387   :  { %3918 = vst.msk [vmem:[%s7383_s6 + $0x78] sm:$0xff] %vm78_vm0, %v3891_v42  ;;  %v4184_v27 = vadd.f32 %v4183_v43, %v4182_v3  ;;  %v7618_v42 = vld [vmem:[#allocation20_spill] sm:$0xff] }
 0x388   :  { %v4185_v49 = vpop.f32.mrf.mxu0 }
 0x389   :  { %v3803_v62 = vpop.f32.mrf.mxu1  ;;  %v3660_v59 = vadd.f32 %v4184_v27, %v7132_v19  ;;  %v5233_v27 = vld [vmem:[%s7377_s0 + $0xa8] sm:$0xff] }
 0x38a   :  { %v4186_v25 = vpop.f32.mrf.mxu0 }
 0x38b   :  { %v3805_v35 = vpop.f32.mrf.mxu1  ;;  %v3804_v18 = vadd.f32 %v3803_v62, %v3660_v59  ;;  %v4187_v15 = vadd.f32 %v4186_v25, %v4185_v49 }
 0x38d   :  { %v3806_v39 = vpop.f32.mrf.mxu1  ;;  %v3865_v54 = vmul.f32 %v3804_v18, %v7613_v37  ;;  %v3663_v61 = vadd.f32 %v4187_v15, %v7132_v19 }
 0x38f   :  { %v3808_v34 = vpop.f32.mrf.mxu1  ;;  %v3892_v60 = vadd.f32 %v5228_v56, %v3865_v54  ;;  %v3807_v28 = vadd.f32 %v3806_v39, %v3663_v61  ;;  %v7619_v61 = vld [vmem:[#allocation30_spill] sm:$0xff] }
 0x391   :  { %3919 = vst.msk [vmem:[%s7383_s6 + $0x80] sm:$0xff] %vm78_vm0, %v3892_v60  ;;  %v3866_v13 = vmul.f32 %v3807_v28, %v7614_v53  ;;  %v5234_v28 = vld [vmem:[%s7377_s0 + $0xb0] sm:$0xff] }
 0x392   :  { %v4188_v52 = vpop.f32.mrf.mxu0 }
 0x393   :  { %v3893_v29 = vadd.f32 %v5229_v46, %v3866_v13  ;;  %v7620_v46 = vld [vmem:[#allocation11_spill] sm:$0xff] }
 0x394   :  { %v4189_v31 = vpop.f32.mrf.mxu0 }
 0x395   :  { %v4190_v45 = vadd.f32 %v4189_v31, %v4188_v52  ;;  %3920 = vst.msk [vmem:[%s7383_s6 + $0x88] sm:$0xff] %vm78_vm0, %v3893_v29  ;;  %v5235_v31 = vld [vmem:[%s7377_s0 + $0xb8] sm:$0xff] }
 0x396   :  { %v4191_v7 = vpop.f32.mrf.mxu0 }
 0x397   :  { %v3668_v11 = vadd.f32 %v4190_v45, %v7132_v19  ;;  %v3811_v23 = vpop.f32.mrf.mxu1 }
 0x398   :  { %v4192_v57 = vpop.f32.mrf.mxu0 }
 0x399   :  { %v4193_v17 = vadd.f32 %v4192_v57, %v4191_v7  ;;  %v3812_v14 = vadd.f32 %v3811_v23, %v3668_v11  ;;  %v3813_v8 = vpop.f32.mrf.mxu1 }
 0x39b   :  { %v3867_v24 = vmul.f32 %v3812_v14, %v7615_v12  ;;  %v3671_v40 = vadd.f32 %v4193_v17, %v7132_v19  ;;  %v3814_v33 = vpop.f32.mrf.mxu1 }
 0x39d   :  { %v3894_v0 = vadd.f32 %v5230_v63, %v3867_v24  ;;  %v3815_v48 = vadd.f32 %v3814_v33, %v3671_v40  ;;  %v3816_v41 = vpop.f32.mrf.mxu1  ;;  %v7621_v63 = vld [vmem:[#allocation6_spill] sm:$0xff] }
 0x39f   :  { %3921 = vst.msk [vmem:[%s7383_s6 + $0x90] sm:$0xff] %vm78_vm0, %v3894_v0  ;;  %v3868_v47 = vmul.f32 %v3815_v48, %v7616_v44  ;;  %v5236_v44 = vld [vmem:[%s7377_s0 + $0xc0] sm:$0xff] }
 0x3a0   :  { %v4194_v9 = vpop.f32.mrf.mxu0 }
 0x3a1   :  { %v3895_v36 = vadd.f32 %v5231_v16, %v3868_v47 }
 0x3a2   :  { %v4195_v55 = vpop.f32.mrf.mxu0 }
 0x3a3   :  { %3922 = vst.msk [vmem:[%s7383_s6 + $0x98] sm:$0xff] %vm78_vm0, %v3895_v36  ;;  %v4196_v1 = vadd.f32 %v4195_v55, %v4194_v9 }
 0x3a4   :  { %v4197_v4 = vpop.f32.mrf.mxu0 }
 0x3a5   :  { %v3819_v2 = vpop.f32.mrf.mxu1  ;;  %v3676_v21 = vadd.f32 %v4196_v1, %v7132_v19  ;;  %v7622_v1 = vld [vmem:[#allocation31_spill] sm:$0xff] }
 0x3a6   :  { %v4198_v50 = vpop.f32.mrf.mxu0 }
 0x3a7   :  { %v3821_v32 = vpop.f32.mrf.mxu1  ;;  %v3820_v6 = vadd.f32 %v3819_v2, %v3676_v21  ;;  %v4199_v38 = vadd.f32 %v4198_v50, %v4197_v4  ;;  %v5237_v50 = vld [vmem:[%s7377_s0 + $0xc8] sm:$0xff] }
 0x3a9   :  { %v3822_v58 = vpop.f32.mrf.mxu1  ;;  %v3869_v5 = vmul.f32 %v3820_v6, %v7617_v10  ;;  %v3679_v30 = vadd.f32 %v4199_v38, %v7132_v19 }
 0x3ab   :  { %v3824_v22 = vpop.f32.mrf.mxu1  ;;  %v3896_v20 = vadd.f32 %v5232_v51, %v3869_v5  ;;  %v3823_v26 = vadd.f32 %v3822_v58, %v3679_v30  ;;  %v7623_v5 = vld [vmem:[#allocation41_spill] sm:$0xff] }
 0x3ad   :  { %3923 = vst.msk [vmem:[%s7383_s6 + $0xa0] sm:$0xff] %vm78_vm0, %v3896_v20  ;;  %v3870_v3 = vmul.f32 %v3823_v26, %v7618_v42 }
 0x3ae   :  { %v4200_v43 = vpop.f32.mrf.mxu0 }
 0x3af   :  { %v3897_v62 = vadd.f32 %v5233_v27, %v3870_v3 }
 0x3b0   :  { %v4201_v49 = vpop.f32.mrf.mxu0 }
 0x3b1   :  { %v4202_v59 = vadd.f32 %v4201_v49, %v4200_v43  ;;  %3924 = vst.msk [vmem:[%s7383_s6 + $0xa8] sm:$0xff] %vm78_vm0, %v3897_v62 }
 0x3b2   :  { %v4203_v35 = vpop.f32.mrf.mxu0 }
 0x3b3   :  { %v3684_v25 = vadd.f32 %v4202_v59, %v7132_v19  ;;  %v3827_v15 = vpop.f32.mrf.mxu1 }
 0x3b4   :  { %v4204_v18 = vpop.f32.mrf.mxu0 }
 0x3b5   :  { %v4205_v39 = vadd.f32 %v4204_v18, %v4203_v35  ;;  %v3828_v37 = vadd.f32 %v3827_v15, %v3684_v25  ;;  %v3829_v54 = vpop.f32.mrf.mxu1 }
 0x3b7   :  { %v3871_v34 = vmul.f32 %v3828_v37, %v7619_v61  ;;  %v3687_v56 = vadd.f32 %v4205_v39, %v7132_v19  ;;  %v3830_v60 = vpop.f32.mrf.mxu1 }
 0x3b9   :  { %v3898_v53 = vadd.f32 %v5234_v28, %v3871_v34  ;;  %v3831_v13 = vadd.f32 %v3830_v60, %v3687_v56  ;;  %v3832_v52 = vpop.f32.mrf.mxu1 }
 0x3bb   :  { %3925 = vst.msk [vmem:[%s7383_s6 + $0xb0] sm:$0xff] %vm78_vm0, %v3898_v53  ;;  %v3872_v29 = vmul.f32 %v3831_v13, %v7620_v46 }
 0x3bc   :  { %v4206_v7 = vpop.f32.mrf.mxu0 }
 0x3bd   :  { %v3899_v45 = vadd.f32 %v5235_v31, %v3872_v29 }
 0x3be   :  { %v4207_v11 = vpop.f32.mrf.mxu0 }
 0x3bf   :  { %3926 = vst.msk [vmem:[%s7383_s6 + $0xb8] sm:$0xff] %vm78_vm0, %v3899_v45  ;;  %v4208_v57 = vadd.f32 %v4207_v11, %v4206_v7 }
 0x3c0   :  { %v4209_v23 = vpop.f32.mrf.mxu0 }
 0x3c1   :  { %v3692_v17 = vadd.f32 %v4208_v57, %v7132_v19 }
 0x3c2   :  { %v4210_v14 = vpop.f32.mrf.mxu0 }
 0x3c3   :  { %v4211_v8 = vadd.f32 %v4210_v14, %v4209_v23 }
 0x3c5   :  { %v3835_v12 = vpop.f32.mrf.mxu1  ;;  %v3695_v40 = vadd.f32 %v4211_v8, %v7132_v19 }
 0x3c6   :  { %v3836_v24 = vadd.f32 %v3835_v12, %v3692_v17 }
 0x3c7   :  { %v3837_v33 = vpop.f32.mrf.mxu1 }
 0x3c8   :  { %v3873_v0 = vmul.f32 %v3836_v24, %v7621_v63  ;;  %v4212_v48 = vpop.f32.mrf.mxu0 }
 0x3c9   :  { %v3838_v41 = vpop.f32.mrf.mxu1 }
 0x3ca   :  { %v3900_v47 = vadd.f32 %v5236_v44, %v3873_v0  ;;  %v3839_v16 = vadd.f32 %v3838_v41, %v3695_v40  ;;  %v4213_v36 = vpop.f32.mrf.mxu0 }
 0x3cb   :  { %v4214_v9 = vadd.f32 %v4213_v36, %v4212_v48  ;;  %v3840_v55 = vpop.f32.mrf.mxu1 }
 0x3cc   :  { %3927 = vst.msk [vmem:[%s7383_s6 + $0xc0] sm:$0xff] %vm78_vm0, %v3900_v47  ;;  %v3874_v2 = vmul.f32 %v3839_v16, %v7622_v1  ;;  %v4215_v4 = vpop.f32.mrf.mxu0 }
 0x3cd   :  { %v3700_v21 = vadd.f32 %v4214_v9, %v7132_v19  ;;  %v3843_v32 = vpop.f32.mrf.mxu1  ;;  %v5238_v19 = vld [vmem:[%s7377_s0 + $0xd0] sm:$0xff] }
 0x3ce   :  { %v3901_v6 = vadd.f32 %v5237_v50, %v3874_v2  ;;  %v4216_v38 = vpop.f32.mrf.mxu0 }
 0x3cf   :  { %v3844_v58 = vadd.f32 %v3843_v32, %v3700_v21  ;;  %v3845_v10 = vpop.f32.mrf.mxu1 }
 0x3d0   :  { %3928 = vst.msk [vmem:[%s7383_s6 + $0xc8] sm:$0xff] %vm78_vm0, %v3901_v6 }
 0x3d1   :  { %v3875_v30 = vmul.f32 %v3844_v58, %v7623_v5  ;;  %v3846_v22 = vpop.f32.mrf.mxu1 }
 0x3d3   :  { %v3902_v51 = vadd.f32 %v5238_v19, %v3875_v30  ;;  %v3847_v20 = vpop.f32.mrf.mxu1 }
 0x3d5   :  { %3929 = vst.msk [vmem:[%s7383_s6 + $0xd0] sm:$0xff] %vm78_vm0, %v3902_v51 }

// kernel: loci_encoder_forward.10
= control target key start
LH: loop header
LB: loop body
LE: loop exit
PB: predicated region body
PF: predicated region fallthrough
CT: control target
= control target key end

     0   :  { %vm681_vm0 = vcmask 392192   ;;  %vm933_vm1 = vcmask 1041408   ;;  %s1632_s21 = smov 96   ;;  %vm941_vm2 = vcmask 1043456   ;;  %s1634_s22 = smov 64   ;;  %vm952_vm3 = vcmask 785408   ;;  %s2083_s1 = inlined_call_operand.vmem [shape: bf16[1200,96], index: 1, kind: input, shape index: {}]   ;;  %s2084_s0 = inlined_call_operand.vmem [shape: f32[24,1200], index: 0, kind: input, shape index: {}]   ;;  %s2085_s3 = inlined_call_operand.vmem [shape: bf16[384,96], index: 3, kind: input, shape index: {}]   ;;  %s2086_s2 = inlined_call_operand.vmem [shape: f32[1,96], index: 2, kind: input, shape index: {}]   ;;  %s2087_s4 = inlined_call_operand.vmem [shape: f32[1,96], index: 4, kind: input, shape index: {}]   ;;  %s2088_s5 = inlined_call_operand.vmem [shape: f32[6,96], index: 5, kind: input, shape index: {}]   ;;  %s2089_s6 = inlined_call_operand.vmem [shape: f32[6,96], index: 6, kind: output, shape index: {}]  }
   0x1   :  { %v1527_v0 = vld [vmem:[%s2083_s1 + $0x78] sm:$0xff]   ;;  %v1531_v4 = vld [vmem:[%s2083_s1 + $0x70] sm:$0xff]   ;;  %v1535_v8 = vld [vmem:[%s2083_s1 + $0x68] sm:$0xff]   ;;  %vm954_vm4 = vcmask 523264   ;;  %vm1635_vm5 = vmmov 0   ;;  %vm956_vm6 = vcmask 261120  }
   0x2   :  { %v1528_v1 = vld [vmem:[%s2083_s1 + $0x38] sm:$0xff]   ;;  %1358 = vmatprep.subr.bf16.mxu0 %v1527_v0  ;;  %v1532_v5 = vld [vmem:[%s2083_s1 + $0x30] sm:$0xff]   ;;  %v1536_v9 = vld [vmem:[%s2083_s1 + $0x28] sm:$0xff]   ;;  %vm1248_vm7 = vcmask 783360  }
   0x3   :  { %v1529_v2 = vld [vmem:[%s2083_s1 + $0xf8] sm:$0xff]   ;;  %1359 = vmatpush3.bf16.msra.mxu0 %v1528_v1  ;;  %v1533_v6 = vld [vmem:[%s2083_s1 + $0xf0] sm:$0xff]   ;;  %v1537_v10 = vld [vmem:[%s2083_s1 + $0xe8] sm:$0xff]  }
   0x4   :  { %v1530_v3 = vld [vmem:[%s2083_s1 + $0xb8] sm:$0xff]   ;;  %1386 = vmatprep.subr.bf16.mxu1 %v1529_v2  ;;  %1360 = vmatprep.subr.bf16.mxu0 %v1531_v4  ;;  %v1534_v7 = vld [vmem:[%s2083_s1 + $0xb0] sm:$0xff]   ;;  %v1538_v11 = vld [vmem:[%s2083_s1 + $0xa8] sm:$0xff]  }
   0x5   :  { %1387 = vmatpush3.bf16.msra.mxu1 %v1530_v3  ;;  %v1539_v12 = vld [vmem:[%s2083_s1 + $0x60] sm:$0xff]   ;;  %v1543_v16 = vld [vmem:[%s2083_s1 + $0x58] sm:$0xff]   ;;  %v1547_v20 = vld [vmem:[%s2083_s1 + $0x50] sm:$0xff]  }
   0x6   :  { %1388 = vmatprep.subr.bf16.mxu1 %v1533_v6  ;;  %v1540_v13 = vld [vmem:[%s2083_s1 + $0x20] sm:$0xff]   ;;  %v1544_v17 = vld [vmem:[%s2083_s1 + $0x18] sm:$0xff]   ;;  %v1548_v21 = vld [vmem:[%s2083_s1 + $0x10] sm:$0xff]  }
   0x7   :  { %1361 = vmatpush3.bf16.msra.mxu0 %v1532_v5  ;;  %v1541_v14 = vld [vmem:[%s2083_s1 + $0xe0] sm:$0xff]   ;;  %v1545_v18 = vld [vmem:[%s2083_s1 + $0xd8] sm:$0xff]   ;;  %v1549_v22 = vld [vmem:[%s2083_s1 + $0xd0] sm:$0xff]  }
   0x8   :  { %1362 = vmatprep.subr.bf16.mxu0 %v1535_v8  ;;  %v1542_v15 = vld [vmem:[%s2083_s1 + $0xa0] sm:$0xff]   ;;  %v1546_v19 = vld [vmem:[%s2083_s1 + $0x98] sm:$0xff]   ;;  %v1550_v23 = vld [vmem:[%s2083_s1 + $0x90] sm:$0xff]  }
   0x9   :  { %1389 = vmatpush3.bf16.msra.mxu1 %v1534_v7  ;;  %v1551_v24 = vld [vmem:[%s2083_s1 + $0x48] sm:$0xff]   ;;  %v1555_v28 = vld [vmem:[%s2083_s1 + $0x40] sm:$0xff]   ;;  %v35_v32 = vld [vmem:[%s2084_s0 + $0x58] sm:$0xff] }
   0xa   :  { %1390 = vmatprep.subr.bf16.mxu1 %v1537_v10  ;;  %v1552_v25 = vld [vmem:[%s2083_s1 + $0x8] sm:$0xff]   ;;  %v1556_v29 = vld [vmem:[%s2083_s1] sm:$0xff]   ;;  %v34_v36 = vld [vmem:[%s2084_s0 + $0x50] sm:$0xff] }
   0xb   :  { %1363 = vmatpush3.bf16.msra.mxu0 %v1536_v9  ;;  %v1553_v26 = vld [vmem:[%s2083_s1 + $0xc8] sm:$0xff]   ;;  %v1557_v30 = vld [vmem:[%s2083_s1 + $0xc0] sm:$0xff]   ;;  %v1559_v38 = vld [vmem:[%s2083_s1 + $0x178] sm:$0xff]  }
   0xc   :  { %1364 = vmatprep.subr.bf16.mxu0 %v1539_v12  ;;  %v1554_v27 = vld [vmem:[%s2083_s1 + $0x88] sm:$0xff]   ;;  %v1558_v34 = vld [vmem:[%s2083_s1 + $0x80] sm:$0xff]   ;;  %v27_v39 = vld [vmem:[%s2084_s0 + $0x18] sm:$0xff] }
   0xd   :  { %1391 = vmatpush3.bf16.msra.mxu1 %v1538_v11  ;;  %v25_v31 = vld [vmem:[%s2084_s0 + $0x8] sm:$0xff]  ;;  %v24_v35 = vld [vmem:[%s2084_s0] sm:$0xff]  ;;  %v1560_v42 = vld [vmem:[%s2083_s1 + $0x138] sm:$0xff]  }
   0xe   :  { %1392 = vmatprep.subr.bf16.mxu1 %v1541_v14  ;;  %v55_v33 = vpack.c.bf16 %v35_v32, %v25_v31  ;;  %v54_v37 = vpack.c.bf16 %v34_v36, %v24_v35  ;;  %v37_v40 = vld [vmem:[%s2084_s0 + $0x68] sm:$0xff]  ;;  %v26_v43 = vld [vmem:[%s2084_s0 + $0x10] sm:$0xff]  ;;  %v36_v44 = vld [vmem:[%s2084_s0 + $0x60] sm:$0xff] }
   0xf   :  { %1365 = vmatpush3.bf16.msra.mxu0 %v1540_v13  ;;  %v57_v41 = vpack.c.bf16 %v37_v40, %v27_v39  ;;  %v56_v45 = vpack.c.bf16 %v36_v44, %v26_v43  ;;  %v1561_v46 = vld [vmem:[%s2083_s1 + $0x1f8] sm:$0xff]   ;;  %v1563_v48 = vld [vmem:[%s2083_s1 + $0x170] sm:$0xff]   ;;  %v1567_v52 = vld [vmem:[%s2083_s1 + $0x168] sm:$0xff]  }
  0x10   :  { %1366 = vmatprep.subr.bf16.mxu0 %v1543_v16  ;;  %720 = vmatprep.mubr.bf16.mxu0 %v55_v33  ;;  %v1562_v47 = vld [vmem:[%s2083_s1 + $0x1b8] sm:$0xff]   ;;  %v1564_v49 = vld [vmem:[%s2083_s1 + $0x130] sm:$0xff]   ;;  %v1568_v53 = vld [vmem:[%s2083_s1 + $0x128] sm:$0xff]  }
  0x11   :  { %1393 = vmatpush3.bf16.msra.mxu1 %v1542_v15  ;;  %768 = vmatprep.mubr.bf16.mxu1 %v57_v41  ;;  %v1565_v50 = vld [vmem:[%s2083_s1 + $0x1f0] sm:$0xff]   ;;  %v1569_v54 = vld [vmem:[%s2083_s1 + $0x1e8] sm:$0xff]   ;;  %v1571_v56 = vld [vmem:[%s2083_s1 + $0x160] sm:$0xff]  }
  0x12   :  { %1394 = vmatprep.subr.bf16.mxu1 %v1545_v18  ;;  %v1566_v51 = vld [vmem:[%s2083_s1 + $0x1b0] sm:$0xff]   ;;  %v1570_v55 = vld [vmem:[%s2083_s1 + $0x1a8] sm:$0xff]   ;;  %v1572_v57 = vld [vmem:[%s2083_s1 + $0x120] sm:$0xff]  }
  0x13   :  { %1367 = vmatpush3.bf16.msra.mxu0 %v1544_v17  ;;  %v1573_v58 = vld [vmem:[%s2083_s1 + $0x1e0] sm:$0xff]   ;;  %v1575_v60 = vld [vmem:[%s2083_s1 + $0x158] sm:$0xff]   ;;  %v45_v62 = vld [vmem:[%s2084_s0 + $0xa8] sm:$0xff] }
  0x14   :  { %1368 = vmatprep.subr.bf16.mxu0 %v1547_v20  ;;  %v1574_v59 = vld [vmem:[%s2083_s1 + $0x1a0] sm:$0xff]   ;;  %v1576_v61 = vld [vmem:[%s2083_s1 + $0x118] sm:$0xff]   ;;  %v65_v63 = vpack.c.bf16 %v45_v62, %v45_v62  ;;  %v1579_v4 = vld [vmem:[%s2083_s1 + $0x150] sm:$0xff]  }
  0x15   :  { %1395 = vmatpush3.bf16.msra.mxu1 %v1546_v19  ;;  %v1577_v0 = vld [vmem:[%s2083_s1 + $0x1d8] sm:$0xff]   ;;  %v44_v1 = vld [vmem:[%s2084_s0 + $0xa0] sm:$0xff]  ;;  %v1580_v5 = vld [vmem:[%s2083_s1 + $0x110] sm:$0xff]  }
  0x16   :  { %1396 = vmatprep.subr.bf16.mxu1 %v1549_v22  ;;  %v64_v2 = vpack.c.bf16 %v44_v1, %v44_v1  ;;  %v1578_v3 = vld [vmem:[%s2083_s1 + $0x198] sm:$0xff]   ;;  %v1581_v6 = vld [vmem:[%s2083_s1 + $0x1d0] sm:$0xff]   ;;  %v1583_v10 = vld [vmem:[%s2083_s1 + $0x148] sm:$0xff]  }
  0x17   :  { %1369 = vmatpush3.bf16.msra.mxu0 %v1548_v21  ;;  %v1582_v7 = vld [vmem:[%s2083_s1 + $0x190] sm:$0xff]   ;;  %v47_v8 = vld [vmem:[%s2084_s0 + $0xb8] sm:$0xff]  ;;  %v1584_v13 = vld [vmem:[%s2083_s1 + $0x108] sm:$0xff]  }
  0x18   :  { %1370 = vmatprep.subr.bf16.mxu0 %v1551_v24  ;;  %v67_v9 = vpack.c.bf16 %v47_v8, %v47_v8  ;;  %v46_v11 = vld [vmem:[%s2084_s0 + $0xb0] sm:$0xff]  ;;  %v1585_v14 = vld [vmem:[%s2083_s1 + $0x1c8] sm:$0xff]   ;;  %v1587_v16 = vld [vmem:[%s2083_s1 + $0x140] sm:$0xff]   ;;  %v1630_v24 = vmov 0  }
  0x19   :  { %1397 = vmatpush3.bf16.msra.mxu1 %v1550_v23  ;;  %v66_v12 = vpack.c.bf16 %v46_v11, %v46_v11  ;;  %v1586_v15 = vld [vmem:[%s2083_s1 + $0x188] sm:$0xff]   ;;  %v1588_v17 = vld [vmem:[%s2083_s1 + $0x100] sm:$0xff]   ;;  %v39_v20 = vld [vmem:[%s2084_s0 + $0x78] sm:$0xff] }
  0x1a   :  { %1398 = vmatprep.subr.bf16.mxu1 %v1553_v26  ;;  %v1589_v18 = vld [vmem:[%s2083_s1 + $0x1c0] sm:$0xff]   ;;  %v29_v19 = vld [vmem:[%s2084_s0 + $0x28] sm:$0xff]  ;;  %v31_v26 = vld [vmem:[%s2084_s0 + $0x38] sm:$0xff] }
  0x1b   :  { %1371 = vmatpush3.bf16.msra.mxu0 %v1552_v25  ;;  %v59_v21 = vpack.c.bf16 %v39_v20, %v29_v19  ;;  %v1590_v22 = vld [vmem:[%s2083_s1 + $0x180] sm:$0xff]   ;;  %v38_v25 = vld [vmem:[%s2084_s0 + $0x70] sm:$0xff]  ;;  %v49_v35 = vld [vmem:[%s2084_s0 + $0xc8] sm:$0xff] }
  0x1c   :  { %1372 = vmatprep.subr.bf16.mxu0 %v1555_v28  ;;  %v28_v23 = vld [vmem:[%s2084_s0 + $0x20] sm:$0xff]  ;;  %v30_v31 = vld [vmem:[%s2084_s0 + $0x30] sm:$0xff]  ;;  %v69_v36 = vpack.c.bf16 %v49_v35, %v49_v35  ;;  %v1602_v62 = vld [vmem:[%s2085_s3 + $0x78] sm:$0xff]  }
  0x1d   :  { %1399 = vmatpush3.bf16.msra.mxu1 %v1554_v27  ;;  %v41_v27 = vld [vmem:[%s2084_s0 + $0x88] sm:$0xff]  ;;  %v58_v28 = vpack.c.bf16 %v38_v25, %v28_v23  ;;  %v40_v32 = vld [vmem:[%s2084_s0 + $0x80] sm:$0xff]  ;;  %v50_v40 = vld [vmem:[%s2084_s0 + $0xd0] sm:$0xff] }
  0x1e   :  { %1400 = vmatprep.subr.bf16.mxu1 %v1557_v30  ;;  %v1591_v30 = vld [vmem:[%s2083_s1 + $0x238] sm:$0xff]   ;;  %v60_v33 = vpack.c.bf16 %v40_v32, %v30_v31  ;;  %v70_v43 = vpack.c.bf16 %v50_v40, %v50_v40  ;;  %v1594_v44 = vld [vmem:[%s2083_s1 + $0x220] sm:$0xff]   ;;  %v1605_v1 = vld [vmem:[%s2085_s3 + $0x30] sm:$0xff]  }
  0x1f   :  { %1373 = vmatpush3.bf16.msra.mxu0 %v1556_v29  ;;  %v61_v29 = vpack.c.bf16 %v41_v27, %v31_v26  ;;  %v1612_v8 = vld [vmem:[%s2085_s3 + $0x50] sm:$0xff]  }
  0x20   :  { %1414 = vmatprep.subr.bf16.mxu0 %v1559_v38  ;;  %v51_v38 = vld [vmem:[%s2084_s0 + $0xd8] sm:$0xff] }
  0x21   :  { %1401 = vmatpush3.bf16.msra.mxu1 %v1558_v34  ;;  %v1592_v34 = vld [vmem:[%s2083_s1 + $0x230] sm:$0xff]   ;;  %v71_v39 = vpack.c.bf16 %v51_v38, %v51_v38 }
  0x22   :  { %721 = vmatmul.mubr.bf16.vlgmr.msra.gmra.mxu0 %v54_v37  ;;  %1442 = vmatprep.subr.bf16.mxu1 %v1561_v46  ;;  %v48_v37 = vld [vmem:[%s2084_s0 + $0xc0] sm:$0xff]  ;;  %v43_v46 = vld [vmem:[%s2084_s0 + $0x98] sm:$0xff] }
  0x23   :  { %1415 = vmatpush3.bf16.msra.mxu0 %v1560_v42  ;;  %728 = vmatprep.mubr.bf16.mxu0 %v65_v63  ;;  %v68_v41 = vpack.c.bf16 %v48_v37, %v48_v37  ;;  %v1593_v42 = vld [vmem:[%s2083_s1 + $0x228] sm:$0xff]   ;;  %v1603_v63 = vld [vmem:[%s2085_s3 + $0x38] sm:$0xff]  }
  0x24   :  { %769 = vmatmul.mubr.bf16.vlgmr.msra.gmra.mxu1 %v56_v45  ;;  %1416 = vmatprep.subr.bf16.mxu0 %v1563_v48  ;;  %v33_v45 = vld [vmem:[%s2084_s0 + $0x48] sm:$0xff]  ;;  %v1595_v48 = vld [vmem:[%s2083_s1 + $0x218] sm:$0xff]  }
  0x25   :  { %1443 = vmatpush3.bf16.msra.mxu1 %v1562_v47  ;;  %776 = vmatprep.mubr.bf16.mxu1 %v67_v9  ;;  %v63_v47 = vpack.c.bf16 %v43_v46, %v33_v45  ;;  %v1613_v9 = vld [vmem:[%s2085_s3 + $0x10] sm:$0xff]  }
  0x26   :  { %1444 = vmatprep.subr.bf16.mxu1 %v1565_v50  ;;  %v1597_v50 = vld [vmem:[%s2083_s1 + $0x208] sm:$0xff]  }
  0x27   :  { %1417 = vmatpush3.bf16.msra.mxu0 %v1564_v49  ;;  %v1596_v49 = vld [vmem:[%s2083_s1 + $0x210] sm:$0xff]  }
  0x28   :  { %1418 = vmatprep.subr.bf16.mxu0 %v1567_v52  ;;  %v1599_v52 = vld [vmem:[%s2083_s1 + $0x250] sm:$0xff]  }
  0x29   :  { %1445 = vmatpush3.bf16.msra.mxu1 %v1566_v51  ;;  %v1598_v51 = vld [vmem:[%s2083_s1 + $0x200] sm:$0xff]  }
  0x2a   :  { %1446 = vmatprep.subr.bf16.mxu1 %v1569_v54  ;;  %729 = vmatmul.mubr.bf16.gmra.mxu0 %v64_v2  ;;  %v1601_v54 = vld [vmem:[%s2083_s1 + $0x240] sm:$0xff]   ;;  %v1606_v2 = vld [vmem:[%s2085_s3 + $0x68] sm:$0xff]  }
  0x2b   :  { %1419 = vmatpush3.bf16.msra.mxu0 %v1568_v53  ;;  %816 = vmatprep.mubr.bf16.mxu0 %v59_v21  ;;  %v1600_v53 = vld [vmem:[%s2083_s1 + $0x248] sm:$0xff]  }
  0x2c   :  { %1420 = vmatprep.subr.bf16.mxu0 %v1571_v56  ;;  %777 = vmatmul.mubr.bf16.gmra.mxu1 %v66_v12  ;;  %v42_v56 = vld [vmem:[%s2084_s0 + $0x90] sm:$0xff] }
  0x2d   :  { %1447 = vmatpush3.bf16.msra.mxu1 %v1570_v55  ;;  %864 = vmatprep.mubr.bf16.mxu1 %v61_v29  ;;  %v32_v55 = vld [vmem:[%s2084_s0 + $0x40] sm:$0xff] }
  0x2e   :  { %1448 = vmatprep.subr.bf16.mxu1 %v1573_v58  ;;  %v62_v58 = vpack.c.bf16 %v42_v56, %v32_v55 }
  0x2f   :  { %1421 = vmatpush3.bf16.msra.mxu0 %v1572_v57  ;;  %v53_v57 = vld [vmem:[%s2084_s0 + $0xe8] sm:$0xff] }
  0x30   :  { %1422 = vmatprep.subr.bf16.mxu0 %v1575_v60  ;;  %v52_v60 = vld [vmem:[%s2084_s0 + $0xe0] sm:$0xff]  ;;  %s1633_s0 = smov 32  }
  0x31   :  { %1449 = vmatpush3.bf16.msra.mxu1 %v1574_v59  ;;  %v73_v59 = vpack.c.bf16 %v53_v57, %v53_v57 }
  0x32   :  { %1450 = vmatprep.subr.bf16.mxu1 %v1577_v0  ;;  %v1604_v0 = vld [vmem:[%s2085_s3 + $0x70] sm:$0xff]  }
  0x33   :  { %1423 = vmatpush3.bf16.msra.mxu0 %v1576_v61  ;;  %v72_v61 = vpack.c.bf16 %v52_v60, %v52_v60 }
  0x34   :  { %1424 = vmatprep.subr.bf16.mxu0 %v1579_v4  ;;  %v1608_v4 = vld [vmem:[%s2085_s3 + $0x60] sm:$0xff]  }
  0x35   :  { %1451 = vmatpush3.bf16.msra.mxu1 %v1578_v3  ;;  %v1607_v3 = vld [vmem:[%s2085_s3 + $0x28] sm:$0xff]  }
  0x36   :  { %1452 = vmatprep.subr.bf16.mxu1 %v1581_v6  ;;  %v1610_v6 = vld [vmem:[%s2085_s3 + $0x58] sm:$0xff]  }
  0x37   :  { %1425 = vmatpush3.bf16.msra.mxu0 %v1580_v5  ;;  %v1609_v5 = vld [vmem:[%s2085_s3 + $0x20] sm:$0xff]  }
  0x38   :  { %1426 = vmatprep.subr.bf16.mxu0 %v1583_v10  ;;  %v1614_v10 = vld [vmem:[%s2085_s3 + $0x48] sm:$0xff]  }
  0x39   :  { %1453 = vmatpush3.bf16.msra.mxu1 %v1582_v7  ;;  %v1611_v7 = vld [vmem:[%s2085_s3 + $0x18] sm:$0xff]  }
  0x3a   :  { %1454 = vmatprep.subr.bf16.mxu1 %v1585_v14 }
  0x3b   :  { %1427 = vmatpush3.bf16.msra.mxu0 %v1584_v13 }
  0x3c   :  { %1428 = vmatprep.subr.bf16.mxu0 %v1587_v16 }
  0x3d   :  { %1455 = vmatpush3.bf16.msra.mxu1 %v1586_v15 }
  0x3e   :  { %1456 = vmatprep.subr.bf16.mxu1 %v1589_v18 }
  0x3f   :  { %1429 = vmatpush3.bf16.msra.mxu0 %v1588_v17 }
  0x40   :  { %880 = vmatprep.subr.bf16.mxu0 %v1630_v24 }
  0x41   :  { %1457 = vmatpush3.bf16.msra.mxu1 %v1590_v22 }
  0x42   :  { %817 = vmatmul.mubr.bf16.vlgmr.msra.gmra.mxu0 %v58_v28  ;;  %1470 = vmatprep.subr.bf16.mxu1 %v1602_v62 }
  0x43   :  { %881 = vmatpush1.bf16.msra.mxu0 %v1591_v30  ;;  %824 = vmatprep.mubr.bf16.mxu0 %v69_v36 }
  0x44   :  { %865 = vmatmul.mubr.bf16.vlgmr.msra.gmra.mxu1 %v60_v33  ;;  %882 = vmatprep.subr.bf16.mxu0 %v1630_v24 }
  0x45   :  { %872 = vmatprep.mubr.bf16.mxu1 %v71_v39  ;;  %1471 = vmatpush3.bf16.msra.mxu1 %v1603_v63 }
  0x46   :  { %1472 = vmatprep.subr.bf16.mxu1 %v1604_v0 }
  0x47   :  { %883 = vmatpush1.bf16.msra.mxu0 %v1592_v34 }
  0x48   :  { %884 = vmatprep.subr.bf16.mxu0 %v1630_v24 }
  0x49   :  { %1473 = vmatpush3.bf16.msra.mxu1 %v1605_v1  ;;  %v1616_v1 = vld [vmem:[%s2085_s3 + $0x40] sm:$0xff]  }
  0x4a   :  { %825 = vmatmul.mubr.bf16.gmra.mxu0 %v68_v41  ;;  %1474 = vmatprep.subr.bf16.mxu1 %v1606_v2 }
  0x4b   :  { %885 = vmatpush1.bf16.msra.mxu0 %v1593_v42  ;;  %1330 = vmatprep.mubr.msk.bf16.mxu0 %vm681_vm0, %v63_v47 }
  0x4c   :  { %873 = vmatmul.mubr.bf16.gmra.mxu1 %v70_v43  ;;  %886 = vmatprep.subr.bf16.mxu0 %v1630_v24 }
  0x4d   :  { %1475 = vmatpush3.bf16.msra.mxu1 %v1607_v3 }
  0x4e   :  { %1476 = vmatprep.subr.bf16.mxu1 %v1608_v4  ;;  %v1617_v4 = vld [vmem:[%s2085_s3] sm:$0xff]  }
  0x4f   :  { %887 = vmatpush1.bf16.msra.mxu0 %v1594_v44  ;;  %v1254_v44 = vld [vmem:[%s2086_s2] ss:$0 sm:$0xff] }
  0x50   :  { %888 = vmatprep.subr.bf16.mxu0 %v1630_v24 }
  0x51   :  { %1477 = vmatpush3.bf16.msra.mxu1 %v1609_v5 }
  0x52   :  { %1478 = vmatprep.subr.bf16.mxu1 %v1610_v6 }
  0x53   :  { %889 = vmatpush1.bf16.msra.mxu0 %v1595_v48 }
  0x54   :  { %890 = vmatprep.subr.bf16.mxu0 %v1630_v24 }
  0x55   :  { %1479 = vmatpush3.bf16.msra.mxu1 %v1611_v7 }
  0x56   :  { %1480 = vmatprep.subr.bf16.mxu1 %v1612_v8 }
  0x57   :  { %891 = vmatpush1.bf16.msra.mxu0 %v1596_v49 }
  0x58   :  { %892 = vmatprep.subr.bf16.mxu0 %v1630_v24 }
  0x59   :  { %1481 = vmatpush3.bf16.msra.mxu1 %v1613_v9 }
  0x5a   :  { %1482 = vmatprep.subr.bf16.mxu1 %v1614_v10 }
  0x5b   :  { %893 = vmatpush1.bf16.msra.mxu0 %v1597_v50 }
  0x5c   :  { %894 = vmatprep.subr.bf16.mxu0 %v1630_v24 }
  0x5f   :  { %895 = vmatpush1.bf16.msra.mxu0 %v1598_v51 }
  0x60   :  { %906 = vmatprep.subr.bf16.mxu0 %v1630_v24 }
  0x63   :  { %907 = vmatpush2.bf16.msra.mxu0 %v1599_v52 }
  0x64   :  { %908 = vmatprep.subr.bf16.mxu0 %v1630_v24 }
  0x67   :  { %909 = vmatpush2.bf16.msra.mxu0 %v1600_v53 }
  0x68   :  { %910 = vmatprep.subr.bf16.mxu0 %v1630_v24 }
  0x6b   :  { %911 = vmatpush2.bf16.msra.mxu0 %v1601_v54 }
  0x6e   :  { %913 = vmatmul.mubr.bf16.vlgmr.msra.gmra.mxu0 %v62_v58 }
  0x6f   :  { %1331 = vmatprep.mubr.msk.bf16.mxu0 %vm681_vm0, %v73_v59  ;;  %v1615_v59 = vld [vmem:[%s2085_s3 + $0x8] sm:$0xff]  }
  0x70   :  { %1483 = vmatpush3.bf16.msra.mxu1 %v1615_v59 }
  0x71   :  { %1484 = vmatprep.subr.bf16.mxu1 %v1616_v1 }
  0x74   :  { %1485 = vmatpush3.bf16.msra.mxu1 %v1617_v4 }
  0x76   :  { %921 = vmatmul.mubr.bf16.gmra.mxu0 %v72_v61 }
  0xe2   :  { %v1374_v11 = vpop.f32.mrf.mxu0 }
  0xe4   :  { %v1375_v12 = vpop.f32.mrf.mxu0  ;;  %v1402_v13 = vpop.f32.mrf.mxu1 }
  0xe5   :  { %v1376_v43 = vadd.f32 %v1375_v12, %v1374_v11 }
  0xe6   :  { %v1377_v14 = vpop.f32.mrf.mxu0  ;;  %v1403_v15 = vpop.f32.mrf.mxu1 }
  0xe7   :  { %v723_v45 = vadd.f32 %v1376_v43, %v1254_v44  ;;  %v1404_v46 = vadd.f32 %v1403_v15, %v1402_v13  ;;  %v1631_v13 = vmov 0.0   ;;  %v1625_v43 = vld [vmem:[%s2085_s3 + $0x80] sm:$0xff]  }
  0xe8   :  { %v1378_v16 = vpop.f32.mrf.mxu0  ;;  %v1405_v17 = vpop.f32.mrf.mxu1  ;;  %1501 = vmatprep.subr.bf16.mxu1 %v1631_v13 }
  0xe9   :  { %v1379_v47 = vadd.f32 %v1378_v16, %v1377_v14  ;;  %v771_v49 = vadd.f32 %v1404_v46, %v723_v45 }
  0xea   :  { %v1380_v18 = vpop.f32.mrf.mxu0  ;;  %v1406_v20 = vpop.f32.mrf.mxu1 }
  0xeb   :  { %v726_v50 = vadd.f32 %v1379_v47, %v1254_v44  ;;  %v1407_v51 = vadd.f32 %v1406_v20, %v1405_v17 }
  0xec   :  { %v1381_v19 = vpop.f32.mrf.mxu0  ;;  %v1408_v23 = vpop.f32.mrf.mxu1 }
  0xed   :  { %v1382_v52 = vadd.f32 %v1381_v19, %v1380_v18  ;;  %v774_v56 = vadd.f32 %v1407_v51, %v726_v50  ;;  %v1332_v51 = vld [vmem:[%s2087_s4] ss:$0 sm:$0xff] }
  0xee   :  { %v1383_v21 = vpop.f32.mrf.mxu0  ;;  %v1409_v24 = vpop.f32.mrf.mxu1 }
  0xef   :  { %v731_v57 = vadd.f32 %v1382_v52, %v1254_v44  ;;  %v1410_v58 = vadd.f32 %v1409_v24, %v1408_v23 }
  0xf0   :  { %v1384_v22 = vpop.f32.mrf.mxu0  ;;  %v1411_v25 = vpop.f32.mrf.mxu1 }
  0xf1   :  { %v779_v2 = vadd.f32 %v1410_v58, %v731_v57 }
  0xf2   :  { %v1412_v26 = vpop.f32.mrf.mxu1 }
 0x102   :  { %v1430_v27 = vpop.f32.mrf.mxu0 }
 0x104   :  { %v1431_v28 = vpop.f32.mrf.mxu0  ;;  %v1458_v29 = vpop.f32.mrf.mxu1 }
 0x105   :  { %v1432_v48 = vadd.f32 %v1431_v28, %v1430_v27 }
 0x106   :  { %v1433_v30 = vpop.f32.mrf.mxu0  ;;  %v1459_v31 = vpop.f32.mrf.mxu1 }
 0x107   :  { %v819_v53 = vadd.f32 %v1432_v48, %v771_v49  ;;  %v1460_v54 = vadd.f32 %v1459_v31, %v1458_v29 }
 0x108   :  { %v1434_v32 = vpop.f32.mrf.mxu0  ;;  %v1461_v33 = vpop.f32.mrf.mxu1 }
 0x109   :  { %v1435_v55 = vadd.f32 %v1434_v32, %v1433_v30  ;;  %v867_v63 = vadd.f32 %v1460_v54, %v819_v53  ;;  %v1240_v54 = vld [vmem:[%s2088_s5] sm:$0x3f] }
 0x10a   :  { %v1436_v34 = vpop.f32.mrf.mxu0  ;;  %v1462_v35 = vpop.f32.mrf.mxu1 }
 0x10b   :  { %v822_v60 = vadd.f32 %v1435_v55, %v774_v56  ;;  %v1463_v61 = vadd.f32 %v1462_v35, %v1461_v33 }
 0x10c   :  { %v1437_v36 = vpop.f32.mrf.mxu0  ;;  %v1464_v37 = vpop.f32.mrf.mxu1 }
 0x10d   :  { %v1438_v62 = vadd.f32 %v1437_v36, %v1436_v34  ;;  %v870_v8 = vadd.f32 %v1463_v61, %v822_v60  ;;  %v1618_v34 = vld [vmem:[%s2085_s3 + $0xb8] sm:$0xff]   ;;  %v1619_v36 = vld [vmem:[%s2085_s3 + $0xb0] sm:$0xff]  }
 0x10e   :  { %v1465_v38 = vpop.f32.mrf.mxu1  ;;  %v1439_v39 = vpop.f32.mrf.mxu0 }
 0x10f   :  { %v827_v6 = vadd.f32 %v1438_v62, %v779_v2  ;;  %v1466_v7 = vadd.f32 %v1465_v38, %v1464_v37  ;;  %v1620_v37 = vld [vmem:[%s2085_s3 + $0xa8] sm:$0xff]   ;;  %v1621_v38 = vld [vmem:[%s2085_s3 + $0xa0] sm:$0xff]   ;;  %v1622_v39 = vld [vmem:[%s2085_s3 + $0x98] sm:$0xff]  }
 0x110   :  { %v1440_v40 = vpop.f32.mrf.mxu0  ;;  %v1467_v41 = vpop.f32.mrf.mxu1 }
 0x111   :  { %v875_v15 = vadd.f32 %v1466_v7, %v827_v6  ;;  %v1623_v40 = vld [vmem:[%s2085_s3 + $0x90] sm:$0xff]   ;;  %v1624_v41 = vld [vmem:[%s2085_s3 + $0x88] sm:$0xff]  }
 0x112   :  { %v1468_v42 = vpop.f32.mrf.mxu1 }
 0x12e   :  { %v914_v0 = vpop.f32.mrf.mxu0 }
 0x12f   :  { %v915_v3 = vadd.f32 %v914_v0, %v867_v63 }
 0x130   :  { %v916_v5 = vpop.f32.mrf.mxu0 }
 0x131   :  { %v928_v10 = vmax.f32 %v915_v3, 0.0 }
 0x132   :  { %v917_v9 = vpop.f32.mrf.mxu0 }
 0x133   :  { %v918_v11 = vadd.f32 %v917_v9, %v870_v8  ;;  %v934_v17 = vrot.slane %v928_v10, 6 }
 0x134   :  { %v919_v12 = vpop.f32.mrf.mxu0 }
 0x135   :  { %v929_v14 = vmax.f32 %v918_v11, 0.0 }
 0x136   :  { %v922_v16 = vpop.f32.mrf.mxu0 }
 0x137   :  { %v935_v18 = vrot.slane %v929_v14, 6  ;;  %v923_v19 = vadd.f32 %v922_v16, %v875_v15  ;;  %v942_v24 = vrot.slane %v929_v14, 4 }
 0x138   :  { %v924_v20 = vpop.f32.mrf.mxu0 }
 0x139   :  { %v930_v21 = vmax.f32 %v923_v19, 0.0  ;;  %v936_v22 = vsel %vm933_vm1, %v934_v17, %v935_v18 }
 0x13a   :  { %v925_v23 = vpop.f32.mrf.mxu0  ;;  %937 = vrot.lane.b32.xlu0 %v936_v22, %s1632_s21 }
 0x13b   :  { %v943_v25 = vrot.slane %v930_v21, 4  ;;  %v948_v26 = vrot.slane %v930_v21, 2 }
 0x13c   :  { %v926_v27 = vpop.f32.mrf.mxu0 }
 0x13d   :  { %949 = vrot.lane.b32.xlu1 %v948_v26, %s1633_s0  ;;  %v944_v28 = vsel %vm941_vm2, %v942_v24, %v943_v25 }
 0x13e   :  { %945 = vrot.lane.b32.xlu0 %v944_v28, %s1634_s22 }
 0x1ac   :  { %v938_v29 = vpop.permute.xlu0 %937 }
 0x1ad   :  { %v953_v30 = vsel %vm952_vm3, %v928_v10, %v938_v29 }
 0x1ae   :  { %v958_v35 = vpack.c.bf16 %v953_v30, %v953_v30 }
 0x1af   :  { %v950_v42 = vpop.permute.xlu1 %949 }
 0x1b0   :  { %v946_v31 = vpop.permute.xlu0 %945 }
 0x1b1   :  { %v955_v32 = vsel %vm954_vm4, %v938_v29, %v946_v31  ;;  %v957_v44 = vsel %vm956_vm6, %v946_v31, %v950_v42 }
 0x1b2   :  { %v959_v33 = vpack.c.bf16 %v955_v32, %v955_v32  ;;  %v960_v45 = vpack.c.bf16 %v957_v44, %v957_v44 }
 0x1b4   :  { %1192 = vmatprep.mubr.bf16.mxu1 %v959_v33 }
 0x1b5   :  { %1193 = vmatmul.mubr.bf16.vlgmr.msra.gmra.mxu1 %v958_v35 }
 0x1b6   :  { %1502 = vmatpush3.bf16.msra.mxu1 %v1618_v34  ;;  %1517 = vmatprep.mubr.msk.bf16.mxu1 %vm1635_vm5, %v1631_v13 }
 0x1b7   :  { %1503 = vmatprep.subr.bf16.mxu1 %v1631_v13 }
 0x1ba   :  { %1504 = vmatpush3.bf16.msra.mxu1 %v1619_v36 }
 0x1bb   :  { %1505 = vmatprep.subr.bf16.mxu1 %v1631_v13 }
 0x1be   :  { %1506 = vmatpush3.bf16.msra.mxu1 %v1620_v37 }
 0x1bf   :  { %1507 = vmatprep.subr.bf16.mxu1 %v1631_v13 }
 0x1c2   :  { %1508 = vmatpush3.bf16.msra.mxu1 %v1621_v38 }
 0x1c3   :  { %1509 = vmatprep.subr.bf16.mxu1 %v1631_v13 }
 0x1c6   :  { %1510 = vmatpush3.bf16.msra.mxu1 %v1622_v39 }
 0x1c7   :  { %1511 = vmatprep.subr.bf16.mxu1 %v1631_v13 }
 0x1ca   :  { %1512 = vmatpush3.bf16.msra.mxu1 %v1623_v40 }
 0x1cb   :  { %1513 = vmatprep.subr.bf16.mxu1 %v1631_v13 }
 0x1ce   :  { %1514 = vmatpush3.bf16.msra.mxu1 %v1624_v41 }
 0x1cf   :  { %1515 = vmatprep.subr.bf16.mxu1 %v1631_v13 }
 0x1d2   :  { %1516 = vmatpush3.bf16.msra.mxu1 %v1625_v43 }
 0x1d5   :  { %1518 = vmatmul.mubr.bf16.vlgmr.msra.gmra.mxu1 %v960_v45 }
 0x275   :  { %v1486_v46 = vpop.f32.mrf.mxu1 }
 0x277   :  { %v1487_v47 = vpop.f32.mrf.mxu1 }
 0x278   :  { %v1488_v50 = vadd.f32 %v1487_v47, %v1486_v46 }
 0x279   :  { %v1489_v48 = vpop.f32.mrf.mxu1 }
 0x27a   :  { %v1195_v52 = vadd.f32 %v1488_v50, %v1332_v51 }
 0x27b   :  { %v1490_v49 = vpop.f32.mrf.mxu1 }
 0x295   :  { %v1234_v53 = vpop.f32.mrf.mxu1 }
 0x296   :  { %v1235_v55 = vadd.f32 %v1234_v53, %v1195_v52 }
 0x297   :  { %v1519_v56 = vpop.f32.mrf.mxu1 }
 0x298   :  { %v1241_v57 = vadd.f32 %v1240_v54, %v1235_v55 }
 0x299   :  { %v1237_v58 = vpop.f32.mrf.mxu1 }
 0x29a   :  { %v1357_v59 = vmul.f32 -1.442695, %v1241_v57 }
 0x29b   :  { %v1520_v60 = vpop.f32.mrf.mxu1 }
 0x29c   :  { %1626 = vpow2.f32 %v1357_v59 }
 0x2a9   :  { %v1627_v61 = vpop.eup %1626 }
 0x2aa   :  { %v1245_v62 = vadd.f32 1.0, %v1627_v61 }
 0x2ac   :  { %1628 = vrcp.f32 %v1245_v62 }
 0x2b9   :  { %v1629_v63 = vpop.eup %1628 }
 0x2ba   :  { %1249 = vst.msk [vmem:[%s2089_s6] sm:$0x3f] %vm1248_vm7, %v1629_v63 }

// kernel: loci_encoder_forward.13
= control target key start
LH: loop header
LB: loop body
LE: loop exit
PB: predicated region body
PF: predicated region fallthrough
CT: control target
= control target key end

     0   :  { %vm35_vm0 = vcmask 259200   ;;  %s123_s19 = smov 16   ;;  %s124_s20 = smov 112   ;;  %vm27_vm1 = vcmask 128000   ;;  %vm94_vm2 = vcmask 7168   ;;  %vm96_vm3 = vcmask 15360   ;;  %s171_s1 = inlined_call_operand.vmem [shape: f32[6,48], index: 1, kind: input, shape index: {}]   ;;  %s172_s2 = inlined_call_operand.vmem [shape: f32[1,16], index: 2, kind: input, shape index: {}]   ;;  %s173_s3 = inlined_call_operand.vmem [shape: f32[1,16], index: 3, kind: input, shape index: {}]   ;;  %s174_s0 = inlined_call_operand.<no memory space> [shape: f32[1,1], index: 0, kind: input, shape index: {}]   ;;  %s175_s4 = inlined_call_operand.vmem [shape: f32[6,4], index: 4, kind: output, shape index: {}]  }
   0x1   :  { %v18_v0 = vld [vmem:[%s171_s1] sm:$0x3f]  ;;  %v33_v32 = vstv %s174_s0  ;;  %vm98_vm4 = vcmask 23552   ;;  %vm100_vm5 = vcmask 29696  }
   0x2   :  { %v36_v1 = vsel %vm35_vm0, %v18_v0, -inf  ;;  %v108_v2 = vld [vmem:[%s172_s2] ss:$0 sm:$0xff]  ;;  %v106_v12 = vadd.f32 -10.0, %v18_v0  ;;  %s125_s2 = smov 96  }
   0x3   :  { %37 = vmax.xlane.f32.xlu0 %v36_v1  ;;  %57 = vrot.lane.b32.xlu1 %v108_v2, %s123_s19  ;;  %v109_v9 = vld [vmem:[%s173_s3] ss:$0 sm:$0xff] }
   0x4   :  { %v107_v13 = vmul.f32 -1.442695, %v106_v12 }
  0x75   :  { %v58_v10 = vpop.permute.xlu1 %57 }
  0x8c   :  { %v38_v3 = vpop.xlane.xlu0 %37 }
  0x8d   :  { %v39_v4 = vsub.f32 %v18_v0, %v38_v3 }
  0x8f   :  { %v40_v5 = vmul.f32 1.442695, %v39_v4 }
  0x91   :  { %113 = vpow2.f32 %v40_v5 }
  0x9e   :  { %v114_v6 = vpop.eup %113 }
  0x9f   :  { %43 = vrot.lane.b32.xlu0 %v114_v6, %s124_s20 }
 0x111   :  { %v44_v7 = vpop.permute.xlu0 %43 }
 0x112   :  { %v46_v8 = vsel %vm27_vm1, %v44_v7, 0.0 }
 0x113   :  { %47 = vadd.xlane.f32.xlu1 %v46_v8 }
 0x124   :  { %74 = vrot.lane.b32.xlu1 %v109_v9, %s123_s19 }
 0x19c   :  { %v48_v11 = vpop.xlane.xlu1 %47 }
 0x19d   :  { %115 = vrcp.f32 %v48_v11 }
 0x19e   :  { %117 = vtanh.f32 %v18_v0 }
 0x19f   :  { %119 = vpow2.f32 %v107_v13 }
 0x1a0   :  { %v75_v15 = vpop.permute.xlu1 %74 }
 0x1aa   :  { %v116_v14 = vpop.eup %115 }
 0x1ab   :  { %v50_v16 = vmul.f32 %v116_v14, %v114_v6  ;;  %v118_v19 = vpop.eup %117 }
 0x1ac   :  { %v120_v20 = vpop.eup %119 }
 0x1ad   :  { %v77_v17 = vmul.f32 %v75_v15, %v50_v16  ;;  %v60_v18 = vmul.f32 %v58_v10, %v50_v16  ;;  %v24_v21 = vadd.f32 1.0, %v120_v20 }
 0x1af   :  { %62 = vrot.lane.b32.xlu1 %v60_v18, %s124_s20  ;;  %79 = vrot.lane.b32.xlu0 %v77_v17, %s124_s20  ;;  %121 = vrcp.f32 %v24_v21 }
 0x1b3   :  { %87 = vrot.lane.b32.xlu1 %v118_v19, %s125_s2 }
 0x1bc   :  { %v122_v22 = vpop.eup %121 }
 0x1bd   :  { %v28_v23 = vsel %vm27_vm1, %v122_v22, 0.0 }
 0x1ce   :  { %29 = vadd.xlane.f32.xlu0 %v28_v23 }
 0x221   :  { %v80_v24 = vpop.permute.xlu0 %79  ;;  %v63_v25 = vpop.permute.xlu1 %62 }
 0x222   :  { %v65_v26 = vsel %vm27_vm1, %v63_v25, 0.0  ;;  %v82_v27 = vsel %vm27_vm1, %v80_v24, 0.0 }
 0x223   :  { %66 = vadd.xlane.f32.xlu1 %v65_v26  ;;  %83 = vadd.xlane.f32.xlu0 %v82_v27 }
 0x225   :  { %v88_v28 = vpop.permute.xlu1 %87 }
 0x226   :  { %v90_v29 = vsel %vm27_vm1, %v88_v28, 0.0 }
 0x227   :  { %91 = vadd.xlane.f32.xlu0 %v90_v29 }
 0x257   :  { %v30_v30 = vpop.xlane.xlu0 %29 }
 0x258   :  { %v32_v31 = vmul.f32 0.0625, %v30_v30 }
 0x25a   :  { %v34_v35 = vmul.f32 %v33_v32, %v32_v31 }
 0x2ac   :  { %v67_v33 = vpop.xlane.xlu1 %66  ;;  %v84_v34 = vpop.xlane.xlu0 %83 }
 0x2ad   :  { %v95_v36 = vsel %vm94_vm2, %v67_v33, %v84_v34 }
 0x2ae   :  { %v97_v39 = vsel %vm96_vm3, %v95_v36, %v34_v35 }
 0x2b0   :  { %v92_v37 = vpop.xlane.xlu0 %91 }
 0x2b1   :  { %v93_v38 = vmul.f32 0.0625, %v92_v37 }
 0x2b3   :  { %v99_v40 = vsel %vm98_vm4, %v97_v39, %v93_v38 }
 0x2b4   :  { %101 = vst.msk [vmem:[%s175_s4] sm:$0x3f] %vm100_vm5, %v99_v40 }

// kernel: loci_encoder_forward.12
= control target key start
LH: loop header
LB: loop body
LE: loop exit
PB: predicated region body
PF: predicated region fallthrough
CT: control target
= control target key end

     0   :  { %vm81_vm0 = vcmask 392192   ;;  %v7683_v3 = vmov 0.0   ;;  %s4965_s9 = smov 96   ;;  %s4966_s10 = smov 16   ;;  %vm1140_vm1 = vcmask 130048   ;;  %vm1168_vm2 = vcmask 523264   ;;  %s7675_s0 = inlined_call_operand.vmem [shape: f32[216,48], index: 0, kind: input, shape index: {}]   ;;  %s7676_s2 = inlined_call_operand.vmem [shape: bf16[432,3], index: 2, kind: input, shape index: {}]   ;;  %s7677_s1 = inlined_call_operand.vmem [shape: f32[216,1], index: 1, kind: input, shape index: {}]   ;;  %s7678_s3 = inlined_call_operand.vmem [shape: f32[1,3], index: 3, kind: input, shape index: {}]   ;;  %s7679_s4 = inlined_call_operand.vmem [shape: bf16[27,3], index: 4, kind: input, shape index: {}]   ;;  %s7680_s5 = inlined_call_operand.vmem [shape: f32[1,3], index: 5, kind: input, shape index: {}]   ;;  %s7681_s6 = inlined_call_operand.vmem [shape: f32[216,3], index: 6, kind: input, shape index: {}]   ;;  %s7682_s7 = inlined_call_operand.vmem [shape: f32[216,3], index: 7, kind: output, shape index: {}]  }
   0x1   :  { %v30_v0 = vld [vmem:[%s7675_s0 + $0x18] sm:$0xff]  ;;  %v31_v1 = vld [vmem:[%s7675_s0 + $0x20] sm:$0xff]  ;;  %v32_v2 = vld [vmem:[%s7675_s0 + $0x28] sm:$0xff]  ;;  %82 = vst.msk [vmem:[#allocation2] sm:$0xff] %vm81_vm0, %v7683_v3  ;;  %s4967_s23 = smov 64   ;;  %s4971_s19 = smov 32  }
   0x2   :  { %83 = vst.msk [vmem:[#allocation2 + $0xe0] sm:$0xff] %vm81_vm0, %v7683_v3  ;;  %v87_v4 = vmax.f32 %v30_v0, 0.0  ;;  %v88_v5 = vmax.f32 %v31_v1, 0.0  ;;  %v89_v6 = vmax.f32 %v32_v2, 0.0  ;;  %v27_v7 = vld [vmem:[%s7675_s0] sm:$0xff]  ;;  %v28_v8 = vld [vmem:[%s7675_s0 + $0x8] sm:$0xff] }
   0x3   :  { %v33_v9 = vld [vmem:[%s7675_s0 + $0x30] sm:$0xff]  ;;  %v84_v10 = vmax.f32 %v27_v7, 0.0  ;;  %v85_v11 = vmax.f32 %v28_v8, 0.0  ;;  %v34_v12 = vld [vmem:[%s7675_s0 + $0x38] sm:$0xff]  ;;  %v36_v15 = vld [vmem:[%s7675_s0 + $0x48] sm:$0xff]  ;;  %vm1112_vm3 = vcmask 785408  }
   0x4   :  { %v90_v13 = vmax.f32 %v33_v9, 0.0  ;;  %v29_v14 = vld [vmem:[%s7675_s0 + $0x10] sm:$0xff]  ;;  %114 = vst.msk [vmem:[#allocation2 + $0x20] sm:$0xff] %vm81_vm0, %v87_v4  ;;  %115 = vst.msk [vmem:[#allocation2 + $0x28] sm:$0xff] %vm81_vm0, %v88_v5  ;;  %v91_v16 = vmax.f32 %v34_v12, 0.0  ;;  %v38_v19 = vld [vmem:[%s7675_s0 + $0x58] sm:$0xff] }
   0x5   :  { %116 = vst.msk [vmem:[#allocation2 + $0x30] sm:$0xff] %vm81_vm0, %v89_v6  ;;  %v86_v17 = vmax.f32 %v29_v14, 0.0  ;;  %v37_v18 = vld [vmem:[%s7675_s0 + $0x50] sm:$0xff]  ;;  %v93_v20 = vmax.f32 %v36_v15, 0.0  ;;  %v35_v21 = vld [vmem:[%s7675_s0 + $0x40] sm:$0xff]  ;;  %111 = vst.msk [vmem:[#allocation2 + $0x8] sm:$0xff] %vm81_vm0, %v84_v10 }
   0x6   :  { %112 = vst.msk [vmem:[#allocation2 + $0x10] sm:$0xff] %vm81_vm0, %v85_v11  ;;  %117 = vst.msk [vmem:[#allocation2 + $0x38] sm:$0xff] %vm81_vm0, %v90_v13  ;;  %v94_v22 = vmax.f32 %v37_v18, 0.0  ;;  %v95_v23 = vmax.f32 %v38_v19, 0.0  ;;  %v92_v24 = vmax.f32 %v35_v21, 0.0  ;;  %v40_v25 = vld [vmem:[%s7675_s0 + $0x68] sm:$0xff] }
   0x7   :  { %v41_v26 = vld [vmem:[%s7675_s0 + $0x70] sm:$0xff]  ;;  %v42_v27 = vld [vmem:[%s7675_s0 + $0x78] sm:$0xff]  ;;  %118 = vst.msk [vmem:[#allocation2 + $0x40] sm:$0xff] %vm81_vm0, %v91_v16  ;;  %113 = vst.msk [vmem:[#allocation2 + $0x18] sm:$0xff] %vm81_vm0, %v86_v17  ;;  %v97_v28 = vmax.f32 %v40_v25, 0.0  ;;  %vm1196_vm4 = vcmask 916480  }
   0x8   :  { %120 = vst.msk [vmem:[#allocation2 + $0x50] sm:$0xff] %vm81_vm0, %v93_v20  ;;  %v98_v29 = vmax.f32 %v41_v26, 0.0  ;;  %v99_v30 = vmax.f32 %v42_v27, 0.0  ;;  %v39_v31 = vld [vmem:[%s7675_s0 + $0x60] sm:$0xff]  ;;  %v44_v32 = vld [vmem:[%s7675_s0 + $0x88] sm:$0xff]  ;;  %v45_v33 = vld [vmem:[%s7675_s0 + $0x90] sm:$0xff] }
   0x9   :  { %121 = vst.msk [vmem:[#allocation2 + $0x58] sm:$0xff] %vm81_vm0, %v94_v22  ;;  %122 = vst.msk [vmem:[#allocation2 + $0x60] sm:$0xff] %vm81_vm0, %v95_v23  ;;  %v96_v34 = vmax.f32 %v39_v31, 0.0  ;;  %v46_v35 = vld [vmem:[%s7675_s0 + $0x98] sm:$0xff]  ;;  %v101_v36 = vmax.f32 %v44_v32, 0.0  ;;  %v102_v37 = vmax.f32 %v45_v33, 0.0 }
   0xa   :  { %119 = vst.msk [vmem:[#allocation2 + $0x48] sm:$0xff] %vm81_vm0, %v92_v24  ;;  %v43_v38 = vld [vmem:[%s7675_s0 + $0x80] sm:$0xff]  ;;  %v48_v39 = vld [vmem:[%s7675_s0 + $0xa8] sm:$0xff]  ;;  %124 = vst.msk [vmem:[#allocation2 + $0x70] sm:$0xff] %vm81_vm0, %v97_v28  ;;  %v103_v40 = vmax.f32 %v46_v35, 0.0  ;;  %vm1224_vm5 = vcmask 261120  }
   0xb   :  { %125 = vst.msk [vmem:[#allocation2 + $0x78] sm:$0xff] %vm81_vm0, %v98_v29  ;;  %126 = vst.msk [vmem:[#allocation2 + $0x80] sm:$0xff] %vm81_vm0, %v99_v30  ;;  %v100_v41 = vmax.f32 %v43_v38, 0.0  ;;  %v49_v42 = vld [vmem:[%s7675_s0 + $0xb0] sm:$0xff]  ;;  %v50_v43 = vld [vmem:[%s7675_s0 + $0xb8] sm:$0xff]  ;;  %v105_v44 = vmax.f32 %v48_v39, 0.0 }
   0xc   :  { %v47_v45 = vld [vmem:[%s7675_s0 + $0xa0] sm:$0xff]  ;;  %123 = vst.msk [vmem:[#allocation2 + $0x68] sm:$0xff] %vm81_vm0, %v96_v34  ;;  %128 = vst.msk [vmem:[#allocation2 + $0x90] sm:$0xff] %vm81_vm0, %v101_v36  ;;  %v106_v46 = vmax.f32 %v49_v42, 0.0  ;;  %v107_v47 = vmax.f32 %v50_v43, 0.0  ;;  %v52_v49 = vld [vmem:[%s7675_s0 + $0xc8] sm:$0xff] }
   0xd   :  { %129 = vst.msk [vmem:[#allocation2 + $0x98] sm:$0xff] %vm81_vm0, %v102_v37  ;;  %v104_v48 = vmax.f32 %v47_v45, 0.0  ;;  %v53_v50 = vld [vmem:[%s7675_s0 + $0xd0] sm:$0xff]  ;;  %v51_v51 = vld [vmem:[%s7675_s0 + $0xc0] sm:$0xff]  ;;  %130 = vst.msk [vmem:[#allocation2 + $0xa0] sm:$0xff] %vm81_vm0, %v103_v40  ;;  %v109_v52 = vmax.f32 %v52_v49, 0.0 }
   0xe   :  { %127 = vst.msk [vmem:[#allocation2 + $0x88] sm:$0xff] %vm81_vm0, %v100_v41  ;;  %132 = vst.msk [vmem:[#allocation2 + $0xb0] sm:$0xff] %vm81_vm0, %v105_v44  ;;  %v110_v53 = vmax.f32 %v53_v50, 0.0  ;;  %v108_v54 = vmax.f32 %v51_v51, 0.0  ;;  %v169_v55 = vld [vmem:[#allocation2 + $0x22] sm:$0xff]  ;;  %v170_v56 = vld [vmem:[#allocation2 + $0x2a] sm:$0xff] }
   0xf   :  { %133 = vst.msk [vmem:[#allocation2 + $0xb8] sm:$0xff] %vm81_vm0, %v106_v46  ;;  %134 = vst.msk [vmem:[#allocation2 + $0xc0] sm:$0xff] %vm81_vm0, %v107_v47  ;;  %v3941_v57 = vpack.i.bf16 %v170_v56, %v169_v55  ;;  %v165_v58 = vld [vmem:[#allocation2 + $0x2] sm:$0xff]  ;;  %v166_v59 = vld [vmem:[#allocation2 + $0xa] sm:$0xff]  ;;  %s4964_s0 = smov 48   ;;  %vm1252_vm6 = vcmask 654336  }
  0x10   :  { %131 = vst.msk [vmem:[#allocation2 + $0xa8] sm:$0xff] %vm81_vm0, %v104_v48  ;;  %v171_v60 = vld [vmem:[#allocation2 + $0x32] sm:$0xff]  ;;  %136 = vst.msk [vmem:[#allocation2 + $0xd0] sm:$0xff] %vm81_vm0, %v109_v52  ;;  %v3931_v61 = vpack.i.bf16 %v166_v59, %v165_v58  ;;  %v172_v62 = vld [vmem:[#allocation2 + $0x3a] sm:$0xff]  ;;  %vm2078_vm7 = vcmask 23552   ;;  %s4973_s26 = smov 6  }
  0x11   :  { %137 = vst.msk [vmem:[#allocation2 + $0xd8] sm:$0xff] %vm81_vm0, %v110_v53  ;;  %135 = vst.msk [vmem:[#allocation2 + $0xc8] sm:$0xff] %vm81_vm0, %v108_v54  ;;  %v167_v63 = vld [vmem:[#allocation2 + $0x12] sm:$0xff]  ;;  %v168_v0 = vld [vmem:[#allocation2 + $0x1a] sm:$0xff]  ;;  %3942 = vrot.lane.b32.xlu1 %v3941_v57, %s4964_s0  ;;  %v3946_v1 = vpack.i.bf16 %v172_v62, %v171_v60  ;;  %s4974_s27 = smov 9   ;;  %s4975_s28 = smov 12  }
  0x12   :  { %3932 = vrot.lane.b32.xlu0 %v3931_v61, %s4964_s0  ;;  %v3936_v2 = vpack.i.bf16 %v168_v0, %v167_v63  ;;  %v175_v4 = vld [vmem:[#allocation2 + $0x52] sm:$0xff]  ;;  %v176_v5 = vld [vmem:[#allocation2 + $0x5a] sm:$0xff]  ;;  %v173_v6 = vld [vmem:[#allocation2 + $0x42] sm:$0xff]  ;;  %s4976_s29 = smov 15   ;;  %vm3439_vm8 = vcmask 1044480   ;;  %s4977_s30 = smov 18  }
  0x13   :  { %v174_v7 = vld [vmem:[#allocation2 + $0x4a] sm:$0xff]  ;;  %v3956_v8 = vpack.i.bf16 %v176_v5, %v175_v4  ;;  %v179_v10 = vld [vmem:[#allocation2 + $0x72] sm:$0xff]  ;;  %v180_v11 = vld [vmem:[#allocation2 + $0x7a] sm:$0xff]  ;;  %vm3440_vm9 = vcmask 1045504   ;;  %s4980_s11 = smov 24   ;;  %vm3164_vm10 = vcmask 48128  }
  0x14   :  { %v3951_v9 = vpack.i.bf16 %v174_v7, %v173_v6  ;;  %v177_v12 = vld [vmem:[#allocation2 + $0x62] sm:$0xff]  ;;  %v178_v13 = vld [vmem:[#allocation2 + $0x6a] sm:$0xff]  ;;  %v3966_v14 = vpack.i.bf16 %v180_v11, %v179_v10  ;;  %v183_v16 = vld [vmem:[#allocation2 + $0x92] sm:$0xff]  ;;  %vm3192_vm11 = vcmask 72704   ;;  %vm3220_vm12 = vcmask 97280  }
  0x15   :  { %3947 = vrot.lane.b32.xlu1 %v3946_v1, %s4964_s0  ;;  %v3961_v15 = vpack.i.bf16 %v178_v13, %v177_v12  ;;  %v184_v17 = vld [vmem:[#allocation2 + $0x9a] sm:$0xff]  ;;  %v181_v18 = vld [vmem:[#allocation2 + $0x82] sm:$0xff]  ;;  %v182_v19 = vld [vmem:[#allocation2 + $0x8a] sm:$0xff]  ;;  %vm3248_vm13 = vcmask 121856   ;;  %vm3276_vm14 = vcmask 146432   ;;  %vm3304_vm15 = vcmask 171008  }
  0x16   :  { %3937 = vrot.lane.b32.xlu0 %v3936_v2, %s4964_s0  ;;  %v3976_v20 = vpack.i.bf16 %v184_v17, %v183_v16  ;;  %v3971_v21 = vpack.i.bf16 %v182_v19, %v181_v18  ;;  %v187_v22 = vld [vmem:[#allocation2 + $0xb2] sm:$0xff]  ;;  %v188_v23 = vld [vmem:[#allocation2 + $0xba] sm:$0xff]  ;;  %v5149_v33 = vld [vmem:[#allocation2 + $0x27] sm:$0xff] }
  0x17   :  { %v185_v24 = vld [vmem:[#allocation2 + $0xa2] sm:$0xff]  ;;  %v186_v25 = vld [vmem:[#allocation2 + $0xaa] sm:$0xff]  ;;  %v3986_v26 = vpack.i.bf16 %v188_v23, %v187_v22  ;;  %v5144_v30 = vld [vmem:[#allocation2 + $0x37] sm:$0xff] }
  0x18   :  { %v189_v27 = vld [vmem:[#allocation2 + $0xc2] sm:$0xff]  ;;  %v190_v28 = vld [vmem:[#allocation2 + $0xca] sm:$0xff]  ;;  %7756 = vst [vmem:[#allocation4_spill] sm:$0xff] %v5144_v30  ;;  %v3981_v32 = vpack.i.bf16 %v186_v25, %v185_v24  ;;  %v5153_v35 = vld [vmem:[#allocation2 + $0x57] sm:$0xff] }
  0x19   :  { %3957 = vrot.lane.b32.xlu1 %v3956_v8, %s4964_s0  ;;  %v5142_v29 = vld [vmem:[#allocation2 + $0x1f] sm:$0xff]  ;;  %v5151_v34 = vld [vmem:[#allocation2 + $0x2f] sm:$0xff]  ;;  %7759 = vst [vmem:[#allocation7_spill] sm:$0xff] %v5153_v35  ;;  %v5161_v39 = vld [vmem:[#allocation2 + $0x47] sm:$0xff]  ;;  %v3991_v55 = vpack.i.bf16 %v190_v28, %v189_v27 }
  0x1a   :  { %3952 = vrot.lane.b32.xlu0 %v3951_v9, %s4964_s0  ;;  %v5146_v31 = vld [vmem:[#allocation2 + $0x3f] sm:$0xff]  ;;  %7758 = vst [vmem:[#allocation6_spill] sm:$0xff] %v5151_v34  ;;  %7761 = vst [vmem:[#allocation9_spill] sm:$0xff] %v5161_v39  ;;  %v5163_v40 = vld [vmem:[#allocation2 + $0x4f] sm:$0xff] }
  0x1b   :  { %7757 = vst [vmem:[#allocation5_spill] sm:$0xff] %v5146_v31  ;;  %v5159_v38 = vld [vmem:[#allocation2 + $0x5f] sm:$0xff]  ;;  %7762 = vst [vmem:[#allocation10_spill] sm:$0xff] %v5163_v40  ;;  %v191_v41 = vld [vmem:[#allocation2 + $0xd2] sm:$0xff] }
  0x1c   :  { %7760 = vst [vmem:[#allocation8_spill] sm:$0xff] %v5159_v38  ;;  %v194_v42 = vld [vmem:[#allocation2 + $0x13] sm:$0xff]  ;;  %v195_v43 = vld [vmem:[#allocation2 + $0x1b] sm:$0xff]  ;;  %v5173_v48 = vld [vmem:[#allocation2 + $0x67] sm:$0xff] }
  0x1d   :  { %3967 = vrot.lane.b32.xlu1 %v3966_v14, %s4964_s0  ;;  %v5169_v46 = vld [vmem:[#allocation2 + $0x77] sm:$0xff]  ;;  %v5171_v47 = vld [vmem:[#allocation2 + $0x7f] sm:$0xff]  ;;  %7765 = vst [vmem:[#allocation13_spill] sm:$0xff] %v5173_v48  ;;  %v193_v50 = vld [vmem:[#allocation2 + $0xb] sm:$0xff]  ;;  %v4001_v7 = vpack.i.bf16 %v195_v43, %v194_v42 }
  0x1e   :  { %3962 = vrot.lane.b32.xlu0 %v3961_v15, %s4964_s0  ;;  %7763 = vst [vmem:[#allocation11_spill] sm:$0xff] %v5169_v46  ;;  %7764 = vst [vmem:[#allocation12_spill] sm:$0xff] %v5171_v47  ;;  %v192_v49 = vld [vmem:[#allocation2 + $0x3] sm:$0xff]  ;;  %v5176_v51 = vld [vmem:[#allocation2 + $0x6f] sm:$0xff] }
  0x1f   :  { %7766 = vst [vmem:[#allocation14_spill] sm:$0xff] %v5176_v51  ;;  %v5180_v53 = vld [vmem:[#allocation2 + $0x97] sm:$0xff]  ;;  %v5182_v54 = vld [vmem:[#allocation2 + $0x9f] sm:$0xff]  ;;  %v5187_v57 = vld [vmem:[#allocation2 + $0x87] sm:$0xff]  ;;  %v3996_v10 = vpack.i.bf16 %v193_v50, %v192_v49 }
  0x20   :  { %7767 = vst [vmem:[#allocation15_spill] sm:$0xff] %v5180_v53  ;;  %7768 = vst [vmem:[#allocation16_spill] sm:$0xff] %v5182_v54  ;;  %v5189_v58 = vld [vmem:[#allocation2 + $0x8f] sm:$0xff]  ;;  %v5191_v59 = vld [vmem:[#allocation2 + $0xb7] sm:$0xff] }
  0x21   :  { %3977 = vrot.lane.b32.xlu1 %v3976_v20, %s4964_s0  ;;  %7769 = vst [vmem:[#allocation17_spill] sm:$0xff] %v5187_v57  ;;  %7770 = vst [vmem:[#allocation18_spill] sm:$0xff] %v5189_v58  ;;  %v5197_v62 = vld [vmem:[#allocation2 + $0xbf] sm:$0xff]  ;;  %v5199_v63 = vld [vmem:[#allocation2 + $0xa7] sm:$0xff] }
  0x22   :  { %3972 = vrot.lane.b32.xlu0 %v3971_v21, %s4964_s0  ;;  %7771 = vst [vmem:[#allocation19_spill] sm:$0xff] %v5191_v59  ;;  %7772 = vst [vmem:[#allocation20_spill] sm:$0xff] %v5197_v62  ;;  %v5201_v0 = vld [vmem:[#allocation2 + $0xaf] sm:$0xff]  ;;  %v5209_v5 = vld [vmem:[#allocation2 + $0xd7] sm:$0xff] }
  0x23   :  { %7773 = vst [vmem:[#allocation21_spill] sm:$0xff] %v5199_v63  ;;  %7774 = vst [vmem:[#allocation22_spill] sm:$0xff] %v5201_v0  ;;  %v5207_v4 = vld [vmem:[#allocation2 + $0xcf] sm:$0xff]  ;;  %v5211_v6 = vld [vmem:[#allocation2 + $0xc7] sm:$0xff] }
  0x24   :  { %7775 = vst [vmem:[#allocation23_spill] sm:$0xff] %v5207_v4  ;;  %7776 = vst [vmem:[#allocation24_spill] sm:$0xff] %v5209_v5  ;;  %v198_v11 = vld [vmem:[#allocation2 + $0x33] sm:$0xff]  ;;  %v199_v12 = vld [vmem:[#allocation2 + $0x3b] sm:$0xff] }
  0x25   :  { %3987 = vrot.lane.b32.xlu1 %v3986_v26, %s4964_s0  ;;  %7777 = vst [vmem:[#allocation25_spill] sm:$0xff] %v5211_v6  ;;  %v196_v13 = vld [vmem:[#allocation2 + $0x23] sm:$0xff]  ;;  %v197_v14 = vld [vmem:[#allocation2 + $0x2b] sm:$0xff]  ;;  %v4011_v15 = vpack.i.bf16 %v199_v12, %v198_v11  ;;  %v202_v17 = vld [vmem:[#allocation2 + $0x53] sm:$0xff] }
  0x26   :  { %3982 = vrot.lane.b32.xlu0 %v3981_v32, %s4964_s0  ;;  %v4006_v16 = vpack.i.bf16 %v197_v14, %v196_v13  ;;  %v203_v18 = vld [vmem:[#allocation2 + $0x5b] sm:$0xff]  ;;  %v200_v19 = vld [vmem:[#allocation2 + $0x43] sm:$0xff]  ;;  %v201_v20 = vld [vmem:[#allocation2 + $0x4b] sm:$0xff] }
  0x27   :  { %v4021_v21 = vpack.i.bf16 %v203_v18, %v202_v17  ;;  %v4016_v22 = vpack.i.bf16 %v201_v20, %v200_v19  ;;  %v206_v23 = vld [vmem:[#allocation2 + $0x73] sm:$0xff]  ;;  %v207_v24 = vld [vmem:[#allocation2 + $0x7b] sm:$0xff]  ;;  %v204_v25 = vld [vmem:[#allocation2 + $0x63] sm:$0xff] }
  0x28   :  { %v205_v26 = vld [vmem:[#allocation2 + $0x6b] sm:$0xff]  ;;  %v4031_v27 = vpack.i.bf16 %v207_v24, %v206_v23  ;;  %v210_v32 = vld [vmem:[#allocation2 + $0x93] sm:$0xff]  ;;  %v208_v42 = vld [vmem:[#allocation2 + $0x83] sm:$0xff]  ;;  %v4076_v23 = vpack.i.bf16 %v5146_v31, %v5144_v30  ;;  %v4071_v24 = vpack.i.bf16 %v5151_v34, %v5149_v33 }
  0x29   :  { %408 = vrot.lane.b32.xlu1 %v191_v41, %s4964_s0  ;;  %v4026_v28 = vpack.i.bf16 %v205_v26, %v204_v25  ;;  %v211_v41 = vld [vmem:[#allocation2 + $0x9b] sm:$0xff]  ;;  %v209_v43 = vld [vmem:[#allocation2 + $0x8b] sm:$0xff]  ;;  %v216_v14 = vld [vmem:[#allocation2 + $0xc3] sm:$0xff]  ;;  %v4086_v25 = vpack.i.bf16 %v5159_v38, %v5153_v35  ;;  %v4081_v26 = vpack.i.bf16 %v5163_v40, %v5161_v39 }
  0x2a   :  { %3992 = vrot.lane.b32.xlu0 %v3991_v55, %s4964_s0  ;;  %v4041_v49 = vpack.i.bf16 %v211_v41, %v210_v32  ;;  %v4036_v50 = vpack.i.bf16 %v209_v43, %v208_v42  ;;  %v214_v55 = vld [vmem:[#allocation2 + $0xb3] sm:$0xff]  ;;  %v213_v11 = vld [vmem:[#allocation2 + $0xab] sm:$0xff]  ;;  %v4106_v32 = vpack.i.bf16 %v5182_v54, %v5180_v53  ;;  %v4101_v41 = vpack.i.bf16 %v5189_v58, %v5187_v57  ;;  %v315_v54 = vld [vmem:[#allocation2 + $0x7e] sm:$0xff] }
  0x2b   :  { %v5231_v18 = vld [vmem:[#allocation2 + $0x17] sm:$0xff]  ;;  %v219_v19 = vld [vmem:[#allocation2 + $0x7] sm:$0xff]  ;;  %v5233_v20 = vld [vmem:[#allocation2 + $0xf] sm:$0xff]  ;;  %v4116_v42 = vpack.i.bf16 %v5197_v62, %v5191_v59 }
  0x2c   :  { %v4908_v43 = vld [vmem:[%s7676_s2 + $0x78] sm:$0xff]   ;;  %v155_v1 = vld [vmem:[#allocation2 + $0x89] sm:$0xff] }
  0x2d   :  { %4002 = vrot.lane.b32.xlu1 %v4001_v7, %s4965_s9  ;;  %v215_v7 = vld [vmem:[#allocation2 + $0xbb] sm:$0xff]  ;;  %3761 = vmatprep.subr.bf16.mxu0 %v4908_v43  ;;  %v152_v8 = vld [vmem:[#allocation2 + $0x71] sm:$0xff]  ;;  %v63_v31 = vld [vmem:[%s7677_s1 + $0x48] sm:$0xff] }
  0x2e   :  { %3997 = vrot.lane.b32.xlu0 %v3996_v10, %s4965_s9  ;;  %v212_v10 = vld [vmem:[#allocation2 + $0xa3] sm:$0xff]  ;;  %v4051_v12 = vpack.i.bf16 %v215_v7, %v214_v55  ;;  %v248_v55 = vld [vmem:[#allocation2 + $0x18] sm:$0xff]  ;;  %v313_v59 = vld [vmem:[#allocation2 + $0x6e] sm:$0xff] }
  0x2f   :  { %v4046_v13 = vpack.i.bf16 %v213_v11, %v212_v10  ;;  %v249_v7 = vld [vmem:[#allocation2 + $0x20] sm:$0xff]  ;;  %v246_v10 = vld [vmem:[#allocation2 + $0x8] sm:$0xff]  ;;  %v247_v11 = vld [vmem:[#allocation2 + $0x10] sm:$0xff] }
  0x30   :  { %v156_v3 = vld [vmem:[#allocation2 + $0x91] sm:$0xff]  ;;  %v319_v53 = vld [vmem:[#allocation2 + $0x9e] sm:$0xff] }
  0x31   :  { %4012 = vrot.lane.b32.xlu1 %v4011_v15, %s4965_s9  ;;  %v217_v15 = vld [vmem:[#allocation2 + $0xcb] sm:$0xff] }
  0x32   :  { %4007 = vrot.lane.b32.xlu0 %v4006_v16, %s4965_s9  ;;  %v218_v16 = vld [vmem:[#allocation2 + $0xd3] sm:$0xff]  ;;  %v4056_v17 = vpack.i.bf16 %v217_v15, %v216_v14  ;;  %v4121_v14 = vpack.i.bf16 %v5207_v4, %v5211_v6  ;;  %v311_v6 = vld [vmem:[#allocation2 + $0x5e] sm:$0xff] }
  0x33   :  { %v252_v15 = vld [vmem:[#allocation2 + $0x38] sm:$0xff] }
  0x34   :  { %v160_v60 = vld [vmem:[#allocation2 + $0xb1] sm:$0xff] }
  0x35   :  { %4022 = vrot.lane.b32.xlu1 %v4021_v21, %s4965_s9  ;;  %v4066_v21 = vpack.i.bf16 %v5142_v29, %v5231_v18 }
  0x36   :  { %4017 = vrot.lane.b32.xlu0 %v4016_v22, %s4965_s9  ;;  %v4061_v22 = vpack.i.bf16 %v5233_v20, %v219_v19  ;;  %v250_v19 = vld [vmem:[#allocation2 + $0x28] sm:$0xff] }
  0x39   :  { %4032 = vrot.lane.b32.xlu1 %v4031_v27, %s4965_s9  ;;  %v4096_v27 = vpack.i.bf16 %v5171_v47, %v5169_v46  ;;  %v321_v47 = vld [vmem:[#allocation2 + $0xae] sm:$0xff] }
  0x3a   :  { %4027 = vrot.lane.b32.xlu0 %v4026_v28, %s4965_s9  ;;  %v4091_v28 = vpack.i.bf16 %v5176_v51, %v5173_v48  ;;  %v323_v51 = vld [vmem:[#allocation2 + $0xbe] sm:$0xff] }
  0x3d   :  { %4042 = vrot.lane.b32.xlu1 %v4041_v49, %s4965_s9  ;;  %v4111_v49 = vpack.i.bf16 %v5201_v0, %v5199_v63 }
  0x3e   :  { %4037 = vrot.lane.b32.xlu0 %v4036_v50, %s4965_s9  ;;  %v4909_v50 = vld [vmem:[%s7676_s2 + $0x38] sm:$0xff]  }
  0x3f   :  { %3762 = vmatpush3.bf16.msra.mxu0 %v4909_v50  ;;  %v261_v50 = vld [vmem:[#allocation2 + $0x80] sm:$0xff] }
  0x41   :  { %4052 = vrot.lane.b32.xlu1 %v4051_v12, %s4965_s9  ;;  %v4910_v12 = vld [vmem:[%s7676_s2 + $0x70] sm:$0xff]  }
  0x42   :  { %4047 = vrot.lane.b32.xlu0 %v4046_v13, %s4965_s9  ;;  %v4911_v13 = vld [vmem:[%s7676_s2 + $0x30] sm:$0xff]   ;;  %3763 = vmatprep.subr.bf16.mxu0 %v4910_v12  ;;  %v4917_v12 = vld [vmem:[%s7676_s2 + $0x18] sm:$0xff]  }
  0x43   :  { %3764 = vmatpush3.bf16.msra.mxu0 %v4911_v13  ;;  %v4918_v13 = vld [vmem:[%s7676_s2 + $0xb8] sm:$0xff]  }
  0x45   :  { %516 = vrot.lane.b32.xlu1 %v218_v16, %s4965_s9  ;;  %v253_v16 = vld [vmem:[#allocation2 + $0x40] sm:$0xff] }
  0x46   :  { %4057 = vrot.lane.b32.xlu0 %v4056_v17, %s4965_s9  ;;  %v4131_v17 = vpack.i.bf16 %v249_v7, %v248_v55  ;;  %v258_v7 = vld [vmem:[#allocation2 + $0x68] sm:$0xff]  ;;  %s4969_s9 = smov 112  }
  0x49   :  { %4067 = vrot.lane.b32.xlu1 %v4066_v21, %s4966_s10  ;;  %v251_v21 = vld [vmem:[#allocation2 + $0x30] sm:$0xff] }
  0x4a   :  { %4062 = vrot.lane.b32.xlu0 %v4061_v22, %s4966_s10  ;;  %v4912_v22 = vld [vmem:[%s7676_s2 + $0x68] sm:$0xff]   ;;  %v4136_v43 = vpack.i.bf16 %v251_v21, %v250_v19 }
  0x4b   :  { %3765 = vmatprep.subr.bf16.mxu0 %v4912_v22  ;;  %v262_v21 = vld [vmem:[#allocation2 + $0x88] sm:$0xff]  ;;  %v4919_v22 = vld [vmem:[%s7676_s2 + $0x50] sm:$0xff]  }
  0x4d   :  { %4077 = vrot.lane.b32.xlu1 %v4076_v23, %s4966_s10  ;;  %v4913_v23 = vld [vmem:[%s7676_s2 + $0x28] sm:$0xff]  }
  0x4e   :  { %4072 = vrot.lane.b32.xlu0 %v4071_v24, %s4966_s10  ;;  %v4126_v24 = vpack.i.bf16 %v247_v11, %v246_v10  ;;  %3766 = vmatpush3.bf16.msra.mxu0 %v4913_v23  ;;  %v259_v10 = vld [vmem:[#allocation2 + $0x70] sm:$0xff]  ;;  %v4916_v11 = vld [vmem:[%s7676_s2 + $0x58] sm:$0xff]  }
  0x4f   :  { %v4920_v23 = vld [vmem:[%s7676_s2 + $0x10] sm:$0xff]  }
  0x51   :  { %4087 = vrot.lane.b32.xlu1 %v4086_v25, %s4966_s10  ;;  %v256_v25 = vld [vmem:[#allocation2 + $0x58] sm:$0xff] }
  0x52   :  { %4082 = vrot.lane.b32.xlu0 %v4081_v26, %s4966_s10  ;;  %v257_v26 = vld [vmem:[#allocation2 + $0x60] sm:$0xff] }
  0x53   :  { %v4151_v55 = vpack.i.bf16 %v257_v26, %v256_v25  ;;  %v4156_v25 = vpack.i.bf16 %v259_v10, %v258_v7  ;;  %v263_v26 = vld [vmem:[#allocation2 + $0x90] sm:$0xff]  ;;  %v4925_v10 = vld [vmem:[%s7676_s2 + $0x40] sm:$0xff]  }
  0x55   :  { %4097 = vrot.lane.b32.xlu1 %v4096_v27, %s4966_s10  ;;  %v4141_v27 = vpack.i.bf16 %v253_v16, %v252_v15  ;;  %v4968_v15 = vmov 0   ;;  %v264_v16 = vld [vmem:[#allocation2 + $0x98] sm:$0xff] }
  0x56   :  { %4092 = vrot.lane.b32.xlu0 %v4091_v28, %s4966_s10  ;;  %v254_v28 = vld [vmem:[#allocation2 + $0x48] sm:$0xff]  ;;  %1745 = vmatprep.subr.bf16.mxu1 %v4968_v15 }
  0x57   :  { %1746 = vmatpush1.bf16.msra.mxu1 %v4918_v13  ;;  %4386 = vset.pattern.permute.xlu0 %v4968_v15 }
  0x58   :  { %1747 = vmatprep.subr.bf16.mxu1 %v4968_v15  ;;  %4387 = vset.pattern.permute.xlu1 %v4968_v15 }
  0x59   :  { %4107 = vrot.lane.b32.xlu1 %v4106_v32, %s4966_s10  ;;  %v255_v32 = vld [vmem:[#allocation2 + $0x50] sm:$0xff] }
  0x5a   :  { %4102 = vrot.lane.b32.xlu0 %v4101_v41, %s4966_s10  ;;  %v4914_v41 = vld [vmem:[%s7676_s2 + $0x60] sm:$0xff]  }
  0x5b   :  { %3767 = vmatprep.subr.bf16.mxu0 %v4914_v41  ;;  %v4924_v41 = vld [vmem:[%s7676_s2 + $0xa8] sm:$0xff]  }
  0x5d   :  { %4117 = vrot.lane.b32.xlu1 %v4116_v42, %s4966_s10  ;;  %v4915_v42 = vld [vmem:[%s7676_s2 + $0x20] sm:$0xff]  }
  0x5e   :  { %4112 = vrot.lane.b32.xlu0 %v4111_v49, %s4966_s10  ;;  %v260_v49 = vld [vmem:[#allocation2 + $0x78] sm:$0xff]  ;;  %3768 = vmatpush3.bf16.msra.mxu0 %v4915_v42  ;;  %v4166_v42 = vpack.i.bf16 %v263_v26, %v262_v21 }
  0x5f   :  { %3769 = vmatprep.subr.bf16.mxu0 %v4916_v11  ;;  %v4161_v19 = vpack.i.bf16 %v261_v50, %v260_v49  ;;  %v269_v49 = vld [vmem:[#allocation2 + $0xc0] sm:$0xff]  ;;  %v266_v50 = vld [vmem:[#allocation2 + $0xa8] sm:$0xff] }
  0x60   :  { %v4926_v11 = vld [vmem:[%s7676_s2] sm:$0xff]  }
  0x61   :  { %624 = vrot.lane.b32.xlu1 %v5209_v5, %s4966_s10  ;;  %v5356_v21 = vld [vmem:[#allocation2 + $0x19] sm:$0xff]  ;;  %v309_v5 = vld [vmem:[#allocation2 + $0x4e] sm:$0xff] }
  0x62   :  { %4122 = vrot.lane.b32.xlu0 %v4121_v14, %s4966_s10  ;;  %v4146_v14 = vpack.i.bf16 %v255_v32, %v254_v28  ;;  %3770 = vmatpush3.bf16.msra.mxu0 %v4917_v12  ;;  %v4922_v28 = vld [vmem:[%s7676_s2 + $0x48] sm:$0xff]   ;;  %v4927_v12 = vld [vmem:[%s7676_s2 + $0xa0] sm:$0xff]  }
  0x63   :  { %3771 = vmatprep.subr.bf16.mxu0 %v4919_v22  ;;  %v4923_v32 = vld [vmem:[%s7676_s2 + $0x8] sm:$0xff]  }
  0x64   :  { %v5358_v22 = vld [vmem:[#allocation2 + $0x21] sm:$0xff] }
  0x65   :  { %4132 = vrot.lane.b32.xlu1 %v4131_v17, %s4967_s23  ;;  %v265_v17 = vld [vmem:[#allocation2 + $0xa0] sm:$0xff]  ;;  %v4196_v26 = vpack.i.bf16 %v5358_v22, %v5356_v21 }
  0x66   :  { %4127 = vrot.lane.b32.xlu0 %v4126_v24, %s4967_s23  ;;  %v4921_v24 = vld [vmem:[%s7676_s2 + $0xb0] sm:$0xff]   ;;  %3772 = vmatpush3.bf16.msra.mxu0 %v4920_v23  ;;  %v4928_v23 = vld [vmem:[%s7676_s2 + $0x98] sm:$0xff]  }
  0x67   :  { %1748 = vmatpush1.bf16.msra.mxu1 %v4921_v24  ;;  %3773 = vmatprep.subr.bf16.mxu0 %v4922_v28  ;;  %v5363_v24 = vld [vmem:[#allocation2 + $0x9] sm:$0xff] }
  0x68   :  { %1749 = vmatprep.subr.bf16.mxu1 %v4968_v15 }
  0x69   :  { %4142 = vrot.lane.b32.xlu1 %v4141_v27, %s4967_s23  ;;  %v4171_v27 = vpack.i.bf16 %v265_v17, %v264_v16  ;;  %v271_v16 = vld [vmem:[#allocation2 + $0xd0] sm:$0xff]  ;;  %v272_v17 = vld [vmem:[#allocation2 + $0xd8] sm:$0xff] }
  0x6a   :  { %4137 = vrot.lane.b32.xlu0 %v4136_v43, %s4967_s23  ;;  %v268_v43 = vld [vmem:[#allocation2 + $0xb8] sm:$0xff]  ;;  %3774 = vmatpush3.bf16.msra.mxu0 %v4923_v32 }
  0x6b   :  { %1750 = vmatpush1.bf16.msra.mxu1 %v4924_v41  ;;  %v4181_v7 = vpack.i.bf16 %v269_v49, %v268_v43  ;;  %3775 = vmatprep.subr.bf16.mxu0 %v4925_v10  ;;  %v5377_v32 = vld [vmem:[#allocation2 + $0x39] sm:$0xff]  ;;  %v5379_v41 = vld [vmem:[#allocation2 + $0x41] sm:$0xff]  ;;  %v5383_v43 = vld [vmem:[#allocation2 + $0x31] sm:$0xff] }
  0x6c   :  { %1751 = vmatprep.subr.bf16.mxu1 %v4968_v15  ;;  %v4206_v49 = vpack.i.bf16 %v5379_v41, %v5377_v32  ;;  %v4930_v10 = vld [vmem:[%s7676_s2 + $0x88] sm:$0xff]  }
  0x6d   :  { %4152 = vrot.lane.b32.xlu1 %v4151_v55, %s4967_s23  ;;  %v267_v55 = vld [vmem:[#allocation2 + $0xb0] sm:$0xff] }
  0x6e   :  { %4147 = vrot.lane.b32.xlu0 %v4146_v14, %s4967_s23  ;;  %v4176_v13 = vpack.i.bf16 %v267_v55, %v266_v50  ;;  %v270_v14 = vld [vmem:[#allocation2 + $0xc8] sm:$0xff]  ;;  %3776 = vmatpush3.bf16.msra.mxu0 %v4926_v11  ;;  %v149_v55 = vld [vmem:[#allocation2 + $0x59] sm:$0xff] }
  0x6f   :  { %1752 = vmatpush1.bf16.msra.mxu1 %v4927_v12  ;;  %v5397_v12 = vld [vmem:[#allocation2 + $0x49] sm:$0xff] }
  0x70   :  { %1753 = vmatprep.subr.bf16.mxu1 %v4968_v15 }
  0x71   :  { %4162 = vrot.lane.b32.xlu1 %v4161_v19, %s4967_s23  ;;  %v4186_v19 = vpack.i.bf16 %v271_v16, %v270_v14 }
  0x72   :  { %4157 = vrot.lane.b32.xlu0 %v4156_v25, %s4967_s23  ;;  %v5365_v25 = vld [vmem:[#allocation2 + $0x11] sm:$0xff] }
  0x73   :  { %1754 = vmatpush1.bf16.msra.mxu1 %v4928_v23  ;;  %v4191_v28 = vpack.i.bf16 %v5365_v25, %v5363_v24  ;;  %v153_v23 = vld [vmem:[#allocation2 + $0x79] sm:$0xff] }
  0x74   :  { %1755 = vmatprep.subr.bf16.mxu1 %v4968_v15 }
  0x75   :  { %4172 = vrot.lane.b32.xlu1 %v4171_v27, %s4967_s23  ;;  %v4929_v27 = vld [vmem:[%s7676_s2 + $0x90] sm:$0xff]  }
  0x76   :  { %4167 = vrot.lane.b32.xlu0 %v4166_v42, %s4967_s23  ;;  %v5381_v42 = vld [vmem:[#allocation2 + $0x29] sm:$0xff] }
  0x77   :  { %1756 = vmatpush1.bf16.msra.mxu1 %v4929_v27  ;;  %v4201_v50 = vpack.i.bf16 %v5383_v43, %v5381_v42 }
  0x78   :  { %1757 = vmatprep.subr.bf16.mxu1 %v4968_v15 }
  0x79   :  { %4182 = vrot.lane.b32.xlu1 %v4181_v7, %s4967_s23  ;;  %v150_v7 = vld [vmem:[#allocation2 + $0x61] sm:$0xff] }
  0x7a   :  { %4177 = vrot.lane.b32.xlu0 %v4176_v13, %s4967_s23  ;;  %v148_v13 = vld [vmem:[#allocation2 + $0x51] sm:$0xff]  ;;  %v4216_v16 = vpack.i.bf16 %v150_v7, %v149_v55  ;;  %v158_v7 = vld [vmem:[#allocation2 + $0xa1] sm:$0xff] }
  0x7b   :  { %1758 = vmatpush1.bf16.msra.mxu1 %v4930_v10 }
  0x7c   :  { %1759 = vmatprep.subr.bf16.mxu1 %v4968_v15 }
  0x7d   :  { %732 = vrot.lane.b32.xlu1 %v272_v17, %s4967_s23  ;;  %v4931_v17 = vld [vmem:[%s7676_s2 + $0x80] sm:$0xff]  }
  0x7e   :  { %4187 = vrot.lane.b32.xlu0 %v4186_v19, %s4967_s23  ;;  %v4211_v19 = vpack.i.bf16 %v148_v13, %v5397_v12  ;;  %v4932_v13 = vld [vmem:[%s7676_s2 + $0xd0] sm:$0xff]  }
  0x7f   :  { %1760 = vmatpush1.bf16.msra.mxu1 %v4931_v17  ;;  %v4231_v17 = vpack.i.bf16 %v156_v3, %v155_v1  ;;  %v4934_v3 = vld [vmem:[%s7676_s2 + $0xc0] sm:$0xff]  }
  0x80   :  { %1771 = vmatprep.subr.bf16.mxu1 %v4968_v15 }
  0x81   :  { %4197 = vrot.lane.b32.xlu1 %v4196_v26, %s4969_s9  ;;  %v154_v26 = vld [vmem:[#allocation2 + $0x81] sm:$0xff] }
  0x82   :  { %4192 = vrot.lane.b32.xlu0 %v4191_v28, %s4969_s9  ;;  %v151_v28 = vld [vmem:[#allocation2 + $0x69] sm:$0xff] }
  0x83   :  { %v5395_v11 = vpop.permute.xlu1 %3942  ;;  %v4221_v55 = vpack.i.bf16 %v152_v8, %v151_v28  ;;  %1772 = vmatpush2.bf16.msra.mxu1 %v4932_v13  ;;  %v4933_v8 = vld [vmem:[%s7676_s2 + $0xc8] sm:$0xff]   ;;  %s4970_s2 = smov 80  }
  0x84   :  { %v5399_v14 = vpop.permute.xlu0 %3932  ;;  %1773 = vmatprep.subr.bf16.mxu1 %v4968_v15  ;;  %v159_v28 = vld [vmem:[#allocation2 + $0xa9] sm:$0xff] }
  0x85   :  { %4207 = vrot.lane.b32.xlu1 %v4206_v49, %s4969_s9  ;;  %v4226_v49 = vpack.i.bf16 %v154_v26, %v153_v23  ;;  %v162_v23 = vld [vmem:[#allocation2 + $0xc1] sm:$0xff]  ;;  %v3935_v35 = vunpack.i.h.bf16 %v5399_v14 }
  0x86   :  { %4202 = vrot.lane.b32.xlu0 %v4201_v50, %s4969_s9  ;;  %v157_v50 = vld [vmem:[#allocation2 + $0x99] sm:$0xff] }
  0x87   :  { %v5408_v27 = vpop.permute.xlu1 %3947  ;;  %1774 = vmatpush2.bf16.msra.mxu1 %v4933_v8  ;;  %v301_v8 = vld [vmem:[#allocation2 + $0xe] sm:$0xff] }
  0x88   :  { %v5410_v10 = vpop.permute.xlu0 %3937  ;;  %1775 = vmatprep.subr.bf16.mxu1 %v4968_v15  ;;  %v273_v15 = vld [vmem:[#allocation2 + $0xd9] sm:$0xff] }
  0x89   :  { %4217 = vrot.lane.b32.xlu1 %v4216_v16, %s4969_s9  ;;  %v4236_v16 = vpack.i.bf16 %v158_v7, %v157_v50  ;;  %v4241_v50 = vpack.i.bf16 %v160_v60, %v159_v28  ;;  %v164_v7 = vld [vmem:[#allocation2 + $0xd1] sm:$0xff] }
  0x8a   :  { %4212 = vrot.lane.b32.xlu0 %v4211_v19, %s4969_s9  ;;  %v161_v19 = vld [vmem:[#allocation2 + $0xb9] sm:$0xff] }
  0x8b   :  { %v5418_v9 = vpop.permute.xlu1 %3957  ;;  %1776 = vmatpush2.bf16.msra.mxu1 %v4934_v3  ;;  %v275_v28 = vld [vmem:[#allocation2 + $0x15] sm:$0xff] }
  0x8c   :  { %v5420_v2 = vpop.permute.xlu0 %3952 }
  0x8d   :  { %4227 = vrot.lane.b32.xlu1 %v4226_v49, %s4969_s9  ;;  %v4246_v49 = vpack.i.bf16 %v162_v23, %v161_v19  ;;  %v274_v23 = vld [vmem:[#allocation2 + $0xd] sm:$0xff] }
  0x8e   :  { %4222 = vrot.lane.b32.xlu0 %v4221_v55, %s4969_s9  ;;  %v163_v55 = vld [vmem:[#allocation2 + $0xc9] sm:$0xff] }
  0x8f   :  { %v5428_v26 = vpop.permute.xlu1 %3967  ;;  %v4251_v60 = vpack.i.bf16 %v164_v7, %v163_v55  ;;  %v276_v55 = vld [vmem:[#allocation2 + $0x1d] sm:$0xff]  ;;  %v277_v7 = vld [vmem:[#allocation2 + $0x25] sm:$0xff] }
  0x90   :  { %7778 = vst [vmem:[#allocation26_spill] sm:$0xff] %v5428_v26  ;;  %v5430_v61 = vpop.permute.xlu0 %3962 }
  0x91   :  { %7779 = vst [vmem:[#allocation27_spill] sm:$0xff] %v5430_v61  ;;  %4237 = vrot.lane.b32.xlu1 %v4236_v16, %s4969_s9  ;;  %v1283_v16 = vpack.c.bf16 %v5231_v18, %v5233_v20  ;;  %v4256_v18 = vpack.i.bf16 %v275_v28, %v274_v23  ;;  %v303_v20 = vld [vmem:[#allocation2 + $0x1e] sm:$0xff]  ;;  %v278_v23 = vld [vmem:[#allocation2 + $0x2d] sm:$0xff]  ;;  %v279_v28 = vld [vmem:[#allocation2 + $0x35] sm:$0xff] }
  0x92   :  { %4232 = vrot.lane.b32.xlu0 %v4231_v17, %s4969_s9  ;;  %v302_v17 = vld [vmem:[#allocation2 + $0x16] sm:$0xff]  ;;  %v4276_v36 = vpack.i.bf16 %v279_v28, %v278_v23 }
  0x93   :  { %v5438_v1 = vpop.permute.xlu1 %3977  ;;  %3730 = vmatprep.mubr.msk.bf16.mxu1 %vm81_vm0, %v1283_v16  ;;  %v4261_v3 = vpack.i.bf16 %v302_v17, %v301_v8  ;;  %v305_v8 = vld [vmem:[#allocation2 + $0x2e] sm:$0xff]  ;;  %v306_v17 = vld [vmem:[#allocation2 + $0x36] sm:$0xff] }
  0x94   :  { %7780 = vst [vmem:[#allocation28_spill] sm:$0xff] %v5438_v1  ;;  %v5440_v13 = vpop.permute.xlu0 %3972  ;;  %v4281_v45 = vpack.i.bf16 %v306_v17, %v305_v8  ;;  %v283_v17 = vld [vmem:[#allocation2 + $0x55] sm:$0xff] }
  0x95   :  { %7781 = vst [vmem:[#allocation29_spill] sm:$0xff] %v5440_v13  ;;  %4247 = vrot.lane.b32.xlu1 %v4246_v49, %s4969_s9  ;;  %v304_v49 = vld [vmem:[#allocation2 + $0x26] sm:$0xff]  ;;  %v3934_v13 = vunpack.i.l.bf16 %v5399_v14 }
  0x96   :  { %4242 = vrot.lane.b32.xlu0 %v4241_v50, %s4969_s9  ;;  %v4271_v16 = vpack.i.bf16 %v304_v49, %v303_v20  ;;  %v308_v20 = vld [vmem:[#allocation2 + $0x46] sm:$0xff] }
  0x97   :  { %v5447_v19 = vpop.permute.xlu1 %3987 }
  0x98   :  { %7782 = vst [vmem:[#allocation30_spill] sm:$0xff] %v5447_v19  ;;  %v5449_v56 = vpop.permute.xlu0 %3982 }
  0x99   :  { %7783 = vst [vmem:[#allocation31_spill] sm:$0xff] %v5449_v56  ;;  %840 = vrot.lane.b32.xlu1 %v273_v15, %s4969_s9  ;;  %v4266_v15 = vpack.i.bf16 %v277_v7, %v276_v55  ;;  %v281_v55 = vld [vmem:[#allocation2 + $0x45] sm:$0xff]  ;;  %v325_v56 = vld [vmem:[#allocation2 + $0xce] sm:$0xff] }
  0x9a   :  { %4252 = vrot.lane.b32.xlu0 %v4251_v60, %s4969_s9  ;;  %s4979_s9 = smov 21  }
  0x9b   :  { %v5453_v50 = vpop.permute.xlu1 %408 }
  0x9c   :  { %7784 = vst [vmem:[#allocation32_spill] sm:$0xff] %v5453_v50  ;;  %v5455_v52 = vpop.permute.xlu0 %3992 }
  0x9d   :  { %7785 = vst [vmem:[#allocation33_spill] sm:$0xff] %v5455_v52  ;;  %4262 = vrot.lane.b32.xlu1 %v4261_v3, %s4970_s2  ;;  %v307_v3 = vld [vmem:[#allocation2 + $0x3e] sm:$0xff]  ;;  %v317_v52 = vld [vmem:[#allocation2 + $0x8e] sm:$0xff] }
  0x9e   :  { %4257 = vrot.lane.b32.xlu0 %v4256_v18, %s4971_s19  ;;  %v280_v18 = vld [vmem:[#allocation2 + $0x3d] sm:$0xff]  ;;  %v4291_v37 = vpack.i.bf16 %v308_v20, %v307_v3  ;;  %v285_v20 = vld [vmem:[#allocation2 + $0x65] sm:$0xff] }
  0x9f   :  { %v5459_v60 = vpop.permute.xlu1 %4002  ;;  %v4286_v4 = vpack.i.bf16 %v281_v55, %v280_v18 }
  0xa0   :  { %v5461_v44 = vpop.permute.xlu0 %3997 }
  0xa1   :  { %4272 = vrot.lane.b32.xlu1 %v4271_v16, %s4970_s2  ;;  %v310_v16 = vld [vmem:[#allocation2 + $0x56] sm:$0xff] }
  0xa2   :  { %4267 = vrot.lane.b32.xlu0 %v4266_v15, %s4971_s19  ;;  %v282_v15 = vld [vmem:[#allocation2 + $0x4d] sm:$0xff]  ;;  %v4301_v28 = vpack.i.bf16 %v310_v16, %v309_v5  ;;  %v287_v16 = vld [vmem:[#allocation2 + $0x75] sm:$0xff] }
  0xa3   :  { %v5465_v49 = vpop.permute.xlu1 %4012  ;;  %v4296_v62 = vpack.i.bf16 %v283_v17, %v282_v15 }
  0xa4   :  { %v5467_v7 = vpop.permute.xlu0 %4007 }
  0xa5   :  { %4282 = vrot.lane.b32.xlu1 %v4281_v45, %s4970_s2  ;;  %v312_v45 = vld [vmem:[#allocation2 + $0x66] sm:$0xff] }
  0xa6   :  { %4277 = vrot.lane.b32.xlu0 %v4276_v36, %s4971_s19  ;;  %v284_v36 = vld [vmem:[#allocation2 + $0x5d] sm:$0xff]  ;;  %v4311_v55 = vpack.i.bf16 %v312_v45, %v311_v6  ;;  %v289_v45 = vld [vmem:[#allocation2 + $0x85] sm:$0xff] }
  0xa7   :  { %v5471_v8 = vpop.permute.xlu1 %4022  ;;  %v4306_v0 = vpack.i.bf16 %v285_v20, %v284_v36 }
  0xa8   :  { %v5473_v23 = vpop.permute.xlu0 %4017 }
  0xa9   :  { %4292 = vrot.lane.b32.xlu1 %v4291_v37, %s4970_s2  ;;  %v314_v37 = vld [vmem:[#allocation2 + $0x76] sm:$0xff] }
  0xaa   :  { %4287 = vrot.lane.b32.xlu0 %v4286_v4, %s4971_s19  ;;  %v286_v4 = vld [vmem:[#allocation2 + $0x6d] sm:$0xff]  ;;  %v4321_v17 = vpack.i.bf16 %v314_v37, %v313_v59  ;;  %v291_v37 = vld [vmem:[#allocation2 + $0x95] sm:$0xff] }
  0xab   :  { %v5477_v3 = vpop.permute.xlu1 %4032  ;;  %v4316_v50 = vpack.i.bf16 %v287_v16, %v286_v4 }
  0xac   :  { %7786 = vst [vmem:[#allocation34_spill] sm:$0xff] %v5477_v3  ;;  %v5479_v18 = vpop.permute.xlu0 %4027 }
  0xad   :  { %4302 = vrot.lane.b32.xlu1 %v4301_v28, %s4970_s2  ;;  %v316_v28 = vld [vmem:[#allocation2 + $0x86] sm:$0xff] }
  0xae   :  { %4297 = vrot.lane.b32.xlu0 %v4296_v62, %s4971_s19  ;;  %v288_v62 = vld [vmem:[#allocation2 + $0x7d] sm:$0xff]  ;;  %v4331_v20 = vpack.i.bf16 %v316_v28, %v315_v54  ;;  %v293_v28 = vld [vmem:[#allocation2 + $0xa5] sm:$0xff] }
  0xaf   :  { %v5483_v5 = vpop.permute.xlu1 %4042  ;;  %v4326_v63 = vpack.i.bf16 %v289_v45, %v288_v62 }
  0xb0   :  { %7787 = vst [vmem:[#allocation35_spill] sm:$0xff] %v5483_v5  ;;  %v5485_v15 = vpop.permute.xlu0 %4037  ;;  %v7719_v1 = vunpack.i.l.bf16 %v5483_v5  ;;  %v7798_v3 = vunpack.i.h.bf16 %v5483_v5 }
  0xb1   :  { %7788 = vst [vmem:[#allocation36_spill] sm:$0xff] %v5485_v15  ;;  %4312 = vrot.lane.b32.xlu1 %v4311_v55, %s4970_s2  ;;  %v318_v55 = vld [vmem:[#allocation2 + $0x96] sm:$0xff] }
  0xb2   :  { %4307 = vrot.lane.b32.xlu0 %v4306_v0, %s4971_s19  ;;  %v290_v0 = vld [vmem:[#allocation2 + $0x8d] sm:$0xff]  ;;  %v4341_v16 = vpack.i.bf16 %v318_v55, %v317_v52  ;;  %v295_v55 = vld [vmem:[#allocation2 + $0xb5] sm:$0xff] }
  0xb3   :  { %v5489_v6 = vpop.permute.xlu1 %4052  ;;  %v4336_v58 = vpack.i.bf16 %v291_v37, %v290_v0 }
  0xb4   :  { %7789 = vst [vmem:[#allocation37_spill] sm:$0xff] %v5489_v6  ;;  %v5491_v36 = vpop.permute.xlu0 %4047 }
  0xb5   :  { %4322 = vrot.lane.b32.xlu1 %v4321_v17, %s4970_s2  ;;  %v320_v17 = vld [vmem:[#allocation2 + $0xa6] sm:$0xff] }
  0xb6   :  { %4317 = vrot.lane.b32.xlu0 %v4316_v50, %s4971_s19  ;;  %v292_v50 = vld [vmem:[#allocation2 + $0x9d] sm:$0xff]  ;;  %v4351_v45 = vpack.i.bf16 %v320_v17, %v319_v53  ;;  %v297_v17 = vld [vmem:[#allocation2 + $0xc5] sm:$0xff] }
  0xb7   :  { %v5495_v59 = vpop.permute.xlu1 %516  ;;  %v4346_v19 = vpack.i.bf16 %v293_v28, %v292_v50 }
  0xb8   :  { %7790 = vst [vmem:[#allocation38_spill] sm:$0xff] %v5495_v59  ;;  %v5497_v4 = vpop.permute.xlu0 %4057 }
  0xb9   :  { %7791 = vst [vmem:[#allocation39_spill] sm:$0xff] %v5497_v4  ;;  %4332 = vrot.lane.b32.xlu1 %v4331_v20, %s4970_s2  ;;  %v322_v20 = vld [vmem:[#allocation2 + $0xb6] sm:$0xff] }
  0xba   :  { %4327 = vrot.lane.b32.xlu0 %v4326_v63, %s4971_s19  ;;  %v294_v63 = vld [vmem:[#allocation2 + $0xad] sm:$0xff]  ;;  %v4361_v37 = vpack.i.bf16 %v322_v20, %v321_v47  ;;  %v299_v20 = vld [vmem:[#allocation2 + $0xd5] sm:$0xff] }
  0xbb   :  { %v5501_v54 = vpop.permute.xlu1 %4067  ;;  %v4356_v57 = vpack.i.bf16 %v295_v55, %v294_v63 }
  0xbc   :  { %v5503_v62 = vpop.permute.xlu0 %4062 }
  0xbd   :  { %4342 = vrot.lane.b32.xlu1 %v4341_v16, %s4970_s2  ;;  %v324_v16 = vld [vmem:[#allocation2 + $0xc6] sm:$0xff] }
  0xbe   :  { %4337 = vrot.lane.b32.xlu0 %v4336_v58, %s4971_s19  ;;  %v296_v58 = vld [vmem:[#allocation2 + $0xbd] sm:$0xff]  ;;  %v4371_v28 = vpack.i.bf16 %v324_v16, %v323_v51 }
  0xbf   :  { %v5507_v52 = vpop.permute.xlu1 %4077  ;;  %v4366_v46 = vpack.i.bf16 %v297_v17, %v296_v58  ;;  %v300_v16 = vld [vmem:[#allocation2 + $0xdd] sm:$0xff] }
  0xc0   :  { %v5509_v0 = vpop.permute.xlu0 %4072 }
  0xc1   :  { %4352 = vrot.lane.b32.xlu1 %v4351_v45, %s4970_s2  ;;  %v326_v45 = vld [vmem:[#allocation2 + $0xd6] sm:$0xff] }
  0xc2   :  { %4347 = vrot.lane.b32.xlu0 %v4346_v19, %s4971_s19  ;;  %v298_v19 = vld [vmem:[#allocation2 + $0xcd] sm:$0xff]  ;;  %v4381_v55 = vpack.i.bf16 %v326_v45, %v325_v56 }
  0xc3   :  { %v5513_v53 = vpop.permute.xlu1 %4087  ;;  %v4376_v38 = vpack.i.bf16 %v299_v20, %v298_v19  ;;  %v57_v19 = vld [vmem:[%s7677_s1 + $0x18] sm:$0xff] }
  0xc4   :  { %v5515_v50 = vpop.permute.xlu0 %4082 }
  0xc5   :  { %4362 = vrot.lane.b32.xlu1 %v4361_v37, %s4970_s2 }
  0xc6   :  { %4357 = vrot.lane.b32.xlu0 %v4356_v57, %s4971_s19  ;;  %v327_v57 = vld [vmem:[#allocation2 + $0xde] sm:$0xff] }
  0xc7   :  { %v5519_v47 = vpop.permute.xlu1 %4097 }
  0xc8   :  { %7792 = vst [vmem:[#allocation40_spill] sm:$0xff] %v5519_v47  ;;  %v5521_v63 = vpop.permute.xlu0 %4092  ;;  %v5599_v47 = vsel %vm81_vm0, %v5363_v24, %v3935_v35 }
  0xc9   :  { %7793 = vst [vmem:[#allocation41_spill] sm:$0xff] %v5521_v63  ;;  %4372 = vrot.lane.b32.xlu1 %v4371_v28, %s4970_s2  ;;  %v56_v28 = vld [vmem:[%s7677_s1 + $0x10] sm:$0xff] }
  0xca   :  { %4367 = vrot.lane.b32.xlu0 %v4366_v46, %s4971_s19  ;;  %v55_v46 = vld [vmem:[%s7677_s1 + $0x8] sm:$0xff] }
  0xcb   :  { %v5525_v48 = vpop.permute.xlu1 %4107 }
  0xcc   :  { %v5527_v51 = vpop.permute.xlu0 %4102  ;;  %v4110_v15 = vunpack.i.h.bf16 %v5525_v48  ;;  %v4109_v14 = vunpack.i.l.bf16 %v5525_v48 }
  0xcd   :  { %7794 = vst [vmem:[#allocation42_spill] sm:$0xff] %v5527_v51  ;;  %4382 = vrot.lane.b32.xlu1 %v4381_v55, %s4970_s2  ;;  %v58_v55 = vld [vmem:[%s7677_s1 + $0x20] sm:$0xff] }
  0xce   :  { %4377 = vrot.lane.b32.xlu0 %v4376_v38, %s4971_s19  ;;  %v54_v38 = vld [vmem:[%s7677_s1] sm:$0xff]  ;;  %v1160_v61 = vsel %vm1140_vm1, %v7798_v3, %v4110_v15 }
  0xcf   :  { %v5531_v37 = vpop.permute.xlu1 %4117 }
  0xd0   :  { %v5533_v58 = vpop.permute.xlu0 %4112  ;;  %v4120_v35 = vunpack.i.h.bf16 %v5531_v37  ;;  %v4119_v24 = vunpack.i.l.bf16 %v5531_v37 }
  0xd1   :  { %1056 = vrot.lane.b32.xlu1 %v327_v57, %s4970_s2  ;;  %v4115_v26 = vunpack.i.h.bf16 %v5533_v58  ;;  %v4114_v37 = vunpack.i.l.bf16 %v5533_v58 }
  0xd2   :  { %948 = vrot.lane.b32.xlu0 %v300_v16, %s4971_s19  ;;  %v59_v16 = vld [vmem:[%s7677_s1 + $0x28] sm:$0xff] }
  0xd3   :  { %v5540_v56 = vpop.permute.xlu1 %624 }
  0xd4   :  { %v5545_v17 = vpop.permute.xlu0 %4122 }
  0xd5   :  { %1923 = vperm.xlu1 %4387, %v55_v46   ;;  %v4125_v15 = vunpack.i.h.bf16 %v5545_v17 }
  0xd6   :  { %1918 = vperm.xlu0 %4386, %v54_v38   ;;  %v60_v38 = vld [vmem:[%s7677_s1 + $0x30] sm:$0xff] }
  0xd7   :  { %v5550_v45 = vpop.permute.xlu1 %4132 }
  0xd8   :  { %v5555_v20 = vpop.permute.xlu0 %4127 }
  0xd9   :  { %1928 = vperm.xlu1 %4387, %v56_v28  }
  0xda   :  { %1933 = vperm.xlu0 %4386, %v57_v19   ;;  %v61_v19 = vld [vmem:[%s7677_s1 + $0x38] sm:$0xff] }
  0xdb   :  { %v5560_v57 = vpop.permute.xlu1 %4142 }
  0xdc   :  { %v5565_v46 = vpop.permute.xlu0 %4137 }
  0xdd   :  { %1938 = vperm.xlu1 %4387, %v58_v55   ;;  %v62_v55 = vld [vmem:[%s7677_s1 + $0x40] sm:$0xff] }
  0xde   :  { %1943 = vperm.xlu0 %4386, %v59_v16   ;;  %v138_v16 = vld [vmem:[#allocation2 + $0x1] sm:$0xff] }
  0xdf   :  { %v5570_v28 = vpop.permute.xlu1 %4152 }
  0xe0   :  { %v5575_v40 = vpop.permute.xlu0 %4147 }
  0xe1   :  { %1948 = vperm.xlu1 %4387, %v60_v38   ;;  %v64_v38 = vld [vmem:[%s7677_s1 + $0x50] sm:$0xff] }
  0xe2   :  { %1953 = vperm.xlu0 %4386, %v61_v19   ;;  %v1159_v19 = vsel %vm1140_vm1, %v7719_v1, %v4109_v14 }
  0xe3   :  { %v5582_v51 = vpop.permute.xlu1 %4162 }
  0xe4   :  { %7795 = vst [vmem:[#allocation43_spill] sm:$0xff] %v5582_v51  ;;  %v5587_v39 = vpop.permute.xlu0 %4157  ;;  %v5595_v51 = vsel %vm81_vm0, %v138_v16, %v3934_v13  ;;  %v65_v13 = vld [vmem:[%s7677_s1 + $0x58] sm:$0xff] }
  0xe5   :  { %7796 = vst [vmem:[#allocation44_spill] sm:$0xff] %v5587_v39  ;;  %1958 = vperm.xlu1 %4387, %v62_v55   ;;  %v66_v55 = vld [vmem:[%s7677_s1 + $0x60] sm:$0xff]  ;;  %v7801_v39 = vunpack.i.l.bf16 %v5491_v36 }
  0xe6   :  { %1963 = vperm.xlu0 %4386, %v63_v31  }
  0xe7   :  { %v4173_v34 = vpop.permute.xlu1 %4172  ;;  %v1161_v63 = vsel %vm1140_vm1, %v7801_v39, %v4114_v37  ;;  %v1167_v39 = vsel %vm1140_vm1, %v5495_v59, %v5540_v56  ;;  %v4134_v59 = vunpack.i.l.bf16 %v5550_v45 }
  0xe8   :  { %v4175_v16 = vunpack.i.h.bf16 %v4173_v34  ;;  %v4174_v31 = vunpack.i.l.bf16 %v4173_v34  ;;  %v5613_v30 = vpop.permute.xlu0 %4167 }
  0xe9   :  { %7797 = vst [vmem:[#allocation45_spill] sm:$0xff] %v5613_v30  ;;  %1968 = vperm.xlu1 %4387, %v64_v38   ;;  %v4124_v38 = vunpack.i.l.bf16 %v5545_v17  ;;  %v68_v17 = vld [vmem:[%s7677_s1 + $0x70] sm:$0xff] }
  0xea   :  { %v5626_v34 = vsel %vm1168_vm2, %v1159_v19, %v4174_v31  ;;  %v5629_v48 = vsel %vm1168_vm2, %v1160_v61, %v4175_v16  ;;  %1973 = vperm.xlu0 %4386, %v65_v13   ;;  %v67_v19 = vld [vmem:[%s7677_s1 + $0x68] sm:$0xff]  ;;  %v7799_v61 = vunpack.i.l.bf16 %v5489_v6  ;;  %v7800_v31 = vunpack.i.h.bf16 %v5489_v6 }
  0xeb   :  { %v4183_v58 = vpop.permute.xlu1 %4182 }
  0xec   :  { %v1163_v16 = vsel %vm1140_vm1, %v7799_v61, %v4119_v24  ;;  %v1164_v13 = vsel %vm1140_vm1, %v7800_v31, %v4120_v35  ;;  %v4185_v1 = vunpack.i.h.bf16 %v4183_v58  ;;  %v4184_v14 = vunpack.i.l.bf16 %v4183_v58  ;;  %v4178_v3 = vpop.permute.xlu0 %4177 }
  0xed   :  { %v4180_v5 = vunpack.i.h.bf16 %v4178_v3  ;;  %v4179_v30 = vunpack.i.l.bf16 %v4178_v3  ;;  %1978 = vperm.xlu1 %4387, %v66_v55   ;;  %v7802_v24 = vunpack.i.h.bf16 %v5491_v36  ;;  %v4070_v55 = vunpack.i.h.bf16 %v5501_v54 }
  0xee   :  { %v5656_v35 = vsel %vm1168_vm2, %v1163_v16, %v4184_v14  ;;  %v5659_v58 = vsel %vm1168_vm2, %v1164_v13, %v4185_v1  ;;  %1983 = vperm.xlu0 %4386, %v67_v19   ;;  %v69_v1 = vld [vmem:[%s7677_s1 + $0x78] sm:$0xff]  ;;  %v4069_v3 = vunpack.i.l.bf16 %v5501_v54  ;;  %v4065_v19 = vunpack.i.h.bf16 %v5503_v62 }
  0xef   :  { %v1162_v61 = vsel %vm1140_vm1, %v7802_v24, %v4115_v26  ;;  %v733_v37 = vpop.permute.xlu1 %732  ;;  %v5669_v26 = vsel %vm1168_vm2, %v1161_v63, %v4179_v30  ;;  %v4064_v16 = vunpack.i.l.bf16 %v5503_v62  ;;  %v7803_v30 = vunpack.i.l.bf16 %v5497_v4 }
  0xf0   :  { %v5672_v14 = vsel %vm1168_vm2, %v1162_v61, %v4180_v5  ;;  %v5681_v31 = vsel %vm1168_vm2, %v1167_v39, %v733_v37  ;;  %v4188_v56 = vpop.permute.xlu0 %4187  ;;  %v7804_v5 = vunpack.i.h.bf16 %v5497_v4  ;;  %v4135_v54 = vunpack.i.h.bf16 %v5550_v45  ;;  %v70_v37 = vld [vmem:[%s7677_s1 + $0x80] sm:$0xff] }
  0xf1   :  { %v1165_v63 = vsel %vm1140_vm1, %v7803_v30, %v4124_v38  ;;  %v4190_v24 = vunpack.i.h.bf16 %v4188_v56  ;;  %v4189_v61 = vunpack.i.l.bf16 %v4188_v56  ;;  %1988 = vperm.xlu1 %4387, %v68_v17   ;;  %v4130_v62 = vunpack.i.h.bf16 %v5555_v20 }
  0xf2   :  { %v1166_v13 = vsel %vm1140_vm1, %v7804_v5, %v4125_v15  ;;  %v4129_v39 = vunpack.i.l.bf16 %v5555_v20  ;;  %1993 = vperm.xlu0 %4386, %v69_v1   ;;  %v7805_v15 = vunpack.i.l.bf16 %v5461_v44  ;;  %v7806_v56 = vunpack.i.h.bf16 %v5461_v44  ;;  %v71_v1 = vld [vmem:[%s7677_s1 + $0x88] sm:$0xff] }
  0xf3   :  { %v5696_v38 = vpop.permute.xlu1 %4197  ;;  %v5707_v30 = vsel %vm1168_vm2, %v1165_v63, %v4189_v61  ;;  %v5710_v20 = vsel %vm1168_vm2, %v1166_v13, %v4190_v24  ;;  %v7807_v5 = vunpack.i.l.bf16 %v5459_v60  ;;  %v72_v13 = vld [vmem:[%s7677_s1 + $0x90] sm:$0xff] }
  0xf4   :  { %v1113_v17 = vsel %vm1112_vm3, %v5595_v51, %v7805_v15  ;;  %v1114_v45 = vsel %vm1112_vm3, %v5599_v47, %v7806_v56  ;;  %v7808_v51 = vunpack.i.h.bf16 %v5459_v60  ;;  %v5723_v61 = vpop.permute.xlu0 %4192  ;;  %v7809_v56 = vunpack.i.l.bf16 %v5461_v44 }
  0xf5   :  { %v1143_v4 = vsel %vm1140_vm1, %v7807_v5, %v4069_v3  ;;  %v7810_v3 = vunpack.i.h.bf16 %v5461_v44  ;;  %1998 = vperm.xlu1 %4387, %v70_v37   ;;  %v7811_v44 = vunpack.i.l.bf16 %v5723_v61  ;;  %v3944_v37 = vunpack.i.l.bf16 %v5395_v11 }
  0xf6   :  { %v1144_v15 = vsel %vm1140_vm1, %v7808_v51, %v4070_v55  ;;  %v1141_v6 = vsel %vm1140_vm1, %v7809_v56, %v4064_v16  ;;  %v1171_v47 = vsel %vm1168_vm2, %v1143_v4, %v4134_v59  ;;  %2003 = vperm.xlu0 %4386, %v71_v1   ;;  %v7812_v16 = vunpack.i.h.bf16 %v5723_v61 }
  0xf7   :  { %v1142_v5 = vsel %vm1140_vm1, %v7810_v3, %v4065_v19  ;;  %v1169_v55 = vsel %vm1168_vm2, %v1141_v6, %v4129_v39  ;;  %v1172_v63 = vsel %vm1168_vm2, %v1144_v15, %v4135_v54  ;;  %v5740_v24 = vpop.permute.xlu1 %4207  ;;  %v7814_v4 = vunpack.i.h.bf16 %v5696_v38  ;;  %v73_v39 = vld [vmem:[%s7677_s1 + $0x98] sm:$0xff] }
  0xf8   :  { %v1170_v51 = vsel %vm1168_vm2, %v1142_v5, %v4130_v62  ;;  %v1197_v19 = vsel %vm1196_vm4, %v1169_v55, %v7811_v44  ;;  %v7813_v62 = vunpack.i.l.bf16 %v5696_v38  ;;  %v3949_v1 = vunpack.i.l.bf16 %v5408_v27  ;;  %v5760_v56 = vpop.permute.xlu0 %4202 }
  0xf9   :  { %v1198_v6 = vsel %vm1196_vm4, %v1170_v51, %v7812_v16  ;;  %v1200_v54 = vsel %vm1196_vm4, %v1172_v63, %v7814_v4  ;;  %v3940_v15 = vunpack.i.h.bf16 %v5410_v10  ;;  %v3939_v5 = vunpack.i.l.bf16 %v5410_v10  ;;  %2008 = vperm.xlu1 %4387, %v72_v13  }
  0xfa   :  { %v1199_v59 = vsel %vm1196_vm4, %v1171_v47, %v7813_v62  ;;  %v1281_v3 = vpack.c.bf16 %v1198_v6, %v1197_v19  ;;  %v4075_v47 = vunpack.i.h.bf16 %v5509_v0  ;;  %v4074_v55 = vunpack.i.l.bf16 %v5509_v0  ;;  %v74_v62 = vld [vmem:[%s7677_s1 + $0xa0] sm:$0xff]  ;;  %2013 = vperm.xlu0 %4386, %v73_v39  }
  0xfb   :  { %v1280_v63 = vpack.c.bf16 %v1114_v45, %v1113_v17  ;;  %v4140_v51 = vunpack.i.h.bf16 %v5565_v46  ;;  %v4139_v44 = vunpack.i.l.bf16 %v5565_v46  ;;  %v1285_v16 = vpack.c.bf16 %v1200_v54, %v1199_v59  ;;  %v5774_v17 = vpop.permute.xlu1 %4217  ;;  %v75_v46 = vld [vmem:[%s7677_s1 + $0xa8] sm:$0xff] }
  0xfc   :  { %1633 = vmatprep.mubr.bf16.mxu0 %v1281_v3  ;;  %v4010_v19 = vunpack.i.h.bf16 %v5467_v7  ;;  %v4009_v10 = vunpack.i.l.bf16 %v5467_v7  ;;  %v4205_v6 = vunpack.i.h.bf16 %v5760_v56  ;;  %v4204_v0 = vunpack.i.l.bf16 %v5760_v56  ;;  %v5780_v13 = vpop.permute.xlu0 %4212  ;;  %v7831_v56 = vld [vmem:[#allocation40_spill] sm:$0xff] }
  0xfd   :  { %1634 = vmatmul.mubr.bf16.vlgmr.msra.gmra.mxu0 %v1280_v63  ;;  %v3950_v45 = vunpack.i.h.bf16 %v5408_v27  ;;  %v1089_v59 = vsel %vm81_vm0, %v5358_v22, %v3944_v37  ;;  %v7815_v7 = vunpack.i.h.bf16 %v5395_v11  ;;  %v1091_v54 = vsel %vm81_vm0, %v5383_v43, %v3949_v1  ;;  %2018 = vperm.xlu1 %4387, %v74_v62  }
  0xfe   :  { %1641 = vmatprep.mubr.bf16.mxu0 %v1285_v16  ;;  %v1145_v39 = vsel %vm1140_vm1, %v4009_v10, %v4074_v55  ;;  %v1146_v3 = vsel %vm1140_vm1, %v4010_v19, %v4075_v47  ;;  %v1087_v27 = vsel %vm81_vm0, %v5365_v25, %v3939_v5  ;;  %v1088_v63 = vsel %vm81_vm0, %v5356_v21, %v3940_v15  ;;  %v76_v25 = vld [vmem:[%s7677_s1 + $0xb0] sm:$0xff]  ;;  %v77_v55 = vld [vmem:[%s7677_s1 + $0xb8] sm:$0xff] }
  0xff   :  { %v1090_v4 = vsel %vm81_vm0, %v5381_v42, %v7815_v7  ;;  %v7816_v22 = vunpack.i.l.bf16 %v5459_v60  ;;  %v7817_v42 = vunpack.i.h.bf16 %v5459_v60  ;;  %v1173_v43 = vsel %vm1168_vm2, %v1145_v39, %v4139_v44  ;;  %2023 = vperm.xlu0 %4386, %v75_v46   ;;  %v5809_v5 = vpop.permute.xlu1 %4227 }
 0x100   :  { %v1174_v1 = vsel %vm1168_vm2, %v1146_v3, %v4140_v51  ;;  %v3955_v21 = vunpack.i.h.bf16 %v5420_v2  ;;  %v3954_v15 = vunpack.i.l.bf16 %v5420_v2  ;;  %v1201_v60 = vsel %vm1196_vm4, %v1173_v43, %v4204_v0  ;;  %v5823_v16 = vpop.permute.xlu0 %4222 }
 0x101   :  { %v1115_v11 = vsel %vm1112_vm3, %v1087_v27, %v7816_v22  ;;  %v1116_v37 = vsel %vm1112_vm3, %v1088_v63, %v7817_v42  ;;  %v1202_v47 = vsel %vm1196_vm4, %v1174_v1, %v4205_v6  ;;  %v3959_v51 = vunpack.i.l.bf16 %v5418_v9  ;;  %2028 = vperm.xlu1 %4387, %v76_v25   ;;  %v78_v42 = vld [vmem:[%s7677_s1 + $0xc0] sm:$0xff] }
 0x102   :  { %v4015_v44 = vunpack.i.h.bf16 %v5465_v49  ;;  %v4014_v2 = vunpack.i.l.bf16 %v5465_v49  ;;  %v1092_v62 = vsel %vm81_vm0, %v5377_v32, %v3950_v45  ;;  %v4080_v46 = vunpack.i.h.bf16 %v5507_v52 }
 0x103   :  { %v4079_v7 = vunpack.i.l.bf16 %v5507_v52  ;;  %v1284_v39 = vpack.c.bf16 %v1116_v37, %v1115_v11  ;;  %v1117_v3 = vsel %vm1112_vm3, %v1089_v59, %v4009_v10  ;;  %v4145_v27 = vunpack.i.h.bf16 %v5560_v57  ;;  %2033 = vperm.xlu0 %4386, %v77_v55   ;;  %v5838_v45 = vpop.permute.xlu1 %4237 }
 0x104   :  { %v4144_v63 = vunpack.i.l.bf16 %v5560_v57  ;;  %v1289_v22 = vpack.c.bf16 %v1202_v47, %v1201_v60  ;;  %v1118_v49 = vsel %vm1112_vm3, %v1090_v4, %v4010_v19  ;;  %v4210_v32 = vunpack.i.h.bf16 %v5740_v24  ;;  %v79_v19 = vld [vmem:[%s7677_s1 + $0xc8] sm:$0xff]  ;;  %v5853_v11 = vpop.permute.xlu0 %4232  ;;  %v80_v47 = vld [vmem:[%s7677_s1 + $0xd0] sm:$0xff] }
 0x105   :  { %v4209_v52 = vunpack.i.l.bf16 %v5740_v24  ;;  %1642 = vmatmul.mubr.bf16.gmra.mxu0 %v1284_v39  ;;  %v5842_v10 = vsel %vm81_vm0, %v5379_v41, %v3954_v15  ;;  %v5846_v57 = vsel %vm81_vm0, %v5397_v12, %v3955_v21  ;;  %v7736_v59 = vunpack.i.h.bf16 %v5838_v45  ;;  %2038 = vperm.xlu1 %4387, %v78_v42   ;;  %v7838_v24 = vld [vmem:[#allocation42_spill] sm:$0xff] }
 0x106   :  { %v7737_v4 = vunpack.i.l.bf16 %v5838_v45  ;;  %1649 = vmatprep.mubr.bf16.mxu0 %v1289_v22  ;;  %v5856_v37 = vsel %vm1112_vm3, %v1091_v54, %v4014_v2  ;;  %v5859_v41 = vsel %vm1112_vm3, %v1092_v62, %v4015_v44  ;;  %v4020_v12 = vunpack.i.h.bf16 %v5473_v23 }
 0x107   :  { %v1147_v43 = vsel %vm1140_vm1, %v4014_v2, %v4079_v7  ;;  %v1148_v1 = vsel %vm1140_vm1, %v4015_v44, %v4080_v46  ;;  %v1288_v25 = vpack.c.bf16 %v1118_v49, %v1117_v3  ;;  %v5876_v60 = vsel %vm1196_vm4, %v5629_v48, %v7736_v59  ;;  %2043 = vperm.xlu0 %4386, %v79_v19   ;;  %v5882_v44 = vpop.permute.xlu1 %4247 }
 0x108   :  { %v1175_v21 = vsel %vm1168_vm2, %v1147_v43, %v4144_v63  ;;  %v1176_v15 = vsel %vm1168_vm2, %v1148_v1, %v4145_v27  ;;  %v5870_v54 = vsel %vm1196_vm4, %v5626_v34, %v7737_v4  ;;  %v4019_v55 = vunpack.i.l.bf16 %v5473_v23  ;;  %v5896_v3 = vpop.permute.xlu0 %4242 }
 0x109   :  { %v1203_v34 = vsel %vm1196_vm4, %v1175_v21, %v4209_v52  ;;  %v1204_v2 = vsel %vm1196_vm4, %v1176_v15, %v4210_v32  ;;  %v4085_v62 = vunpack.i.h.bf16 %v5515_v50  ;;  %v4084_v46 = vunpack.i.l.bf16 %v5515_v50  ;;  %2048 = vperm.xlu1 %4387, %v80_v47  }
 0x10a   :  { %v7730_v7 = vunpack.i.h.bf16 %v5882_v44  ;;  %v7731_v39 = vunpack.i.l.bf16 %v5882_v44  ;;  %v4150_v27 = vunpack.i.h.bf16 %v5575_v40  ;;  %v4149_v63 = vunpack.i.l.bf16 %v5575_v40 }
 0x10b   :  { %v7733_v22 = vunpack.i.h.bf16 %v5896_v3  ;;  %v7735_v49 = vunpack.i.l.bf16 %v5896_v3  ;;  %v4215_v42 = vunpack.i.h.bf16 %v5780_v13  ;;  %v1293_v19 = vpack.c.bf16 %v1204_v2, %v1203_v34  ;;  %v5916_v1 = vpop.permute.xlu1 %840 }
 0x10c   :  { %v5907_v50 = vsel %vm1196_vm4, %v5656_v35, %v7731_v39  ;;  %v5913_v43 = vsel %vm1196_vm4, %v5659_v58, %v7730_v7  ;;  %v4214_v40 = vunpack.i.l.bf16 %v5780_v13  ;;  %v5937_v15 = vpop.permute.xlu0 %4252  ;;  %v1149_v47 = vsel %vm1140_vm1, %v4019_v55, %v4084_v46 }
 0x10d   :  { %1650 = vmatmul.mubr.bf16.gmra.mxu0 %v1288_v25  ;;  %v5922_v21 = vsel %vm1196_vm4, %v5669_v26, %v7735_v49  ;;  %v5928_v35 = vsel %vm1196_vm4, %v5672_v14, %v7733_v22  ;;  %v5935_v25 = vsel %vm1196_vm4, %v5681_v31, %v5916_v1  ;;  %v1150_v14 = vsel %vm1140_vm1, %v4020_v12, %v4085_v62 }
 0x10e   :  { %1657 = vmatprep.mubr.bf16.mxu0 %v1293_v19  ;;  %v7734_v34 = vunpack.i.h.bf16 %v5937_v15  ;;  %v7732_v2 = vunpack.i.l.bf16 %v5937_v15  ;;  %v4025_v31 = vunpack.i.h.bf16 %v5471_v8  ;;  %v1292_v19 = vpack.c.bf16 %v5859_v41, %v5856_v37 }
 0x10f   :  { %v1177_v58 = vsel %vm1168_vm2, %v1149_v47, %v4149_v63  ;;  %v1178_v7 = vsel %vm1168_vm2, %v1150_v14, %v4150_v27  ;;  %v4263_v26 = vpop.permute.xlu1 %4262  ;;  %v4089_v41 = vunpack.i.l.bf16 %v5513_v53  ;;  %v4024_v47 = vunpack.i.l.bf16 %v5471_v8 }
 0x110   :  { %v1205_v46 = vsel %vm1196_vm4, %v1177_v58, %v4214_v40  ;;  %v1206_v62 = vsel %vm1196_vm4, %v1178_v7, %v4215_v42  ;;  %v5962_v39 = vsel %vm1196_vm4, %v5707_v30, %v7732_v2  ;;  %v5968_v37 = vsel %vm1196_vm4, %v5710_v20, %v7734_v34  ;;  %v4258_v27 = vpop.permute.xlu0 %4257 }
 0x111   :  { %v4265_v63 = vunpack.i.h.bf16 %v4263_v26  ;;  %v4264_v58 = vunpack.i.l.bf16 %v4263_v26  ;;  %v4090_v14 = vunpack.i.h.bf16 %v5513_v53  ;;  %v4260_v30 = vunpack.i.h.bf16 %v4258_v27 }
 0x112   :  { %v4259_v2 = vunpack.i.l.bf16 %v4258_v27  ;;  %v4155_v48 = vunpack.i.h.bf16 %v5570_v28  ;;  %v4154_v22 = vunpack.i.l.bf16 %v5570_v28  ;;  %v1297_v20 = vpack.c.bf16 %v1206_v62, %v1205_v46 }
 0x113   :  { %v1121_v34 = vsel %vm1112_vm3, %v5842_v10, %v4019_v55  ;;  %v7738_v49 = vunpack.i.h.bf16 %v5774_v17  ;;  %v4219_v26 = vunpack.i.l.bf16 %v5774_v17  ;;  %v4273_v7 = vpop.permute.xlu1 %4272  ;;  %v7818_v59 = vunpack.i.l.bf16 %v5723_v61 }
 0x114   :  { %v7819_v27 = vunpack.i.h.bf16 %v5723_v61  ;;  %v1151_v28 = vsel %vm1140_vm1, %v4024_v47, %v4089_v41  ;;  %v4268_v46 = vpop.permute.xlu0 %4267  ;;  %v4274_v41 = vunpack.i.l.bf16 %v4273_v7 }
 0x115   :  { %1658 = vmatmul.mubr.bf16.gmra.mxu0 %v1292_v19  ;;  %v1225_v53 = vsel %vm1224_vm5, %v7818_v59, %v4259_v2  ;;  %v1122_v19 = vsel %vm1112_vm3, %v5846_v57, %v4020_v12  ;;  %v1152_v59 = vsel %vm1140_vm1, %v4025_v31, %v4090_v14  ;;  %v4270_v61 = vunpack.i.h.bf16 %v4268_v46 }
 0x116   :  { %v1226_v4 = vsel %vm1224_vm5, %v7819_v27, %v4260_v30  ;;  %1665 = vmatprep.mubr.bf16.mxu0 %v1297_v20  ;;  %v1253_v10 = vsel %vm1252_vm6, %v1225_v53, %v4264_v58  ;;  %v4269_v2 = vunpack.i.l.bf16 %v4268_v46  ;;  %v4275_v30 = vunpack.i.h.bf16 %v4273_v7  ;;  %v4937_v46 = vld [vmem:[#allocation2 + $0x51] sm:$0xff] }
 0x117   :  { %v1254_v55 = vsel %vm1252_vm6, %v1226_v4, %v4265_v63  ;;  %v1179_v20 = vsel %vm1168_vm2, %v1151_v28, %v4154_v22  ;;  %v1180_v58 = vsel %vm1168_vm2, %v1152_v59, %v4155_v48  ;;  %v5999_v4 = vpop.permute.xlu1 %4282  ;;  %v7820_v12 = vunpack.i.l.bf16 %v5696_v38 }
 0x118   :  { %v1282_v62 = vpack.c.bf16 %v1254_v55, %v1253_v10  ;;  %v1207_v23 = vsel %vm1196_vm4, %v1179_v20, %v4219_v26  ;;  %v1208_v57 = vsel %vm1196_vm4, %v1180_v58, %v7738_v49  ;;  %v7821_v7 = vunpack.i.h.bf16 %v5696_v38  ;;  %v4278_v53 = vpop.permute.xlu0 %4277  ;;  %v7823_v55 = vld [vmem:[#allocation41_spill] sm:$0xff] }
 0x119   :  { %v1227_v63 = vsel %vm1224_vm5, %v7820_v12, %v4269_v2  ;;  %v3960_v48 = vunpack.i.h.bf16 %v5418_v9  ;;  %v4030_v14 = vunpack.i.h.bf16 %v5479_v18  ;;  %v1296_v27 = vpack.c.bf16 %v1122_v19, %v1121_v34  ;;  %v7824_v2 = vld [vmem:[#allocation44_spill] sm:$0xff] }
 0x11a   :  { %1778 = vmatmul.mubr.bf16.vlgmr.msra.gmra.mxu1 %v1282_v62  ;;  %v1228_v22 = vsel %vm1224_vm5, %v7821_v7, %v4270_v61  ;;  %v7822_v28 = vpack.c.bf16 %v5149_v33, %v5142_v29  ;;  %v1095_v10 = vsel %vm81_vm0, %v4937_v46, %v3959_v51  ;;  %v4029_v38 = vunpack.i.l.bf16 %v5479_v18  ;;  %v7825_v7 = vld [vmem:[#allocation26_spill] sm:$0xff]  ;;  %v7826_v46 = vld [vmem:[#allocation27_spill] sm:$0xff] }
 0x11b   :  { %v4095_v59 = vunpack.i.h.bf16 %v7823_v55  ;;  %v4094_v61 = vunpack.i.l.bf16 %v7823_v55  ;;  %v4160_v62 = vunpack.i.h.bf16 %v7824_v2  ;;  %v4159_v34 = vunpack.i.l.bf16 %v7824_v2  ;;  %v6031_v12 = vpop.permute.xlu1 %4292 }
 0x11c   :  { %3731 = vmatprep.mubr.msk.bf16.mxu1 %vm81_vm0, %v7822_v28  ;;  %v1301_v19 = vpack.c.bf16 %v1208_v57, %v1207_v23  ;;  %v1255_v29 = vsel %vm1252_vm6, %v1227_v63, %v4274_v41  ;;  %v1256_v33 = vsel %vm1252_vm6, %v1228_v22, %v4275_v30  ;;  %v4225_v20 = vunpack.i.h.bf16 %v5823_v16  ;;  %v6035_v49 = vpop.permute.xlu0 %4287  ;;  %v4938_v23 = vld [vmem:[#allocation2 + $0x59] sm:$0xff] }
 0x11d   :  { %v4224_v9 = vunpack.i.l.bf16 %v5823_v16  ;;  %v4280_v51 = vunpack.i.h.bf16 %v4278_v53  ;;  %v4279_v58 = vunpack.i.l.bf16 %v4278_v53  ;;  %1666 = vmatmul.mubr.bf16.gmra.mxu0 %v1296_v27  ;;  %v3969_v28 = vunpack.i.l.bf16 %v7825_v7 }
 0x11e   :  { %v3964_v55 = vunpack.i.l.bf16 %v7826_v46  ;;  %1673 = vmatprep.mubr.bf16.mxu0 %v1301_v19  ;;  %v1096_v41 = vsel %vm81_vm0, %v4938_v23, %v3960_v48  ;;  %v1123_v30 = vsel %vm1112_vm3, %v1095_v10, %v4024_v47  ;;  %v1153_v57 = vsel %vm1140_vm1, %v4029_v38, %v4094_v61  ;;  %v7827_v61 = vld [vmem:[#allocation34_spill] sm:$0xff] }
 0x11f   :  { %v1154_v63 = vsel %vm1140_vm1, %v4030_v14, %v4095_v59  ;;  %v1286_v22 = vpack.c.bf16 %v1256_v33, %v1255_v29  ;;  %v1124_v53 = vsel %vm1112_vm3, %v1096_v41, %v4025_v31  ;;  %v4285_v27 = vunpack.i.h.bf16 %v5999_v4  ;;  %v6050_v47 = vpop.permute.xlu1 %4302  ;;  %v7828_v33 = vld [vmem:[#allocation4_spill] sm:$0xff]  ;;  %v7829_v23 = vld [vmem:[#allocation6_spill] sm:$0xff] }
 0x120   :  { %v4284_v2 = vunpack.i.l.bf16 %v5999_v4  ;;  %v1181_v19 = vsel %vm1168_vm2, %v1153_v57, %v4159_v34  ;;  %v1182_v48 = vsel %vm1168_vm2, %v1154_v63, %v4160_v62  ;;  %v1229_v31 = vsel %vm1224_vm5, %v4204_v0, %v4279_v58  ;;  %v6066_v34 = vpop.permute.xlu0 %4297  ;;  %v4939_v57 = vld [vmem:[#allocation2 + $0x61] sm:$0xff] }
 0x121   :  { %v1209_v10 = vsel %vm1196_vm4, %v1181_v19, %v4224_v9  ;;  %v1210_v8 = vsel %vm1196_vm4, %v1182_v48, %v4225_v20  ;;  %v1230_v4 = vsel %vm1224_vm5, %v4205_v6, %v4280_v51  ;;  %v3965_v59 = vunpack.i.h.bf16 %v7826_v46  ;;  %v7832_v51 = vld [vmem:[#allocation43_spill] sm:$0xff] }
 0x122   :  { %1786 = vmatmul.mubr.bf16.gmra.mxu1 %v1286_v22  ;;  %v4035_v62 = vunpack.i.h.bf16 %v7827_v61  ;;  %v1300_v29 = vpack.c.bf16 %v1124_v53, %v1123_v30  ;;  %v7830_v41 = vpack.c.bf16 %v7828_v33, %v7829_v23  ;;  %v1097_v63 = vsel %vm81_vm0, %v4939_v57, %v3964_v55 }
 0x123   :  { %v4034_v0 = vunpack.i.l.bf16 %v7827_v61  ;;  %v4100_v58 = vunpack.i.h.bf16 %v7831_v56  ;;  %v4099_v6 = vunpack.i.l.bf16 %v7831_v56  ;;  %v4165_v46 = vunpack.i.h.bf16 %v7832_v51 }
 0x124   :  { %3732 = vmatprep.mubr.msk.bf16.mxu1 %vm81_vm0, %v7830_v41  ;;  %v4164_v22 = vunpack.i.l.bf16 %v7832_v51  ;;  %v1305_v19 = vpack.c.bf16 %v1210_v8, %v1209_v10  ;;  %v1257_v30 = vsel %vm1252_vm6, %v1229_v31, %v4284_v2  ;;  %v1258_v53 = vsel %vm1252_vm6, %v1230_v4, %v4285_v27  ;;  %v6084_v41 = vpop.permute.xlu1 %4312  ;;  %v6087_v56 = vpop.permute.xlu0 %4307  ;;  %v4940_v10 = vld [vmem:[#allocation2 + $0x69] sm:$0xff]  ;;  %v4941_v8 = vld [vmem:[#allocation2 + $0x71] sm:$0xff] }
 0x125   :  { %v7739_v48 = vunpack.i.h.bf16 %v5809_v5  ;;  %v4229_v33 = vunpack.i.l.bf16 %v5809_v5  ;;  %v4290_v55 = vunpack.i.h.bf16 %v6035_v49  ;;  %v4289_v23 = vunpack.i.l.bf16 %v6035_v49  ;;  %1674 = vmatmul.mubr.bf16.gmra.mxu0 %v1300_v29 }
 0x126   :  { %v3970_v57 = vunpack.i.h.bf16 %v7825_v7  ;;  %1681 = vmatprep.mubr.bf16.mxu0 %v1305_v19  ;;  %v1098_v2 = vsel %vm81_vm0, %v4940_v10, %v3965_v59  ;;  %v1125_v27 = vsel %vm1112_vm3, %v1097_v63, %v4029_v38  ;;  %v1099_v31 = vsel %vm81_vm0, %v4941_v8, %v3969_v28  ;;  %v7835_v10 = vld [vmem:[#allocation9_spill] sm:$0xff] }
 0x127   :  { %v1155_v49 = vsel %vm1140_vm1, %v4034_v0, %v4099_v6  ;;  %v1156_v4 = vsel %vm1140_vm1, %v4035_v62, %v4100_v58  ;;  %v1290_v7 = vpack.c.bf16 %v1258_v53, %v1257_v30  ;;  %v1126_v29 = vsel %vm1112_vm3, %v1098_v2, %v4030_v14  ;;  %v7833_v6 = vld [vmem:[#allocation28_spill] sm:$0xff]  ;;  %v7836_v2 = vld [vmem:[#allocation5_spill] sm:$0xff] }
 0x128   :  { %v4295_v59 = vunpack.i.h.bf16 %v6031_v12  ;;  %v4294_v38 = vunpack.i.l.bf16 %v6031_v12  ;;  %v1183_v63 = vsel %vm1168_vm2, %v1155_v49, %v4164_v22  ;;  %v1184_v28 = vsel %vm1168_vm2, %v1156_v4, %v4165_v46  ;;  %v6105_v51 = vpop.permute.xlu1 %4322  ;;  %v7834_v22 = vld [vmem:[#allocation36_spill] sm:$0xff]  ;;  %v6121_v30 = vpop.permute.xlu0 %4317  ;;  %v4942_v49 = vld [vmem:[#allocation2 + $0x79] sm:$0xff] }
 0x129   :  { %v1211_v58 = vsel %vm1196_vm4, %v1183_v63, %v4229_v33  ;;  %v1212_v18 = vsel %vm1196_vm4, %v1184_v28, %v7739_v48  ;;  %v1231_v14 = vsel %vm1224_vm5, %v4209_v52, %v4289_v23  ;;  %v1232_v12 = vsel %vm1224_vm5, %v4210_v32, %v4290_v55  ;;  %v7839_v55 = vld [vmem:[#allocation45_spill] sm:$0xff] }
 0x12a   :  { %1794 = vmatmul.mubr.bf16.gmra.mxu1 %v1290_v7  ;;  %v3980_v46 = vunpack.i.h.bf16 %v7833_v6  ;;  %v4040_v19 = vunpack.i.h.bf16 %v7834_v22  ;;  %v1304_v53 = vpack.c.bf16 %v1126_v29, %v1125_v27  ;;  %v7837_v8 = vpack.c.bf16 %v7835_v10, %v7836_v2  ;;  %v7840_v48 = vld [vmem:[#allocation29_spill] sm:$0xff] }
 0x12b   :  { %v1100_v4 = vsel %vm81_vm0, %v4942_v49, %v3970_v57  ;;  %v4039_v52 = vunpack.i.l.bf16 %v7834_v22  ;;  %v4105_v23 = vunpack.i.h.bf16 %v7838_v24  ;;  %v4104_v32 = vunpack.i.l.bf16 %v7838_v24 }
 0x12c   :  { %3733 = vmatprep.mubr.msk.bf16.mxu1 %vm81_vm0, %v7837_v8  ;;  %v4170_v7 = vunpack.i.h.bf16 %v7839_v55  ;;  %v4169_v63 = vunpack.i.l.bf16 %v7839_v55  ;;  %v1309_v28 = vpack.c.bf16 %v1212_v18, %v1211_v58  ;;  %v1259_v27 = vsel %vm1252_vm6, %v1231_v14, %v4294_v38  ;;  %v6139_v49 = vpop.permute.xlu1 %4332  ;;  %v6144_v38 = vpop.permute.xlu0 %4327 }
 0x12d   :  { %v1260_v29 = vsel %vm1252_vm6, %v1232_v12, %v4295_v59  ;;  %v4235_v10 = vunpack.i.h.bf16 %v5853_v11  ;;  %v4234_v2 = vunpack.i.l.bf16 %v5853_v11  ;;  %v4300_v57 = vunpack.i.h.bf16 %v6066_v34  ;;  %1682 = vmatmul.mubr.bf16.gmra.mxu0 %v1304_v53 }
 0x12e   :  { %v4299_v8 = vunpack.i.l.bf16 %v6066_v34  ;;  %v3979_v24 = vunpack.i.l.bf16 %v7833_v6  ;;  %v3975_v55 = vunpack.i.h.bf16 %v7840_v48  ;;  %v3974_v58 = vunpack.i.l.bf16 %v7840_v48  ;;  %1689 = vmatprep.mubr.bf16.mxu0 %v1309_v28  ;;  %v7842_v28 = vld [vmem:[#allocation10_spill] sm:$0xff] }
 0x12f   :  { %v1127_v11 = vsel %vm1112_vm3, %v1099_v31, %v4034_v0  ;;  %v1157_v34 = vsel %vm1140_vm1, %v4039_v52, %v4104_v32  ;;  %v1158_v59 = vsel %vm1140_vm1, %v4040_v19, %v4105_v23  ;;  %v1294_v18 = vpack.c.bf16 %v1260_v29, %v1259_v27  ;;  %v4943_v27 = vld [vmem:[#allocation2 + $0x91] sm:$0xff] }
 0x130   :  { %v1128_v48 = vsel %vm1112_vm3, %v1100_v4, %v4035_v62  ;;  %v4305_v14 = vunpack.i.h.bf16 %v6050_v47  ;;  %v4304_v12 = vunpack.i.l.bf16 %v6050_v47  ;;  %v1185_v6 = vsel %vm1168_vm2, %v1157_v34, %v4169_v63  ;;  %v4343_v31 = vpop.permute.xlu1 %4342  ;;  %v4338_v4 = vpop.permute.xlu0 %4337  ;;  %v7841_v63 = vld [vmem:[#allocation7_spill] sm:$0xff]  ;;  %v4944_v34 = vld [vmem:[#allocation2 + $0x99] sm:$0xff] }
 0x131   :  { %v1186_v0 = vsel %vm1168_vm2, %v1158_v59, %v4170_v7  ;;  %v1213_v53 = vsel %vm1196_vm4, %v1185_v6, %v4234_v2  ;;  %v1233_v61 = vsel %vm1224_vm5, %v4214_v40, %v4299_v8  ;;  %v1234_v62 = vsel %vm1224_vm5, %v4215_v42, %v4300_v57  ;;  %v4945_v42 = vld [vmem:[#allocation2 + $0x81] sm:$0xff] }
 0x132   :  { %1802 = vmatmul.mubr.bf16.gmra.mxu1 %v1294_v18  ;;  %v1214_v32 = vsel %vm1196_vm4, %v1186_v0, %v4235_v10  ;;  %v4345_v47 = vunpack.i.h.bf16 %v4343_v31  ;;  %v4344_v23 = vunpack.i.l.bf16 %v4343_v31  ;;  %v7843_v7 = vpack.c.bf16 %v7841_v63, %v7842_v28  ;;  %v4946_v31 = vld [vmem:[#allocation2 + $0x89] sm:$0xff] }
 0x133   :  { %v6175_v29 = vsel %vm81_vm0, %v4943_v27, %v3979_v24  ;;  %v6178_v59 = vsel %vm81_vm0, %v4944_v34, %v3980_v46  ;;  %v4340_v40 = vunpack.i.h.bf16 %v4338_v4  ;;  %v4339_v13 = vunpack.i.l.bf16 %v4338_v4 }
 0x134   :  { %3734 = vmatprep.mubr.msk.bf16.mxu1 %vm81_vm0, %v7843_v7  ;;  %v1308_v8 = vpack.c.bf16 %v1128_v48, %v1127_v11  ;;  %v1101_v57 = vsel %vm81_vm0, %v4945_v42, %v3974_v58  ;;  %v1313_v18 = vpack.c.bf16 %v1214_v32, %v1213_v53  ;;  %v1261_v6 = vsel %vm1252_vm6, %v1233_v61, %v4304_v12  ;;  %v4353_v46 = vpop.permute.xlu1 %4352  ;;  %v4348_v48 = vpop.permute.xlu0 %4347  ;;  %v7847_v42 = vld [vmem:[#allocation13_spill] sm:$0xff] }
 0x135   :  { %v1262_v0 = vsel %vm1252_vm6, %v1234_v62, %v4305_v14  ;;  %v1102_v63 = vsel %vm81_vm0, %v4946_v31, %v3975_v55  ;;  %v4310_v24 = vunpack.i.h.bf16 %v6087_v56  ;;  %v4309_v28 = vunpack.i.l.bf16 %v6087_v56 }
 0x136   :  { %1690 = vmatmul.mubr.bf16.gmra.mxu0 %v1308_v8  ;;  %v1241_v4 = vsel %vm1224_vm5, %v4234_v2, %v4339_v13  ;;  %v1242_v11 = vsel %vm1224_vm5, %v4235_v10, %v4340_v40  ;;  %v4355_v58 = vunpack.i.h.bf16 %v4353_v46  ;;  %v4354_v53 = vunpack.i.l.bf16 %v4353_v46 }
 0x137   :  { %1697 = vmatprep.mubr.bf16.mxu0 %v1313_v18  ;;  %v6189_v12 = vsel %vm1252_vm6, %v1241_v4, %v4344_v23  ;;  %v6192_v14 = vsel %vm1252_vm6, %v1242_v11, %v4345_v47  ;;  %v4350_v55 = vunpack.i.h.bf16 %v4348_v48  ;;  %v4349_v32 = vunpack.i.l.bf16 %v4348_v48 }
 0x138   :  { %v1298_v61 = vpack.c.bf16 %v1262_v0, %v1261_v6  ;;  %v1314_v56 = vpack.c.bf16 %v6192_v14, %v6189_v12  ;;  %v4315_v2 = vunpack.i.h.bf16 %v6084_v41  ;;  %v4314_v10 = vunpack.i.l.bf16 %v6084_v41  ;;  %v4363_v47 = vpop.permute.xlu1 %4362  ;;  %v4358_v13 = vpop.permute.xlu0 %4357  ;;  %v7889_v12 = vld [vmem:[#allocation38_spill] sm:$0xff] }
 0x139   :  { %v1129_v62 = vsel %vm1112_vm3, %v1101_v57, %v4039_v52  ;;  %v1130_v23 = vsel %vm1112_vm3, %v1102_v63, %v4040_v19  ;;  %v1235_v7 = vsel %vm1224_vm5, %v4219_v26, %v4309_v28  ;;  %v7844_v27 = vunpack.i.h.bf16 %v5774_v17  ;;  %v7848_v57 = vld [vmem:[#allocation8_spill] sm:$0xff]  ;;  %v7850_v63 = vld [vmem:[#allocation31_spill] sm:$0xff] }
 0x13a   :  { %1810 = vmatmul.mubr.bf16.gmra.mxu1 %v1298_v61  ;;  %v7845_v41 = vunpack.i.l.bf16 %v5838_v45  ;;  %v7846_v52 = vunpack.i.h.bf16 %v5838_v45  ;;  %v4365_v19 = vunpack.i.h.bf16 %v4363_v47  ;;  %v4364_v8 = vunpack.i.l.bf16 %v4363_v47 }
 0x13b   :  { %v1236_v34 = vsel %vm1224_vm5, %v7844_v27, %v4310_v24  ;;  %v7849_v18 = vpack.c.bf16 %v7847_v42, %v7848_v57  ;;  %v4360_v6 = vunpack.i.h.bf16 %v4358_v13  ;;  %v4359_v0 = vunpack.i.l.bf16 %v4358_v13 }
 0x13c   :  { %v1243_v40 = vsel %vm1224_vm5, %v7845_v41, %v4349_v32  ;;  %v1244_v22 = vsel %vm1224_vm5, %v7846_v52, %v4350_v55  ;;  %v1312_v31 = vpack.c.bf16 %v1130_v23, %v1129_v62  ;;  %v3985_v24 = vunpack.i.h.bf16 %v7850_v63  ;;  %v4368_v62 = vpop.permute.xlu0 %4367 }
 0x13d   :  { %3735 = vmatprep.mubr.msk.bf16.mxu1 %vm81_vm0, %v7849_v18  ;;  %v6221_v17 = vsel %vm1252_vm6, %v1243_v40, %v4354_v53  ;;  %v6224_v26 = vsel %vm1252_vm6, %v1244_v22, %v4355_v58  ;;  %v3984_v28 = vunpack.i.l.bf16 %v7850_v63  ;;  %v1263_v46 = vsel %vm1252_vm6, %v1235_v7, %v4314_v10  ;;  %v4373_v58 = vpop.permute.xlu1 %4372  ;;  %v7860_v63 = vld [vmem:[#allocation14_spill] sm:$0xff] }
 0x13e   :  { %v1318_v45 = vpack.c.bf16 %v6224_v26, %v6221_v17  ;;  %v1264_v4 = vsel %vm1252_vm6, %v1236_v34, %v4315_v2  ;;  %v4320_v11 = vunpack.i.h.bf16 %v6121_v30  ;;  %v4319_v48 = vunpack.i.l.bf16 %v6121_v30  ;;  %1698 = vmatmul.mubr.bf16.gmra.mxu0 %v1312_v31  ;;  %v7859_v31 = vld [vmem:[#allocation11_spill] sm:$0xff]  ;;  %v7896_v17 = vld [vmem:[#allocation24_spill] sm:$0xff] }
 0x13f   :  { %v7851_v53 = vunpack.i.l.bf16 %v5896_v3  ;;  %v7852_v32 = vunpack.i.h.bf16 %v5896_v3  ;;  %v7853_v10 = vpack.c.bf16 %v5876_v60, %v5870_v54  ;;  %v4375_v2 = vunpack.i.h.bf16 %v4373_v58  ;;  %v7854_v54 = vld [vmem:[#allocation35_spill] sm:$0xff] }
 0x140   :  { %v4374_v23 = vunpack.i.l.bf16 %v4373_v58  ;;  %v4370_v7 = vunpack.i.h.bf16 %v4368_v62  ;;  %v4369_v27 = vunpack.i.l.bf16 %v4368_v62  ;;  %v1302_v34 = vpack.c.bf16 %v1264_v4, %v1263_v46  ;;  %v7897_v26 = vld [vmem:[#allocation23_spill] sm:$0xff] }
 0x141   :  { %v1245_v55 = vsel %vm1224_vm5, %v7851_v53, %v4359_v0  ;;  %v1246_v61 = vsel %vm1224_vm5, %v7852_v32, %v4360_v6  ;;  %1705 = vmatprep.mubr.bf16.mxu0 %v7853_v10  ;;  %v4325_v41 = vunpack.i.h.bf16 %v6105_v51  ;;  %v4324_v40 = vunpack.i.l.bf16 %v6105_v51  ;;  %v4378_v6 = vpop.permute.xlu0 %4377 }
 0x142   :  { %v6244_v47 = vsel %vm1252_vm6, %v1245_v55, %v4364_v8  ;;  %v6247_v30 = vsel %vm1252_vm6, %v1246_v61, %v4365_v19  ;;  %v7855_v60 = vunpack.i.l.bf16 %v7854_v54  ;;  %v7856_v22 = vunpack.i.h.bf16 %v7854_v54  ;;  %1818 = vmatmul.mubr.bf16.gmra.mxu1 %v1302_v34  ;;  %v4383_v19 = vpop.permute.xlu1 %4382 }
 0x143   :  { %v1322_v3 = vpack.c.bf16 %v6247_v30, %v6244_v47  ;;  %v1237_v8 = vsel %vm1224_vm5, %v4224_v9, %v4319_v48  ;;  %v1238_v51 = vsel %vm1224_vm5, %v4225_v20, %v4320_v11  ;;  %v7857_v42 = vunpack.i.l.bf16 %v5882_v44 }
 0x144   :  { %v1131_v52 = vsel %vm1112_vm3, %v6175_v29, %v7855_v60  ;;  %v1132_v13 = vsel %vm1112_vm3, %v6178_v59, %v7856_v22  ;;  %v7858_v29 = vunpack.i.h.bf16 %v5882_v44  ;;  %v4385_v59 = vunpack.i.h.bf16 %v4383_v19 }
 0x145   :  { %v1247_v57 = vsel %vm1224_vm5, %v7857_v42, %v4369_v27  ;;  %v4384_v0 = vunpack.i.l.bf16 %v4383_v19  ;;  %v7861_v46 = vpack.c.bf16 %v7859_v31, %v7860_v63  ;;  %v4380_v9 = vunpack.i.h.bf16 %v4378_v6  ;;  %v4947_v27 = vld [vmem:[#allocation2 + $0xa1] sm:$0xff]  ;;  %v7868_v42 = vld [vmem:[#allocation17_spill] sm:$0xff] }
 0x146   :  { %v1248_v18 = vsel %vm1224_vm5, %v7858_v29, %v4370_v7  ;;  %v6278_v16 = vsel %vm1252_vm6, %v1247_v57, %v4374_v23  ;;  %v4379_v4 = vunpack.i.l.bf16 %v4378_v6  ;;  %v1316_v11 = vpack.c.bf16 %v1132_v13, %v1131_v52  ;;  %v1057_v32 = vpop.permute.xlu1 %1056  ;;  %v949_v23 = vpop.permute.xlu0 %948  ;;  %v7869_v57 = vld [vmem:[#allocation12_spill] sm:$0xff] }
 0x147   :  { %3736 = vmatprep.mubr.msk.bf16.mxu1 %vm81_vm0, %v7861_v46  ;;  %v6281_v20 = vsel %vm1252_vm6, %v1248_v18, %v4375_v2  ;;  %v1265_v48 = vsel %vm1252_vm6, %v1237_v8, %v4324_v40  ;;  %v1266_v58 = vsel %vm1252_vm6, %v1238_v51, %v4325_v41  ;;  %v4330_v53 = vunpack.i.h.bf16 %v6144_v38  ;;  %v4948_v41 = vld [vmem:[#allocation2 + $0xa9] sm:$0xff]  ;;  %v4949_v31 = vld [vmem:[#allocation2 + $0xb1] sm:$0xff]  ;;  %v4950_v46 = vld [vmem:[#allocation2 + $0xb9] sm:$0xff] }
 0x148   :  { %v1326_v44 = vpack.c.bf16 %v6281_v20, %v6278_v16  ;;  %v4329_v55 = vunpack.i.l.bf16 %v6144_v38  ;;  %1706 = vmatmul.mubr.bf16.gmra.mxu0 %v1316_v11  ;;  %v7862_v61 = vunpack.i.l.bf16 %v5937_v15  ;;  %v7863_v10 = vunpack.i.h.bf16 %v5937_v15 }
 0x149   :  { %v7864_v7 = vpack.c.bf16 %v5928_v35, %v5922_v21  ;;  %v1105_v34 = vsel %vm81_vm0, %v4947_v27, %v3984_v28  ;;  %v1106_v38 = vsel %vm81_vm0, %v4948_v41, %v3985_v24  ;;  %v1251_v15 = vsel %vm1224_vm5, %v5916_v1, %v949_v23  ;;  %v4951_v23 = vld [vmem:[#allocation2 + $0xc1] sm:$0xff]  ;;  %v4952_v27 = vld [vmem:[#allocation2 + $0xc9] sm:$0xff] }
 0x14a   :  { %v1249_v62 = vsel %vm1224_vm5, %v7862_v61, %v4379_v4  ;;  %v1250_v2 = vsel %vm1224_vm5, %v7863_v10, %v4380_v9  ;;  %v1306_v60 = vpack.c.bf16 %v1266_v58, %v1265_v48  ;;  %v7865_v52 = vunpack.i.l.bf16 %v5491_v36  ;;  %v7873_v4 = vld [vmem:[#allocation37_spill] sm:$0xff]  ;;  %v7881_v41 = vld [vmem:[#allocation39_spill] sm:$0xff] }
 0x14b   :  { %1713 = vmatprep.mubr.bf16.mxu0 %v7864_v7  ;;  %v6301_v40 = vsel %vm1252_vm6, %v1249_v62, %v4384_v0  ;;  %v1278_v54 = vsel %vm1252_vm6, %v1250_v2, %v4385_v59  ;;  %v4335_v28 = vunpack.i.h.bf16 %v6139_v49  ;;  %v4334_v22 = vunpack.i.l.bf16 %v6139_v49  ;;  %v7871_v49 = vld [vmem:[#allocation30_spill] sm:$0xff] }
 0x14c   :  { %v1133_v21 = vsel %vm1112_vm3, %v1105_v34, %v7865_v52  ;;  %v1330_v35 = vpack.c.bf16 %v1278_v54, %v6301_v40  ;;  %v1279_v24 = vsel %vm1252_vm6, %v1251_v15, %v1057_v32  ;;  %v7866_v13 = vunpack.i.h.bf16 %v5491_v36  ;;  %1826 = vmatmul.mubr.bf16.gmra.mxu1 %v1306_v60  ;;  %v7877_v32 = vld [vmem:[#allocation18_spill] sm:$0xff] }
 0x14d   :  { %v1239_v1 = vsel %vm1224_vm5, %v4229_v33, %v4329_v55  ;;  %v7867_v8 = vunpack.i.h.bf16 %v5809_v5  ;;  %v7870_v29 = vpack.c.bf16 %v7868_v42, %v7869_v57  ;;  %v3990_v18 = vunpack.i.h.bf16 %v7871_v49  ;;  %v7876_v55 = vld [vmem:[#allocation15_spill] sm:$0xff]  ;;  %v7894_v42 = vld [vmem:[#allocation20_spill] sm:$0xff] }
 0x14e   :  { %v1134_v19 = vsel %vm1112_vm3, %v1106_v38, %v7866_v13  ;;  %v3989_v36 = vunpack.i.l.bf16 %v7871_v49  ;;  %v1267_v59 = vsel %vm1252_vm6, %v1239_v1, %v4334_v22  ;;  %v7872_v5 = vpack.c.bf16 %v5913_v43, %v5907_v50  ;;  %v7879_v43 = vld [vmem:[#allocation33_spill] sm:$0xff]  ;;  %v7887_v22 = vld [vmem:[#allocation32_spill] sm:$0xff] }
 0x14f   :  { %v1240_v51 = vsel %vm1224_vm5, %v7867_v8, %v4330_v53  ;;  %3737 = vmatprep.mubr.msk.bf16.mxu1 %vm81_vm0, %v7870_v29  ;;  %v1320_v6 = vpack.c.bf16 %v1134_v19, %v1133_v21  ;;  %v1108_v9 = vsel %vm81_vm0, %v4950_v46, %v3990_v18  ;;  %v7874_v11 = vunpack.i.l.bf16 %v7873_v4  ;;  %v328_v29 = vld [vmem:[#allocation2 + $0xdf] sm:$0xff] }
 0x150   :  { %v1268_v0 = vsel %vm1252_vm6, %v1240_v51, %v4335_v28  ;;  %v1107_v63 = vsel %vm81_vm0, %v4949_v31, %v3989_v36  ;;  %v7875_v58 = vunpack.i.h.bf16 %v7873_v4  ;;  %v7878_v50 = vpack.c.bf16 %v7876_v55, %v7877_v32  ;;  %v4953_v28 = vld [vmem:[#allocation2 + $0xd1] sm:$0xff] }
 0x151   :  { %1714 = vmatmul.mubr.bf16.gmra.mxu0 %v1320_v6  ;;  %v1310_v33 = vpack.c.bf16 %v1268_v0, %v1267_v59  ;;  %v1135_v48 = vsel %vm1112_vm3, %v1107_v63, %v7874_v11  ;;  %v3995_v61 = vunpack.i.h.bf16 %v7879_v43  ;;  %v3994_v62 = vunpack.i.l.bf16 %v7879_v43  ;;  %v7893_v51 = vld [vmem:[#allocation25_spill] sm:$0xff]  ;;  %v6407_v55 = vpop.permute.xlu0 %1918 }
 0x152   :  { %1721 = vmatprep.mubr.bf16.mxu0 %v7872_v5  ;;  %v1136_v53 = vsel %vm1112_vm3, %v1108_v9, %v7875_v58  ;;  %v7880_v2 = vpack.c.bf16 %v5968_v37, %v5962_v39  ;;  %v7882_v38 = vunpack.i.l.bf16 %v7881_v41  ;;  %v7883_v54 = vunpack.i.h.bf16 %v7881_v41  ;;  %v7884_v39 = vld [vmem:[#allocation21_spill] sm:$0xff]  ;;  %v7885_v37 = vld [vmem:[#allocation16_spill] sm:$0xff] }
 0x153   :  { %v1324_v10 = vpack.c.bf16 %v1136_v53, %v1135_v48  ;;  %v1109_v7 = vsel %vm81_vm0, %v4951_v23, %v3994_v62  ;;  %v1110_v34 = vsel %vm81_vm0, %v4952_v27, %v3995_v61  ;;  %v7886_v60 = vpack.c.bf16 %v7884_v39, %v7885_v37 }
 0x154   :  { %1834 = vmatmul.mubr.bf16.gmra.mxu1 %v1310_v33  ;;  %v1137_v40 = vsel %vm1112_vm3, %v1109_v7, %v7882_v38  ;;  %v1138_v15 = vsel %vm1112_vm3, %v1110_v34, %v7883_v54  ;;  %v1333_v21 = vpack.c.bf16 %v5935_v25, %v5935_v25  ;;  %v1111_v13 = vsel %vm81_vm0, %v4953_v28, %v7887_v22  ;;  %v7890_v25 = vld [vmem:[#allocation19_spill] sm:$0xff] }
 0x155   :  { %3738 = vmatprep.mubr.msk.bf16.mxu1 %vm81_vm0, %v7878_v50  ;;  %v1328_v52 = vpack.c.bf16 %v1138_v15, %v1137_v40  ;;  %v7888_v19 = vmov 0.0   ;;  %v1139_v14 = vsel %vm1112_vm3, %v1111_v13, %v7889_v12  ;;  %v7895_v57 = vpack.c.bf16 %v7893_v51, %v7894_v42 }
 0x156   :  { %2079 = vst.msk [vmem:[#allocation3] sm:$0xff] %vm2078_vm7, %v7888_v19  ;;  %2080 = vst.msk [vmem:[#allocation3 + $0xe0] sm:$0xff] %vm2078_vm7, %v7888_v19  ;;  %v1332_v8 = vpack.c.bf16 %v1139_v14, %v1139_v14  ;;  %v1335_v49 = vpack.c.bf16 %v328_v29, %v328_v29  ;;  %v1334_v47 = vpack.c.bf16 %v1279_v24, %v1279_v24  ;;  %vm3396_vm1 = vcmask 220160  }
 0x159   :  { %1722 = vmatmul.mubr.bf16.gmra.mxu0 %v1324_v10  ;;  %v6412_v10 = vpop.permute.xlu1 %1923 }
 0x15a   :  { %1729 = vmatprep.mubr.bf16.mxu0 %v7880_v2 }
 0x15c   :  { %1842 = vmatmul.mubr.bf16.gmra.mxu1 %v1314_v56  ;;  %v7891_v56 = vld [vmem:[#allocation22_spill] sm:$0xff] }
 0x15d   :  { %3739 = vmatprep.mubr.msk.bf16.mxu1 %vm81_vm0, %v7886_v60  ;;  %v7892_v1 = vpack.c.bf16 %v7890_v25, %v7891_v56 }
 0x161   :  { %1730 = vmatmul.mubr.bf16.gmra.mxu0 %v1328_v52  ;;  %v6424_v52 = vpop.permute.xlu1 %1928 }
 0x162   :  { %1737 = vmatprep.mubr.bf16.mxu0 %v1333_v21 }
 0x164   :  { %1850 = vmatmul.mubr.bf16.gmra.mxu1 %v1318_v45  ;;  %v7898_v45 = vpack.c.bf16 %v7896_v17, %v7897_v26 }
 0x165   :  { %3740 = vmatprep.mubr.msk.bf16.mxu1 %vm81_vm0, %v7892_v1  ;;  %v6433_v1 = vpop.permute.xlu0 %1933 }
 0x169   :  { %1738 = vmatmul.mubr.bf16.gmra.mxu0 %v1332_v8 }
 0x16c   :  { %1858 = vmatmul.mubr.bf16.gmra.mxu1 %v1322_v3 }
 0x16d   :  { %3741 = vmatprep.mubr.msk.bf16.mxu1 %vm81_vm0, %v7895_v57 }
 0x174   :  { %1866 = vmatmul.mubr.bf16.gmra.mxu1 %v1326_v44 }
 0x175   :  { %3742 = vmatprep.mubr.msk.bf16.mxu1 %vm81_vm0, %v7898_v45 }
 0x17c   :  { %1874 = vmatmul.mubr.bf16.gmra.mxu1 %v1330_v35  ;;  %v6400_v35 = vld [vmem:[%s7678_s3] ss:$0 sm:$0xff]  ;;  %s4972_s3 = smov 3  }
 0x17d   :  { %3743 = vmatprep.mubr.msk.bf16.mxu1 %vm81_vm0, %v1335_v49  ;;  %vm3332_vm0 = vcmask 195584  }
 0x184   :  { %1882 = vmatmul.mubr.bf16.gmra.mxu1 %v1334_v47 }
 0x1bd   :  { %v3777_v30 = vpop.f32.mrf.mxu0 }
 0x1bf   :  { %v3778_v3 = vpop.f32.mrf.mxu0 }
 0x1c0   :  { %v3779_v31 = vadd.f32 %v3778_v3, %v3777_v30  ;;  %v6442_v3 = vpop.permute.xlu1 %1938 }
 0x1c1   :  { %v3780_v18 = vpop.f32.mrf.mxu0 }
 0x1c2   :  { %v1636_v9 = vadd.f32 %v3779_v31, %v6400_v35 }
 0x1c3   :  { %v3781_v36 = vpop.f32.mrf.mxu0 }
 0x1c4   :  { %v3782_v46 = vadd.f32 %v3781_v36, %v3780_v18 }
 0x1c5   :  { %v3783_v6 = vpop.f32.mrf.mxu0 }
 0x1c6   :  { %v1639_v43 = vadd.f32 %v3782_v46, %v6400_v35 }
 0x1c7   :  { %v3784_v59 = vpop.f32.mrf.mxu0 }
 0x1c8   :  { %v3785_v32 = vadd.f32 %v3784_v59, %v3783_v6 }
 0x1c9   :  { %v3786_v16 = vpop.f32.mrf.mxu0 }
 0x1ca   :  { %v1644_v38 = vadd.f32 %v3785_v32, %v6400_v35 }
 0x1cb   :  { %v3787_v20 = vpop.f32.mrf.mxu0 }
 0x1cc   :  { %v3788_v34 = vadd.f32 %v3787_v20, %v3786_v16 }
 0x1cd   :  { %v3789_v44 = vpop.f32.mrf.mxu0 }
 0x1ce   :  { %v1647_v22 = vadd.f32 %v3788_v34, %v6400_v35 }
 0x1cf   :  { %v3790_v0 = vpop.f32.mrf.mxu0 }
 0x1d0   :  { %v3791_v21 = vadd.f32 %v3790_v0, %v3789_v44 }
 0x1d1   :  { %v3792_v5 = vpop.f32.mrf.mxu0 }
 0x1d2   :  { %v1652_v42 = vadd.f32 %v3791_v21, %v6400_v35 }
 0x1d3   :  { %v3793_v33 = vpop.f32.mrf.mxu0 }
 0x1d4   :  { %v3794_v8 = vadd.f32 %v3793_v33, %v3792_v5 }
 0x1d5   :  { %v3795_v63 = vpop.f32.mrf.mxu0 }
 0x1d6   :  { %v1655_v6 = vadd.f32 %v3794_v8, %v6400_v35 }
 0x1d7   :  { %v3796_v24 = vpop.f32.mrf.mxu0 }
 0x1d8   :  { %v3797_v18 = vadd.f32 %v3796_v24, %v3795_v63  ;;  %v6452_v24 = vpop.permute.xlu0 %1943 }
 0x1d9   :  { %v6403_v4 = vpop.f32.mrf.mxu0 }
 0x1da   :  { %v1779_v11 = vpop.f32.mrf.mxu1 }
 0x1db   :  { %v1780_v48 = vadd.f32 %v1779_v11, %v1636_v9  ;;  %v6405_v58 = vpop.f32.mrf.mxu0  ;;  %v1660_v11 = vadd.f32 %v3797_v18, %v6400_v35 }
 0x1dc   :  { %v1781_v53 = vpop.f32.mrf.mxu1  ;;  %v3800_v46 = vadd.f32 %v6405_v58, %v6403_v4 }
 0x1dd   :  { %v1889_v50 = vmax.f32 %v1780_v48, 0.0  ;;  %v6410_v61 = vpop.f32.mrf.mxu0 }
 0x1de   :  { %v1782_v62 = vpop.f32.mrf.mxu1 }
 0x1df   :  { %v2051_v2 = vmul.f32 %v6407_v55, %v1889_v50  ;;  %v1783_v23 = vadd.f32 %v1782_v62, %v1639_v43  ;;  %v6415_v7 = vpop.f32.mrf.mxu0 }
 0x1e0   :  { %v1784_v27 = vpop.f32.mrf.mxu1  ;;  %v3803_v4 = vadd.f32 %v6415_v7, %v6410_v61 }
 0x1e1   :  { %2081 = vst.msk [vmem:[#allocation3 + $0x8] sm:$0xff] %vm2078_vm7, %v2051_v2  ;;  %v1890_v41 = vmax.f32 %v1783_v23, 0.0  ;;  %v6419_v40 = vpop.f32.mrf.mxu0 }
 0x1e2   :  { %v1787_v54 = vpop.f32.mrf.mxu1 }
 0x1e3   :  { %v2052_v15 = vmul.f32 %v6412_v10, %v1890_v41  ;;  %v1788_v39 = vadd.f32 %v1787_v54, %v1644_v38  ;;  %v6422_v37 = vpop.f32.mrf.mxu0  ;;  %v6468_v41 = vpop.permute.xlu1 %1948  ;;  %v1663_v54 = vadd.f32 %v3800_v46, %v6400_v35 }
 0x1e4   :  { %v1789_v60 = vpop.f32.mrf.mxu1 }
 0x1e5   :  { %2082 = vst.msk [vmem:[#allocation3 + $0x10] sm:$0xff] %vm2078_vm7, %v2052_v15  ;;  %v1891_v28 = vmax.f32 %v1788_v39, 0.0  ;;  %v6428_v13 = vpop.f32.mrf.mxu0 }
 0x1e6   :  { %v1790_v19 = vpop.f32.mrf.mxu1 }
 0x1e7   :  { %v2053_v12 = vmul.f32 %v6424_v52, %v1891_v28  ;;  %v1791_v14 = vadd.f32 %v1790_v19, %v1647_v22  ;;  %v6431_v25 = vpop.f32.mrf.mxu0 }
 0x1e8   :  { %v1792_v56 = vpop.f32.mrf.mxu1  ;;  %v2135_v47 = vld [vmem:[#allocation3 + $0x2] sm:$0xff] }
 0x1e9   :  { %2083 = vst.msk [vmem:[#allocation3 + $0x18] sm:$0xff] %vm2078_vm7, %v2053_v12  ;;  %v1892_v51 = vmax.f32 %v1791_v14, 0.0  ;;  %v6437_v57 = vpop.f32.mrf.mxu0  ;;  %v2162_v63 = vld [vmem:[#allocation3 + $0x3] sm:$0xff]  ;;  %v1668_v14 = vadd.f32 %v3803_v4, %v6400_v35 }
 0x1ea   :  { %v1795_v17 = vpop.f32.mrf.mxu1  ;;  %v2189_v34 = vld [vmem:[#allocation3 + $0x7] sm:$0xff] }
 0x1eb   :  { %v2054_v26 = vmul.f32 %v6433_v1, %v1892_v51  ;;  %v1796_v45 = vadd.f32 %v1795_v17, %v1652_v42  ;;  %v6440_v29 = vpop.f32.mrf.mxu0  ;;  %v2216_v8 = vld [vmem:[#allocation3 + $0x8] sm:$0xff]  ;;  %v6481_v51 = vpop.permute.xlu0 %1953  ;;  %v3806_v42 = vadd.f32 %v6422_v37, %v6419_v40  ;;  %v3809_v40 = vadd.f32 %v6431_v25, %v6428_v13 }
 0x1ec   :  { %v1797_v49 = vpop.f32.mrf.mxu1  ;;  %v2136_v30 = vld [vmem:[#allocation3 + $0xa] sm:$0xff] }
 0x1ed   :  { %2084 = vst.msk [vmem:[#allocation3 + $0x20] sm:$0xff] %vm2078_vm7, %v2054_v26  ;;  %v1893_v36 = vmax.f32 %v1796_v45, 0.0  ;;  %v4388_v59 = vpack.i.bf16 %v2136_v30, %v2135_v47  ;;  %v6446_v16 = vpop.f32.mrf.mxu0  ;;  %v2163_v44 = vld [vmem:[#allocation3 + $0xb] sm:$0xff] }
 0x1ee   :  { %v1798_v20 = vpop.f32.mrf.mxu1  ;;  %v4393_v48 = vpack.i.bf16 %v2163_v44, %v2162_v63  ;;  %v6460_v50 = vld [vmem:[#allocation3 + $0xf] sm:$0xff] }
 0x1ef   :  { %v2055_v0 = vmul.f32 %v6442_v3, %v1893_v36  ;;  %v1799_v5 = vadd.f32 %v1798_v20, %v1655_v6  ;;  %4389 = vrot.lane.b32.xlu0 %v4388_v59, %s4972_s3  ;;  %v6450_v33 = vpop.f32.mrf.mxu0  ;;  %v4398_v39 = vpack.i.bf16 %v6460_v50, %v2189_v34  ;;  %v2217_v7 = vld [vmem:[#allocation3 + $0x10] sm:$0xff]  ;;  %v6518_v34 = vpop.permute.xlu0 %1963 }
 0x1f0   :  { %v1800_v31 = vpop.f32.mrf.mxu1  ;;  %v2137_v23 = vld [vmem:[#allocation3 + $0x12] sm:$0xff]  ;;  %v4403_v45 = vpack.i.bf16 %v2217_v7, %v2216_v8  ;;  %v6499_v44 = vld [vmem:[#allocation3 + $0x9] sm:$0xff]  ;;  %7899 = vst [vmem:[#allocation41_spill] sm:$0xff] %v6518_v34  ;;  %v4935_v8 = vld [vmem:[%s7679_s4 + $0x8] sm:$0x3f]  }
 0x1f1   :  { %2085 = vst.msk [vmem:[#allocation3 + $0x28] sm:$0xff] %vm2078_vm7, %v2055_v0  ;;  %v1894_v9 = vmax.f32 %v1799_v5, 0.0  ;;  %v6458_v53 = vpop.f32.mrf.mxu0  ;;  %v2164_v56 = vld [vmem:[#allocation3 + $0x13] sm:$0xff]  ;;  %v6501_v0 = vpop.permute.xlu1 %1958  ;;  %v1671_v31 = vadd.f32 %v3806_v42, %v6400_v35  ;;  %v4978_v42 = vmov 65535  }
 0x1f2   :  { %v1803_v32 = vpop.f32.mrf.mxu1  ;;  %v2110_v18 = vld [vmem:[#allocation3 + $0x11] sm:$0xff] }
 0x1f3   :  { %v2056_v43 = vmul.f32 %v6452_v24, %v1894_v9  ;;  %v1804_v62 = vadd.f32 %v1803_v32, %v1660_v11  ;;  %4394 = vrot.lane.b32.xlu0 %v4393_v48, %s4973_s26  ;;  %v6466_v58 = vpop.f32.mrf.mxu0  ;;  %v6497_v20 = vld [vmem:[#allocation3 + $0x17] sm:$0xff]  ;;  %v4408_v46 = vpack.i.bf16 %v2110_v18, %v6499_v44 }
 0x1f4   :  { %v1805_v2 = vpop.f32.mrf.mxu1  ;;  %v2138_v27 = vld [vmem:[#allocation3 + $0x1a] sm:$0xff] }
 0x1f5   :  { %2086 = vst.msk [vmem:[#allocation3 + $0x30] sm:$0xff] %vm2078_vm7, %v2056_v43  ;;  %v1895_v38 = vmax.f32 %v1804_v62, 0.0  ;;  %v4428_v15 = vpack.i.bf16 %v2138_v27, %v2137_v23  ;;  %v2165_v61 = vld [vmem:[#allocation3 + $0x1b] sm:$0xff]  ;;  %v3812_v43 = vadd.f32 %v6440_v29, %v6437_v57  ;;  %v1676_v2 = vadd.f32 %v3809_v40, %v6400_v35  ;;  %v2244_v27 = vld [vmem:[#allocation3 + $0xd] sm:$0xff] }
 0x1f6   :  { %v6473_v60 = vpop.f32.mrf.mxu0  ;;  %v1806_v21 = vpop.f32.mrf.mxu1  ;;  %v4433_v26 = vpack.i.bf16 %v2165_v61, %v2164_v56  ;;  %v6488_v30 = vld [vmem:[#allocation3 + $0x1f] sm:$0xff]  ;;  %v2245_v11 = vld [vmem:[#allocation3 + $0x15] sm:$0xff] }
 0x1f7   :  { %v2057_v28 = vmul.f32 %v6468_v41, %v1895_v38  ;;  %v1807_v22 = vadd.f32 %v1806_v21, %v1663_v54  ;;  %4429 = vrot.lane.b32.xlu1 %v4428_v15, %s4972_s3  ;;  %4399 = vrot.lane.b32.xlu0 %v4398_v39, %s4974_s27  ;;  %v4438_v63 = vpack.i.bf16 %v6488_v30, %v6497_v20  ;;  %v2219_v9 = vld [vmem:[#allocation3 + $0x20] sm:$0xff]  ;;  %v2218_v23 = vld [vmem:[#allocation3 + $0x18] sm:$0xff]  ;;  %v2271_v56 = vld [vmem:[#allocation3 + $0xe] sm:$0xff] }
 0x1f8   :  { %v6478_v19 = vpop.f32.mrf.mxu0  ;;  %v1808_v12 = vpop.f32.mrf.mxu1  ;;  %v4443_v54 = vpack.i.bf16 %v2219_v9, %v2218_v23  ;;  %v4413_v15 = vpack.i.bf16 %v2245_v11, %v2244_v27  ;;  %v2272_v39 = vld [vmem:[#allocation3 + $0x16] sm:$0xff]  ;;  %v2112_v57 = vld [vmem:[#allocation3 + $0x21] sm:$0xff] }
 0x1f9   :  { %2087 = vst.msk [vmem:[#allocation3 + $0x38] sm:$0xff] %vm2078_vm7, %v2057_v28  ;;  %v1896_v17 = vmax.f32 %v1807_v22, 0.0  ;;  %v1679_v12 = vadd.f32 %v3812_v43, %v6400_v35  ;;  %v6551_v11 = vpop.permute.xlu0 %1973  ;;  %v4936_v27 = vld [vmem:[%s7679_s4] sm:$0xff]  }
 0x1fa   :  { %v6486_v49 = vpop.f32.mrf.mxu0  ;;  %v1811_v47 = vpop.f32.mrf.mxu1 }
 0x1fb   :  { %v2058_v36 = vmul.f32 %v6481_v51, %v1896_v17  ;;  %v1812_v6 = vadd.f32 %v1811_v47, %v1668_v14  ;;  %4434 = vrot.lane.b32.xlu1 %v4433_v26, %s4973_s26  ;;  %4404 = vrot.lane.b32.xlu0 %v4403_v45, %s4975_s28  ;;  %v6529_v14 = vld [vmem:[#allocation3 + $0x19] sm:$0xff]  ;;  %v3441_v17 = vsel %vm3439_vm8, 4294967295, %v4978_v42  ;;  %v6535_v26 = vpop.permute.xlu1 %1968  ;;  %v3815_v45 = vadd.f32 %v6450_v33, %v6446_v16 }
 0x1fc   :  { %v6495_v37 = vpop.f32.mrf.mxu0  ;;  %v1813_v59 = vpop.f32.mrf.mxu1  ;;  %v4448_v18 = vpack.i.bf16 %v2112_v57, %v6529_v14  ;;  %v3818_v16 = vadd.f32 %v6466_v58, %v6458_v53  ;;  %v2274_v53 = vld [vmem:[#allocation3 + $0x26] sm:$0xff] }
 0x1fd   :  { %2088 = vst.msk [vmem:[#allocation3 + $0x40] sm:$0xff] %vm2078_vm7, %v2058_v36  ;;  %v1897_v5 = vmax.f32 %v1812_v6, 0.0  ;;  %v4418_v36 = vpack.i.bf16 %v2272_v39, %v2271_v56  ;;  %v2247_v59 = vld [vmem:[#allocation3 + $0x25] sm:$0xff] }
 0x1fe   :  { %v6508_v13 = vpop.f32.mrf.mxu0  ;;  %v1814_v25 = vpop.f32.mrf.mxu1  ;;  %v2140_v58 = vld [vmem:[#allocation3 + $0x2a] sm:$0xff]  ;;  %v2273_v39 = vld [vmem:[#allocation3 + $0x1e] sm:$0xff] }
 0x1ff   :  { %v2059_v48 = vmul.f32 %v6501_v0, %v1897_v5  ;;  %v1815_v32 = vadd.f32 %v1814_v25, %v1671_v31  ;;  %4439 = vrot.lane.b32.xlu1 %v4438_v63, %s4974_s27  ;;  %4409 = vrot.lane.b32.xlu0 %v4408_v46, %s4976_s29  ;;  %v3442_v5 = vsel %vm3440_vm9, %v3441_v17, 0  ;;  %v2246_v25 = vld [vmem:[#allocation3 + $0x1d] sm:$0xff]  ;;  %v6568_v57 = vpop.permute.xlu1 %1978  ;;  %v2193_v56 = vld [vmem:[#allocation3 + $0x27] sm:$0xff] }
 0x200   :  { %v6515_v62 = vpop.f32.mrf.mxu0  ;;  %v1816_v4 = vpop.f32.mrf.mxu1  ;;  %v3444_v9 = vand.u32 %v4935_v8, %v3442_v5  ;;  %v4453_v43 = vpack.i.bf16 %v2247_v59, %v2246_v25  ;;  %7900 = vst [vmem:[#allocation44_spill] sm:$0xff] %v6568_v57  ;;  %v2167_v17 = vld [vmem:[#allocation3 + $0x2b] sm:$0xff]  ;;  %v3824_v59 = vadd.f32 %v6495_v37, %v6486_v49 }
 0x201   :  { %2089 = vst.msk [vmem:[#allocation3 + $0x48] sm:$0xff] %vm2078_vm7, %v2059_v48  ;;  %v1898_v38 = vmax.f32 %v1815_v32, 0.0  ;;  %v1684_v32 = vadd.f32 %v3815_v45, %v6400_v35  ;;  %v4423_v4 = vpack.i.bf16 %v6497_v20, %v6460_v50 }
 0x202   :  { %v6521_v21 = vpop.f32.mrf.mxu0  ;;  %v1819_v61 = vpop.f32.mrf.mxu1  ;;  %3877 = vmatprep.subr.bf16.mxu0 %v3444_v9  ;;  %3909 = vmatprep.subr.bf16.mxu1 %v3444_v9 }
 0x203   :  { %v2060_v29 = vmul.f32 %v6518_v34, %v1898_v38  ;;  %v1820_v7 = vadd.f32 %v1819_v61, %v1676_v2  ;;  %4444 = vrot.lane.b32.xlu1 %v4443_v54, %s4975_s28  ;;  %4414 = vrot.lane.b32.xlu0 %v4413_v15, %s4977_s30  ;;  %v1687_v15 = vadd.f32 %v3818_v16, %v6400_v35  ;;  %v2139_v61 = vld [vmem:[#allocation3 + $0x22] sm:$0xff]  ;;  %v6587_v16 = vld [vmem:[#allocation3 + $0x2f] sm:$0xff] }
 0x204   :  { %v6526_v28 = vpop.f32.mrf.mxu0  ;;  %v1821_v22 = vpop.f32.mrf.mxu1  ;;  %3878 = vmatpush3.bf16.msra.mxu0 %v3444_v9  ;;  %3911 = vmatpush3.bf16.msra.mxu1 %v3444_v9 }
 0x205   :  { %2090 = vst.msk [vmem:[#allocation3 + $0x50] sm:$0xff] %vm2078_vm7, %v2060_v29  ;;  %v1899_v47 = vmax.f32 %v1820_v7, 0.0  ;;  %v3821_v29 = vadd.f32 %v6478_v19, %v6473_v60  ;;  %v4458_v22 = vpack.i.bf16 %v2274_v53, %v2273_v39  ;;  %3879 = vmatprep.subr.bf16.mxu0 %v4936_v27  ;;  %3910 = vmatprep.subr.bf16.mxu1 %v4936_v27 }
 0x206   :  { %v1822_v40 = vpop.f32.mrf.mxu1 }
 0x207   :  { %v2061_v31 = vmul.f32 %v6535_v26, %v1899_v47  ;;  %v1823_v63 = vadd.f32 %v1822_v40, %v1679_v12  ;;  %4449 = vrot.lane.b32.xlu1 %v4448_v18, %s4976_s29  ;;  %4419 = vrot.lane.b32.xlu0 %v4418_v36, %s4979_s9  ;;  %v4468_v12 = vpack.i.bf16 %v2140_v58, %v2139_v61  ;;  %v2166_v36 = vld [vmem:[#allocation3 + $0x23] sm:$0xff]  ;;  %v6581_v40 = vpop.permute.xlu0 %1983 }
 0x208   :  { %v6541_v6 = vpop.f32.mrf.mxu0  ;;  %v1824_v46 = vpop.f32.mrf.mxu1  ;;  %v4463_v18 = vpack.i.bf16 %v2193_v56, %v6488_v30  ;;  %3880 = vmatpush3.bf16.msra.mxu0 %v4936_v27  ;;  %3912 = vmatpush3.bf16.msra.mxu1 %v4936_v27  ;;  %7901 = vst [vmem:[#allocation26_spill] sm:$0xff] %v6581_v40  ;;  %v2142_v30 = vld [vmem:[#allocation3 + $0x3a] sm:$0xff]  ;;  %v1695_v58 = vadd.f32 %v3824_v59, %v6400_v35 }
 0x209   :  { %2091 = vst.msk [vmem:[#allocation3 + $0x58] sm:$0xff] %vm2078_vm7, %v2061_v31  ;;  %v1900_v48 = vmax.f32 %v1823_v63, 0.0  ;;  %v1692_v31 = vadd.f32 %v3821_v29, %v6400_v35  ;;  %v4473_v63 = vpack.i.bf16 %v2167_v17, %v2166_v36  ;;  %v2220_v29 = vld [vmem:[#allocation3 + $0x28] sm:$0xff]  ;;  %v6618_v36 = vld [vmem:[#allocation3 + $0x3f] sm:$0xff] }
 0x20a   :  { %v6549_v33 = vpop.f32.mrf.mxu0 }
 0x20b   :  { %v2062_v38 = vmul.f32 %v6551_v11, %v1900_v48  ;;  %4454 = vrot.lane.b32.xlu1 %v4453_v43, %s4977_s30  ;;  %4424 = vrot.lane.b32.xlu0 %v4423_v4, %s4980_s11  ;;  %v4478_v43 = vpack.i.bf16 %v6587_v16, %v2193_v56  ;;  %v6597_v4 = vpop.permute.xlu1 %1988  ;;  %v3830_v56 = vadd.f32 %v6526_v28, %v6521_v21  ;;  %v6623_v21 = vld [vmem:[#allocation3 + $0x29] sm:$0xff] }
 0x20c   :  { %v6557_v2 = vpop.f32.mrf.mxu0  ;;  %v1827_v23 = vpop.f32.mrf.mxu1  ;;  %7902 = vst [vmem:[#allocation27_spill] sm:$0xff] %v6597_v4 }
 0x20d   :  { %v1828_v54 = vadd.f32 %v1827_v23, %v1684_v32  ;;  %2092 = vst.msk [vmem:[#allocation3 + $0x60] sm:$0xff] %vm2078_vm7, %v2062_v38  ;;  %v2141_v32 = vld [vmem:[#allocation3 + $0x32] sm:$0xff]  ;;  %v3827_v23 = vadd.f32 %v6515_v62, %v6508_v13 }
 0x20e   :  { %v6565_v50 = vpop.f32.mrf.mxu0  ;;  %v1829_v20 = vpop.f32.mrf.mxu1  ;;  %v4508_v27 = vpack.i.bf16 %v2142_v30, %v2141_v32  ;;  %v2221_v38 = vld [vmem:[#allocation3 + $0x30] sm:$0xff] }
 0x20f   :  { %v1901_v7 = vmax.f32 %v1828_v54, 0.0  ;;  %4459 = vrot.lane.b32.xlu1 %v4458_v22, %s4979_s9  ;;  %4469 = vrot.lane.b32.xlu0 %v4468_v12, %s4972_s3  ;;  %v4483_v22 = vpack.i.bf16 %v2221_v38, %v2220_v29  ;;  %v6610_v12 = vpop.permute.xlu0 %1993  ;;  %v1700_v17 = vadd.f32 %v3827_v23, %v6400_v35  ;;  %v6630_v30 = vpop.permute.xlu1 %1998  ;;  %v3836_v29 = vadd.f32 %v6565_v50, %v6557_v2 }
 0x210   :  { %v1830_v42 = vpop.f32.mrf.mxu1  ;;  %7903 = vst [vmem:[#allocation34_spill] sm:$0xff] %v6610_v12  ;;  %7904 = vst [vmem:[#allocation4_spill] sm:$0xff] %v6630_v30 }
 0x211   :  { %v6573_v8 = vpop.f32.mrf.mxu0  ;;  %v2063_v45 = vmul.f32 %v6568_v57, %v1901_v7  ;;  %v1831_v47 = vadd.f32 %v1830_v42, %v1687_v15  ;;  %v2169_v15 = vld [vmem:[#allocation3 + $0x3b] sm:$0xff]  ;;  %v2168_v7 = vld [vmem:[#allocation3 + $0x33] sm:$0xff] }
 0x212   :  { %v1832_v19 = vpop.f32.mrf.mxu1 }
 0x213   :  { %v6578_v60 = vpop.f32.mrf.mxu0  ;;  %2093 = vst.msk [vmem:[#allocation3 + $0x68] sm:$0xff] %vm2078_vm7, %v2063_v45  ;;  %v1902_v5 = vmax.f32 %v1831_v47, 0.0  ;;  %4464 = vrot.lane.b32.xlu1 %v4463_v18, %s4980_s11  ;;  %4474 = vrot.lane.b32.xlu0 %v4473_v63, %s4973_s26  ;;  %v4513_v45 = vpack.i.bf16 %v2169_v15, %v2168_v7  ;;  %v2114_v47 = vld [vmem:[#allocation3 + $0x31] sm:$0xff] }
 0x214   :  { %v1835_v25 = vpop.f32.mrf.mxu1  ;;  %v6627_v63 = vld [vmem:[#allocation3 + $0x37] sm:$0xff] }
 0x215   :  { %v6589_v46 = vpop.f32.mrf.mxu0  ;;  %v2064_v9 = vmul.f32 %v6581_v40, %v1902_v5  ;;  %v1836_v48 = vadd.f32 %v1835_v25, %v1692_v31  ;;  %v4488_v25 = vpack.i.bf16 %v2114_v47, %v6623_v21  ;;  %v4518_v32 = vpack.i.bf16 %v6618_v36, %v6627_v63  ;;  %v2222_v15 = vld [vmem:[#allocation3 + $0x38] sm:$0xff] }
 0x216   :  { %v1837_v37 = vpop.f32.mrf.mxu1 }
 0x217   :  { %v6594_v49 = vpop.f32.mrf.mxu0  ;;  %2094 = vst.msk [vmem:[#allocation3 + $0x70] sm:$0xff] %vm2078_vm7, %v2064_v9  ;;  %v1903_v53 = vmax.f32 %v1836_v48, 0.0  ;;  %4509 = vrot.lane.b32.xlu1 %v4508_v27, %s4972_s3  ;;  %4479 = vrot.lane.b32.xlu0 %v4478_v43, %s4974_s27  ;;  %v3833_v9 = vadd.f32 %v6549_v33, %v6541_v6  ;;  %v1703_v37 = vadd.f32 %v3830_v56, %v6400_v35  ;;  %v2249_v43 = vld [vmem:[#allocation3 + $0x35] sm:$0xff]  ;;  %v2248_v6 = vld [vmem:[#allocation3 + $0x2d] sm:$0xff] }
 0x218   :  { %v1838_v20 = vpop.f32.mrf.mxu1  ;;  %v2276_v56 = vld [vmem:[#allocation3 + $0x36] sm:$0xff] }
 0x219   :  { %v6603_v54 = vpop.f32.mrf.mxu0  ;;  %v2065_v39 = vmul.f32 %v6597_v4, %v1903_v53  ;;  %v1839_v61 = vadd.f32 %v1838_v20, %v1695_v58  ;;  %v2223_v58 = vld [vmem:[#allocation3 + $0x40] sm:$0xff]  ;;  %v1708_v7 = vadd.f32 %v3833_v9, %v6400_v35  ;;  %v3839_v9 = vadd.f32 %v6578_v60, %v6573_v8 }
 0x21a   :  { %v1840_v62 = vpop.f32.mrf.mxu1  ;;  %v2250_v60 = vld [vmem:[#allocation3 + $0x3d] sm:$0xff] }
 0x21b   :  { %v6608_v13 = vpop.f32.mrf.mxu0  ;;  %2095 = vst.msk [vmem:[#allocation3 + $0x78] sm:$0xff] %vm2078_vm7, %v2065_v39  ;;  %v1904_v42 = vmax.f32 %v1839_v61, 0.0  ;;  %4514 = vrot.lane.b32.xlu1 %v4513_v45, %s4973_s26  ;;  %4484 = vrot.lane.b32.xlu0 %v4483_v22, %s4975_s28  ;;  %v4493_v39 = vpack.i.bf16 %v2249_v43, %v2248_v6  ;;  %v6645_v61 = vpop.permute.xlu0 %2003  ;;  %v4523_v22 = vpack.i.bf16 %v2223_v58, %v2222_v15  ;;  %v2116_v45 = vld [vmem:[#allocation3 + $0x41] sm:$0xff] }
 0x21c   :  { %v1843_v18 = vpop.f32.mrf.mxu1  ;;  %7905 = vst [vmem:[#allocation6_spill] sm:$0xff] %v6645_v61  ;;  %v2251_v58 = vld [vmem:[#allocation3 + $0x45] sm:$0xff] }
 0x21d   :  { %v6616_v19 = vpop.f32.mrf.mxu0  ;;  %v2066_v59 = vmul.f32 %v6610_v12, %v1904_v42  ;;  %v1844_v5 = vadd.f32 %v1843_v18, %v1700_v17 }
 0x21e   :  { %v1845_v31 = vpop.f32.mrf.mxu1 }
 0x21f   :  { %v6625_v28 = vpop.f32.mrf.mxu0  ;;  %2096 = vst.msk [vmem:[#allocation3 + $0x80] sm:$0xff] %vm2078_vm7, %v2066_v59  ;;  %v1905_v48 = vmax.f32 %v1844_v5, 0.0  ;;  %4519 = vrot.lane.b32.xlu1 %v4518_v32, %s4974_s27  ;;  %4489 = vrot.lane.b32.xlu0 %v4488_v25, %s4976_s29  ;;  %v2275_v59 = vld [vmem:[#allocation3 + $0x2e] sm:$0xff]  ;;  %v6658_v5 = vld [vmem:[#allocation3 + $0x39] sm:$0xff]  ;;  %v6660_v25 = vpop.permute.xlu1 %2008 }
 0x220   :  { %v1846_v53 = vpop.f32.mrf.mxu1  ;;  %v4498_v31 = vpack.i.bf16 %v2276_v56, %v2275_v59  ;;  %7906 = vst [vmem:[#allocation40_spill] sm:$0xff] %v6660_v25  ;;  %v4528_v32 = vpack.i.bf16 %v2116_v45, %v6658_v5  ;;  %v6676_v15 = vpop.permute.xlu0 %2013  ;;  %v2144_v45 = vld [vmem:[#allocation3 + $0x4a] sm:$0xff]  ;;  %v2143_v59 = vld [vmem:[#allocation3 + $0x42] sm:$0xff] }
 0x221   :  { %v6638_v23 = vpop.f32.mrf.mxu0  ;;  %v2067_v27 = vmul.f32 %v6630_v30, %v1905_v48  ;;  %v1847_v38 = vadd.f32 %v1846_v53, %v1703_v37  ;;  %v1711_v37 = vadd.f32 %v3836_v29, %v6400_v35  ;;  %7907 = vst [vmem:[#allocation43_spill] sm:$0xff] %v6676_v15 }
 0x222   :  { %v1848_v20 = vpop.f32.mrf.mxu1 }
 0x223   :  { %v6643_v33 = vpop.f32.mrf.mxu0  ;;  %2097 = vst.msk [vmem:[#allocation3 + $0x88] sm:$0xff] %vm2078_vm7, %v2067_v27  ;;  %v1906_v62 = vmax.f32 %v1847_v38, 0.0  ;;  %4524 = vrot.lane.b32.xlu1 %v4523_v22, %s4975_s28  ;;  %4494 = vrot.lane.b32.xlu0 %v4493_v39, %s4977_s30  ;;  %v4503_v20 = vpack.i.bf16 %v6627_v63, %v6587_v16  ;;  %v3842_v39 = vadd.f32 %v6594_v49, %v6589_v46  ;;  %v2278_v22 = vld [vmem:[#allocation3 + $0x46] sm:$0xff]  ;;  %v2277_v16 = vld [vmem:[#allocation3 + $0x3e] sm:$0xff] }
 0x224   :  { %v1851_v17 = vpop.f32.mrf.mxu1  ;;  %v4538_v49 = vpack.i.bf16 %v2278_v22, %v2277_v16 }
 0x225   :  { %v6651_v42 = vpop.f32.mrf.mxu0  ;;  %v2068_v47 = vmul.f32 %v6645_v61, %v1906_v62  ;;  %v1852_v18 = vadd.f32 %v1851_v17, %v1708_v7  ;;  %v1716_v62 = vadd.f32 %v3839_v9, %v6400_v35  ;;  %v4533_v7 = vpack.i.bf16 %v2251_v58, %v2250_v60  ;;  %v2171_v58 = vld [vmem:[#allocation3 + $0x4b] sm:$0xff] }
 0x226   :  { %v1853_v50 = vpop.f32.mrf.mxu1  ;;  %v1719_v9 = vadd.f32 %v3842_v39, %v6400_v35  ;;  %v3848_v60 = vadd.f32 %v6625_v28, %v6616_v19 }
 0x227   :  { %v6656_v2 = vpop.f32.mrf.mxu0  ;;  %2098 = vst.msk [vmem:[#allocation3 + $0x90] sm:$0xff] %vm2078_vm7, %v2068_v47  ;;  %v1907_v48 = vmax.f32 %v1852_v18, 0.0  ;;  %4529 = vrot.lane.b32.xlu1 %v4528_v32, %s4976_s29  ;;  %4499 = vrot.lane.b32.xlu0 %v4498_v31, %s4979_s9  ;;  %v3845_v50 = vadd.f32 %v6608_v13, %v6603_v54  ;;  %v6689_v32 = vpop.permute.xlu1 %2018  ;;  %v2170_v13 = vld [vmem:[#allocation3 + $0x43] sm:$0xff] }
 0x228   :  { %v1854_v53 = vpop.f32.mrf.mxu1  ;;  %7908 = vst [vmem:[#allocation28_spill] sm:$0xff] %v6689_v32  ;;  %v1727_v16 = vadd.f32 %v3848_v60, %v6400_v35  ;;  %v6724_v60 = vld [vmem:[#allocation3 + $0x5f] sm:$0xff] }
 0x229   :  { %v6667_v43 = vpop.f32.mrf.mxu0  ;;  %v2069_v27 = vmul.f32 %v6660_v25, %v1907_v48  ;;  %v1855_v38 = vadd.f32 %v1854_v53, %v1711_v37  ;;  %v4548_v48 = vpack.i.bf16 %v2144_v45, %v2143_v59  ;;  %v2197_v37 = vld [vmem:[#allocation3 + $0x47] sm:$0xff]  ;;  %v1724_v39 = vadd.f32 %v3845_v50, %v6400_v35  ;;  %v2173_v50 = vld [vmem:[#allocation3 + $0x5b] sm:$0xff] }
 0x22a   :  { %v1856_v8 = vpop.f32.mrf.mxu1  ;;  %v4543_v54 = vpack.i.bf16 %v2197_v37, %v6618_v36  ;;  %v2145_v36 = vld [vmem:[#allocation3 + $0x52] sm:$0xff] }
 0x22b   :  { %v6672_v6 = vpop.f32.mrf.mxu0  ;;  %2099 = vst.msk [vmem:[#allocation3 + $0x98] sm:$0xff] %vm2078_vm7, %v2069_v27  ;;  %v1908_v29 = vmax.f32 %v1855_v38, 0.0  ;;  %4534 = vrot.lane.b32.xlu1 %v4533_v7, %s4977_s30  ;;  %4504 = vrot.lane.b32.xlu0 %v4503_v20, %s4980_s11  ;;  %v6701_v7 = vpop.permute.xlu0 %2023 }
 0x22c   :  { %v1859_v17 = vpop.f32.mrf.mxu1  ;;  %7909 = vst [vmem:[#allocation36_spill] sm:$0xff] %v6701_v7 }
 0x22d   :  { %v3858_v56 = vpop.f32.mrf.mxu0  ;;  %v2070_v47 = vmul.f32 %v6676_v15, %v1908_v29  ;;  %v1860_v18 = vadd.f32 %v1859_v17, %v1716_v62  ;;  %v4553_v29 = vpack.i.bf16 %v2171_v58, %v2170_v13  ;;  %v6699_v62 = vld [vmem:[#allocation3 + $0x4f] sm:$0xff] }
 0x22e   :  { %v1861_v46 = vpop.f32.mrf.mxu1  ;;  %v2146_v56 = vld [vmem:[#allocation3 + $0x5a] sm:$0xff]  ;;  %v4558_v28 = vpack.i.bf16 %v6699_v62, %v2197_v37 }
 0x22f   :  { %v3859_v63 = vpop.f32.mrf.mxu0  ;;  %2100 = vst.msk [vmem:[#allocation3 + $0xa0] sm:$0xff] %vm2078_vm7, %v2070_v47  ;;  %v1909_v31 = vmax.f32 %v1860_v18, 0.0  ;;  %4539 = vrot.lane.b32.xlu1 %v4538_v49, %s4979_s9  ;;  %4549 = vrot.lane.b32.xlu0 %v4548_v48, %s4972_s3  ;;  %v3851_v47 = vadd.f32 %v6643_v33, %v6638_v23  ;;  %v2225_v46 = vld [vmem:[#allocation3 + $0x50] sm:$0xff]  ;;  %v6711_v49 = vpop.permute.xlu1 %2028  ;;  %v2224_v48 = vld [vmem:[#allocation3 + $0x48] sm:$0xff] }
 0x230   :  { %v1862_v53 = vpop.f32.mrf.mxu1  ;;  %v4588_v63 = vpack.i.bf16 %v2146_v56, %v2145_v36  ;;  %7910 = vst [vmem:[#allocation9_spill] sm:$0xff] %v6711_v49  ;;  %v2172_v33 = vld [vmem:[#allocation3 + $0x53] sm:$0xff]  ;;  %v4563_v37 = vpack.i.bf16 %v2225_v46, %v2224_v48  ;;  %v3857_v56 = vadd.f32 %v6672_v6, %v6667_v43 }
 0x231   :  { %v2071_v27 = vmul.f32 %v6689_v32, %v1909_v31  ;;  %v1863_v38 = vadd.f32 %v1862_v53, %v1719_v9  ;;  %v3854_v53 = vadd.f32 %v6656_v2, %v6651_v42  ;;  %v6729_v42 = vld [vmem:[#allocation3 + $0x49] sm:$0xff]  ;;  %v2226_v6 = vld [vmem:[#allocation3 + $0x58] sm:$0xff] }
 0x232   :  { %v1864_v8 = vpop.f32.mrf.mxu1  ;;  %v2252_v46 = vld [vmem:[#allocation3 + $0x4d] sm:$0xff] }
 0x233   :  { %2101 = vst.msk [vmem:[#allocation3 + $0xa8] sm:$0xff] %vm2078_vm7, %v2071_v27  ;;  %v1910_v20 = vmax.f32 %v1863_v38, 0.0  ;;  %4544 = vrot.lane.b32.xlu1 %v4543_v54, %s4980_s11  ;;  %4554 = vrot.lane.b32.xlu0 %v4553_v29, %s4973_s26  ;;  %v1732_v27 = vadd.f32 %v3851_v47, %v6400_v35  ;;  %v4593_v38 = vpack.i.bf16 %v2173_v50, %v2172_v33  ;;  %v6720_v8 = vld [vmem:[#allocation3 + $0x51] sm:$0xff]  ;;  %v6722_v54 = vpop.permute.xlu0 %2033  ;;  %v6738_v36 = vpop.permute.xlu1 %2038  ;;  %v2227_v47 = vld [vmem:[#allocation3 + $0x60] sm:$0xff] }
 0x234   :  { %v1867_v22 = vpop.f32.mrf.mxu1  ;;  %7911 = vst [vmem:[#allocation5_spill] sm:$0xff] %v6722_v54  ;;  %v2199_v29 = vld [vmem:[#allocation3 + $0x57] sm:$0xff]  ;;  %7912 = vst [vmem:[#allocation42_spill] sm:$0xff] %v6738_v36  ;;  %v1740_v50 = vadd.f32 %v3857_v56, %v6400_v35  ;;  %v2120_v33 = vld [vmem:[#allocation3 + $0x61] sm:$0xff] }
 0x235   :  { %v2072_v17 = vmul.f32 %v6701_v7, %v1910_v20  ;;  %v1868_v45 = vadd.f32 %v1867_v22, %v1724_v39  ;;  %v4568_v22 = vpack.i.bf16 %v6720_v8, %v6729_v42  ;;  %v2255_v56 = vld [vmem:[#allocation3 + $0x65] sm:$0xff] }
 0x236   :  { %v1869_v19 = vpop.f32.mrf.mxu1 }
 0x237   :  { %2102 = vst.msk [vmem:[#allocation3 + $0xb0] sm:$0xff] %vm2078_vm7, %v2072_v17  ;;  %v1911_v18 = vmax.f32 %v1868_v45, 0.0  ;;  %4589 = vrot.lane.b32.xlu1 %v4588_v63, %s4972_s3  ;;  %4559 = vrot.lane.b32.xlu0 %v4558_v28, %s4974_s27  ;;  %v1735_v45 = vadd.f32 %v3854_v53, %v6400_v35  ;;  %v4598_v19 = vpack.i.bf16 %v6724_v60, %v2199_v29  ;;  %v6745_v48 = vpop.permute.xlu0 %2043 }
 0x238   :  { %v1870_v59 = vpop.f32.mrf.mxu1  ;;  %7913 = vst [vmem:[#allocation45_spill] sm:$0xff] %v6745_v48 }
 0x239   :  { %v2073_v31 = vmul.f32 %v6711_v49, %v1911_v18  ;;  %v1871_v9 = vadd.f32 %v1870_v59, %v1727_v16  ;;  %v2253_v18 = vld [vmem:[#allocation3 + $0x55] sm:$0xff] }
 0x23a   :  { %v1872_v23 = vpop.f32.mrf.mxu1 }
 0x23b   :  { %2103 = vst.msk [vmem:[#allocation3 + $0xb8] sm:$0xff] %vm2078_vm7, %v2073_v31  ;;  %v1912_v58 = vmax.f32 %v1871_v9, 0.0  ;;  %4594 = vrot.lane.b32.xlu1 %v4593_v38, %s4973_s26  ;;  %4564 = vrot.lane.b32.xlu0 %v4563_v37, %s4975_s28  ;;  %v4603_v31 = vpack.i.bf16 %v2227_v47, %v2226_v6  ;;  %v4573_v9 = vpack.i.bf16 %v2253_v18, %v2252_v46  ;;  %v2280_v37 = vld [vmem:[#allocation3 + $0x56] sm:$0xff]  ;;  %v2282_v18 = vld [vmem:[#allocation3 + $0x66] sm:$0xff] }
 0x23c   :  { %v1875_v13 = vpop.f32.mrf.mxu1  ;;  %v6750_v38 = vld [vmem:[#allocation3 + $0x59] sm:$0xff]  ;;  %v4583_v47 = vpack.i.bf16 %v2199_v29, %v6699_v62 }
 0x23d   :  { %v2074_v20 = vmul.f32 %v6722_v54, %v1912_v58  ;;  %v1876_v39 = vadd.f32 %v1875_v13, %v1732_v27  ;;  %v2279_v13 = vld [vmem:[#allocation3 + $0x4e] sm:$0xff]  ;;  %v2150_v29 = vld [vmem:[#allocation3 + $0x7a] sm:$0xff] }
 0x23e   :  { %v1877_v2 = vpop.f32.mrf.mxu1 }
 0x23f   :  { %2104 = vst.msk [vmem:[#allocation3 + $0xc0] sm:$0xff] %vm2078_vm7, %v2074_v20  ;;  %v1913_v17 = vmax.f32 %v1876_v39, 0.0  ;;  %4599 = vrot.lane.b32.xlu1 %v4598_v19, %s4974_s27  ;;  %4569 = vrot.lane.b32.xlu0 %v4568_v22, %s4976_s29  ;;  %v4608_v20 = vpack.i.bf16 %v2120_v33, %v6750_v38  ;;  %v4578_v39 = vpack.i.bf16 %v2280_v37, %v2279_v13  ;;  %v6754_v2 = vpop.permute.xlu1 %2048  ;;  %v2254_v19 = vld [vmem:[#allocation3 + $0x5d] sm:$0xff]  ;;  %v2149_v33 = vld [vmem:[#allocation3 + $0x72] sm:$0xff] }
 0x240   :  { %v1878_v28 = vpop.f32.mrf.mxu1  ;;  %7914 = vst [vmem:[#allocation29_spill] sm:$0xff] %v6754_v2  ;;  %v4668_v37 = vpack.i.bf16 %v2150_v29, %v2149_v33  ;;  %v2176_v13 = vld [vmem:[#allocation3 + $0x73] sm:$0xff] }
 0x241   :  { %v2075_v16 = vmul.f32 %v6738_v36, %v1913_v17  ;;  %v1879_v63 = vadd.f32 %v1878_v28, %v1735_v45  ;;  %v4613_v28 = vpack.i.bf16 %v2255_v56, %v2254_v19  ;;  %v2153_v56 = vld [vmem:[#allocation3 + $0x92] sm:$0xff] }
 0x242   :  { %v1880_v43 = vpop.f32.mrf.mxu1  ;;  %v2237_v33 = vld [vmem:[#allocation3 + $0xb0] sm:$0xff] }
 0x243   :  { %2105 = vst.msk [vmem:[#allocation3 + $0xc8] sm:$0xff] %vm2078_vm7, %v2075_v16  ;;  %v1914_v59 = vmax.f32 %v1879_v63, 0.0  ;;  %4604 = vrot.lane.b32.xlu1 %v4603_v31, %s4975_s28  ;;  %4574 = vrot.lane.b32.xlu0 %v4573_v9, %s4977_s30  ;;  %v2148_v16 = vld [vmem:[#allocation3 + $0x6a] sm:$0xff]  ;;  %v2281_v63 = vld [vmem:[#allocation3 + $0x5e] sm:$0xff] }
 0x244   :  { %v1883_v23 = vpop.f32.mrf.mxu1  ;;  %v2147_v43 = vld [vmem:[#allocation3 + $0x62] sm:$0xff]  ;;  %v4618_v6 = vpack.i.bf16 %v2282_v18, %v2281_v63  ;;  %v2180_v18 = vld [vmem:[#allocation3 + $0x93] sm:$0xff] }
 0x245   :  { %v2076_v53 = vmul.f32 %v6745_v48, %v1914_v59  ;;  %v1884_v58 = vadd.f32 %v1883_v23, %v1740_v50  ;;  %v4628_v46 = vpack.i.bf16 %v2148_v16, %v2147_v43  ;;  %v2201_v59 = vld [vmem:[#allocation3 + $0x67] sm:$0xff]  ;;  %v2202_v23 = vld [vmem:[#allocation3 + $0x6f] sm:$0xff] }
 0x246   :  { %v1885_v27 = vpop.f32.mrf.mxu1  ;;  %v2175_v50 = vld [vmem:[#allocation3 + $0x6b] sm:$0xff]  ;;  %v2174_v31 = vld [vmem:[#allocation3 + $0x63] sm:$0xff]  ;;  %v4623_v9 = vpack.i.bf16 %v2201_v59, %v6724_v60  ;;  %v6827_v48 = vld [vmem:[#allocation3 + $0xbb] sm:$0xff] }
 0x247   :  { %2106 = vst.msk [vmem:[#allocation3 + $0xd0] sm:$0xff] %vm2078_vm7, %v2076_v53  ;;  %v1915_v35 = vmax.f32 %v1884_v58, 0.0  ;;  %4609 = vrot.lane.b32.xlu1 %v4608_v20, %s4976_s29  ;;  %4579 = vrot.lane.b32.xlu0 %v4578_v39, %s4979_s9  ;;  %v4633_v62 = vpack.i.bf16 %v2175_v50, %v2174_v31  ;;  %v4638_v53 = vpack.i.bf16 %v2202_v23, %v2201_v59  ;;  %v2177_v58 = vld [vmem:[#allocation3 + $0x7b] sm:$0xff]  ;;  %v2229_v27 = vld [vmem:[#allocation3 + $0x70] sm:$0xff]  ;;  %v6783_v50 = vld [vmem:[#allocation3 + $0xa7] sm:$0xff] }
 0x248   :  { %v1886_v22 = vpop.f32.mrf.mxu1  ;;  %v4673_v20 = vpack.i.bf16 %v2177_v58, %v2176_v13  ;;  %v2154_v39 = vld [vmem:[#allocation3 + $0x9a] sm:$0xff]  ;;  %v2256_v16 = vld [vmem:[#allocation3 + $0x6d] sm:$0xff] }
 0x249   :  { %v2077_v17 = vmul.f32 %v6754_v2, %v1915_v35  ;;  %v2228_v35 = vld [vmem:[#allocation3 + $0x68] sm:$0xff]  ;;  %v2122_v22 = vld [vmem:[#allocation3 + $0x71] sm:$0xff] }
 0x24a   :  { %v1887_v45 = vpop.f32.mrf.mxu1  ;;  %v4643_v60 = vpack.i.bf16 %v2229_v27, %v2228_v35  ;;  %v2284_v59 = vld [vmem:[#allocation3 + $0x76] sm:$0xff]  ;;  %v2283_v31 = vld [vmem:[#allocation3 + $0x6e] sm:$0xff] }
 0x24b   :  { %2107 = vst.msk [vmem:[#allocation3 + $0xd8] sm:$0xff] %vm2078_vm7, %v2077_v17  ;;  %4614 = vrot.lane.b32.xlu1 %v4613_v28, %s4977_s30  ;;  %4584 = vrot.lane.b32.xlu0 %v4583_v47, %s4980_s11  ;;  %v6772_v17 = vld [vmem:[#allocation3 + $0x69] sm:$0xff]  ;;  %v4728_v45 = vpack.i.bf16 %v2154_v39, %v2153_v56  ;;  %v2181_v28 = vld [vmem:[#allocation3 + $0x9b] sm:$0xff]  ;;  %v4658_v29 = vpack.i.bf16 %v2284_v59, %v2283_v31  ;;  %v2157_v2 = vld [vmem:[#allocation3 + $0xb2] sm:$0xff] }
 0x24c   :  { %v4648_v19 = vpack.i.bf16 %v2122_v22, %v6772_v17  ;;  %v2257_v47 = vld [vmem:[#allocation3 + $0x75] sm:$0xff]  ;;  %v4733_v43 = vpack.i.bf16 %v2181_v28, %v2180_v18  ;;  %v2129_v39 = vld [vmem:[#allocation3 + $0xa9] sm:$0xff]  ;;  %v2124_v31 = vld [vmem:[#allocation3 + $0x81] sm:$0xff] }
 0x24d   :  { %v2265_v28 = vld [vmem:[#allocation3 + $0xb5] sm:$0xff] }
 0x24e   :  { %v2230_v18 = vld [vmem:[#allocation3 + $0x78] sm:$0xff] }
 0x24f   :  { %4619 = vrot.lane.b32.xlu1 %v4618_v6, %s4979_s9  ;;  %4629 = vrot.lane.b32.xlu0 %v4628_v46, %s4972_s3  ;;  %v4653_v6 = vpack.i.bf16 %v2257_v47, %v2256_v16  ;;  %v6779_v46 = vld [vmem:[#allocation3 + $0xaf] sm:$0xff]  ;;  %v2231_v47 = vld [vmem:[#allocation3 + $0x80] sm:$0xff] }
 0x250   :  { %v4683_v59 = vpack.i.bf16 %v2231_v47, %v2230_v18 }
 0x253   :  { %4624 = vrot.lane.b32.xlu1 %v4623_v9, %s4980_s11  ;;  %4634 = vrot.lane.b32.xlu0 %v4633_v62, %s4973_s26  ;;  %v4763_v62 = vpack.i.bf16 %v6779_v46, %v6783_v50 }
 0x257   :  { %4669 = vrot.lane.b32.xlu1 %v4668_v37, %s4972_s3  ;;  %4639 = vrot.lane.b32.xlu0 %v4638_v53, %s4974_s27  ;;  %v2203_v37 = vld [vmem:[#allocation3 + $0x77] sm:$0xff]  ;;  %v2236_v53 = vld [vmem:[#allocation3 + $0xa8] sm:$0xff] }
 0x258   :  { %v4768_v13 = vpack.i.bf16 %v2237_v33, %v2236_v53  ;;  %v4663_v35 = vpack.i.bf16 %v2203_v37, %v2202_v23  ;;  %v2264_v23 = vld [vmem:[#allocation3 + $0xad] sm:$0xff]  ;;  %v2259_v33 = vld [vmem:[#allocation3 + $0x85] sm:$0xff] }
 0x259   :  { %v6814_v53 = vld [vmem:[#allocation3 + $0x86] sm:$0xff] }
 0x25b   :  { %4674 = vrot.lane.b32.xlu1 %v4673_v20, %s4973_s26  ;;  %4644 = vrot.lane.b32.xlu0 %v4643_v60, %s4975_s28  ;;  %v2130_v20 = vld [vmem:[#allocation3 + $0xb1] sm:$0xff]  ;;  %v6795_v60 = vld [vmem:[#allocation3 + $0x7f] sm:$0xff] }
 0x25f   :  { %4729 = vrot.lane.b32.xlu1 %v4728_v45, %s4972_s3  ;;  %4649 = vrot.lane.b32.xlu0 %v4648_v19, %s4976_s29  ;;  %v4773_v45 = vpack.i.bf16 %v2130_v20, %v2129_v39  ;;  %v4678_v19 = vpack.i.bf16 %v6795_v60, %v2203_v37  ;;  %v2258_v37 = vld [vmem:[#allocation3 + $0x7d] sm:$0xff] }
 0x260   :  { %v6819_v39 = vld [vmem:[#allocation3 + $0xb7] sm:$0xff] }
 0x261   :  { %v6777_v63 = vpop.permute.xlu0 %4389 }
 0x263   :  { %4734 = vrot.lane.b32.xlu1 %v4733_v43, %s4973_s26  ;;  %4654 = vrot.lane.b32.xlu0 %v4653_v6, %s4977_s30  ;;  %v4778_v6 = vpack.i.bf16 %v2265_v28, %v2264_v23  ;;  %v4391_v28 = vunpack.i.l.bf16 %v6777_v63 }
 0x265   :  { %v6785_v9 = vpop.permute.xlu0 %4394 }
 0x266   :  { %v4396_v36 = vunpack.i.l.bf16 %v6785_v9 }
 0x267   :  { %4764 = vrot.lane.b32.xlu1 %v4763_v62, %s4974_s27  ;;  %4659 = vrot.lane.b32.xlu0 %v4658_v29, %s4979_s9  ;;  %v2292_v62 = vld [vmem:[#allocation3 + $0xb6] sm:$0xff] }
 0x268   :  { %v6810_v29 = vld [vmem:[#allocation3 + $0x79] sm:$0xff] }
 0x269   :  { %v6791_v58 = vpop.permute.xlu1 %4429  ;;  %v6793_v27 = vpop.permute.xlu0 %4399  ;;  %v4688_v20 = vpack.i.bf16 %v2124_v31, %v6810_v29  ;;  %v4397_v31 = vunpack.i.h.bf16 %v6785_v9  ;;  %v6841_v9 = vld [vmem:[#allocation3 + $0xb3] sm:$0xff] }
 0x26a   :  { %v4401_v30 = vunpack.i.l.bf16 %v6793_v27 }
 0x26b   :  { %4769 = vrot.lane.b32.xlu1 %v4768_v13, %s4975_s28  ;;  %4664 = vrot.lane.b32.xlu0 %v4663_v35, %s4980_s11  ;;  %v6816_v13 = vld [vmem:[#allocation3 + $0x87] sm:$0xff] }
 0x26c   :  { %v2291_v35 = vld [vmem:[#allocation3 + $0xae] sm:$0xff] }
 0x26d   :  { %v6799_v22 = vpop.permute.xlu1 %4434  ;;  %v6801_v56 = vpop.permute.xlu0 %4404  ;;  %v4783_v18 = vpack.i.bf16 %v2292_v62, %v2291_v35  ;;  %v4788_v62 = vpack.i.bf16 %v6819_v39, %v6779_v46 }
 0x26e   :  { %v4407_v35 = vunpack.i.h.bf16 %v6801_v56 }
 0x26f   :  { %4774 = vrot.lane.b32.xlu1 %v4773_v45, %s4976_s29  ;;  %4679 = vrot.lane.b32.xlu0 %v4678_v19, %s4974_s27  ;;  %v6821_v45 = vld [vmem:[#allocation3 + $0xba] sm:$0xff]  ;;  %v4392_v19 = vunpack.i.h.bf16 %v6777_v63  ;;  %v4402_v63 = vunpack.i.h.bf16 %v6793_v27  ;;  %v4798_v27 = vpack.i.bf16 %v6827_v48, %v6841_v9 }
 0x271   :  { %v6806_v16 = vpop.permute.xlu1 %4439  ;;  %v6808_v43 = vpop.permute.xlu0 %4409 }
 0x272   :  { %v4412_v46 = vunpack.i.h.bf16 %v6808_v43 }
 0x273   :  { %4779 = vrot.lane.b32.xlu1 %v4778_v6, %s4977_s30  ;;  %4684 = vrot.lane.b32.xlu0 %v4683_v59, %s4975_s28  ;;  %v4693_v6 = vpack.i.bf16 %v2259_v33, %v2258_v37  ;;  %v2285_v59 = vld [vmem:[#allocation3 + $0x7e] sm:$0xff]  ;;  %v4793_v33 = vpack.i.bf16 %v6821_v45, %v2157_v2  ;;  %v4411_v2 = vunpack.i.l.bf16 %v6808_v43 }
 0x274   :  { %v4698_v61 = vpack.i.bf16 %v6814_v53, %v2285_v59  ;;  %v2108_v37 = vld [vmem:[#allocation3 + $0x1] sm:$0xff]  ;;  %v4432_v53 = vunpack.i.h.bf16 %v6791_v58  ;;  %v4406_v59 = vunpack.i.l.bf16 %v6801_v56 }
 0x275   :  { %v6825_v47 = vpop.permute.xlu1 %4444  ;;  %v4415_v23 = vpop.permute.xlu0 %4414 }
 0x276   :  { %v4417_v7 = vunpack.i.h.bf16 %v4415_v23  ;;  %v4416_v54 = vunpack.i.l.bf16 %v4415_v23  ;;  %v3140_v43 = vsel %vm2078_vm7, %v6529_v14, %v4432_v53  ;;  %v4437_v23 = vunpack.i.h.bf16 %v6799_v22 }
 0x277   :  { %4784 = vrot.lane.b32.xlu1 %v4783_v18, %s4979_s9  ;;  %4689 = vrot.lane.b32.xlu0 %v4688_v20, %s4976_s29  ;;  %v3137_v18 = vsel %vm2078_vm7, %v2108_v37, %v4391_v28  ;;  %v3138_v20 = vsel %vm2078_vm7, %v6499_v44, %v4392_v19  ;;  %v4431_v19 = vunpack.i.l.bf16 %v6791_v58  ;;  %v4442_v53 = vunpack.i.h.bf16 %v6806_v16 }
 0x278   :  { %v3165_v25 = vsel %vm3164_vm10, %v3137_v18, %v4396_v36  ;;  %v3166_v56 = vsel %vm3164_vm10, %v3138_v20, %v4397_v31  ;;  %v4447_v18 = vunpack.i.h.bf16 %v6825_v47 }
 0x279   :  { %v6853_v45 = vpop.permute.xlu1 %4449  ;;  %v4420_v15 = vpop.permute.xlu0 %4419  ;;  %v3193_v48 = vsel %vm3192_vm11, %v3165_v25, %v4401_v30  ;;  %v3194_v28 = vsel %vm3192_vm11, %v3166_v56, %v4402_v63  ;;  %v4436_v30 = vunpack.i.l.bf16 %v6799_v22 }
 0x27a   :  { %v4422_v9 = vunpack.i.h.bf16 %v4420_v15  ;;  %v4421_v44 = vunpack.i.l.bf16 %v4420_v15  ;;  %v3221_v36 = vsel %vm3220_vm12, %v3193_v48, %v4406_v59  ;;  %v3222_v31 = vsel %vm3220_vm12, %v3194_v28, %v4407_v35 }
 0x27b   :  { %4789 = vrot.lane.b32.xlu1 %v4788_v62, %s4980_s11  ;;  %4694 = vrot.lane.b32.xlu0 %v4693_v6, %s4977_s30  ;;  %v3249_v25 = vsel %vm3248_vm13, %v3221_v36, %v4411_v2  ;;  %v3250_v15 = vsel %vm3248_vm13, %v3222_v31, %v4412_v46  ;;  %v4441_v35 = vunpack.i.l.bf16 %v6806_v16  ;;  %v4954_v46 = vld [vmem:[#allocation3 + $0x11] sm:$0xff]  ;;  %v4452_v16 = vunpack.i.h.bf16 %v6853_v45  ;;  %v6889_v36 = vld [vmem:[#allocation3 + $0xbf] sm:$0xff] }
 0x27c   :  { %v3277_v6 = vsel %vm3276_vm14, %v3249_v25, %v4416_v54  ;;  %v3278_v14 = vsel %vm3276_vm14, %v3250_v15, %v4417_v7  ;;  %v4446_v54 = vunpack.i.l.bf16 %v6825_v47  ;;  %v3139_v2 = vsel %vm2078_vm7, %v4954_v46, %v4431_v19  ;;  %v2152_v31 = vld [vmem:[#allocation3 + $0x8a] sm:$0xff]  ;;  %v2238_v46 = vld [vmem:[#allocation3 + $0xb8] sm:$0xff] }
 0x27d   :  { %v4455_v63 = vpop.permute.xlu1 %4454  ;;  %v4425_v62 = vpop.permute.xlu0 %4424  ;;  %v3305_v59 = vsel %vm3304_vm15, %v3277_v6, %v4421_v44  ;;  %v3306_v22 = vsel %vm3304_vm15, %v3278_v14, %v4422_v9  ;;  %v4451_v56 = vunpack.i.l.bf16 %v6853_v45  ;;  %v3168_v9 = vsel %vm3164_vm10, %v3140_v43, %v4437_v23 }
 0x27e   :  { %v4427_v37 = vunpack.i.h.bf16 %v4425_v62  ;;  %v4426_v58 = vunpack.i.l.bf16 %v4425_v62  ;;  %v4457_v47 = vunpack.i.h.bf16 %v4455_v63  ;;  %v4456_v44 = vunpack.i.l.bf16 %v4455_v63 }
 0x27f   :  { %4794 = vrot.lane.b32.xlu1 %v4793_v33, %s4972_s3  ;;  %4699 = vrot.lane.b32.xlu0 %v4698_v61, %s4979_s9  ;;  %v3167_v61 = vsel %vm3164_vm10, %v3139_v2, %v4436_v30  ;;  %v3196_v19 = vsel %vm3192_vm11, %v3168_v9, %v4442_v53  ;;  %v7915_v45 = vpack.i.bf16 %v6816_v13, %v6795_v60  ;;  %v2151_v30 = vld [vmem:[#allocation3 + $0x82] sm:$0xff] }
 0x280   :  { %v3333_v7 = vsel %vm3332_vm0, %v3305_v59, %v4426_v58  ;;  %v3334_v20 = vsel %vm3332_vm0, %v3306_v22, %v4427_v37  ;;  %v3195_v25 = vsel %vm3192_vm11, %v3167_v61, %v4441_v35  ;;  %v3224_v23 = vsel %vm3220_vm12, %v3196_v19, %v4447_v18  ;;  %v2239_v22 = vld [vmem:[#allocation3 + $0xc0] sm:$0xff]  ;;  %v2179_v18 = vld [vmem:[#allocation3 + $0x8b] sm:$0xff] }
 0x281   :  { %v3360_v48 = vpack.c.bf16 %v3334_v20, %v3333_v7  ;;  %v4460_v28 = vpop.permute.xlu1 %4459  ;;  %v6885_v33 = vpop.permute.xlu0 %4469  ;;  %v3223_v43 = vsel %vm3220_vm12, %v3195_v25, %v4446_v54  ;;  %v3252_v6 = vsel %vm3248_vm13, %v3224_v23, %v4452_v16  ;;  %v4708_v58 = vpack.i.bf16 %v2152_v31, %v2151_v30  ;;  %v2178_v2 = vld [vmem:[#allocation3 + $0x83] sm:$0xff] }
 0x282   :  { %v4462_v15 = vunpack.i.h.bf16 %v4460_v28  ;;  %v4461_v62 = vunpack.i.l.bf16 %v4460_v28  ;;  %v3251_v63 = vsel %vm3248_vm13, %v3223_v43, %v4451_v56  ;;  %v3280_v53 = vsel %vm3276_vm14, %v3252_v6, %v4457_v47  ;;  %v6919_v9 = vld [vmem:[#allocation3 + $0xc1] sm:$0xff]  ;;  %v6921_v47 = vld [vmem:[#allocation3 + $0x8f] sm:$0xff] }
 0x283   :  { %4799 = vrot.lane.b32.xlu1 %v4798_v27, %s4973_s26  ;;  %4704 = vrot.lane.b32.xlu0 %v7915_v45, %s4980_s11  ;;  %v4803_v27 = vpack.i.bf16 %v6889_v36, %v6819_v39  ;;  %v3279_v60 = vsel %vm3276_vm14, %v3251_v63, %v4456_v44  ;;  %v4808_v28 = vpack.i.bf16 %v2239_v22, %v2238_v46  ;;  %v6926_v44 = vld [vmem:[#allocation3 + $0xb9] sm:$0xff]  ;;  %v2233_v45 = vld [vmem:[#allocation3 + $0x90] sm:$0xff]  ;;  %v2232_v23 = vld [vmem:[#allocation3 + $0x88] sm:$0xff] }
 0x284   :  { %3881 = vmatprep.mubr.msk.bf16.mxu0 %vm3396_vm1, %v3360_v48  ;;  %v3307_v54 = vsel %vm3304_vm15, %v3279_v60, %v4461_v62  ;;  %v3308_v7 = vsel %vm3304_vm15, %v3280_v53, %v4462_v15  ;;  %v4713_v61 = vpack.i.bf16 %v2179_v18, %v2178_v2  ;;  %v4813_v19 = vpack.i.bf16 %v6919_v9, %v6926_v44  ;;  %v2267_v62 = vld [vmem:[#allocation3 + $0xc5] sm:$0xff]  ;;  %v2266_v43 = vld [vmem:[#allocation3 + $0xbd] sm:$0xff] }
 0x285   :  { %v4465_v14 = vpop.permute.xlu1 %4464  ;;  %v6903_v37 = vpop.permute.xlu0 %4474  ;;  %v4718_v15 = vpack.i.bf16 %v6921_v47, %v6816_v13  ;;  %v4818_v6 = vpack.i.bf16 %v2267_v62, %v2266_v43  ;;  %v6944_v60 = vld [vmem:[#allocation3 + $0x97] sm:$0xff]  ;;  %v6946_v13 = vld [vmem:[#allocation3 + $0xa0] sm:$0xff]  ;;  %v2156_v53 = vld [vmem:[#allocation3 + $0xaa] sm:$0xff] }
 0x286   :  { %v4467_v35 = vunpack.i.h.bf16 %v4465_v14  ;;  %v4466_v59 = vunpack.i.l.bf16 %v4465_v14  ;;  %v4723_v14 = vpack.i.bf16 %v2233_v45, %v2232_v23  ;;  %v2293_v22 = vld [vmem:[#allocation3 + $0xbe] sm:$0xff]  ;;  %v4477_v62 = vunpack.i.h.bf16 %v6903_v37 }
 0x287   :  { %4804 = vrot.lane.b32.xlu1 %v4803_v27, %s4974_s27  ;;  %4709 = vrot.lane.b32.xlu0 %v4708_v58, %s4972_s3  ;;  %v6942_v27 = vld [vmem:[#allocation3 + $0x9f] sm:$0xff]  ;;  %v4476_v45 = vunpack.i.l.bf16 %v6903_v37 }
 0x288   :  { %v3335_v20 = vsel %vm3332_vm0, %v3307_v54, %v4466_v59  ;;  %v3336_v39 = vsel %vm3332_vm0, %v3308_v7, %v4467_v35  ;;  %v2294_v58 = vld [vmem:[#allocation3 + $0xc6] sm:$0xff]  ;;  %v6952_v59 = vld [vmem:[#allocation3 + $0x98] sm:$0xff]  ;;  %v4738_v18 = vpack.i.bf16 %v6942_v27, %v6944_v60  ;;  %v6956_v7 = vld [vmem:[#allocation3 + $0xcf] sm:$0xff] }
 0x289   :  { %v3361_v16 = vpack.c.bf16 %v3336_v39, %v3335_v20  ;;  %v6915_v56 = vpop.permute.xlu1 %4509  ;;  %v6917_v48 = vpop.permute.xlu0 %4479  ;;  %v6950_v35 = vld [vmem:[#allocation3 + $0xab] sm:$0xff]  ;;  %v4472_v20 = vunpack.i.h.bf16 %v6885_v33  ;;  %v4471_v39 = vunpack.i.l.bf16 %v6885_v33 }
 0x28a   :  { %v2213_v54 = vld [vmem:[#allocation3 + $0xc7] sm:$0xff]  ;;  %v4482_v33 = vunpack.i.h.bf16 %v6917_v48 }
 0x28b   :  { %4809 = vrot.lane.b32.xlu1 %v4808_v28, %s4975_s28  ;;  %4714 = vrot.lane.b32.xlu0 %v4713_v61, %s4973_s26  ;;  %v2155_v28 = vld [vmem:[#allocation3 + $0xa2] sm:$0xff] }
 0x28c   :  { %3882 = vmatmul.mubr.msk.bf16.vlgmr.msra.gmra.mxu0 %vm3396_vm1, %v3361_v16  ;;  %v4823_v16 = vpack.i.bf16 %v2294_v58, %v2293_v22  ;;  %v2182_v61 = vld [vmem:[#allocation3 + $0xa3] sm:$0xff]  ;;  %v4743_v43 = vpack.i.bf16 %v2156_v53, %v2155_v28  ;;  %v4853_v58 = vpack.i.bf16 %v6956_v7, %v2213_v54 }
 0x28d   :  { %v6928_v31 = vpop.permute.xlu1 %4514  ;;  %v6930_v25 = vpop.permute.xlu0 %4484  ;;  %v4748_v23 = vpack.i.bf16 %v6950_v35, %v2182_v61  ;;  %v2240_v22 = vld [vmem:[#allocation3 + $0xc8] sm:$0xff] }
 0x28e   :  { %v4487_v37 = vunpack.i.h.bf16 %v6930_v25  ;;  %v4486_v53 = vunpack.i.l.bf16 %v6930_v25  ;;  %v4955_v28 = vld [vmem:[#allocation3 + $0x21] sm:$0xff] }
 0x28f   :  { %4814 = vrot.lane.b32.xlu1 %v4813_v19, %s4976_s29  ;;  %4719 = vrot.lane.b32.xlu0 %v4718_v15, %s4974_s27  ;;  %v6962_v19 = vld [vmem:[#allocation3 + $0xd0] sm:$0xff]  ;;  %v4512_v15 = vunpack.i.h.bf16 %v6915_v56 }
 0x290   :  { %v4858_v35 = vpack.i.bf16 %v6962_v19, %v2240_v22 }
 0x291   :  { %v6938_v30 = vpop.permute.xlu1 %4519  ;;  %v6940_v63 = vpop.permute.xlu0 %4489 }
 0x293   :  { %4819 = vrot.lane.b32.xlu1 %v4818_v6, %s4977_s30  ;;  %4724 = vrot.lane.b32.xlu0 %v4723_v14, %s4975_s28  ;;  %v4481_v6 = vunpack.i.l.bf16 %v6917_v48  ;;  %v4828_v14 = vpack.i.bf16 %v2213_v54, %v6889_v36  ;;  %v3142_v48 = vsel %vm2078_vm7, %v6623_v21, %v4472_v20  ;;  %v4491_v36 = vunpack.i.l.bf16 %v6940_v63 }
 0x294   :  { %v3170_v49 = vsel %vm3164_vm10, %v3142_v48, %v4477_v62 }
 0x295   :  { %v6960_v46 = vpop.permute.xlu1 %4524  ;;  %v4495_v2 = vpop.permute.xlu0 %4494  ;;  %v3198_v22 = vsel %vm3192_vm11, %v3170_v49, %v4482_v33 }
 0x296   :  { %v4497_v40 = vunpack.i.h.bf16 %v4495_v2  ;;  %v4496_v25 = vunpack.i.l.bf16 %v4495_v2  ;;  %v3226_v62 = vsel %vm3220_vm12, %v3198_v22, %v4487_v37  ;;  %v4517_v2 = vunpack.i.h.bf16 %v6928_v31 }
 0x297   :  { %4824 = vrot.lane.b32.xlu1 %v4823_v16, %s4979_s9  ;;  %4739 = vrot.lane.b32.xlu0 %v4738_v18, %s4974_s27  ;;  %v3141_v16 = vsel %vm2078_vm7, %v4955_v28, %v4471_v39  ;;  %v4492_v18 = vunpack.i.h.bf16 %v6940_v63  ;;  %v3144_v63 = vsel %vm2078_vm7, %v6658_v5, %v4512_v15  ;;  %v4511_v39 = vunpack.i.l.bf16 %v6915_v56 }
 0x298   :  { %v3169_v32 = vsel %vm3164_vm10, %v3141_v16, %v4476_v45  ;;  %v4521_v37 = vunpack.i.l.bf16 %v6938_v30  ;;  %v4527_v28 = vunpack.i.h.bf16 %v6960_v46  ;;  %v4526_v16 = vunpack.i.l.bf16 %v6960_v46  ;;  %v7016_v46 = vld [vmem:[#allocation3 + $0x91] sm:$0xff] }
 0x299   :  { %v4530_v54 = vpop.permute.xlu1 %4529  ;;  %v4500_v61 = vpop.permute.xlu0 %4499  ;;  %v3197_v19 = vsel %vm3192_vm11, %v3169_v32, %v4481_v6  ;;  %v4516_v32 = vunpack.i.l.bf16 %v6928_v31  ;;  %v3254_v33 = vsel %vm3248_vm13, %v3226_v62, %v4492_v18 }
 0x29a   :  { %v4502_v21 = vunpack.i.h.bf16 %v4500_v61  ;;  %v4501_v20 = vunpack.i.l.bf16 %v4500_v61  ;;  %v3225_v45 = vsel %vm3220_vm12, %v3197_v19, %v4486_v53  ;;  %v3282_v5 = vsel %vm3276_vm14, %v3254_v33, %v4497_v40 }
 0x29b   :  { %4829 = vrot.lane.b32.xlu1 %v4828_v14, %s4980_s11  ;;  %4744 = vrot.lane.b32.xlu0 %v4743_v43, %s4972_s3  ;;  %v3253_v49 = vsel %vm3248_vm13, %v3225_v45, %v4491_v36  ;;  %v4522_v53 = vunpack.i.h.bf16 %v6938_v30  ;;  %v4956_v36 = vld [vmem:[#allocation3 + $0x31] sm:$0xff]  ;;  %v4532_v30 = vunpack.i.h.bf16 %v4530_v54 }
 0x29c   :  { %v3281_v43 = vsel %vm3276_vm14, %v3253_v49, %v4496_v25  ;;  %v3310_v31 = vsel %vm3304_vm15, %v3282_v5, %v4502_v21  ;;  %v3143_v61 = vsel %vm2078_vm7, %v4956_v36, %v4511_v39  ;;  %v4531_v25 = vunpack.i.l.bf16 %v4530_v54 }
 0x29d   :  { %v4535_v6 = vpop.permute.xlu1 %4534  ;;  %v4505_v14 = vpop.permute.xlu0 %4504  ;;  %v3309_v48 = vsel %vm3304_vm15, %v3281_v43, %v4501_v20  ;;  %v7916_v54 = vpack.i.bf16 %v6946_v13, %v6952_v59 }
 0x29e   :  { %v4507_v15 = vunpack.i.h.bf16 %v4505_v14  ;;  %v4506_v56 = vunpack.i.l.bf16 %v4505_v14  ;;  %v4537_v20 = vunpack.i.h.bf16 %v4535_v6  ;;  %v4536_v45 = vunpack.i.l.bf16 %v4535_v6 }
 0x29f   :  { %4854 = vrot.lane.b32.xlu1 %v4853_v58, %s4974_s27  ;;  %4749 = vrot.lane.b32.xlu0 %v4748_v23, %s4973_s26  ;;  %v3171_v58 = vsel %vm3164_vm10, %v3143_v61, %v4516_v32  ;;  %v3172_v23 = vsel %vm3164_vm10, %v3144_v63, %v4517_v2  ;;  %v7028_v2 = vld [vmem:[#allocation3 + $0x89] sm:$0xff] }
 0x2a0   :  { %v3337_v40 = vsel %vm3332_vm0, %v3309_v48, %v4506_v56  ;;  %v3338_v18 = vsel %vm3332_vm0, %v3310_v31, %v4507_v15  ;;  %v3199_v62 = vsel %vm3192_vm11, %v3171_v58, %v4521_v37  ;;  %v3200_v49 = vsel %vm3192_vm11, %v3172_v23, %v4522_v53  ;;  %v2161_v53 = vld [vmem:[#allocation3 + $0xd2] sm:$0xff]  ;;  %v2160_v37 = vld [vmem:[#allocation3 + $0xca] sm:$0xff] }
 0x2a1   :  { %v3362_v19 = vpack.c.bf16 %v3338_v18, %v3337_v40  ;;  %v4540_v22 = vpop.permute.xlu1 %4539  ;;  %v7012_v21 = vpop.permute.xlu0 %4549  ;;  %v3227_v32 = vsel %vm3220_vm12, %v3199_v62, %v4526_v16  ;;  %v3228_v63 = vsel %vm3220_vm12, %v3200_v49, %v4527_v28  ;;  %v2159_v40 = vld [vmem:[#allocation3 + $0xc2] sm:$0xff]  ;;  %v7062_v49 = vld [vmem:[#allocation3 + $0x99] sm:$0xff] }
 0x2a2   :  { %v4542_v33 = vunpack.i.h.bf16 %v4540_v22  ;;  %v4541_v39 = vunpack.i.l.bf16 %v4540_v22  ;;  %v3255_v6 = vsel %vm3248_vm13, %v3227_v32, %v4531_v25  ;;  %v3256_v14 = vsel %vm3248_vm13, %v3228_v63, %v4532_v30  ;;  %v2188_v25 = vld [vmem:[#allocation3 + $0xd3] sm:$0xff]  ;;  %v2186_v22 = vld [vmem:[#allocation3 + $0xc3] sm:$0xff] }
 0x2a3   :  { %4859 = vrot.lane.b32.xlu1 %v4858_v35, %s4975_s28  ;;  %4754 = vrot.lane.b32.xlu0 %v7916_v54, %s4975_s28  ;;  %v4758_v35 = vpack.i.bf16 %v7016_v46, %v7028_v2  ;;  %v3283_v13 = vsel %vm3276_vm14, %v3255_v6, %v4536_v45  ;;  %v3284_v59 = vsel %vm3276_vm14, %v3256_v14, %v4537_v20  ;;  %v7055_v45 = vld [vmem:[#allocation3 + $0xd7] sm:$0xff]  ;;  %v7057_v62 = vld [vmem:[#allocation3 + $0xa1] sm:$0xff]  ;;  %v2260_v14 = vld [vmem:[#allocation3 + $0x8d] sm:$0xff] }
 0x2a4   :  { %3885 = vmatprep.mubr.msk.bf16.mxu0 %vm3396_vm1, %v3362_v19  ;;  %v3311_v48 = vsel %vm3304_vm15, %v3283_v13, %v4541_v39  ;;  %v3312_v31 = vsel %vm3304_vm15, %v3284_v59, %v4542_v33  ;;  %v4833_v30 = vpack.i.bf16 %v2160_v37, %v2159_v40  ;;  %v2187_v19 = vld [vmem:[#allocation3 + $0xcb] sm:$0xff]  ;;  %v4843_v54 = vpack.i.bf16 %v7057_v62, %v7062_v49  ;;  %v2242_v32 = vld [vmem:[#allocation3 + $0xd8] sm:$0xff] }
 0x2a5   :  { %v4545_v43 = vpop.permute.xlu1 %4544  ;;  %v7032_v5 = vpop.permute.xlu0 %4554  ;;  %v4838_v20 = vpack.i.bf16 %v2187_v19, %v2186_v22  ;;  %v7070_v63 = vld [vmem:[#allocation3 + $0xd1] sm:$0xff]  ;;  %v2263_v13 = vld [vmem:[#allocation3 + $0xa5] sm:$0xff] }
 0x2a6   :  { %v4547_v15 = vunpack.i.h.bf16 %v4545_v43  ;;  %v4546_v56 = vunpack.i.l.bf16 %v4545_v43  ;;  %v2261_v6 = vld [vmem:[#allocation3 + $0x95] sm:$0xff]  ;;  %v7078_v59 = vld [vmem:[#allocation3 + $0xa6] sm:$0xff]  ;;  %v4557_v40 = vunpack.i.h.bf16 %v7032_v5  ;;  %v7089_v19 = vld [vmem:[#allocation3 + $0x9e] sm:$0xff] }
 0x2a7   :  { %2378 = vrot.lane.b32.xlu1 %v2161_v53, %s4972_s3  ;;  %4759 = vrot.lane.b32.xlu0 %v4758_v35, %s4976_s29  ;;  %v7074_v43 = vld [vmem:[#allocation3 + $0x96] sm:$0xff]  ;;  %v7076_v35 = vld [vmem:[#allocation3 + $0xc9] sm:$0xff] }
 0x2a8   :  { %v3339_v28 = vsel %vm3332_vm0, %v3311_v48, %v4546_v56  ;;  %v3340_v16 = vsel %vm3332_vm0, %v3312_v31, %v4547_v15  ;;  %v4552_v15 = vunpack.i.h.bf16 %v7012_v21  ;;  %v4551_v56 = vunpack.i.l.bf16 %v7012_v21 }
 0x2a9   :  { %v3363_v18 = vpack.c.bf16 %v3340_v16, %v3339_v28  ;;  %v7044_v36 = vpop.permute.xlu1 %4589  ;;  %v7046_v61 = vpop.permute.xlu0 %4559  ;;  %v4863_v48 = vpack.i.bf16 %v7070_v63, %v7076_v35  ;;  %v4848_v31 = vpack.i.bf16 %v2261_v6, %v2260_v14  ;;  %v2269_v28 = vld [vmem:[#allocation3 + $0xd5] sm:$0xff] }
 0x2aa   :  { %v2287_v16 = vld [vmem:[#allocation3 + $0x8e] sm:$0xff]  ;;  %v4562_v21 = vunpack.i.h.bf16 %v7046_v61  ;;  %v4561_v22 = vunpack.i.l.bf16 %v7046_v61  ;;  %v4957_v61 = vld [vmem:[#allocation3 + $0x41] sm:$0xff] }
 0x2ab   :  { %2486 = vrot.lane.b32.xlu1 %v2188_v25, %s4973_s26  ;;  %4834 = vrot.lane.b32.xlu0 %v4833_v30, %s4972_s3  ;;  %v2262_v30 = vld [vmem:[#allocation3 + $0x9d] sm:$0xff]  ;;  %v4878_v25 = vpack.i.bf16 %v7074_v43, %v2287_v16  ;;  %v3146_v16 = vsel %vm2078_vm7, %v6729_v42, %v4552_v15 }
 0x2ac   :  { %3886 = vmatmul.mubr.msk.bf16.gmra.mxu0 %vm3396_vm1, %v3363_v18  ;;  %v4556_v18 = vunpack.i.l.bf16 %v7032_v5  ;;  %v4592_v5 = vunpack.i.h.bf16 %v7044_v36  ;;  %v3174_v57 = vsel %vm3164_vm10, %v3146_v16, %v4557_v40 }
 0x2ad   :  { %v7051_v58 = vpop.permute.xlu1 %4594  ;;  %v7053_v23 = vpop.permute.xlu0 %4564  ;;  %v3202_v42 = vsel %vm3192_vm11, %v3174_v57, %v4562_v21 }
 0x2ae   :  { %v4567_v6 = vunpack.i.h.bf16 %v7053_v23  ;;  %v4566_v14 = vunpack.i.l.bf16 %v7053_v23  ;;  %v2243_v23 = vld [vmem:[#allocation3 + $0xd9] sm:$0xff] }
 0x2af   :  { %2594 = vrot.lane.b32.xlu1 %v7055_v45, %s4974_s27  ;;  %4839 = vrot.lane.b32.xlu0 %v4838_v20, %s4973_s26  ;;  %v4873_v20 = vpack.i.bf16 %v2263_v13, %v2262_v30 }
 0x2b1   :  { %v7064_v33 = vpop.permute.xlu1 %4599  ;;  %v7066_v39 = vpop.permute.xlu0 %4569 }
 0x2b2   :  { %v4571_v13 = vunpack.i.l.bf16 %v7066_v39 }
 0x2b3   :  { %2702 = vrot.lane.b32.xlu1 %v2242_v32, %s4975_s28  ;;  %4844 = vrot.lane.b32.xlu0 %v4843_v54, %s4976_s29  ;;  %v2268_v54 = vld [vmem:[#allocation3 + $0xcd] sm:$0xff] }
 0x2b4   :  { %v4868_v43 = vpack.i.bf16 %v2269_v28, %v2268_v54 }
 0x2b5   :  { %v7082_v53 = vpop.permute.xlu1 %4604  ;;  %v4575_v37 = vpop.permute.xlu0 %4574 }
 0x2b6   :  { %v4577_v4 = vunpack.i.h.bf16 %v4575_v37  ;;  %v4576_v34 = vunpack.i.l.bf16 %v4575_v37  ;;  %v3230_v37 = vsel %vm3220_vm12, %v3202_v42, %v4567_v6  ;;  %v4601_v6 = vunpack.i.l.bf16 %v7064_v33 }
 0x2b7   :  { %4864 = vrot.lane.b32.xlu1 %v4863_v48, %s4976_s29  ;;  %4849 = vrot.lane.b32.xlu0 %v4848_v31, %s4977_s30  ;;  %v3145_v48 = vsel %vm2078_vm7, %v4957_v61, %v4551_v56  ;;  %v4572_v31 = vunpack.i.h.bf16 %v7066_v39  ;;  %v3148_v39 = vsel %vm2078_vm7, %v6750_v38, %v4592_v5  ;;  %v4591_v56 = vunpack.i.l.bf16 %v7044_v36 }
 0x2b8   :  { %v3173_v32 = vsel %vm3164_vm10, %v3145_v48, %v4556_v18  ;;  %v4597_v18 = vunpack.i.h.bf16 %v7051_v58  ;;  %v4607_v61 = vunpack.i.h.bf16 %v7082_v53 }
 0x2b9   :  { %v4610_v30 = vpop.permute.xlu1 %4609  ;;  %v4580_v12 = vpop.permute.xlu0 %4579  ;;  %v3201_v28 = vsel %vm3192_vm11, %v3173_v32, %v4561_v22  ;;  %v4596_v22 = vunpack.i.l.bf16 %v7051_v58 }
 0x2ba   :  { %v4582_v15 = vunpack.i.h.bf16 %v4580_v12  ;;  %v4581_v54 = vunpack.i.l.bf16 %v4580_v12  ;;  %v3229_v40 = vsel %vm3220_vm12, %v3201_v28, %v4566_v14  ;;  %v3258_v12 = vsel %vm3248_vm13, %v3230_v37, %v4572_v31 }
 0x2bb   :  { %2810 = vrot.lane.b32.xlu1 %v2243_v23, %s4976_s29  ;;  %4874 = vrot.lane.b32.xlu0 %v4873_v20, %s4977_s30  ;;  %v3257_v57 = vsel %vm3248_vm13, %v3229_v40, %v4571_v13  ;;  %v3286_v38 = vsel %vm3276_vm14, %v3258_v12, %v4577_v4  ;;  %v4602_v14 = vunpack.i.h.bf16 %v7064_v33  ;;  %v3147_v31 = vsel %vm2078_vm7, %v6720_v8, %v4591_v56  ;;  %v2296_v40 = vld [vmem:[#allocation3 + $0xd6] sm:$0xff] }
 0x2bc   :  { %v3285_v20 = vsel %vm3276_vm14, %v3257_v57, %v4576_v34  ;;  %v3314_v58 = vsel %vm3304_vm15, %v3286_v38, %v4582_v15  ;;  %v4606_v34 = vunpack.i.l.bf16 %v7082_v53  ;;  %v4612_v33 = vunpack.i.h.bf16 %v4610_v30  ;;  %v2270_v53 = vld [vmem:[#allocation3 + $0xdd] sm:$0xff] }
 0x2bd   :  { %v4615_v21 = vpop.permute.xlu1 %4614  ;;  %v4585_v32 = vpop.permute.xlu0 %4584  ;;  %v3313_v16 = vsel %vm3304_vm15, %v3285_v20, %v4581_v54  ;;  %v4611_v13 = vunpack.i.l.bf16 %v4610_v30  ;;  %v7917_v30 = vpack.i.bf16 %v7078_v59, %v7089_v19 }
 0x2be   :  { %v4587_v5 = vunpack.i.h.bf16 %v4585_v32  ;;  %v4586_v36 = vunpack.i.l.bf16 %v4585_v32  ;;  %v4617_v15 = vunpack.i.h.bf16 %v4615_v21  ;;  %v4616_v54 = vunpack.i.l.bf16 %v4615_v21 }
 0x2bf   :  { %4869 = vrot.lane.b32.xlu1 %v4868_v43, %s4977_s30  ;;  %4879 = vrot.lane.b32.xlu0 %v4878_v25, %s4979_s9  ;;  %v3175_v43 = vsel %vm3164_vm10, %v3147_v31, %v4596_v22  ;;  %v3176_v25 = vsel %vm3164_vm10, %v3148_v39, %v4597_v18  ;;  %v2295_v18 = vld [vmem:[#allocation3 + $0xce] sm:$0xff]  ;;  %v4898_v31 = vpack.i.bf16 %v7055_v45, %v6956_v7 }
 0x2c0   :  { %v3341_v4 = vsel %vm3332_vm0, %v3313_v16, %v4586_v36  ;;  %v3342_v48 = vsel %vm3332_vm0, %v3314_v58, %v4587_v5  ;;  %v3203_v37 = vsel %vm3192_vm11, %v3175_v43, %v4601_v6  ;;  %v3204_v57 = vsel %vm3192_vm11, %v3176_v25, %v4602_v14  ;;  %v2298_v43 = vld [vmem:[#allocation3 + $0xdf] sm:$0xff] }
 0x2c1   :  { %v3364_v23 = vpack.c.bf16 %v3342_v48, %v3341_v4  ;;  %v4620_v28 = vpop.permute.xlu1 %4619  ;;  %v7134_v42 = vpop.permute.xlu0 %4629  ;;  %v3231_v56 = vsel %vm3220_vm12, %v3203_v37, %v4606_v34  ;;  %v3232_v39 = vsel %vm3220_vm12, %v3204_v57, %v4607_v61  ;;  %v4883_v38 = vpack.i.bf16 %v2296_v40, %v2295_v18  ;;  %v2297_v48 = vld [vmem:[#allocation3 + $0xde] sm:$0xff] }
 0x2c2   :  { %v4622_v12 = vunpack.i.h.bf16 %v4620_v28  ;;  %v4621_v8 = vunpack.i.l.bf16 %v4620_v28  ;;  %v3259_v22 = vsel %vm3248_vm13, %v3231_v56, %v4611_v13  ;;  %v3260_v21 = vsel %vm3248_vm13, %v3232_v39, %v4612_v33 }
 0x2c3   :  { %2918 = vrot.lane.b32.xlu1 %v2270_v53, %s4977_s30  ;;  %4889 = vrot.lane.b32.xlu0 %v7917_v30, %s4979_s9  ;;  %v4893_v5 = vpack.i.bf16 %v6944_v60, %v6921_v47  ;;  %v3287_v59 = vsel %vm3276_vm14, %v3259_v22, %v4616_v54  ;;  %v3288_v19 = vsel %vm3276_vm14, %v3260_v21, %v4617_v15  ;;  %v4631_v15 = vunpack.i.l.bf16 %v7134_v42  ;;  %v4958_v21 = vld [vmem:[#allocation3 + $0x61] sm:$0xff] }
 0x2c4   :  { %3889 = vmatprep.mubr.msk.bf16.mxu0 %vm3396_vm1, %v3364_v23  ;;  %v3315_v6 = vsel %vm3304_vm15, %v3287_v59, %v4621_v8  ;;  %v3316_v16 = vsel %vm3304_vm15, %v3288_v19, %v4622_v12  ;;  %v4903_v4 = vpack.i.bf16 %v6783_v50, %v6942_v27  ;;  %v4632_v27 = vunpack.i.h.bf16 %v7134_v42 }
 0x2c5   :  { %v4625_v32 = vpop.permute.xlu1 %4624  ;;  %v4635_v20 = vpop.permute.xlu0 %4634 }
 0x2c6   :  { %v4627_v36 = vunpack.i.h.bf16 %v4625_v32  ;;  %v4626_v14 = vunpack.i.l.bf16 %v4625_v32  ;;  %v4637_v40 = vunpack.i.h.bf16 %v4635_v20  ;;  %v4636_v7 = vunpack.i.l.bf16 %v4635_v20 }
 0x2c7   :  { %4884 = vrot.lane.b32.xlu1 %v4883_v38, %s4979_s9  ;;  %4894 = vrot.lane.b32.xlu0 %v4893_v5, %s4980_s11  ;;  %v3150_v22 = vsel %vm2078_vm7, %v6772_v17, %v4632_v27  ;;  %v3149_v32 = vsel %vm2078_vm7, %v4958_v21, %v4631_v15 }
 0x2c8   :  { %v3343_v58 = vsel %vm3332_vm0, %v3315_v6, %v4626_v14  ;;  %v3344_v61 = vsel %vm3332_vm0, %v3316_v16, %v4627_v36  ;;  %v3178_v59 = vsel %vm3164_vm10, %v3150_v22, %v4637_v40 }
 0x2c9   :  { %v3365_v34 = vpack.c.bf16 %v3344_v61, %v3343_v58  ;;  %v7160_v47 = vpop.permute.xlu1 %4669  ;;  %v4640_v60 = vpop.permute.xlu0 %4639 }
 0x2ca   :  { %v4642_v57 = vunpack.i.h.bf16 %v4640_v60  ;;  %v4641_v12 = vunpack.i.l.bf16 %v4640_v60 }
 0x2cb   :  { %3026 = vrot.lane.b32.xlu1 %v2297_v48, %s4979_s9  ;;  %4904 = vrot.lane.b32.xlu0 %v4903_v4, %s4980_s11 }
 0x2cc   :  { %3890 = vmatmul.mubr.msk.bf16.gmra.mxu0 %vm3396_vm1, %v3365_v34  ;;  %v3206_v6 = vsel %vm3192_vm11, %v3178_v59, %v4642_v57  ;;  %v4672_v57 = vunpack.i.h.bf16 %v7160_v47 }
 0x2cd   :  { %v7169_v33 = vpop.permute.xlu1 %4674  ;;  %v4645_v13 = vpop.permute.xlu0 %4644 }
 0x2ce   :  { %v4647_v56 = vunpack.i.h.bf16 %v4645_v13  ;;  %v4646_v39 = vunpack.i.l.bf16 %v4645_v13 }
 0x2cf   :  { %4899 = vrot.lane.b32.xlu1 %v4898_v31, %s4980_s11 }
 0x2d0   :  { %v3234_v61 = vsel %vm3220_vm12, %v3206_v6, %v4647_v56  ;;  %v4677_v56 = vunpack.i.h.bf16 %v7169_v33 }
 0x2d1   :  { %v4730_v23 = vpop.permute.xlu1 %4729  ;;  %v4650_v28 = vpop.permute.xlu0 %4649 }
 0x2d2   :  { %v4732_v25 = vunpack.i.h.bf16 %v4730_v23  ;;  %v4731_v50 = vunpack.i.l.bf16 %v4730_v23  ;;  %v4652_v20 = vunpack.i.h.bf16 %v4650_v28  ;;  %v4651_v38 = vunpack.i.l.bf16 %v4650_v28 }
 0x2d3   :  { %3108 = vrot.lane.b32.xlu1 %v2298_v43, %s4980_s11 }
 0x2d4   :  { %v3156_v8 = vsel %vm2078_vm7, %v7062_v49, %v4732_v25  ;;  %v3155_v30 = vsel %vm2078_vm7, %v7016_v46, %v4731_v50  ;;  %v3177_v46 = vsel %vm3164_vm10, %v3149_v32, %v4636_v7  ;;  %v3262_v60 = vsel %vm3248_vm13, %v3234_v61, %v4652_v20 }
 0x2d5   :  { %v4735_v54 = vpop.permute.xlu1 %4734  ;;  %v4655_v53 = vpop.permute.xlu0 %4654  ;;  %v3205_v14 = vsel %vm3192_vm11, %v3177_v46, %v4641_v12  ;;  %v4671_v12 = vunpack.i.l.bf16 %v7160_v47 }
 0x2d6   :  { %v4737_v45 = vunpack.i.h.bf16 %v4735_v54  ;;  %v4736_v37 = vunpack.i.l.bf16 %v4735_v54  ;;  %v4657_v19 = vunpack.i.h.bf16 %v4655_v53  ;;  %v4656_v36 = vunpack.i.l.bf16 %v4655_v53 }
 0x2d7   :  { %v3233_v58 = vsel %vm3220_vm12, %v3205_v14, %v4646_v39  ;;  %v4676_v39 = vunpack.i.l.bf16 %v7169_v33 }
 0x2d8   :  { %v7180_v18 = vsel %vm3164_vm10, %v3155_v30, %v4736_v37  ;;  %v7183_v42 = vsel %vm3164_vm10, %v3156_v8, %v4737_v45  ;;  %v3261_v34 = vsel %vm3248_vm13, %v3233_v58, %v4651_v38  ;;  %v3290_v13 = vsel %vm3276_vm14, %v3262_v60, %v4657_v19 }
 0x2d9   :  { %v7188_v49 = vpop.permute.xlu1 %4764  ;;  %v4660_v5 = vpop.permute.xlu0 %4659  ;;  %v3289_v31 = vsel %vm3276_vm14, %v3261_v34, %v4656_v36  ;;  %v3152_v38 = vsel %vm2078_vm7, %v6810_v29, %v4672_v57 }
 0x2da   :  { %v4662_v16 = vunpack.i.h.bf16 %v4660_v5  ;;  %v4661_v17 = vunpack.i.l.bf16 %v4660_v5  ;;  %v4959_v5 = vld [vmem:[#allocation3 + $0x71] sm:$0xff]  ;;  %v3180_v6 = vsel %vm3164_vm10, %v3152_v38, %v4677_v56 }
 0x2db   :  { %v3151_v46 = vsel %vm2078_vm7, %v4959_v5, %v4671_v12  ;;  %v4767_v5 = vunpack.i.h.bf16 %v7188_v49 }
 0x2dc   :  { %v3317_v43 = vsel %vm3304_vm15, %v3289_v31, %v4661_v17  ;;  %v3318_v25 = vsel %vm3304_vm15, %v3290_v13, %v4662_v16  ;;  %v3179_v14 = vsel %vm3164_vm10, %v3151_v46, %v4676_v39  ;;  %v4766_v46 = vunpack.i.l.bf16 %v7188_v49 }
 0x2dd   :  { %v7198_v4 = vpop.permute.xlu1 %4769  ;;  %v4665_v48 = vpop.permute.xlu0 %4664 }
 0x2de   :  { %v4667_v23 = vunpack.i.h.bf16 %v4665_v48  ;;  %v4666_v28 = vunpack.i.l.bf16 %v4665_v48 }
 0x2e0   :  { %v3345_v50 = vsel %vm3332_vm0, %v3317_v43, %v4666_v28  ;;  %v3346_v27 = vsel %vm3332_vm0, %v3318_v25, %v4667_v23 }
 0x2e1   :  { %v3366_v15 = vpack.c.bf16 %v3346_v27, %v3345_v50  ;;  %v7206_v54 = vpop.permute.xlu1 %4774  ;;  %v4680_v53 = vpop.permute.xlu0 %4679 }
 0x2e2   :  { %v4682_v22 = vunpack.i.h.bf16 %v4680_v53  ;;  %v4681_v21 = vunpack.i.l.bf16 %v4680_v53 }
 0x2e3   :  { %3893 = vmatprep.mubr.msk.bf16.mxu0 %vm3396_vm1, %v3366_v15 }
 0x2e4   :  { %v3208_v17 = vsel %vm3192_vm11, %v3180_v6, %v4682_v22  ;;  %v3207_v58 = vsel %vm3192_vm11, %v3179_v14, %v4681_v21  ;;  %v4771_v14 = vunpack.i.l.bf16 %v7198_v4 }
 0x2e5   :  { %v7209_v40 = vpop.permute.xlu1 %4779  ;;  %v4685_v7 = vpop.permute.xlu0 %4684 }
 0x2e6   :  { %v4687_v32 = vunpack.i.h.bf16 %v4685_v7  ;;  %v4686_v20 = vunpack.i.l.bf16 %v4685_v7  ;;  %v4781_v49 = vunpack.i.l.bf16 %v7209_v40 }
 0x2e8   :  { %v3235_v29 = vsel %vm3220_vm12, %v3207_v58, %v4686_v20  ;;  %v3236_v60 = vsel %vm3220_vm12, %v3208_v17, %v4687_v32  ;;  %v4776_v17 = vunpack.i.l.bf16 %v7206_v54 }
 0x2e9   :  { %v7211_v45 = vpop.permute.xlu1 %4784  ;;  %v4690_v37 = vpop.permute.xlu0 %4689 }
 0x2ea   :  { %v4692_v59 = vunpack.i.h.bf16 %v4690_v37  ;;  %v4691_v19 = vunpack.i.l.bf16 %v4690_v37 }
 0x2ec   :  { %v3263_v48 = vsel %vm3248_vm13, %v3235_v29, %v4691_v19  ;;  %v3264_v31 = vsel %vm3248_vm13, %v3236_v60, %v4692_v59  ;;  %v4782_v60 = vunpack.i.h.bf16 %v7209_v40 }
 0x2ed   :  { %v7215_v8 = vpop.permute.xlu1 %4789  ;;  %v4695_v30 = vpop.permute.xlu0 %4694 }
 0x2ee   :  { %v4697_v16 = vunpack.i.h.bf16 %v4695_v30  ;;  %v4696_v33 = vunpack.i.l.bf16 %v4695_v30  ;;  %v4792_v40 = vunpack.i.h.bf16 %v7215_v8 }
 0x2f0   :  { %v3291_v28 = vsel %vm3276_vm14, %v3263_v48, %v4696_v33  ;;  %v3292_v43 = vsel %vm3276_vm14, %v3264_v31, %v4697_v16  ;;  %v4777_v33 = vunpack.i.h.bf16 %v7206_v54  ;;  %v4787_v54 = vunpack.i.h.bf16 %v7211_v45 }
 0x2f1   :  { %v4795_v47 = vpop.permute.xlu1 %4794  ;;  %v4700_v36 = vpop.permute.xlu0 %4699 }
 0x2f2   :  { %v4702_v61 = vunpack.i.h.bf16 %v4700_v36  ;;  %v4701_v34 = vunpack.i.l.bf16 %v4700_v36  ;;  %v4797_v59 = vunpack.i.h.bf16 %v4795_v47  ;;  %v4796_v19 = vunpack.i.l.bf16 %v4795_v47 }
 0x2f3   :  { %v4772_v36 = vunpack.i.h.bf16 %v7198_v4  ;;  %v4960_v4 = vld [vmem:[#allocation3 + $0xb1] sm:$0xff] }
 0x2f4   :  { %v3319_v27 = vsel %vm3304_vm15, %v3291_v28, %v4701_v34  ;;  %v3320_v15 = vsel %vm3304_vm15, %v3292_v43, %v4702_v61  ;;  %v3160_v31 = vsel %vm2078_vm7, %v6926_v44, %v4797_v59  ;;  %v4786_v43 = vunpack.i.l.bf16 %v7211_v45 }
 0x2f5   :  { %v4800_v13 = vpop.permute.xlu1 %4799  ;;  %v4705_v23 = vpop.permute.xlu0 %4704 }
 0x2f6   :  { %v4707_v25 = vunpack.i.h.bf16 %v4705_v23  ;;  %v4706_v50 = vunpack.i.l.bf16 %v4705_v23  ;;  %v4802_v6 = vunpack.i.h.bf16 %v4800_v13  ;;  %v4801_v16 = vunpack.i.l.bf16 %v4800_v13 }
 0x2f7   :  { %v3159_v13 = vsel %vm2078_vm7, %v4960_v4, %v4796_v19 }
 0x2f8   :  { %v3347_v53 = vsel %vm3332_vm0, %v3319_v27, %v4706_v50  ;;  %v3348_v7 = vsel %vm3332_vm0, %v3320_v15, %v4707_v25  ;;  %v3187_v25 = vsel %vm3164_vm10, %v3159_v13, %v4801_v16  ;;  %v3188_v50 = vsel %vm3164_vm10, %v3160_v31, %v4802_v6  ;;  %v4961_v6 = vld [vmem:[#allocation3 + $0xa9] sm:$0xff] }
 0x2f9   :  { %v3367_v37 = vpack.c.bf16 %v3348_v7, %v3347_v53  ;;  %v4805_v57 = vpop.permute.xlu1 %4804  ;;  %v7236_v12 = vpop.permute.xlu0 %4709  ;;  %v4791_v27 = vunpack.i.l.bf16 %v7215_v8 }
 0x2fa   :  { %v4807_v58 = vunpack.i.h.bf16 %v4805_v57  ;;  %v4806_v61 = vunpack.i.l.bf16 %v4805_v57 }
 0x2fb   :  { %3894 = vmatmul.mubr.msk.bf16.gmra.mxu0 %vm3396_vm1, %v3367_v37 }
 0x2fc   :  { %v3215_v15 = vsel %vm3192_vm11, %v3187_v25, %v4806_v61  ;;  %v3216_v44 = vsel %vm3192_vm11, %v3188_v50, %v4807_v58 }
 0x2fd   :  { %v4810_v30 = vpop.permute.xlu1 %4809  ;;  %v7239_v56 = vpop.permute.xlu0 %4714 }
 0x2fe   :  { %v4812_v48 = vunpack.i.h.bf16 %v4810_v30  ;;  %v4811_v47 = vunpack.i.l.bf16 %v4810_v30 }
 0x300   :  { %v3243_v37 = vsel %vm3220_vm12, %v3215_v15, %v4811_v47  ;;  %v3244_v57 = vsel %vm3220_vm12, %v3216_v44, %v4812_v48 }
 0x301   :  { %v7241_v39 = vpop.permute.xlu1 %4814  ;;  %v7243_v22 = vpop.permute.xlu0 %4719 }
 0x302   :  { %v4817_v59 = vunpack.i.h.bf16 %v7241_v39  ;;  %v4816_v19 = vunpack.i.l.bf16 %v7241_v39 }
 0x304   :  { %v3271_v50 = vsel %vm3248_vm13, %v3243_v37, %v4816_v19  ;;  %v3272_v15 = vsel %vm3248_vm13, %v3244_v57, %v4817_v59 }
 0x305   :  { %v7245_v21 = vpop.permute.xlu1 %4819  ;;  %v7247_v32 = vpop.permute.xlu0 %4724 }
 0x306   :  { %v4822_v58 = vunpack.i.h.bf16 %v7245_v21  ;;  %v4821_v61 = vunpack.i.l.bf16 %v7245_v21 }
 0x308   :  { %v3300_v44 = vsel %vm3276_vm14, %v3272_v15, %v4822_v58 }
 0x309   :  { %v7249_v20 = vpop.permute.xlu1 %4824  ;;  %v7251_v38 = vpop.permute.xlu0 %4739 }
 0x30a   :  { %v4827_v47 = vunpack.i.h.bf16 %v7249_v20  ;;  %v4826_v31 = vunpack.i.l.bf16 %v7249_v20  ;;  %v4741_v15 = vunpack.i.l.bf16 %v7251_v38 }
 0x30d   :  { %v4830_v34 = vpop.permute.xlu1 %4829  ;;  %v4745_v29 = vpop.permute.xlu0 %4744 }
 0x30e   :  { %v4747_v23 = vunpack.i.h.bf16 %v4745_v29  ;;  %v4746_v28 = vunpack.i.l.bf16 %v4745_v29 }
 0x310   :  { %v3158_v8 = vsel %vm2078_vm7, %v4961_v6, %v4747_v23  ;;  %v3157_v16 = vsel %vm2078_vm7, %v7057_v62, %v4746_v28  ;;  %v4832_v62 = vunpack.i.h.bf16 %v4830_v34  ;;  %v4831_v28 = vunpack.i.l.bf16 %v4830_v34 }
 0x311   :  { %v7272_v53 = vpop.permute.xlu1 %4854  ;;  %v4750_v7 = vpop.permute.xlu0 %4749 }
 0x312   :  { %v4752_v45 = vunpack.i.h.bf16 %v4750_v7  ;;  %v4751_v30 = vunpack.i.l.bf16 %v4750_v7 }
 0x314   :  { %v3185_v29 = vsel %vm3164_vm10, %v3157_v16, %v4751_v30  ;;  %v3186_v48 = vsel %vm3164_vm10, %v3158_v8, %v4752_v45 }
 0x315   :  { %v3213_v39 = vsel %vm3192_vm11, %v3185_v29, %v4766_v46  ;;  %v3214_v4 = vsel %vm3192_vm11, %v3186_v48, %v4767_v5  ;;  %v7289_v13 = vpop.permute.xlu1 %4859  ;;  %v7291_v23 = vpop.permute.xlu0 %4754  ;;  %v3299_v5 = vsel %vm3276_vm14, %v3271_v50, %v4821_v61  ;;  %v4712_v61 = vunpack.i.h.bf16 %v7236_v12 }
 0x316   :  { %v3241_v21 = vsel %vm3220_vm12, %v3213_v39, %v4771_v14  ;;  %v3242_v25 = vsel %vm3220_vm12, %v3214_v4, %v4772_v36  ;;  %v3327_v14 = vsel %vm3304_vm15, %v3299_v5, %v4826_v31  ;;  %v3328_v36 = vsel %vm3304_vm15, %v3300_v44, %v4827_v47 }
 0x317   :  { %v3269_v20 = vsel %vm3248_vm13, %v3241_v21, %v4776_v17  ;;  %v3270_v46 = vsel %vm3248_vm13, %v3242_v25, %v4777_v33  ;;  %v3355_v57 = vsel %vm3332_vm0, %v3327_v14, %v4831_v28  ;;  %v3356_v30 = vsel %vm3332_vm0, %v3328_v36, %v4832_v62  ;;  %v4962_v25 = vld [vmem:[#allocation3 + $0x81] sm:$0xff] }
 0x318   :  { %v3297_v7 = vsel %vm3276_vm14, %v3269_v20, %v4781_v49  ;;  %v3298_v34 = vsel %vm3276_vm14, %v3270_v46, %v4782_v60  ;;  %v3371_v19 = vpack.c.bf16 %v3356_v30, %v3355_v57  ;;  %v4717_v48 = vunpack.i.h.bf16 %v7239_v56 }
 0x319   :  { %v7305_v45 = vpop.permute.xlu1 %2378  ;;  %v7307_v37 = vpop.permute.xlu0 %4759  ;;  %v3325_v17 = vsel %vm3304_vm15, %v3297_v7, %v4786_v43  ;;  %v3326_v33 = vsel %vm3304_vm15, %v3298_v34, %v4787_v54  ;;  %v4716_v47 = vunpack.i.l.bf16 %v7239_v56  ;;  %v4722_v31 = vunpack.i.h.bf16 %v7243_v22 }
 0x31a   :  { %v3353_v49 = vsel %vm3332_vm0, %v3325_v17, %v4791_v27  ;;  %v3354_v60 = vsel %vm3332_vm0, %v3326_v33, %v4792_v40  ;;  %v4711_v40 = vunpack.i.l.bf16 %v7236_v12  ;;  %v4721_v39 = vunpack.i.l.bf16 %v7243_v22 }
 0x31b   :  { %v3370_v59 = vpack.c.bf16 %v3354_v60, %v3353_v49  ;;  %v3154_v4 = vsel %vm2078_vm7, %v7028_v2, %v4712_v61  ;;  %v4726_v62 = vunpack.i.l.bf16 %v7247_v32  ;;  %v4727_v50 = vunpack.i.h.bf16 %v7247_v32 }
 0x31c   :  { %v3153_v12 = vsel %vm2078_vm7, %v4962_v25, %v4711_v40  ;;  %v4742_v56 = vunpack.i.h.bf16 %v7251_v38  ;;  %v3182_v20 = vsel %vm3164_vm10, %v3154_v4, %v4717_v48  ;;  %v4756_v5 = vunpack.i.l.bf16 %v7291_v23 }
 0x31d   :  { %v2487_v6 = vpop.permute.xlu1 %2486  ;;  %v4835_v8 = vpop.permute.xlu0 %4834  ;;  %3901 = vmatprep.mubr.msk.bf16.mxu1 %vm3396_vm1, %v3370_v59  ;;  %v3181_v22 = vsel %vm3164_vm10, %v3153_v12, %v4716_v47  ;;  %v3210_v46 = vsel %vm3192_vm11, %v3182_v20, %v4722_v31  ;;  %v4757_v34 = vunpack.i.h.bf16 %v7291_v23  ;;  %v3211_v57 = vsel %vm3192_vm11, %v7180_v18, %v4741_v15 }
 0x31e   :  { %3902 = vmatmul.mubr.msk.bf16.vlgmr.msra.gmra.mxu1 %vm3396_vm1, %v3371_v19  ;;  %v3209_v2 = vsel %vm3192_vm11, %v3181_v22, %v4721_v39  ;;  %v4836_v44 = vunpack.i.l.bf16 %v4835_v8  ;;  %v4837_v32 = vunpack.i.h.bf16 %v4835_v8  ;;  %v3238_v17 = vsel %vm3220_vm12, %v3210_v46, %v4727_v50 }
 0x31f   :  { %v3237_v7 = vsel %vm3220_vm12, %v3209_v2, %v4726_v62  ;;  %v3212_v33 = vsel %vm3192_vm11, %v7183_v42, %v4742_v56  ;;  %v4857_v49 = vunpack.i.h.bf16 %v7272_v53  ;;  %v4856_v60 = vunpack.i.l.bf16 %v7272_v53 }
 0x320   :  { %v4862_v23 = vunpack.i.h.bf16 %v7289_v13  ;;  %v4761_v59 = vunpack.i.l.bf16 %v7307_v37  ;;  %v4861_v19 = vunpack.i.l.bf16 %v7289_v13  ;;  %v3239_v8 = vsel %vm3220_vm12, %v3211_v57, %v4756_v5 }
 0x321   :  { %v2595_v16 = vpop.permute.xlu1 %2594  ;;  %v4840_v43 = vpop.permute.xlu0 %4839  ;;  %v4762_v61 = vunpack.i.h.bf16 %v7307_v37  ;;  %v3161_v42 = vsel %vm2078_vm7, %v6919_v9, %v4836_v44  ;;  %v3240_v18 = vsel %vm3220_vm12, %v3212_v33, %v4757_v34  ;;  %v3163_v13 = vsel %vm2078_vm7, %v7070_v63, %v7305_v45 }
 0x322   :  { %v4841_v14 = vunpack.i.l.bf16 %v4840_v43  ;;  %v4842_v30 = vunpack.i.h.bf16 %v4840_v43  ;;  %v3162_v43 = vsel %vm2078_vm7, %v7076_v35, %v4837_v32  ;;  %v3265_v39 = vsel %vm3248_vm13, %v3237_v7, %v4761_v59 }
 0x323   :  { %v3191_v35 = vsel %vm3164_vm10, %v3163_v13, %v2487_v6  ;;  %v3266_v25 = vsel %vm3248_vm13, %v3238_v17, %v4762_v61 }
 0x324   :  { %v3189_v53 = vsel %vm3164_vm10, %v3161_v42, %v4841_v14  ;;  %v3190_v37 = vsel %vm3164_vm10, %v3162_v43, %v4842_v30  ;;  %v3219_v12 = vsel %vm3192_vm11, %v3191_v35, %v2595_v16 }
 0x325   :  { %v7317_v58 = vpop.permute.xlu1 %2702  ;;  %v7319_v54 = vpop.permute.xlu0 %4844  ;;  %v3217_v50 = vsel %vm3192_vm11, %v3189_v53, %v4856_v60  ;;  %v3218_v45 = vsel %vm3192_vm11, %v3190_v37, %v4857_v49 }
 0x326   :  { %v4846_v40 = vunpack.i.l.bf16 %v7319_v54  ;;  %v4847_v63 = vunpack.i.h.bf16 %v7319_v54 }
 0x328   :  { %v3267_v56 = vsel %vm3248_vm13, %v3239_v8, %v4846_v40  ;;  %v3268_v34 = vsel %vm3248_vm13, %v3240_v18, %v4847_v63  ;;  %v3246_v40 = vsel %vm3220_vm12, %v3218_v45, %v4862_v23 }
 0x329   :  { %v7322_v29 = vpop.permute.xlu1 %4864  ;;  %v7324_v27 = vpop.permute.xlu0 %4849 }
 0x32a   :  { %v4852_v9 = vunpack.i.h.bf16 %v7324_v27  ;;  %v4851_v31 = vunpack.i.l.bf16 %v7324_v27  ;;  %v4867_v32 = vunpack.i.h.bf16 %v7322_v29 }
 0x32c   :  { %v3293_v20 = vsel %vm3276_vm14, %v3265_v39, %v4851_v31  ;;  %v3294_v2 = vsel %vm3276_vm14, %v3266_v25, %v4852_v9  ;;  %v3274_v9 = vsel %vm3248_vm13, %v3246_v40, %v4867_v32  ;;  %v3593_v32 = vld [vmem:[%s7681_s6 + $0x18] sm:$0xff] }
 0x32d   :  { %v7334_v28 = vpop.permute.xlu1 %2810  ;;  %v7336_v21 = vpop.permute.xlu0 %4874 }
 0x32e   :  { %v4877_v27 = vunpack.i.h.bf16 %v7336_v21  ;;  %v4876_v15 = vunpack.i.l.bf16 %v7336_v21 }
 0x330   :  { %v3295_v17 = vsel %vm3276_vm14, %v3267_v56, %v4876_v15  ;;  %v3296_v33 = vsel %vm3276_vm14, %v3268_v34, %v4877_v27 }
 0x331   :  { %v7349_v36 = vpop.permute.xlu1 %4869  ;;  %v4880_v38 = vpop.permute.xlu0 %4879 }
 0x332   :  { %v4882_v4 = vunpack.i.h.bf16 %v4880_v38  ;;  %v4881_v62 = vunpack.i.l.bf16 %v4880_v38  ;;  %v4866_v38 = vunpack.i.l.bf16 %v7322_v29  ;;  %v4872_v60 = vunpack.i.h.bf16 %v7349_v36 }
 0x333   :  { %v4871_v59 = vunpack.i.l.bf16 %v7349_v36  ;;  %v3245_v29 = vsel %vm3220_vm12, %v3217_v50, %v4861_v19  ;;  %v3247_v36 = vsel %vm3220_vm12, %v3219_v12, %v7317_v58 }
 0x334   :  { %v3321_v5 = vsel %vm3304_vm15, %v3293_v20, %v4881_v62  ;;  %v3322_v54 = vsel %vm3304_vm15, %v3294_v2, %v4882_v4  ;;  %v3273_v37 = vsel %vm3248_vm13, %v3245_v29, %v4866_v38  ;;  %v3302_v4 = vsel %vm3276_vm14, %v3274_v9, %v4872_v60  ;;  %v3592_v20 = vld [vmem:[%s7681_s6 + $0x10] sm:$0xff] }
 0x335   :  { %v7370_v48 = vpop.permute.xlu1 %2918  ;;  %v4890_v47 = vpop.permute.xlu0 %4889  ;;  %v3301_v35 = vsel %vm3276_vm14, %v3273_v37, %v4871_v59  ;;  %v3275_v23 = vsel %vm3248_vm13, %v3247_v36, %v7334_v28 }
 0x336   :  { %v4892_v44 = vunpack.i.h.bf16 %v4890_v47  ;;  %v4891_v7 = vunpack.i.l.bf16 %v4890_v47  ;;  %v3303_v58 = vsel %vm3276_vm14, %v3275_v23, %v7370_v48 }
 0x338   :  { %v3323_v42 = vsel %vm3304_vm15, %v3295_v17, %v4891_v7  ;;  %v3324_v18 = vsel %vm3304_vm15, %v3296_v33, %v4892_v44 }
 0x339   :  { %v4885_v22 = vpop.permute.xlu1 %4884  ;;  %v4895_v6 = vpop.permute.xlu0 %4894 }
 0x33a   :  { %v4897_v46 = vunpack.i.h.bf16 %v4895_v6  ;;  %v4896_v16 = vunpack.i.l.bf16 %v4895_v6  ;;  %v4887_v43 = vunpack.i.h.bf16 %v4885_v22  ;;  %v4886_v53 = vunpack.i.l.bf16 %v4885_v22  ;;  %v7430_v22 = vld [vmem:[%s7680_s5] ss:$0 sm:$0xff] }
 0x33c   :  { %v3349_v21 = vsel %vm3332_vm0, %v3321_v5, %v4896_v16  ;;  %v3350_v14 = vsel %vm3332_vm0, %v3322_v54, %v4897_v46  ;;  %v3329_v25 = vsel %vm3304_vm15, %v3301_v35, %v4886_v53  ;;  %v3330_v50 = vsel %vm3304_vm15, %v3302_v4, %v4887_v43  ;;  %v3590_v5 = vld [vmem:[%s7681_s6] sm:$0xff]  ;;  %v3597_v53 = vld [vmem:[%s7681_s6 + $0x38] sm:$0xff] }
 0x33d   :  { %v3368_v57 = vpack.c.bf16 %v3350_v14, %v3349_v21  ;;  %v3027_v30 = vpop.permute.xlu1 %3026  ;;  %v4905_v49 = vpop.permute.xlu0 %4904  ;;  %v3598_v4 = vld [vmem:[%s7681_s6 + $0x40] sm:$0xff] }
 0x33e   :  { %v4907_v8 = vunpack.i.h.bf16 %v4905_v49  ;;  %v4906_v61 = vunpack.i.l.bf16 %v4905_v49  ;;  %v3331_v45 = vsel %vm3304_vm15, %v3303_v58, %v3027_v30  ;;  %v3596_v49 = vld [vmem:[%s7681_s6 + $0x30] sm:$0xff] }
 0x33f   :  { %3897 = vmatprep.mubr.msk.bf16.mxu0 %vm3396_vm1, %v3368_v57 }
 0x340   :  { %v3351_v47 = vsel %vm3332_vm0, %v3323_v42, %v4906_v61  ;;  %v3352_v13 = vsel %vm3332_vm0, %v3324_v18, %v4907_v8  ;;  %v3594_v8 = vld [vmem:[%s7681_s6 + $0x20] sm:$0xff] }
 0x341   :  { %v3369_v31 = vpack.c.bf16 %v3352_v13, %v3351_v47  ;;  %v4900_v39 = vpop.permute.xlu1 %4899 }
 0x342   :  { %v4902_v19 = vunpack.i.h.bf16 %v4900_v39  ;;  %v4901_v62 = vunpack.i.l.bf16 %v4900_v39 }
 0x343   :  { %3898 = vmatmul.mubr.msk.bf16.gmra.mxu0 %vm3396_vm1, %v3369_v31  ;;  %v3600_v31 = vld [vmem:[%s7681_s6 + $0x50] sm:$0xff] }
 0x344   :  { %v3357_v12 = vsel %vm3332_vm0, %v3329_v25, %v4901_v62  ;;  %v3358_v63 = vsel %vm3332_vm0, %v3330_v50, %v4902_v19  ;;  %v3601_v50 = vld [vmem:[%s7681_s6 + $0x58] sm:$0xff] }
 0x345   :  { %v3372_v56 = vpack.c.bf16 %v3358_v63, %v3357_v12  ;;  %v3109_v27 = vpop.permute.xlu1 %3108 }
 0x346   :  { %v3359_v15 = vsel %vm3332_vm0, %v3331_v45, %v3109_v27 }
 0x347   :  { %v3373_v28 = vpack.c.bf16 %v3359_v15, %v3359_v15  ;;  %3905 = vmatprep.mubr.msk.bf16.mxu1 %vm3396_vm1, %v3372_v56  ;;  %v7918_v56 = vld [vmem:[#allocation41_spill] sm:$0xff] }
 0x349   :  { %3906 = vmatmul.mubr.msk.bf16.gmra.mxu1 %vm3396_vm1, %v3373_v28 }
 0x34c   :  { %v3883_v48 = vpop.f32.mrf.mxu0 }
 0x34d   :  { %v3489_v6 = vadd.f32 %v3883_v48, %v7430_v22  ;;  %v3604_v48 = vld [vmem:[%s7681_s6 + $0x70] sm:$0xff] }
 0x34e   :  { %v3480_v2 = vpop.f32.mrf.mxu0 }
 0x34f   :  { %v3619_v46 = vmul.f32 %v3489_v6, %v6424_v52  ;;  %v3481_v16 = vadd.f32 %v7430_v22, %v3480_v2 }
 0x350   :  { %v3884_v54 = vpop.f32.mrf.mxu0 }
 0x351   :  { %v3646_v44 = vadd.f32 %v3619_v46, %v3592_v20  ;;  %v3617_v7 = vmul.f32 %v3481_v16, %v6407_v55  ;;  %v3492_v34 = vadd.f32 %v3884_v54, %v7430_v22  ;;  %v3591_v55 = vld [vmem:[%s7681_s6 + $0x8] sm:$0xff]  ;;  %v3602_v16 = vld [vmem:[%s7681_s6 + $0x60] sm:$0xff] }
 0x352   :  { %v3483_v21 = vpop.f32.mrf.mxu0  ;;  %v7919_v20 = vld [vmem:[#allocation27_spill] sm:$0xff] }
 0x353   :  { %3673 = vst.msk [vmem:[%s7682_s7 + $0x10] sm:$0xff] %vm2078_vm7, %v3646_v44  ;;  %v3644_v52 = vadd.f32 %v3617_v7, %v3590_v5  ;;  %v3620_v14 = vmul.f32 %v3492_v34, %v6433_v1  ;;  %v3484_v38 = vadd.f32 %v7430_v22, %v3483_v21  ;;  %v7920_v44 = vld [vmem:[#allocation44_spill] sm:$0xff] }
 0x355   :  { %3671 = vst.msk [vmem:[%s7682_s7] sm:$0xff] %vm2078_vm7, %v3644_v52  ;;  %v3647_v17 = vadd.f32 %v3620_v14, %v3593_v32  ;;  %v3618_v33 = vmul.f32 %v3484_v38, %v6412_v10  ;;  %v3605_v32 = vld [vmem:[%s7681_s6 + $0x78] sm:$0xff]  ;;  %v7921_v14 = vld [vmem:[#allocation34_spill] sm:$0xff] }
 0x357   :  { %3674 = vst.msk [vmem:[%s7682_s7 + $0x18] sm:$0xff] %vm2078_vm7, %v3647_v17  ;;  %v3645_v1 = vadd.f32 %v3618_v33, %v3591_v55  ;;  %v3603_v17 = vld [vmem:[%s7681_s6 + $0x68] sm:$0xff] }
 0x359   :  { %3672 = vst.msk [vmem:[%s7682_s7 + $0x8] sm:$0xff] %vm2078_vm7, %v3645_v1  ;;  %v7922_v1 = vld [vmem:[#allocation26_spill] sm:$0xff] }
 0x36c   :  { %v3887_v57 = vpop.f32.mrf.mxu0 }
 0x36d   :  { %v3505_v30 = vadd.f32 %v3887_v57, %v7430_v22 }
 0x36e   :  { %v3496_v60 = vpop.f32.mrf.mxu0 }
 0x36f   :  { %v3623_v10 = vmul.f32 %v3505_v30, %v6468_v41  ;;  %v3497_v59 = vadd.f32 %v7430_v22, %v3496_v60 }
 0x370   :  { %v3888_v61 = vpop.f32.mrf.mxu0 }
 0x371   :  { %v3650_v42 = vadd.f32 %v3623_v10, %v3596_v49  ;;  %v3621_v18 = vmul.f32 %v3497_v59, %v6442_v3  ;;  %v3508_v43 = vadd.f32 %v3888_v61, %v7430_v22  ;;  %v3595_v3 = vld [vmem:[%s7681_s6 + $0x28] sm:$0xff]  ;;  %v3612_v10 = vld [vmem:[%s7681_s6 + $0xb0] sm:$0xff] }
 0x372   :  { %v3499_v29 = vpop.f32.mrf.mxu0 }
 0x373   :  { %3677 = vst.msk [vmem:[%s7682_s7 + $0x30] sm:$0xff] %vm2078_vm7, %v3650_v42  ;;  %v3648_v41 = vadd.f32 %v3621_v18, %v3594_v8  ;;  %v3624_v40 = vmul.f32 %v3508_v43, %v6481_v51  ;;  %v3500_v47 = vadd.f32 %v7430_v22, %v3499_v29  ;;  %v7923_v8 = vld [vmem:[#allocation9_spill] sm:$0xff]  ;;  %v3610_v18 = vld [vmem:[%s7681_s6 + $0xa0] sm:$0xff]  ;;  %v7924_v29 = vld [vmem:[#allocation28_spill] sm:$0xff] }
 0x375   :  { %3675 = vst.msk [vmem:[%s7682_s7 + $0x20] sm:$0xff] %vm2078_vm7, %v3648_v41  ;;  %v3651_v13 = vadd.f32 %v3624_v40, %v3597_v53  ;;  %v3622_v36 = vmul.f32 %v3500_v47, %v6452_v24  ;;  %v3613_v47 = vld [vmem:[%s7681_s6 + $0xb8] sm:$0xff] }
 0x377   :  { %3678 = vst.msk [vmem:[%s7682_s7 + $0x38] sm:$0xff] %vm2078_vm7, %v3651_v13  ;;  %v3649_v51 = vadd.f32 %v3622_v36, %v3595_v3  ;;  %v7925_v36 = vld [vmem:[#allocation5_spill] sm:$0xff] }
 0x379   :  { %3676 = vst.msk [vmem:[%s7682_s7 + $0x28] sm:$0xff] %vm2078_vm7, %v3649_v51 }
 0x38c   :  { %v3891_v37 = vpop.f32.mrf.mxu0 }
 0x38d   :  { %v3521_v9 = vadd.f32 %v3891_v37, %v7430_v22 }
 0x38e   :  { %v3512_v39 = vpop.f32.mrf.mxu0 }
 0x38f   :  { %v3627_v24 = vmul.f32 %v3521_v9, %v6535_v26  ;;  %v3513_v35 = vadd.f32 %v7430_v22, %v3512_v39  ;;  %v3611_v9 = vld [vmem:[%s7681_s6 + $0xa8] sm:$0xff]  ;;  %v7926_v39 = vld [vmem:[#allocation36_spill] sm:$0xff] }
 0x390   :  { %v3892_v19 = vpop.f32.mrf.mxu0 }
 0x391   :  { %v3654_v62 = vadd.f32 %v3627_v24, %v3600_v31  ;;  %v3625_v23 = vmul.f32 %v3513_v35, %v6501_v0  ;;  %v3524_v25 = vadd.f32 %v3892_v19, %v7430_v22  ;;  %v3599_v0 = vld [vmem:[%s7681_s6 + $0x48] sm:$0xff] }
 0x392   :  { %v3515_v58 = vpop.f32.mrf.mxu0 }
 0x393   :  { %3681 = vst.msk [vmem:[%s7682_s7 + $0x50] sm:$0xff] %vm2078_vm7, %v3654_v62  ;;  %v3652_v26 = vadd.f32 %v3625_v23, %v3598_v4  ;;  %v3628_v12 = vmul.f32 %v3524_v25, %v6551_v11  ;;  %v3516_v63 = vadd.f32 %v7430_v22, %v3515_v58  ;;  %v3608_v62 = vld [vmem:[%s7681_s6 + $0x90] sm:$0xff] }
 0x394   :  { %v7927_v25 = vld [vmem:[#allocation40_spill] sm:$0xff] }
 0x395   :  { %3679 = vst.msk [vmem:[%s7682_s7 + $0x40] sm:$0xff] %vm2078_vm7, %v3652_v26  ;;  %v3655_v45 = vadd.f32 %v3628_v12, %v3601_v50  ;;  %v3626_v27 = vmul.f32 %v3516_v63, %v7918_v56  ;;  %v3606_v26 = vld [vmem:[%s7681_s6 + $0x80] sm:$0xff] }
 0x397   :  { %3682 = vst.msk [vmem:[%s7682_s7 + $0x58] sm:$0xff] %vm2078_vm7, %v3655_v45  ;;  %v3653_v11 = vadd.f32 %v3626_v27, %v3599_v0  ;;  %v7928_v0 = vld [vmem:[#allocation4_spill] sm:$0xff]  ;;  %v3609_v27 = vld [vmem:[%s7681_s6 + $0x98] sm:$0xff] }
 0x399   :  { %3680 = vst.msk [vmem:[%s7682_s7 + $0x48] sm:$0xff] %vm2078_vm7, %v3653_v11 }
 0x3bb   :  { %v3895_v15 = vpop.f32.mrf.mxu0 }
 0x3bc   :  { %v3537_v28 = vadd.f32 %v3895_v15, %v7430_v22 }
 0x3bd   :  { %v3528_v6 = vpop.f32.mrf.mxu0 }
 0x3be   :  { %v3631_v2 = vmul.f32 %v3537_v28, %v7919_v20  ;;  %v3529_v46 = vadd.f32 %v7430_v22, %v3528_v6 }
 0x3bf   :  { %v3896_v5 = vpop.f32.mrf.mxu0 }
 0x3c0   :  { %v3658_v54 = vadd.f32 %v3631_v2, %v3604_v48  ;;  %v3629_v7 = vmul.f32 %v3529_v46, %v7920_v44  ;;  %v3540_v34 = vadd.f32 %v3896_v5, %v7430_v22  ;;  %v7929_v48 = vld [vmem:[#allocation43_spill] sm:$0xff]  ;;  %v7930_v44 = vld [vmem:[#allocation6_spill] sm:$0xff] }
 0x3c1   :  { %v3531_v21 = vpop.f32.mrf.mxu0  ;;  %v3607_v46 = vld [vmem:[%s7681_s6 + $0x88] sm:$0xff] }
 0x3c2   :  { %3685 = vst.msk [vmem:[%s7682_s7 + $0x70] sm:$0xff] %vm2078_vm7, %v3658_v54  ;;  %v3656_v52 = vadd.f32 %v3629_v7, %v3602_v16  ;;  %v3632_v38 = vmul.f32 %v3540_v34, %v7921_v14  ;;  %v3532_v55 = vadd.f32 %v7430_v22, %v3531_v21  ;;  %v3616_v16 = vld [vmem:[%s7681_s6 + $0xd0] sm:$0xff]  ;;  %v7931_v34 = vld [vmem:[#allocation29_spill] sm:$0xff] }
 0x3c4   :  { %3683 = vst.msk [vmem:[%s7682_s7 + $0x60] sm:$0xff] %vm2078_vm7, %v3656_v52  ;;  %v3659_v33 = vadd.f32 %v3632_v38, %v3605_v32  ;;  %v3630_v57 = vmul.f32 %v3532_v55, %v7922_v1  ;;  %v3614_v52 = vld [vmem:[%s7681_s6 + $0xc0] sm:$0xff] }
 0x3c6   :  { %3686 = vst.msk [vmem:[%s7682_s7 + $0x78] sm:$0xff] %vm2078_vm7, %v3659_v33  ;;  %v3657_v30 = vadd.f32 %v3630_v57, %v3603_v17  ;;  %v7932_v17 = vld [vmem:[#allocation42_spill] sm:$0xff] }
 0x3c8   :  { %3684 = vst.msk [vmem:[%s7682_s7 + $0x68] sm:$0xff] %vm2078_vm7, %v3657_v30 }
 0x3de   :  { %v3903_v49 = vpop.f32.mrf.mxu1 }
 0x3df   :  { %v3569_v60 = vadd.f32 %v3903_v49, %v7430_v22  ;;  %v3615_v49 = vld [vmem:[%s7681_s6 + $0xc8] sm:$0xff] }
 0x3e0   :  { %v3560_v59 = vpop.f32.mrf.mxu1 }
 0x3e1   :  { %v3639_v61 = vmul.f32 %v3569_v60, %v7923_v8  ;;  %v3561_v42 = vadd.f32 %v7430_v22, %v3560_v59  ;;  %v7933_v60 = vld [vmem:[#allocation45_spill] sm:$0xff] }
 0x3e2   :  { %v3904_v43 = vpop.f32.mrf.mxu1 }
 0x3e3   :  { %v3666_v53 = vadd.f32 %v3639_v61, %v3612_v10  ;;  %v3637_v41 = vmul.f32 %v3561_v42, %v7924_v29  ;;  %v3572_v40 = vadd.f32 %v3904_v43, %v7430_v22 }
 0x3e4   :  { %v3563_v3 = vpop.f32.mrf.mxu1 }
 0x3e5   :  { %3693 = vst.msk [vmem:[%s7682_s7 + $0xb0] sm:$0xff] %vm2078_vm7, %v3666_v53  ;;  %v3664_v13 = vadd.f32 %v3637_v41, %v3610_v18  ;;  %v3640_v51 = vmul.f32 %v3572_v40, %v7925_v36  ;;  %v3564_v37 = vadd.f32 %v7430_v22, %v3563_v3 }
 0x3e7   :  { %3691 = vst.msk [vmem:[%s7682_s7 + $0xa0] sm:$0xff] %vm2078_vm7, %v3664_v13  ;;  %v3667_v31 = vadd.f32 %v3640_v51, %v3613_v47  ;;  %v3638_v24 = vmul.f32 %v3564_v37, %v7926_v39 }
 0x3e9   :  { %3694 = vst.msk [vmem:[%s7682_s7 + $0xb8] sm:$0xff] %vm2078_vm7, %v3667_v31  ;;  %v3665_v35 = vadd.f32 %v3638_v24, %v3611_v9 }
 0x3eb   :  { %3692 = vst.msk [vmem:[%s7682_s7 + $0xa8] sm:$0xff] %vm2078_vm7, %v3665_v35 }
 0x403   :  { %v3899_v4 = vpop.f32.mrf.mxu0 }
 0x404   :  { %v3553_v19 = vadd.f32 %v3899_v4, %v7430_v22 }
 0x405   :  { %v3544_v23 = vpop.f32.mrf.mxu0 }
 0x406   :  { %v3635_v50 = vmul.f32 %v3553_v19, %v7927_v25  ;;  %v3545_v58 = vadd.f32 %v7430_v22, %v3544_v23 }
 0x407   :  { %v3900_v12 = vpop.f32.mrf.mxu0 }
 0x408   :  { %v3662_v63 = vadd.f32 %v3635_v50, %v3608_v62  ;;  %v3633_v45 = vmul.f32 %v3545_v58, %v7928_v0  ;;  %v3556_v56 = vadd.f32 %v3900_v12, %v7430_v22 }
 0x409   :  { %v3547_v11 = vpop.f32.mrf.mxu0  ;;  %v3907_v15 = vpop.f32.mrf.mxu1 }
 0x40a   :  { %3689 = vst.msk [vmem:[%s7682_s7 + $0x90] sm:$0xff] %vm2078_vm7, %v3662_v63  ;;  %v3660_v28 = vadd.f32 %v3633_v45, %v3606_v26  ;;  %v3636_v6 = vmul.f32 %v3556_v56, %v7929_v48  ;;  %v3548_v20 = vadd.f32 %v7430_v22, %v3547_v11  ;;  %v3585_v2 = vadd.f32 %v3907_v15, %v7430_v22 }
 0x40b   :  { %v3576_v5 = vpop.f32.mrf.mxu1 }
 0x40c   :  { %3687 = vst.msk [vmem:[%s7682_s7 + $0x80] sm:$0xff] %vm2078_vm7, %v3660_v28  ;;  %v3663_v54 = vadd.f32 %v3636_v6, %v3609_v27  ;;  %v3634_v7 = vmul.f32 %v3548_v20, %v7930_v44  ;;  %v3643_v32 = vmul.f32 %v3585_v2, %v7931_v34  ;;  %v3577_v21 = vadd.f32 %v7430_v22, %v3576_v5 }
 0x40d   :  { %v3908_v14 = vpop.f32.mrf.mxu1 }
 0x40e   :  { %3690 = vst.msk [vmem:[%s7682_s7 + $0x98] sm:$0xff] %vm2078_vm7, %v3663_v54  ;;  %v3661_v38 = vadd.f32 %v3634_v7, %v3607_v46  ;;  %v3670_v55 = vadd.f32 %v3643_v32, %v3616_v16  ;;  %v3641_v33 = vmul.f32 %v3577_v21, %v7932_v17 }
 0x40f   :  { %v3579_v1 = vpop.f32.mrf.mxu1 }
 0x410   :  { %3688 = vst.msk [vmem:[%s7682_s7 + $0x88] sm:$0xff] %vm2078_vm7, %v3661_v38  ;;  %3697 = vst.msk [vmem:[%s7682_s7 + $0xd0] sm:$0xff] %vm2078_vm7, %v3670_v55  ;;  %v3668_v57 = vadd.f32 %v3641_v33, %v3614_v52  ;;  %v3580_v30 = vadd.f32 %v7430_v22, %v3579_v1 }
 0x412   :  { %3695 = vst.msk [vmem:[%s7682_s7 + $0xc0] sm:$0xff] %vm2078_vm7, %v3668_v57  ;;  %v3642_v10 = vmul.f32 %v3580_v30, %v7933_v60 }
 0x414   :  { %v3669_v59 = vadd.f32 %v3642_v10, %v3615_v49 }
 0x416   :  { %3696 = vst.msk [vmem:[%s7682_s7 + $0xc8] sm:$0xff] %vm2078_vm7, %v3669_v59 }

</bundles_post_ra>
